<compile_context>
chip_gen: v5e
topology: v5e:2x2
jax: 0.10.0
libtpu: 0.0.40
codegen_flags: <defaults>
</compile_context>

<pallas_src>
import functools

import jax
import jax.numpy as jnp
from jax import lax
from jax.experimental import pallas as pl
from jax.experimental.pallas import tpu as pltpu

LEAKY_SLOPE = 0.1     # nn.LeakyReLU(0.1) everywhere in this module
BN_EPS = 1e-5         # nn.BatchNorm2d default eps
CLAMP_MIN = -100.0
CLAMP_MAX = 85.0


# --------------------------------------------------------------------------- #
# Pallas kernels
# --------------------------------------------------------------------------- #
def _make_conv_block_kernel(use_bn):
    """Fused (patches @ W + b) [+ BatchNorm + LeakyReLU | + tanh] kernel."""
    if use_bn:
        def kernel(p_ref, w_ref, b_ref, g_ref, beta_ref, o_ref):
            h = jnp.dot(p_ref[...], w_ref[...],
                        preferred_element_type=jnp.float32) + b_ref[...]
            # BatchNorm2d over (N, H, W) per channel == over rows per column.
            inv_n = 1.0 / h.shape[0]
            s1 = jnp.sum(h, axis=0, keepdims=True)         # independent XLU reduce
            s2 = jnp.sum(h * h, axis=0, keepdims=True)      # independent XLU reduce
            mean = s1 * inv_n
            var = jnp.maximum(s2 * inv_n - mean * mean, 0.0)
            scale = g_ref[...] * lax.rsqrt(var + BN_EPS)    # gamma folded into scale
            h = (h - mean) * scale + beta_ref[...]
            h = jnp.maximum(h, LEAKY_SLOPE * h)             # LeakyReLU(0.1)
            o_ref[...] = h.astype(o_ref.dtype)
    else:
        def kernel(p_ref, w_ref, b_ref, o_ref):
            h = jnp.dot(p_ref[...], w_ref[...],
                        preferred_element_type=jnp.float32) + b_ref[...]
            o_ref[...] = jnp.tanh(h).astype(o_ref.dtype)
    return kernel


def _gaussian_head_kernel(z_ref, n_ref,
                          w1m_ref, b1m_ref, w2m_ref, b2m_ref,
                          w1v_ref, b1v_ref, w2v_ref, b2v_ref,
                          mu_ref, lv_ref, zs_ref):
    """Fused Gaussian head: two 2-layer MLPs + clamp + tanh + reparameterization."""
    z = z_ref[...]

    def head(w1, b1, w2, b2):
        a = jnp.dot(z, w1[...], preferred_element_type=jnp.float32) + b1[...]
        a = jnp.maximum(a, LEAKY_SLOPE * a)
        return jnp.dot(a, w2[...], preferred_element_type=jnp.float32) + b2[...]

    mu = head(w1m_ref, b1m_ref, w2m_ref, b2m_ref)
    lv = head(w1v_ref, b1v_ref, w2v_ref, b2v_ref)
    # Conditional clamp in the reference is a no-op when already in range, so an
    # unconditional clamp is exactly equivalent.
    mu = jnp.clip(mu, CLAMP_MIN, CLAMP_MAX)
    lv = jnp.clip(lv, CLAMP_MIN, CLAMP_MAX)
    lv = jnp.tanh(lv)
    std = jnp.exp(0.5 * lv)
    zs = mu + n_ref[...] * std

    mu_ref[...] = mu.astype(mu_ref.dtype)
    lv_ref[...] = lv.astype(lv_ref.dtype)
    zs_ref[...] = zs.astype(zs_ref.dtype)


# --------------------------------------------------------------------------- #
# Pallas call wrappers
# --------------------------------------------------------------------------- #
_VMEM = pl.BlockSpec(memory_space=pltpu.MemorySpace.VMEM)


def _conv_block_pallas(patches, wmat, bias, gamma, beta, *, use_bn):
    m = patches.shape[0]
    co = wmat.shape[1]
    args = [patches, wmat, bias.reshape(1, -1)]
    if use_bn:
        args += [gamma.reshape(1, -1), beta.reshape(1, -1)]
    return pl.pallas_call(
        _make_conv_block_kernel(use_bn),
        out_shape=jax.ShapeDtypeStruct((m, co), patches.dtype),
        in_specs=[_VMEM] * len(args),
        out_specs=_VMEM,
    )(*args)


def _gaussian_head_pallas(zf, noise, mu_params, var_params):
    w1m, b1m, w2m, b2m = mu_params
    w1v, b1v, w2v, b2v = var_params
    b, latent = zf.shape[0], w2m.shape[0]
    args = [zf, noise,
            w1m.T, b1m.reshape(1, -1), w2m.T, b2m.reshape(1, -1),
            w1v.T, b1v.reshape(1, -1), w2v.T, b2v.reshape(1, -1)]
    out_shape = tuple(jax.ShapeDtypeStruct((b, latent), zf.dtype) for _ in range(3))
    return pl.pallas_call(
        _gaussian_head_kernel,
        out_shape=out_shape,
        in_specs=[_VMEM] * len(args),
        out_specs=(_VMEM, _VMEM, _VMEM),
    )(*args)


# --------------------------------------------------------------------------- #
# Wrapper-side layout helpers + forward
# --------------------------------------------------------------------------- #
def _im2col_3x3_s2(x):
    """x: [B, C, H, W] -> patches [B*Ho*Wo, C*9] for a 3x3 / stride-2 / pad-1 conv."""
    bsz, c, h, w = x.shape
    ho, wo = h // 2, w // 2
    xp = jnp.pad(x, ((0, 0), (0, 0), (1, 1), (1, 1)))
    taps = []
    for dy in range(3):
        for dx in range(3):
            taps.append(xp[:, :, dy:dy + 2 * ho:2, dx:dx + 2 * wo:2])  # [B,C,Ho,Wo]
    p = jnp.stack(taps, axis=2)                 # [B, C, 9, Ho, Wo]
    p = jnp.transpose(p, (0, 3, 4, 1, 2))       # [B, Ho, Wo, C, 9]
    return p.reshape(bsz * ho * wo, c * 9)      # column index = ci*9 + dy*3 + dx


def latent_state_encoder_flow_forward(x, params, noise, *, time_steps, num_channels):
    """Pallas forward of LatentStateEncoderFlow (stochastic=True path)."""
    bsz = x.shape[0]
    if num_channels > 1:
        h_in, w_in = x.shape[2], x.shape[3]
        x = jnp.transpose(x, (0, 1, 4, 2, 3)).reshape(
            bsz, time_steps * num_channels, h_in, w_in)
    h = x[:, : time_steps * num_channels]

    n_hidden = len(params["conv"]) - 1  # 3 (conv+BN+LeakyReLU) stages, then conv+tanh
    for i, (w, b) in enumerate(params["conv"]):
        co = w.shape[0]
        ho, wo = h.shape[2] // 2, h.shape[3] // 2
        patches = _im2col_3x3_s2(h)
        wmat = w.reshape(co, -1).T              # [Cin*9, Cout]
        if i < n_hidden:
            g, be = params["bn"][i]
            out = _conv_block_pallas(patches, wmat, b, g, be, use_bn=True)
        else:
            out = _conv_block_pallas(patches, wmat, b, None, None, use_bn=False)
        h = out.reshape(bsz, ho, wo, co).transpose(0, 3, 1, 2)  # back to NCHW

    zf = h.reshape(bsz, -1)  # NCHW flatten == torch Flatten ordering
    # TODO(synk): stochastic=False (plain nn.Linear head) not wired up; default
    # stochastic=True (Gaussian head) only.
    return _gaussian_head_pallas(zf, noise, params["mu"], params["var"])


# --------------------------------------------------------------------------- #
# Deterministic synthetic parameters + pure-JAX reference for validation
# --------------------------------------------------------------------------- #
def init_encoder_params(key, time_steps, num_channels, num_filters, latent_dim):
    cin = time_steps * num_channels
    chans = [cin, num_filters, num_filters * 2, num_filters * 4, num_filters]
    params = {"conv": [], "bn": [], "mu": None, "var": None}
    kconv, khead = jax.random.split(key)
    ks = jax.random.split(kconv, 16)
    for i in range(4):
        ci, co = chans[i], chans[i + 1]
        kw, kb, kg, kbe = ks[4 * i: 4 * i + 4]
        w = 0.1 * jax.random.normal(kw, (co, ci, 3, 3), jnp.float32)
        b = 0.1 * jax.random.normal(kb, (co,), jnp.float32)
        params["conv"].append((w, b))
        if i < 3:
            g = 1.0 + 0.05 * jax.random.normal(kg, (co,), jnp.float32)
            be = 0.05 * jax.random.normal(kbe, (co,), jnp.float32)
            params["bn"].append((g, be))
    in_dim = num_filters * 4 ** 2
    hid = in_dim // 2
    km, kv = jax.random.split(khead)

    def head(k):
        k1, k2, k3, k4 = jax.random.split(k, 4)
        w1 = 0.1 * jax.random.normal(k1, (hid, in_dim), jnp.float32)
        b1 = 0.1 * jax.random.normal(k2, (hid,), jnp.float32)
        w2 = 0.1 * jax.random.normal(k3, (latent_dim, hid), jnp.float32)
        b2 = 0.1 * jax.random.normal(k4, (latent_dim,), jnp.float32)
        return (w1, b1, w2, b2)

    params["mu"] = head(km)
    params["var"] = head(kv)
    return params


def _reference_forward(x, params, noise, time_steps, num_channels):
    prec = jax.lax.Precision.HIGHEST
    h = x[:, : time_steps * num_channels]
    for i, (w, b) in enumerate(params["conv"]):
        h = lax.conv_general_dilated(h, w, (2, 2), ((1, 1), (1, 1)),
                                     dimension_numbers=("NCHW", "OIHW", "NCHW"),
                                     precision=prec)
        h = h + b[None, :, None, None]
        if i < 3:
            g, be = params["bn"][i]
            mean = jnp.mean(h, axis=(0, 2, 3), keepdims=True)
            var = jnp.mean((h - mean) ** 2, axis=(0, 2, 3), keepdims=True)
            h = (h - mean) / jnp.sqrt(var + BN_EPS) * g[None, :, None, None] \
                + be[None, :, None, None]
            h = jnp.where(h > 0, h, LEAKY_SLOPE * h)
        else:
            h = jnp.tanh(h)
    zf = h.reshape(h.shape[0], -1)

    def head(p):
        w1, b1, w2, b2 = p
        a = jnp.dot(zf, w1.T, precision=prec) + b1
        a = jnp.where(a > 0, a, LEAKY_SLOPE * a)
        return jnp.dot(a, w2.T, precision=prec) + b2

    mu = jnp.clip(head(params["mu"]), CLAMP_MIN, CLAMP_MAX)
    lv = jnp.clip(head(params["var"]), CLAMP_MIN, CLAMP_MAX)
    lv = jnp.tanh(lv)
    z = mu + noise * jnp.exp(0.5 * lv)
    return mu, lv, z


# --------------------------------------------------------------------------- #
if __name__ == "__main__":
    # Module geometry: 4 stride-2 convs reduce 64x64 -> 4x4, so the Gaussian
    # in_dim = num_filters * 4**2 requires H = W = 64.
    batch, height, width = 2, 64, 64
    time_steps, num_channels = 3, 1
    num_filters, latent_dim = 8, 16

    root = jax.random.PRNGKey(0)
    kp, kx, kn = jax.random.split(root, 3)
    params = init_encoder_params(kp, time_steps, num_channels, num_filters, latent_dim)
    x = jax.random.normal(kx, (batch, time_steps * num_channels, height, width),
                          jnp.float32)
    noise = jax.random.normal(kn, (batch, latent_dim), jnp.float32)

    fwd = jax.jit(functools.partial(latent_state_encoder_flow_forward,
                                    time_steps=time_steps,
                                    num_channels=num_channels))
    mu, logvar, z = fwd(x, params, noise)
    mu, logvar, z = jax.block_until_ready((mu, logvar, z))

    mu_r, lv_r, z_r = _reference_forward(x, params, noise, time_steps, num_channels)

    assert mu.shape == (batch, latent_dim)
    assert logvar.shape == (batch, latent_dim)
    assert z.shape == (batch, latent_dim)
    for got, ref, name in ((mu, mu_r, "mu"), (logvar, lv_r, "logvar"), (z, z_r, "z")):
        assert jnp.allclose(got, ref, atol=1e-3, rtol=1e-3), f"mismatch in {name}"

    print("KERNEL_OK")
</pallas_src>

<mosaic_0001>
module attributes {stable_mosaic.version = 11 : i64} {
  func.func @kernel(%arg0: memref<2048x27xf32, #tpu.memory_space<vmem>>, %arg1: memref<27x8xf32, #tpu.memory_space<vmem>>, %arg2: memref<1x8xf32, #tpu.memory_space<vmem>>, %arg3: memref<1x8xf32, #tpu.memory_space<vmem>>, %arg4: memref<1x8xf32, #tpu.memory_space<vmem>>, %arg5: memref<2048x8xf32, #tpu.memory_space<vmem>>) attributes {dimension_semantics = [], scalar_prefetch = 0 : i64, scratch_operands = 0 : i64, tpu.core_type = #tpu.core_type<tc>} {
    %c0 = arith.constant 0 : index
    %c0_0 = arith.constant 0 : index
    %0 = vector.load %arg0[%c0, %c0_0] : memref<2048x27xf32, #tpu.memory_space<vmem>>, vector<2048x27xf32>
    %c0_1 = arith.constant 0 : index
    %c0_2 = arith.constant 0 : index
    %1 = vector.load %arg1[%c0_1, %c0_2] : memref<27x8xf32, #tpu.memory_space<vmem>>, vector<27x8xf32>
    %cst = arith.constant dense<0.000000e+00> : vector<2048x8xf32>
    %2 = tpu.matmul %0, %1, %cst {dimension_numbers = #tpu.dot_dimension_numbers<[1], [0], [0], [1], [0, 0, 1, 1], [], []>} : vector<2048x27xf32>, vector<27x8xf32>, vector<2048x8xf32> -> vector<2048x8xf32>
    %c0_3 = arith.constant 0 : index
    %c0_4 = arith.constant 0 : index
    %3 = vector.load %arg2[%c0_3, %c0_4] : memref<1x8xf32, #tpu.memory_space<vmem>>, vector<1x8xf32>
    %4 = vector.broadcast %3 : vector<1x8xf32> to vector<2048x8xf32>
    %5 = arith.addf %2, %4 : vector<2048x8xf32>
    %cst_5 = arith.constant dense<0.000000e+00> : vector<8xf32>
    %6 = vector.multi_reduction <add>, %5, %cst_5 [0] : vector<2048x8xf32> to vector<8xf32>
    %7 = vector.shape_cast %6 : vector<8xf32> to vector<1x8xf32>
    %8 = arith.mulf %5, %5 : vector<2048x8xf32>
    %cst_6 = arith.constant dense<0.000000e+00> : vector<8xf32>
    %9 = vector.multi_reduction <add>, %8, %cst_6 [0] : vector<2048x8xf32> to vector<8xf32>
    %10 = vector.shape_cast %9 : vector<8xf32> to vector<1x8xf32>
    %cst_7 = arith.constant 4.8828125E-4 : f32
    %11 = vector.broadcast %cst_7 : f32 to vector<1x8xf32>
    %12 = arith.mulf %7, %11 : vector<1x8xf32>
    %cst_8 = arith.constant 4.8828125E-4 : f32
    %13 = vector.broadcast %cst_8 : f32 to vector<1x8xf32>
    %14 = arith.mulf %10, %13 : vector<1x8xf32>
    %15 = arith.mulf %12, %12 : vector<1x8xf32>
    %16 = arith.subf %14, %15 : vector<1x8xf32>
    %cst_9 = arith.constant 0.000000e+00 : f32
    %17 = vector.broadcast %cst_9 : f32 to vector<1x8xf32>
    %18 = arith.maximumf %16, %17 : vector<1x8xf32>
    %c0_10 = arith.constant 0 : index
    %c0_11 = arith.constant 0 : index
    %19 = vector.load %arg3[%c0_10, %c0_11] : memref<1x8xf32, #tpu.memory_space<vmem>>, vector<1x8xf32>
    %cst_12 = arith.constant 9.99999974E-6 : f32
    %20 = vector.broadcast %cst_12 : f32 to vector<1x8xf32>
    %21 = arith.addf %18, %20 : vector<1x8xf32>
    %22 = math.rsqrt %21 : vector<1x8xf32>
    %23 = arith.mulf %19, %22 : vector<1x8xf32>
    %24 = vector.broadcast %12 : vector<1x8xf32> to vector<2048x8xf32>
    %25 = arith.subf %5, %24 : vector<2048x8xf32>
    %26 = vector.broadcast %23 : vector<1x8xf32> to vector<2048x8xf32>
    %27 = arith.mulf %25, %26 : vector<2048x8xf32>
    %c0_13 = arith.constant 0 : index
    %c0_14 = arith.constant 0 : index
    %28 = vector.load %arg4[%c0_13, %c0_14] : memref<1x8xf32, #tpu.memory_space<vmem>>, vector<1x8xf32>
    %29 = vector.broadcast %28 : vector<1x8xf32> to vector<2048x8xf32>
    %30 = arith.addf %27, %29 : vector<2048x8xf32>
    %cst_15 = arith.constant 1.000000e-01 : f32
    %31 = vector.broadcast %cst_15 : f32 to vector<2048x8xf32>
    %32 = arith.mulf %31, %30 : vector<2048x8xf32>
    %33 = arith.maximumf %30, %32 : vector<2048x8xf32>
    %c0_16 = arith.constant 0 : index
    %c0_17 = arith.constant 0 : index
    %34 = vector.load %arg5[%c0_16, %c0_17] : memref<2048x8xf32, #tpu.memory_space<vmem>>, vector<2048x8xf32>
    tpu.vector_store %arg5[%c0_16, %c0_17], %33 {strides = array<i32>} : memref<2048x8xf32, #tpu.memory_space<vmem>>, vector<2048x8xf32>,
    return
  }
}

module attributes {stable_mosaic.version = 11 : i64} {
  func.func @kernel(%arg0: memref<512x72xf32, #tpu.memory_space<vmem>>, %arg1: memref<72x16xf32, #tpu.memory_space<vmem>>, %arg2: memref<1x16xf32, #tpu.memory_space<vmem>>, %arg3: memref<1x16xf32, #tpu.memory_space<vmem>>, %arg4: memref<1x16xf32, #tpu.memory_space<vmem>>, %arg5: memref<512x16xf32, #tpu.memory_space<vmem>>) attributes {dimension_semantics = [], scalar_prefetch = 0 : i64, scratch_operands = 0 : i64, tpu.core_type = #tpu.core_type<tc>} {
    %c0 = arith.constant 0 : index
    %c0_0 = arith.constant 0 : index
    %0 = vector.load %arg0[%c0, %c0_0] : memref<512x72xf32, #tpu.memory_space<vmem>>, vector<512x72xf32>
    %c0_1 = arith.constant 0 : index
    %c0_2 = arith.constant 0 : index
    %1 = vector.load %arg1[%c0_1, %c0_2] : memref<72x16xf32, #tpu.memory_space<vmem>>, vector<72x16xf32>
    %cst = arith.constant dense<0.000000e+00> : vector<512x16xf32>
    %2 = tpu.matmul %0, %1, %cst {dimension_numbers = #tpu.dot_dimension_numbers<[1], [0], [0], [1], [0, 0, 1, 1], [], []>} : vector<512x72xf32>, vector<72x16xf32>, vector<512x16xf32> -> vector<512x16xf32>
    %c0_3 = arith.constant 0 : index
    %c0_4 = arith.constant 0 : index
    %3 = vector.load %arg2[%c0_3, %c0_4] : memref<1x16xf32, #tpu.memory_space<vmem>>, vector<1x16xf32>
    %4 = vector.broadcast %3 : vector<1x16xf32> to vector<512x16xf32>
    %5 = arith.addf %2, %4 : vector<512x16xf32>
    %cst_5 = arith.constant dense<0.000000e+00> : vector<16xf32>
    %6 = vector.multi_reduction <add>, %5, %cst_5 [0] : vector<512x16xf32> to vector<16xf32>
    %7 = vector.shape_cast %6 : vector<16xf32> to vector<1x16xf32>
    %8 = arith.mulf %5, %5 : vector<512x16xf32>
    %cst_6 = arith.constant dense<0.000000e+00> : vector<16xf32>
    %9 = vector.multi_reduction <add>, %8, %cst_6 [0] : vector<512x16xf32> to vector<16xf32>
    %10 = vector.shape_cast %9 : vector<16xf32> to vector<1x16xf32>
    %cst_7 = arith.constant 0.001953125 : f32
    %11 = vector.broadcast %cst_7 : f32 to vector<1x16xf32>
    %12 = arith.mulf %7, %11 : vector<1x16xf32>
    %cst_8 = arith.constant 0.001953125 : f32
    %13 = vector.broadcast %cst_8 : f32 to vector<1x16xf32>
    %14 = arith.mulf %10, %13 : vector<1x16xf32>
    %15 = arith.mulf %12, %12 : vector<1x16xf32>
    %16 = arith.subf %14, %15 : vector<1x16xf32>
    %cst_9 = arith.constant 0.000000e+00 : f32
    %17 = vector.broadcast %cst_9 : f32 to vector<1x16xf32>
    %18 = arith.maximumf %16, %17 : vector<1x16xf32>
    %c0_10 = arith.constant 0 : index
    %c0_11 = arith.constant 0 : index
    %19 = vector.load %arg3[%c0_10, %c0_11] : memref<1x16xf32, #tpu.memory_space<vmem>>, vector<1x16xf32>
    %cst_12 = arith.constant 9.99999974E-6 : f32
    %20 = vector.broadcast %cst_12 : f32 to vector<1x16xf32>
    %21 = arith.addf %18, %20 : vector<1x16xf32>
    %22 = math.rsqrt %21 : vector<1x16xf32>
    %23 = arith.mulf %19, %22 : vector<1x16xf32>
    %24 = vector.broadcast %12 : vector<1x16xf32> to vector<512x16xf32>
    %25 = arith.subf %5, %24 : vector<512x16xf32>
    %26 = vector.broadcast %23 : vector<1x16xf32> to vector<512x16xf32>
    %27 = arith.mulf %25, %26 : vector<512x16xf32>
    %c0_13 = arith.constant 0 : index
    %c0_14 = arith.constant 0 : index
    %28 = vector.load %arg4[%c0_13, %c0_14] : memref<1x16xf32, #tpu.memory_space<vmem>>, vector<1x16xf32>
    %29 = vector.broadcast %28 : vector<1x16xf32> to vector<512x16xf32>
    %30 = arith.addf %27, %29 : vector<512x16xf32>
    %cst_15 = arith.constant 1.000000e-01 : f32
    %31 = vector.broadcast %cst_15 : f32 to vector<512x16xf32>
    %32 = arith.mulf %31, %30 : vector<512x16xf32>
    %33 = arith.maximumf %30, %32 : vector<512x16xf32>
    %c0_16 = arith.constant 0 : index
    %c0_17 = arith.constant 0 : index
    %34 = vector.load %arg5[%c0_16, %c0_17] : memref<512x16xf32, #tpu.memory_space<vmem>>, vector<512x16xf32>
    tpu.vector_store %arg5[%c0_16, %c0_17], %33 {strides = array<i32>} : memref<512x16xf32, #tpu.memory_space<vmem>>, vector<512x16xf32>,
    return
  }
}

module attributes {stable_mosaic.version = 11 : i64} {
  func.func @kernel(%arg0: memref<128x144xf32, #tpu.memory_space<vmem>>, %arg1: memref<144x32xf32, #tpu.memory_space<vmem>>, %arg2: memref<1x32xf32, #tpu.memory_space<vmem>>, %arg3: memref<1x32xf32, #tpu.memory_space<vmem>>, %arg4: memref<1x32xf32, #tpu.memory_space<vmem>>, %arg5: memref<128x32xf32, #tpu.memory_space<vmem>>) attributes {dimension_semantics = [], scalar_prefetch = 0 : i64, scratch_operands = 0 : i64, tpu.core_type = #tpu.core_type<tc>} {
    %c0 = arith.constant 0 : index
    %c0_0 = arith.constant 0 : index
    %0 = vector.load %arg0[%c0, %c0_0] : memref<128x144xf32, #tpu.memory_space<vmem>>, vector<128x144xf32>
    %c0_1 = arith.constant 0 : index
    %c0_2 = arith.constant 0 : index
    %1 = vector.load %arg1[%c0_1, %c0_2] : memref<144x32xf32, #tpu.memory_space<vmem>>, vector<144x32xf32>
    %cst = arith.constant dense<0.000000e+00> : vector<128x32xf32>
    %2 = tpu.matmul %0, %1, %cst {dimension_numbers = #tpu.dot_dimension_numbers<[1], [0], [0], [1], [0, 0, 1, 1], [], []>} : vector<128x144xf32>, vector<144x32xf32>, vector<128x32xf32> -> vector<128x32xf32>
    %c0_3 = arith.constant 0 : index
    %c0_4 = arith.constant 0 : index
    %3 = vector.load %arg2[%c0_3, %c0_4] : memref<1x32xf32, #tpu.memory_space<vmem>>, vector<1x32xf32>
    %4 = vector.broadcast %3 : vector<1x32xf32> to vector<128x32xf32>
    %5 = arith.addf %2, %4 : vector<128x32xf32>
    %cst_5 = arith.constant dense<0.000000e+00> : vector<32xf32>
    %6 = vector.multi_reduction <add>, %5, %cst_5 [0] : vector<128x32xf32> to vector<32xf32>
    %7 = vector.shape_cast %6 : vector<32xf32> to vector<1x32xf32>
    %8 = arith.mulf %5, %5 : vector<128x32xf32>
    %cst_6 = arith.constant dense<0.000000e+00> : vector<32xf32>
    %9 = vector.multi_reduction <add>, %8, %cst_6 [0] : vector<128x32xf32> to vector<32xf32>
    %10 = vector.shape_cast %9 : vector<32xf32> to vector<1x32xf32>
    %cst_7 = arith.constant 7.812500e-03 : f32
    %11 = vector.broadcast %cst_7 : f32 to vector<1x32xf32>
    %12 = arith.mulf %7, %11 : vector<1x32xf32>
    %cst_8 = arith.constant 7.812500e-03 : f32
    %13 = vector.broadcast %cst_8 : f32 to vector<1x32xf32>
    %14 = arith.mulf %10, %13 : vector<1x32xf32>
    %15 = arith.mulf %12, %12 : vector<1x32xf32>
    %16 = arith.subf %14, %15 : vector<1x32xf32>
    %cst_9 = arith.constant 0.000000e+00 : f32
    %17 = vector.broadcast %cst_9 : f32 to vector<1x32xf32>
    %18 = arith.maximumf %16, %17 : vector<1x32xf32>
    %c0_10 = arith.constant 0 : index
    %c0_11 = arith.constant 0 : index
    %19 = vector.load %arg3[%c0_10, %c0_11] : memref<1x32xf32, #tpu.memory_space<vmem>>, vector<1x32xf32>
    %cst_12 = arith.constant 9.99999974E-6 : f32
    %20 = vector.broadcast %cst_12 : f32 to vector<1x32xf32>
    %21 = arith.addf %18, %20 : vector<1x32xf32>
    %22 = math.rsqrt %21 : vector<1x32xf32>
    %23 = arith.mulf %19, %22 : vector<1x32xf32>
    %24 = vector.broadcast %12 : vector<1x32xf32> to vector<128x32xf32>
    %25 = arith.subf %5, %24 : vector<128x32xf32>
    %26 = vector.broadcast %23 : vector<1x32xf32> to vector<128x32xf32>
    %27 = arith.mulf %25, %26 : vector<128x32xf32>
    %c0_13 = arith.constant 0 : index
    %c0_14 = arith.constant 0 : index
    %28 = vector.load %arg4[%c0_13, %c0_14] : memref<1x32xf32, #tpu.memory_space<vmem>>, vector<1x32xf32>
    %29 = vector.broadcast %28 : vector<1x32xf32> to vector<128x32xf32>
    %30 = arith.addf %27, %29 : vector<128x32xf32>
    %cst_15 = arith.constant 1.000000e-01 : f32
    %31 = vector.broadcast %cst_15 : f32 to vector<128x32xf32>
    %32 = arith.mulf %31, %30 : vector<128x32xf32>
    %33 = arith.maximumf %30, %32 : vector<128x32xf32>
    %c0_16 = arith.constant 0 : index
    %c0_17 = arith.constant 0 : index
    %34 = vector.load %arg5[%c0_16, %c0_17] : memref<128x32xf32, #tpu.memory_space<vmem>>, vector<128x32xf32>
    tpu.vector_store %arg5[%c0_16, %c0_17], %33 {strides = array<i32>} : memref<128x32xf32, #tpu.memory_space<vmem>>, vector<128x32xf32>,
    return
  }
}

module attributes {stable_mosaic.version = 11 : i64} {
  func.func @kernel(%arg0: memref<32x288xf32, #tpu.memory_space<vmem>>, %arg1: memref<288x8xf32, #tpu.memory_space<vmem>>, %arg2: memref<1x8xf32, #tpu.memory_space<vmem>>, %arg3: memref<32x8xf32, #tpu.memory_space<vmem>>) attributes {dimension_semantics = [], scalar_prefetch = 0 : i64, scratch_operands = 0 : i64, tpu.core_type = #tpu.core_type<tc>} {
    %c0 = arith.constant 0 : index
    %c0_0 = arith.constant 0 : index
    %0 = vector.load %arg0[%c0, %c0_0] : memref<32x288xf32, #tpu.memory_space<vmem>>, vector<32x288xf32>
    %c0_1 = arith.constant 0 : index
    %c0_2 = arith.constant 0 : index
    %1 = vector.load %arg1[%c0_1, %c0_2] : memref<288x8xf32, #tpu.memory_space<vmem>>, vector<288x8xf32>
    %cst = arith.constant dense<0.000000e+00> : vector<32x8xf32>
    %2 = tpu.matmul %0, %1, %cst {dimension_numbers = #tpu.dot_dimension_numbers<[1], [0], [0], [1], [0, 0, 1, 1], [], []>} : vector<32x288xf32>, vector<288x8xf32>, vector<32x8xf32> -> vector<32x8xf32>
    %c0_3 = arith.constant 0 : index
    %c0_4 = arith.constant 0 : index
    %3 = vector.load %arg2[%c0_3, %c0_4] : memref<1x8xf32, #tpu.memory_space<vmem>>, vector<1x8xf32>
    %4 = vector.broadcast %3 : vector<1x8xf32> to vector<32x8xf32>
    %5 = arith.addf %2, %4 : vector<32x8xf32>
    %6 = math.tanh %5 : vector<32x8xf32>
    %c0_5 = arith.constant 0 : index
    %c0_6 = arith.constant 0 : index
    %7 = vector.load %arg3[%c0_5, %c0_6] : memref<32x8xf32, #tpu.memory_space<vmem>>, vector<32x8xf32>
    tpu.vector_store %arg3[%c0_5, %c0_6], %6 {strides = array<i32>} : memref<32x8xf32, #tpu.memory_space<vmem>>, vector<32x8xf32>,
    return
  }
}

module attributes {stable_mosaic.version = 11 : i64} {
  func.func @_gaussian_head_kernel(%arg0: memref<2x128xf32, #tpu.memory_space<vmem>>, %arg1: memref<2x16xf32, #tpu.memory_space<vmem>>, %arg2: memref<128x64xf32, #tpu.memory_space<vmem>>, %arg3: memref<1x64xf32, #tpu.memory_space<vmem>>, %arg4: memref<64x16xf32, #tpu.memory_space<vmem>>, %arg5: memref<1x16xf32, #tpu.memory_space<vmem>>, %arg6: memref<128x64xf32, #tpu.memory_space<vmem>>, %arg7: memref<1x64xf32, #tpu.memory_space<vmem>>, %arg8: memref<64x16xf32, #tpu.memory_space<vmem>>, %arg9: memref<1x16xf32, #tpu.memory_space<vmem>>, %arg10: memref<2x16xf32, #tpu.memory_space<vmem>>, %arg11: memref<2x16xf32, #tpu.memory_space<vmem>>, %arg12: memref<2x16xf32, #tpu.memory_space<vmem>>) attributes {dimension_semantics = [], scalar_prefetch = 0 : i64, scratch_operands = 0 : i64, tpu.core_type = #tpu.core_type<tc>} {
    %c0 = arith.constant 0 : index
    %c0_0 = arith.constant 0 : index
    %0 = vector.load %arg0[%c0, %c0_0] : memref<2x128xf32, #tpu.memory_space<vmem>>, vector<2x128xf32>
    %c0_1 = arith.constant 0 : index
    %c0_2 = arith.constant 0 : index
    %1 = vector.load %arg2[%c0_1, %c0_2] : memref<128x64xf32, #tpu.memory_space<vmem>>, vector<128x64xf32>
    %cst = arith.constant dense<0.000000e+00> : vector<2x64xf32>
    %2 = tpu.matmul %0, %1, %cst {dimension_numbers = #tpu.dot_dimension_numbers<[1], [0], [0], [1], [0, 0, 1, 1], [], []>} : vector<2x128xf32>, vector<128x64xf32>, vector<2x64xf32> -> vector<2x64xf32>
    %c0_3 = arith.constant 0 : index
    %c0_4 = arith.constant 0 : index
    %3 = vector.load %arg3[%c0_3, %c0_4] : memref<1x64xf32, #tpu.memory_space<vmem>>, vector<1x64xf32>
    %4 = vector.broadcast %3 : vector<1x64xf32> to vector<2x64xf32>
    %5 = arith.addf %2, %4 : vector<2x64xf32>
    %cst_5 = arith.constant 1.000000e-01 : f32
    %6 = vector.broadcast %cst_5 : f32 to vector<2x64xf32>
    %7 = arith.mulf %6, %5 : vector<2x64xf32>
    %8 = arith.maximumf %5, %7 : vector<2x64xf32>
    %c0_6 = arith.constant 0 : index
    %c0_7 = arith.constant 0 : index
    %9 = vector.load %arg4[%c0_6, %c0_7] : memref<64x16xf32, #tpu.memory_space<vmem>>, vector<64x16xf32>
    %cst_8 = arith.constant dense<0.000000e+00> : vector<2x16xf32>
    %10 = tpu.matmul %8, %9, %cst_8 {dimension_numbers = #tpu.dot_dimension_numbers<[1], [0], [0], [1], [0, 0, 1, 1], [], []>} : vector<2x64xf32>, vector<64x16xf32>, vector<2x16xf32> -> vector<2x16xf32>
    %c0_9 = arith.constant 0 : index
    %c0_10 = arith.constant 0 : index
    %11 = vector.load %arg5[%c0_9, %c0_10] : memref<1x16xf32, #tpu.memory_space<vmem>>, vector<1x16xf32>
    %12 = vector.broadcast %11 : vector<1x16xf32> to vector<2x16xf32>
    %13 = arith.addf %10, %12 : vector<2x16xf32>
    %c0_11 = arith.constant 0 : index
    %c0_12 = arith.constant 0 : index
    %14 = vector.load %arg6[%c0_11, %c0_12] : memref<128x64xf32, #tpu.memory_space<vmem>>, vector<128x64xf32>
    %cst_13 = arith.constant dense<0.000000e+00> : vector<2x64xf32>
    %15 = tpu.matmul %0, %14, %cst_13 {dimension_numbers = #tpu.dot_dimension_numbers<[1], [0], [0], [1], [0, 0, 1, 1], [], []>} : vector<2x128xf32>, vector<128x64xf32>, vector<2x64xf32> -> vector<2x64xf32>
    %c0_14 = arith.constant 0 : index
    %c0_15 = arith.constant 0 : index
    %16 = vector.load %arg7[%c0_14, %c0_15] : memref<1x64xf32, #tpu.memory_space<vmem>>, vector<1x64xf32>
    %17 = vector.broadcast %16 : vector<1x64xf32> to vector<2x64xf32>
    %18 = arith.addf %15, %17 : vector<2x64xf32>
    %cst_16 = arith.constant 1.000000e-01 : f32
    %19 = vector.broadcast %cst_16 : f32 to vector<2x64xf32>
    %20 = arith.mulf %19, %18 : vector<2x64xf32>
    %21 = arith.maximumf %18, %20 : vector<2x64xf32>
    %c0_17 = arith.constant 0 : index
    %c0_18 = arith.constant 0 : index
    %22 = vector.load %arg8[%c0_17, %c0_18] : memref<64x16xf32, #tpu.memory_space<vmem>>, vector<64x16xf32>
    %cst_19 = arith.constant dense<0.000000e+00> : vector<2x16xf32>
    %23 = tpu.matmul %21, %22, %cst_19 {dimension_numbers = #tpu.dot_dimension_numbers<[1], [0], [0], [1], [0, 0, 1, 1], [], []>} : vector<2x64xf32>, vector<64x16xf32>, vector<2x16xf32> -> vector<2x16xf32>
    %c0_20 = arith.constant 0 : index
    %c0_21 = arith.constant 0 : index
    %24 = vector.load %arg9[%c0_20, %c0_21] : memref<1x16xf32, #tpu.memory_space<vmem>>, vector<1x16xf32>
    %25 = vector.broadcast %24 : vector<1x16xf32> to vector<2x16xf32>
    %26 = arith.addf %23, %25 : vector<2x16xf32>
    %cst_22 = arith.constant -1.000000e+02 : f32
    %cst_23 = arith.constant 8.500000e+01 : f32
    %27 = vector.broadcast %cst_22 : f32 to vector<2x16xf32>
    %28 = arith.maximumf %27, %13 : vector<2x16xf32>
    %29 = vector.broadcast %cst_23 : f32 to vector<2x16xf32>
    %30 = arith.minimumf %29, %28 : vector<2x16xf32>
    %cst_24 = arith.constant -1.000000e+02 : f32
    %cst_25 = arith.constant 8.500000e+01 : f32
    %31 = vector.broadcast %cst_24 : f32 to vector<2x16xf32>
    %32 = arith.maximumf %31, %26 : vector<2x16xf32>
    %33 = vector.broadcast %cst_25 : f32 to vector<2x16xf32>
    %34 = arith.minimumf %33, %32 : vector<2x16xf32>
    %35 = math.tanh %34 : vector<2x16xf32>
    %cst_26 = arith.constant 5.000000e-01 : f32
    %36 = vector.broadcast %cst_26 : f32 to vector<2x16xf32>
    %37 = arith.mulf %36, %35 : vector<2x16xf32>
    %38 = math.exp %37 : vector<2x16xf32>
    %c0_27 = arith.constant 0 : index
    %c0_28 = arith.constant 0 : index
    %39 = vector.load %arg1[%c0_27, %c0_28] : memref<2x16xf32, #tpu.memory_space<vmem>>, vector<2x16xf32>
    %40 = arith.mulf %39, %38 : vector<2x16xf32>
    %41 = arith.addf %30, %40 : vector<2x16xf32>
    %c0_29 = arith.constant 0 : index
    %c0_30 = arith.constant 0 : index
    %42 = vector.load %arg10[%c0_29, %c0_30] : memref<2x16xf32, #tpu.memory_space<vmem>>, vector<2x16xf32>
    tpu.vector_store %arg10[%c0_29, %c0_30], %30 {strides = array<i32>} : memref<2x16xf32, #tpu.memory_space<vmem>>, vector<2x16xf32>,
    %c0_31 = arith.constant 0 : index
    %c0_32 = arith.constant 0 : index
    %43 = vector.load %arg11[%c0_31, %c0_32] : memref<2x16xf32, #tpu.memory_space<vmem>>, vector<2x16xf32>
    tpu.vector_store %arg11[%c0_31, %c0_32], %35 {strides = array<i32>} : memref<2x16xf32, #tpu.memory_space<vmem>>, vector<2x16xf32>,
    %c0_33 = arith.constant 0 : index
    %c0_34 = arith.constant 0 : index
    %44 = vector.load %arg12[%c0_33, %c0_34] : memref<2x16xf32, #tpu.memory_space<vmem>>, vector<2x16xf32>
    tpu.vector_store %arg12[%c0_33, %c0_34], %41 {strides = array<i32>} : memref<2x16xf32, #tpu.memory_space<vmem>>, vector<2x16xf32>,
    return
  }
}

</mosaic_0001>

<bundles_post_ra>
// kernel: latent_state_encoder_flow_forward.5
= control target key start
LH: loop header
LB: loop body
LE: loop exit
PB: predicated region body
PF: predicated region fallthrough
CT: control target
= control target key end

     0   :  { %vm1053_vm0 = vcmask 1042432   ;;  %vm284_vm1 = vcmask 220160   ;;  %vm1842_vm2 = vcmask 64512   ;;  %s13157_s1 = inlined_call_operand.vmem [shape: f32[27,8], index: 1, kind: input, shape index: {}]   ;;  %s13158_s0 = inlined_call_operand.vmem [shape: f32[2048,27], index: 0, kind: input, shape index: {}]   ;;  %s13159_s2 = inlined_call_operand.vmem [shape: f32[1,8], index: 2, kind: input, shape index: {}]   ;;  %s13160_s4 = inlined_call_operand.vmem [shape: f32[1,8], index: 4, kind: input, shape index: {}]   ;;  %s13161_s3 = inlined_call_operand.vmem [shape: f32[1,8], index: 3, kind: input, shape index: {}]   ;;  %s13162_s5 = inlined_call_operand.vmem [shape: f32[2048,8], index: 5, kind: output, shape index: {}]  }
   0x1   :  { %v279_v0 = vld [vmem:[%s13157_s1 + $0x18] sm:$0x7]  ;;  %v278_v1 = vld [vmem:[%s13157_s1 + $0x10] sm:$0xff]  ;;  %v277_v2 = vld [vmem:[%s13157_s1 + $0x8] sm:$0xff] }
   0x2   :  { %4698 = vmatpush.msk.msra.mxu0 %vm1053_vm0, %v279_v0  ;;  %4955 = vmatpush.msk.msra.mxu1 %vm1053_vm0, %v279_v0  ;;  %v276_v3 = vld [vmem:[%s13157_s1] sm:$0xff]  ;;  %v21_v5 = vld [vmem:[%s13158_s0 + $0x8] sm:$0xff]  ;;  %v22_v6 = vld [vmem:[%s13158_s0 + $0x10] sm:$0xff] }
   0x3   :  { %4956 = vmatpush.msk.msra.mxu2 %vm1053_vm0, %v279_v0  ;;  %4957 = vmatpush.msk.msra.mxu3 %vm1053_vm0, %v279_v0  ;;  %v20_v4 = vld [vmem:[%s13158_s0] sm:$0xff]  ;;  %v23_v7 = vld [vmem:[%s13158_s0 + $0x18] sm:$0xff]  ;;  %v25_v9 = vld [vmem:[%s13158_s0 + $0x28] sm:$0xff] }
   0x4   :  { %1070 = vmatpush.msra.mxu0 %v278_v1  ;;  %4958 = vmatpush.msra.mxu1 %v278_v1  ;;  %v24_v8 = vld [vmem:[%s13158_s0 + $0x20] sm:$0xff]  ;;  %v26_v10 = vld [vmem:[%s13158_s0 + $0x30] sm:$0xff]  ;;  %v27_v11 = vld [vmem:[%s13158_s0 + $0x38] sm:$0xff] }
   0x5   :  { %4959 = vmatpush.msra.mxu2 %v278_v1  ;;  %4960 = vmatpush.msra.mxu3 %v278_v1  ;;  %v28_v12 = vld [vmem:[%s13158_s0 + $0x40] sm:$0xff]  ;;  %v29_v13 = vld [vmem:[%s13158_s0 + $0x48] sm:$0xff]  ;;  %v30_v14 = vld [vmem:[%s13158_s0 + $0x50] sm:$0xff] }
   0x6   :  { %1071 = vmatpush.msra.mxu0 %v277_v2  ;;  %4961 = vmatpush.msra.mxu1 %v277_v2  ;;  %v31_v15 = vld [vmem:[%s13158_s0 + $0x58] sm:$0xff]  ;;  %v32_v16 = vld [vmem:[%s13158_s0 + $0x60] sm:$0xff]  ;;  %v33_v18 = vld [vmem:[%s13158_s0 + $0x68] sm:$0xff] }
   0x7   :  { %4962 = vmatpush.msra.mxu2 %v277_v2  ;;  %4963 = vmatpush.msra.mxu3 %v277_v2  ;;  %v84_v17 = vld [vmem:[%s13158_s0 + $0x200] sm:$0xff]  ;;  %v85_v19 = vld [vmem:[%s13158_s0 + $0x208] sm:$0xff]  ;;  %v34_v20 = vld [vmem:[%s13158_s0 + $0x70] sm:$0xff] }
   0x8   :  { %1072 = vmatpush.msra.mxu0 %v276_v3  ;;  %4964 = vmatpush.msra.mxu1 %v276_v3  ;;  %v86_v21 = vld [vmem:[%s13158_s0 + $0x210] sm:$0xff]  ;;  %v35_v22 = vld [vmem:[%s13158_s0 + $0x78] sm:$0xff]  ;;  %v36_v25 = vld [vmem:[%s13158_s0 + $0x80] sm:$0xff] }
   0x9   :  { %4699 = vmatmul.msk.f32.vlgmr.msra.gmra.mxu0 %vm284_vm1, %v20_v4  ;;  %4965 = vmatpush.msra.mxu2 %v276_v3  ;;  %v87_v23 = vld [vmem:[%s13158_s0 + $0x218] sm:$0xff]  ;;  %v88_v26 = vld [vmem:[%s13158_s0 + $0x220] sm:$0xff]  ;;  %v37_v28 = vld [vmem:[%s13158_s0 + $0x88] sm:$0xff] }
   0xa   :  { %4966 = vmatpush.msra.mxu3 %v276_v3  ;;  %4763 = vmatmul.msk.f32.vlgmr.msra.gmra.mxu1 %vm284_vm1, %v84_v17  ;;  %v89_v29 = vld [vmem:[%s13158_s0 + $0x228] sm:$0xff]  ;;  %v38_v31 = vld [vmem:[%s13158_s0 + $0x90] sm:$0xff]  ;;  %v39_v34 = vld [vmem:[%s13158_s0 + $0x98] sm:$0xff] }
   0xb   :  { %v90_v32 = vld [vmem:[%s13158_s0 + $0x230] sm:$0xff]  ;;  %v91_v35 = vld [vmem:[%s13158_s0 + $0x238] sm:$0xff]  ;;  %v40_v37 = vld [vmem:[%s13158_s0 + $0xa0] sm:$0xff] }
   0xc   :  { %v92_v38 = vld [vmem:[%s13158_s0 + $0x240] sm:$0xff]  ;;  %v41_v40 = vld [vmem:[%s13158_s0 + $0xa8] sm:$0xff]  ;;  %v42_v43 = vld [vmem:[%s13158_s0 + $0xb0] sm:$0xff] }
   0xd   :  { %v93_v41 = vld [vmem:[%s13158_s0 + $0x248] sm:$0xff]  ;;  %v94_v44 = vld [vmem:[%s13158_s0 + $0x250] sm:$0xff]  ;;  %v43_v46 = vld [vmem:[%s13158_s0 + $0xb8] sm:$0xff] }
   0xe   :  { %v95_v47 = vld [vmem:[%s13158_s0 + $0x258] sm:$0xff]  ;;  %v44_v49 = vld [vmem:[%s13158_s0 + $0xc0] sm:$0xff]  ;;  %v45_v52 = vld [vmem:[%s13158_s0 + $0xc8] sm:$0xff] }
   0xf   :  { %v96_v50 = vld [vmem:[%s13158_s0 + $0x260] sm:$0xff]  ;;  %v97_v53 = vld [vmem:[%s13158_s0 + $0x268] sm:$0xff]  ;;  %v46_v55 = vld [vmem:[%s13158_s0 + $0xd0] sm:$0xff] }
  0x10   :  { %v98_v56 = vld [vmem:[%s13158_s0 + $0x270] sm:$0xff]  ;;  %v47_v58 = vld [vmem:[%s13158_s0 + $0xd8] sm:$0xff]  ;;  %v148_v60 = vld [vmem:[%s13158_s0 + $0x400] sm:$0xff] }
  0x11   :  { %4700 = vmatmul.msk.f32.gmra.mxu0 %vm284_vm1, %v21_v5  ;;  %v99_v59 = vld [vmem:[%s13158_s0 + $0x278] sm:$0xff]  ;;  %4827 = vmatmul.msk.f32.vlgmr.msra.gmra.mxu2 %vm284_vm1, %v148_v60  ;;  %v48_v62 = vld [vmem:[%s13158_s0 + $0xe0] sm:$0xff]  ;;  %v149_v1 = vld [vmem:[%s13158_s0 + $0x408] sm:$0xff] }
  0x12   :  { %4764 = vmatmul.msk.f32.gmra.mxu1 %vm284_vm1, %v85_v19  ;;  %v100_v0 = vld [vmem:[%s13158_s0 + $0x280] sm:$0xff]  ;;  %v49_v3 = vld [vmem:[%s13158_s0 + $0xe8] sm:$0xff]  ;;  %v58_v60 = vld [vmem:[%s13158_s0 + $0x130] sm:$0xff] }
  0x13   :  { %v101_v5 = vld [vmem:[%s13158_s0 + $0x288] sm:$0xff] }
  0x19   :  { %4701 = vmatmul.msk.f32.gmra.mxu0 %vm284_vm1, %v22_v6  ;;  %4828 = vmatmul.msk.f32.gmra.mxu2 %vm284_vm1, %v149_v1  ;;  %v150_v6 = vld [vmem:[%s13158_s0 + $0x410] sm:$0xff]  ;;  %v159_v1 = vld [vmem:[%s13158_s0 + $0x458] sm:$0xff] }
  0x1a   :  { %4765 = vmatmul.msk.f32.gmra.mxu1 %vm284_vm1, %v86_v21  ;;  %v153_v21 = vld [vmem:[%s13158_s0 + $0x428] sm:$0xff] }
  0x21   :  { %4702 = vmatmul.msk.f32.gmra.mxu0 %vm284_vm1, %v23_v7  ;;  %4829 = vmatmul.msk.f32.gmra.mxu2 %vm284_vm1, %v150_v6 }
  0x22   :  { %4766 = vmatmul.msk.f32.gmra.mxu1 %vm284_vm1, %v87_v23  ;;  %v53_v23 = vld [vmem:[%s13158_s0 + $0x108] sm:$0xff] }
  0x29   :  { %4703 = vmatmul.msk.f32.gmra.mxu0 %vm284_vm1, %v24_v8  ;;  %v50_v8 = vld [vmem:[%s13158_s0 + $0xf0] sm:$0xff] }
  0x2a   :  { %4767 = vmatmul.msk.f32.gmra.mxu1 %vm284_vm1, %v88_v26  ;;  %v105_v26 = vld [vmem:[%s13158_s0 + $0x2a8] sm:$0xff] }
  0x31   :  { %4704 = vmatmul.msk.f32.gmra.mxu0 %vm284_vm1, %v25_v9 }
  0x32   :  { %4768 = vmatmul.msk.f32.gmra.mxu1 %vm284_vm1, %v89_v29 }
  0x39   :  { %4705 = vmatmul.msk.f32.gmra.mxu0 %vm284_vm1, %v26_v10  ;;  %v102_v10 = vld [vmem:[%s13158_s0 + $0x290] sm:$0xff] }
  0x3a   :  { %4769 = vmatmul.msk.f32.gmra.mxu1 %vm284_vm1, %v90_v32 }
  0x41   :  { %4706 = vmatmul.msk.f32.gmra.mxu0 %vm284_vm1, %v27_v11  ;;  %v151_v11 = vld [vmem:[%s13158_s0 + $0x418] sm:$0xff] }
  0x42   :  { %4770 = vmatmul.msk.f32.gmra.mxu1 %vm284_vm1, %v91_v35  ;;  %4830 = vmatmul.msk.f32.gmra.mxu2 %vm284_vm1, %v151_v11  ;;  %v155_v35 = vld [vmem:[%s13158_s0 + $0x438] sm:$0xff] }
  0x49   :  { %4707 = vmatmul.msk.f32.gmra.mxu0 %vm284_vm1, %v28_v12 }
  0x4a   :  { %4771 = vmatmul.msk.f32.gmra.mxu1 %vm284_vm1, %v92_v38  ;;  %v55_v38 = vld [vmem:[%s13158_s0 + $0x118] sm:$0xff] }
  0x51   :  { %4708 = vmatmul.msk.f32.gmra.mxu0 %vm284_vm1, %v29_v13  ;;  %v51_v13 = vld [vmem:[%s13158_s0 + $0xf8] sm:$0xff] }
  0x52   :  { %4772 = vmatmul.msk.f32.gmra.mxu1 %vm284_vm1, %v93_v41  ;;  %v107_v41 = vld [vmem:[%s13158_s0 + $0x2b8] sm:$0xff] }
  0x59   :  { %4709 = vmatmul.msk.f32.gmra.mxu0 %vm284_vm1, %v30_v14 }
  0x5a   :  { %4773 = vmatmul.msk.f32.gmra.mxu1 %vm284_vm1, %v94_v44 }
  0x61   :  { %4710 = vmatmul.msk.f32.gmra.mxu0 %vm284_vm1, %v31_v15  ;;  %v103_v15 = vld [vmem:[%s13158_s0 + $0x298] sm:$0xff] }
  0x62   :  { %4774 = vmatmul.msk.f32.gmra.mxu1 %vm284_vm1, %v95_v47 }
  0x69   :  { %4711 = vmatmul.msk.f32.gmra.mxu0 %vm284_vm1, %v32_v16  ;;  %v152_v16 = vld [vmem:[%s13158_s0 + $0x420] sm:$0xff] }
  0x6a   :  { %4775 = vmatmul.msk.f32.gmra.mxu1 %vm284_vm1, %v96_v50  ;;  %4831 = vmatmul.msk.f32.gmra.mxu2 %vm284_vm1, %v152_v16  ;;  %v157_v50 = vld [vmem:[%s13158_s0 + $0x448] sm:$0xff]  ;;  %v112_v16 = vld [vmem:[%s13158_s0 + $0x2e0] sm:$0xff] }
  0x71   :  { %4712 = vmatmul.msk.f32.gmra.mxu0 %vm284_vm1, %v33_v18  ;;  %v52_v18 = vld [vmem:[%s13158_s0 + $0x100] sm:$0xff] }
  0x72   :  { %4776 = vmatmul.msk.f32.gmra.mxu1 %vm284_vm1, %v97_v53  ;;  %4832 = vmatmul.msk.f32.gmra.mxu2 %vm284_vm1, %v153_v21  ;;  %v57_v53 = vld [vmem:[%s13158_s0 + $0x128] sm:$0xff] }
  0x73   :  { %v61_v21 = vld [vmem:[%s13158_s0 + $0x148] sm:$0xff] }
  0x79   :  { %4713 = vmatmul.msk.f32.gmra.mxu0 %vm284_vm1, %v34_v20  ;;  %v104_v20 = vld [vmem:[%s13158_s0 + $0x2a0] sm:$0xff] }
  0x7a   :  { %4777 = vmatmul.msk.f32.gmra.mxu1 %vm284_vm1, %v98_v56  ;;  %v109_v56 = vld [vmem:[%s13158_s0 + $0x2c8] sm:$0xff] }
  0x81   :  { %4714 = vmatmul.msk.f32.gmra.mxu0 %vm284_vm1, %v35_v22 }
  0x82   :  { %4778 = vmatmul.msk.f32.gmra.mxu1 %vm284_vm1, %v99_v59 }
  0x86   :  { %v5097_v24 = vpop.f32.mrf.mxu0 }
  0x87   :  { %v5226_v63 = vpop.f32.mrf.mxu1 }
  0x89   :  { %4715 = vmatmul.msk.f32.gmra.mxu0 %vm284_vm1, %v36_v25 }
  0x8a   :  { %4779 = vmatmul.msk.f32.gmra.mxu1 %vm284_vm1, %v100_v0  ;;  %v110_v0 = vld [vmem:[%s13158_s0 + $0x2d0] sm:$0xff] }
  0x8e   :  { %v5107_v27 = vpop.f32.mrf.mxu0 }
  0x8f   :  { %v5242_v4 = vpop.f32.mrf.mxu1 }
  0x90   :  { %13806 = vst [vmem:[#allocation2_spill] sm:$0xff] %v5242_v4 }
  0x91   :  { %4716 = vmatmul.msk.f32.gmra.mxu0 %vm284_vm1, %v37_v28  ;;  %v154_v28 = vld [vmem:[%s13158_s0 + $0x430] sm:$0xff] }
  0x92   :  { %4780 = vmatmul.msk.f32.gmra.mxu1 %vm284_vm1, %v101_v5  ;;  %4833 = vmatmul.msk.f32.gmra.mxu2 %vm284_vm1, %v154_v28  ;;  %v59_v5 = vld [vmem:[%s13158_s0 + $0x138] sm:$0xff]  ;;  %v162_v28 = vld [vmem:[%s13158_s0 + $0x470] sm:$0xff] }
  0x96   :  { %v5117_v30 = vpop.f32.mrf.mxu0 }
  0x97   :  { %v5258_v9 = vpop.f32.mrf.mxu1 }
  0x98   :  { %13807 = vst [vmem:[#allocation3_spill] sm:$0xff] %v5258_v9 }
  0x99   :  { %4717 = vmatmul.msk.f32.gmra.mxu0 %vm284_vm1, %v38_v31  ;;  %v54_v31 = vld [vmem:[%s13158_s0 + $0x110] sm:$0xff] }
  0x9a   :  { %4781 = vmatmul.msk.f32.gmra.mxu1 %vm284_vm1, %v102_v10  ;;  %4834 = vmatmul.msk.f32.gmra.mxu2 %vm284_vm1, %v155_v35  ;;  %v160_v10 = vld [vmem:[%s13158_s0 + $0x460] sm:$0xff] }
  0x9e   :  { %v5127_v33 = vpop.f32.mrf.mxu0 }
  0x9f   :  { %v5274_v14 = vpop.f32.mrf.mxu1 }
  0xa0   :  { %13808 = vst [vmem:[#allocation4_spill] sm:$0xff] %v5274_v14 }
  0xa1   :  { %4718 = vmatmul.msk.f32.gmra.mxu0 %vm284_vm1, %v39_v34  ;;  %v106_v34 = vld [vmem:[%s13158_s0 + $0x2b0] sm:$0xff] }
  0xa2   :  { %4782 = vmatmul.msk.f32.gmra.mxu1 %vm284_vm1, %v103_v15 }
  0xa6   :  { %v5137_v36 = vpop.f32.mrf.mxu0 }
  0xa7   :  { %v5290_v19 = vpop.f32.mrf.mxu1 }
  0xa8   :  { %13809 = vst [vmem:[#allocation5_spill] sm:$0xff] %v5290_v19 }
  0xa9   :  { %4719 = vmatmul.msk.f32.gmra.mxu0 %vm284_vm1, %v40_v37 }
  0xaa   :  { %4783 = vmatmul.msk.f32.gmra.mxu1 %vm284_vm1, %v104_v20 }
  0xae   :  { %v5147_v39 = vpop.f32.mrf.mxu0 }
  0xaf   :  { %v5306_v25 = vpop.f32.mrf.mxu1 }
  0xb0   :  { %13810 = vst [vmem:[#allocation6_spill] sm:$0xff] %v5306_v25 }
  0xb1   :  { %4720 = vmatmul.msk.f32.gmra.mxu0 %vm284_vm1, %v41_v40 }
  0xb2   :  { %4784 = vmatmul.msk.f32.gmra.mxu1 %vm284_vm1, %v105_v26  ;;  %v113_v26 = vld [vmem:[%s13158_s0 + $0x2e8] sm:$0xff] }
  0xb6   :  { %v5157_v42 = vpop.f32.mrf.mxu0 }
  0xb7   :  { %v5322_v32 = vpop.f32.mrf.mxu1 }
  0xb8   :  { %13811 = vst [vmem:[#allocation7_spill] sm:$0xff] %v5322_v32 }
  0xb9   :  { %4721 = vmatmul.msk.f32.gmra.mxu0 %vm284_vm1, %v42_v43  ;;  %v156_v43 = vld [vmem:[%s13158_s0 + $0x440] sm:$0xff] }
  0xba   :  { %4785 = vmatmul.msk.f32.gmra.mxu1 %vm284_vm1, %v106_v34  ;;  %4835 = vmatmul.msk.f32.gmra.mxu2 %vm284_vm1, %v156_v43  ;;  %v62_v34 = vld [vmem:[%s13158_s0 + $0x150] sm:$0xff] }
  0xbe   :  { %v5167_v45 = vpop.f32.mrf.mxu0 }
  0xbf   :  { %v5338_v40 = vpop.f32.mrf.mxu1 }
  0xc0   :  { %13812 = vst [vmem:[#allocation8_spill] sm:$0xff] %v5338_v40 }
  0xc1   :  { %4722 = vmatmul.msk.f32.gmra.mxu0 %vm284_vm1, %v43_v46  ;;  %v56_v46 = vld [vmem:[%s13158_s0 + $0x120] sm:$0xff] }
  0xc2   :  { %4786 = vmatmul.msk.f32.gmra.mxu1 %vm284_vm1, %v107_v41  ;;  %4836 = vmatmul.msk.f32.gmra.mxu2 %vm284_vm1, %v157_v50  ;;  %v163_v41 = vld [vmem:[%s13158_s0 + $0x478] sm:$0xff] }
  0xc3   :  { %v115_v50 = vld [vmem:[%s13158_s0 + $0x2f8] sm:$0xff] }
  0xc6   :  { %v5177_v48 = vpop.f32.mrf.mxu0 }
  0xc7   :  { %v5354_v47 = vpop.f32.mrf.mxu1 }
  0xc8   :  { %13813 = vst [vmem:[#allocation9_spill] sm:$0xff] %v5354_v47 }
  0xc9   :  { %4723 = vmatmul.msk.f32.gmra.mxu0 %vm284_vm1, %v44_v49  ;;  %v108_v49 = vld [vmem:[%s13158_s0 + $0x2c0] sm:$0xff] }
  0xca   :  { %4787 = vmatmul.msk.f32.gmra.mxu1 %vm284_vm1, %v108_v49 }
  0xce   :  { %v5187_v51 = vpop.f32.mrf.mxu0 }
  0xd1   :  { %4724 = vmatmul.msk.f32.gmra.mxu0 %vm284_vm1, %v45_v52 }
  0xd2   :  { %4788 = vmatmul.msk.f32.gmra.mxu1 %vm284_vm1, %v109_v56  ;;  %v212_v56 = vld [vmem:[%s13158_s0 + $0x600] sm:$0xff] }
  0xd3   :  { %4891 = vmatmul.msk.f32.vlgmr.msra.gmra.mxu3 %vm284_vm1, %v212_v56  ;;  %v167_v56 = vld [vmem:[%s13158_s0 + $0x498] sm:$0xff] }
  0xd6   :  { %v5197_v54 = vpop.f32.mrf.mxu0 }
  0xd9   :  { %4725 = vmatmul.msk.f32.gmra.mxu0 %vm284_vm1, %v46_v55  ;;  %v5370_v55 = vpop.f32.mrf.mxu1 }
  0xda   :  { %13814 = vst [vmem:[#allocation10_spill] sm:$0xff] %v5370_v55  ;;  %4789 = vmatmul.msk.f32.gmra.mxu1 %vm284_vm1, %v110_v0 }
  0xde   :  { %v5207_v57 = vpop.f32.mrf.mxu0 }
  0xe1   :  { %4726 = vmatmul.msk.f32.gmra.mxu0 %vm284_vm1, %v47_v58  ;;  %v158_v58 = vld [vmem:[%s13158_s0 + $0x450] sm:$0xff] }
  0xe2   :  { %4837 = vmatmul.msk.f32.gmra.mxu2 %vm284_vm1, %v158_v58 }
  0xe6   :  { %v5221_v61 = vpop.f32.mrf.mxu0 }
  0xe9   :  { %4727 = vmatmul.msk.f32.gmra.mxu0 %vm284_vm1, %v48_v62  ;;  %v5386_v62 = vpop.f32.mrf.mxu1 }
  0xea   :  { %13815 = vst [vmem:[#allocation11_spill] sm:$0xff] %v5386_v62  ;;  %4838 = vmatmul.msk.f32.gmra.mxu2 %vm284_vm1, %v159_v1  ;;  %v5488_v1 = vpop.f32.mrf.mxu2  ;;  %v134_v62 = vld [vmem:[%s13158_s0 + $0x390] sm:$0xff] }
  0xeb   :  { %13822 = vst [vmem:[#allocation18_spill] sm:$0xff] %v5488_v1 }
  0xee   :  { %v5237_v2 = vpop.f32.mrf.mxu0 }
  0xf1   :  { %4728 = vmatmul.msk.f32.gmra.mxu0 %vm284_vm1, %v49_v3  ;;  %v5402_v6 = vpop.f32.mrf.mxu1 }
  0xf2   :  { %13816 = vst [vmem:[#allocation12_spill] sm:$0xff] %v5402_v6  ;;  %4839 = vmatmul.msk.f32.gmra.mxu2 %vm284_vm1, %v160_v10  ;;  %v213_v10 = vld [vmem:[%s13158_s0 + $0x608] sm:$0xff] }
  0xf3   :  { %4892 = vmatmul.msk.f32.gmra.mxu3 %vm284_vm1, %v213_v10  ;;  %v133_v6 = vld [vmem:[%s13158_s0 + $0x388] sm:$0xff] }
  0xf6   :  { %v5253_v7 = vpop.f32.mrf.mxu0 }
  0xf9   :  { %4729 = vmatmul.msk.f32.gmra.mxu0 %vm284_vm1, %v50_v8  ;;  %v111_v8 = vld [vmem:[%s13158_s0 + $0x2d8] sm:$0xff]  ;;  %v5418_v15 = vpop.f32.mrf.mxu1 }
  0xfa   :  { %4790 = vmatmul.msk.f32.gmra.mxu1 %vm284_vm1, %v111_v8  ;;  %13817 = vst [vmem:[#allocation13_spill] sm:$0xff] %v5418_v15  ;;  %v165_v8 = vld [vmem:[%s13158_s0 + $0x488] sm:$0xff]  ;;  %v132_v15 = vld [vmem:[%s13158_s0 + $0x380] sm:$0xff] }
  0xfe   :  { %v5269_v12 = vpop.f32.mrf.mxu0 }
 0x101   :  { %4730 = vmatmul.msk.f32.gmra.mxu0 %vm284_vm1, %v51_v13  ;;  %v60_v13 = vld [vmem:[%s13158_s0 + $0x140] sm:$0xff] }
 0x102   :  { %4791 = vmatmul.msk.f32.gmra.mxu1 %vm284_vm1, %v112_v16  ;;  %v65_v16 = vld [vmem:[%s13158_s0 + $0x168] sm:$0xff] }
 0x106   :  { %v5285_v17 = vpop.f32.mrf.mxu0 }
 0x109   :  { %4731 = vmatmul.msk.f32.gmra.mxu0 %vm284_vm1, %v52_v18  ;;  %v161_v18 = vld [vmem:[%s13158_s0 + $0x468] sm:$0xff] }
 0x10a   :  { %4840 = vmatmul.msk.f32.gmra.mxu2 %vm284_vm1, %v161_v18  ;;  %4792 = vmatmul.msk.f32.gmra.mxu1 %vm284_vm1, %v113_v26  ;;  %v117_v26 = vld [vmem:[%s13158_s0 + $0x308] sm:$0xff] }
 0x10e   :  { %v5301_v22 = vpop.f32.mrf.mxu0 }
 0x111   :  { %4732 = vmatmul.msk.f32.gmra.mxu0 %vm284_vm1, %v53_v23  ;;  %v5434_v23 = vpop.f32.mrf.mxu1 }
 0x112   :  { %13818 = vst [vmem:[#allocation14_spill] sm:$0xff] %v5434_v23  ;;  %4841 = vmatmul.msk.f32.gmra.mxu2 %vm284_vm1, %v162_v28  ;;  %v166_v28 = vld [vmem:[%s13158_s0 + $0x490] sm:$0xff] }
 0x116   :  { %v5317_v29 = vpop.f32.mrf.mxu0 }
 0x119   :  { %4733 = vmatmul.msk.f32.gmra.mxu0 %vm284_vm1, %v54_v31  ;;  %v5450_v35 = vpop.f32.mrf.mxu1 }
 0x11a   :  { %13819 = vst [vmem:[#allocation15_spill] sm:$0xff] %v5450_v35  ;;  %4842 = vmatmul.msk.f32.gmra.mxu2 %vm284_vm1, %v163_v41  ;;  %v66_v41 = vld [vmem:[%s13158_s0 + $0x170] sm:$0xff]  ;;  %v131_v35 = vld [vmem:[%s13158_s0 + $0x378] sm:$0xff] }
 0x11e   :  { %v5333_v37 = vpop.f32.mrf.mxu0 }
 0x121   :  { %4734 = vmatmul.msk.f32.gmra.mxu0 %vm284_vm1, %v55_v38  ;;  %v114_v38 = vld [vmem:[%s13158_s0 + $0x2f0] sm:$0xff]  ;;  %v5466_v49 = vpop.f32.mrf.mxu1 }
 0x122   :  { %4793 = vmatmul.msk.f32.gmra.mxu1 %vm284_vm1, %v114_v38  ;;  %13820 = vst [vmem:[#allocation16_spill] sm:$0xff] %v5466_v49  ;;  %v130_v49 = vld [vmem:[%s13158_s0 + $0x370] sm:$0xff] }
 0x126   :  { %v5349_v44 = vpop.f32.mrf.mxu0 }
 0x129   :  { %4735 = vmatmul.msk.f32.gmra.mxu0 %vm284_vm1, %v56_v46  ;;  %v63_v46 = vld [vmem:[%s13158_s0 + $0x158] sm:$0xff]  ;;  %v5486_v0 = vpop.f32.mrf.mxu1 }
 0x12a   :  { %4794 = vmatmul.msk.f32.gmra.mxu1 %vm284_vm1, %v115_v50  ;;  %13821 = vst [vmem:[#allocation17_spill] sm:$0xff] %v5486_v0  ;;  %v129_v0 = vld [vmem:[%s13158_s0 + $0x368] sm:$0xff] }
 0x12e   :  { %v5365_v52 = vpop.f32.mrf.mxu0 }
 0x131   :  { %4736 = vmatmul.msk.f32.gmra.mxu0 %vm284_vm1, %v57_v53  ;;  %v164_v53 = vld [vmem:[%s13158_s0 + $0x480] sm:$0xff]  ;;  %v5508_v18 = vpop.f32.mrf.mxu1 }
 0x132   :  { %4843 = vmatmul.msk.f32.gmra.mxu2 %vm284_vm1, %v164_v53  ;;  %13823 = vst [vmem:[#allocation19_spill] sm:$0xff] %v5508_v18  ;;  %v118_v53 = vld [vmem:[%s13158_s0 + $0x310] sm:$0xff]  ;;  %v128_v18 = vld [vmem:[%s13158_s0 + $0x360] sm:$0xff] }
 0x136   :  { %v5381_v59 = vpop.f32.mrf.mxu0 }
 0x139   :  { %4737 = vmatmul.msk.f32.gmra.mxu0 %vm284_vm1, %v58_v60  ;;  %v64_v60 = vld [vmem:[%s13158_s0 + $0x160] sm:$0xff] }
 0x13a   :  { %4844 = vmatmul.msk.f32.gmra.mxu2 %vm284_vm1, %v165_v8  ;;  %v67_v8 = vld [vmem:[%s13158_s0 + $0x178] sm:$0xff] }
 0x13e   :  { %v5397_v3 = vpop.f32.mrf.mxu0 }
 0x141   :  { %4738 = vmatmul.msk.f32.gmra.mxu0 %vm284_vm1, %v59_v5  ;;  %v116_v5 = vld [vmem:[%s13158_s0 + $0x300] sm:$0xff] }
 0x142   :  { %4795 = vmatmul.msk.f32.gmra.mxu1 %vm284_vm1, %v116_v5  ;;  %4845 = vmatmul.msk.f32.gmra.mxu2 %vm284_vm1, %v166_v28  ;;  %v168_v28 = vld [vmem:[%s13158_s0 + $0x4a0] sm:$0xff] }
 0x146   :  { %v5413_v11 = vpop.f32.mrf.mxu0 }
 0x149   :  { %4739 = vmatmul.msk.f32.gmra.mxu0 %vm284_vm1, %v60_v13 }
 0x14a   :  { %4796 = vmatmul.msk.f32.gmra.mxu1 %vm284_vm1, %v117_v26  ;;  %4846 = vmatmul.msk.f32.gmra.mxu2 %vm284_vm1, %v167_v56  ;;  %v119_v26 = vld [vmem:[%s13158_s0 + $0x318] sm:$0xff] }
 0x14e   :  { %v5429_v20 = vpop.f32.mrf.mxu0 }
 0x151   :  { %4740 = vmatmul.msk.f32.gmra.mxu0 %vm284_vm1, %v61_v21  ;;  %v5510_v21 = vpop.f32.mrf.mxu2 }
 0x152   :  { %13824 = vst [vmem:[#allocation20_spill] sm:$0xff] %v5510_v21  ;;  %4797 = vmatmul.msk.f32.gmra.mxu1 %vm284_vm1, %v118_v53  ;;  %4847 = vmatmul.msk.f32.gmra.mxu2 %vm284_vm1, %v168_v28  ;;  %v68_v53 = vld [vmem:[%s13158_s0 + $0x180] sm:$0xff]  ;;  %v217_v28 = vld [vmem:[%s13158_s0 + $0x628] sm:$0xff]  ;;  %v122_v21 = vld [vmem:[%s13158_s0 + $0x330] sm:$0xff] }
 0x156   :  { %v5445_v31 = vpop.f32.mrf.mxu0  ;;  %v5842_v23 = vpop.f32.mrf.mxu3 }
 0x157   :  { %13855 = vst [vmem:[#allocation51_spill] sm:$0xff] %v5842_v23 }
 0x159   :  { %4741 = vmatmul.msk.f32.gmra.mxu0 %vm284_vm1, %v62_v34  ;;  %v214_v34 = vld [vmem:[%s13158_s0 + $0x610] sm:$0xff]  ;;  %v5532_v50 = vpop.f32.mrf.mxu2 }
 0x15a   :  { %4893 = vmatmul.msk.f32.gmra.mxu3 %vm284_vm1, %v214_v34  ;;  %13826 = vst [vmem:[#allocation22_spill] sm:$0xff] %v5532_v50  ;;  %4798 = vmatmul.msk.f32.gmra.mxu1 %vm284_vm1, %v119_v26  ;;  %v216_v34 = vld [vmem:[%s13158_s0 + $0x620] sm:$0xff]  ;;  %v169_v26 = vld [vmem:[%s13158_s0 + $0x4a8] sm:$0xff] }
 0x15b   :  { %4848 = vmatmul.msk.f32.gmra.mxu2 %vm284_vm1, %v169_v26  ;;  %v170_v26 = vld [vmem:[%s13158_s0 + $0x4b0] sm:$0xff] }
 0x15e   :  { %v5461_v43 = vpop.f32.mrf.mxu0 }
 0x161   :  { %4742 = vmatmul.msk.f32.gmra.mxu0 %vm284_vm1, %v63_v46  ;;  %v5530_v46 = vpop.f32.mrf.mxu1 }
 0x162   :  { %13825 = vst [vmem:[#allocation21_spill] sm:$0xff] %v5530_v46  ;;  %v127_v46 = vld [vmem:[%s13158_s0 + $0x358] sm:$0xff] }
 0x163   :  { %4849 = vmatmul.msk.f32.gmra.mxu2 %vm284_vm1, %v170_v26  ;;  %v171_v26 = vld [vmem:[%s13158_s0 + $0x4b8] sm:$0xff] }
 0x166   :  { %v5481_v58 = vpop.f32.mrf.mxu0 }
 0x169   :  { %4743 = vmatmul.msk.f32.gmra.mxu0 %vm284_vm1, %v64_v60  ;;  %v215_v60 = vld [vmem:[%s13158_s0 + $0x618] sm:$0xff]  ;;  %v5552_v10 = vpop.f32.mrf.mxu1 }
 0x16a   :  { %4894 = vmatmul.msk.f32.gmra.mxu3 %vm284_vm1, %v215_v60  ;;  %13827 = vst [vmem:[#allocation23_spill] sm:$0xff] %v5552_v10  ;;  %v126_v10 = vld [vmem:[%s13158_s0 + $0x350] sm:$0xff] }
 0x16b   :  { %4850 = vmatmul.msk.f32.gmra.mxu2 %vm284_vm1, %v171_v26  ;;  %v172_v26 = vld [vmem:[%s13158_s0 + $0x4c0] sm:$0xff] }
 0x16e   :  { %v5503_v13 = vpop.f32.mrf.mxu0 }
 0x171   :  { %4744 = vmatmul.msk.f32.gmra.mxu0 %vm284_vm1, %v65_v16  ;;  %v5554_v16 = vpop.f32.mrf.mxu2  ;;  %v5574_v56 = vpop.f32.mrf.mxu1 }
 0x172   :  { %13828 = vst [vmem:[#allocation24_spill] sm:$0xff] %v5554_v16  ;;  %4895 = vmatmul.msk.f32.gmra.mxu3 %vm284_vm1, %v216_v34  ;;  %v121_v16 = vld [vmem:[%s13158_s0 + $0x328] sm:$0xff] }
 0x173   :  { %13829 = vst [vmem:[#allocation25_spill] sm:$0xff] %v5574_v56  ;;  %4851 = vmatmul.msk.f32.gmra.mxu2 %vm284_vm1, %v172_v26  ;;  %v173_v26 = vld [vmem:[%s13158_s0 + $0x4c8] sm:$0xff] }
 0x174   :  { %v125_v56 = vld [vmem:[%s13158_s0 + $0x348] sm:$0xff] }
 0x176   :  { %v5525_v38 = vpop.f32.mrf.mxu0 }
 0x179   :  { %4745 = vmatmul.msk.f32.gmra.mxu0 %vm284_vm1, %v66_v41  ;;  %v5576_v60 = vpop.f32.mrf.mxu2 }
 0x17a   :  { %13830 = vst [vmem:[#allocation26_spill] sm:$0xff] %v5576_v60  ;;  %4896 = vmatmul.msk.f32.gmra.mxu3 %vm284_vm1, %v217_v28  ;;  %v5596_v60 = vpop.f32.mrf.mxu1  ;;  %v218_v28 = vld [vmem:[%s13158_s0 + $0x630] sm:$0xff] }
 0x17b   :  { %13831 = vst [vmem:[#allocation27_spill] sm:$0xff] %v5596_v60  ;;  %v124_v60 = vld [vmem:[%s13158_s0 + $0x340] sm:$0xff]  ;;  %4852 = vmatmul.msk.f32.gmra.mxu2 %vm284_vm1, %v173_v26  ;;  %v174_v26 = vld [vmem:[%s13158_s0 + $0x4d0] sm:$0xff] }
 0x17e   :  { %v5547_v5 = vpop.f32.mrf.mxu0 }
 0x181   :  { %4746 = vmatmul.msk.f32.gmra.mxu0 %vm284_vm1, %v67_v8  ;;  %v120_v8 = vld [vmem:[%s13158_s0 + $0x320] sm:$0xff] }
 0x182   :  { %4799 = vmatmul.msk.f32.gmra.mxu1 %vm284_vm1, %v120_v8  ;;  %v5598_v8 = vpop.f32.mrf.mxu2  ;;  %4897 = vmatmul.msk.f32.gmra.mxu3 %vm284_vm1, %v218_v28  ;;  %v5618_v50 = vpop.f32.mrf.mxu1  ;;  %v219_v28 = vld [vmem:[%s13158_s0 + $0x638] sm:$0xff] }
 0x183   :  { %13832 = vst [vmem:[#allocation28_spill] sm:$0xff] %v5598_v8  ;;  %4853 = vmatmul.msk.f32.gmra.mxu2 %vm284_vm1, %v174_v26  ;;  %v175_v26 = vld [vmem:[%s13158_s0 + $0x4d8] sm:$0xff] }
 0x184   :  { %13833 = vst [vmem:[#allocation29_spill] sm:$0xff] %v5618_v50  ;;  %v123_v50 = vld [vmem:[%s13158_s0 + $0x338] sm:$0xff] }
 0x186   :  { %v5569_v41 = vpop.f32.mrf.mxu0 }
 0x189   :  { %4747 = vmatmul.msk.f32.gmra.mxu0 %vm284_vm1, %v68_v53  ;;  %v69_v53 = vld [vmem:[%s13158_s0 + $0x188] sm:$0xff] }
 0x18a   :  { %4800 = vmatmul.msk.f32.gmra.mxu1 %vm284_vm1, %v121_v16  ;;  %v5620_v16 = vpop.f32.mrf.mxu2  ;;  %4898 = vmatmul.msk.f32.gmra.mxu3 %vm284_vm1, %v219_v28  ;;  %v5640_v1 = vpop.f32.mrf.mxu1  ;;  %v220_v28 = vld [vmem:[%s13158_s0 + $0x640] sm:$0xff] }
 0x18b   :  { %13834 = vst [vmem:[#allocation30_spill] sm:$0xff] %v5620_v16  ;;  %4854 = vmatmul.msk.f32.gmra.mxu2 %vm284_vm1, %v175_v26  ;;  %v176_v26 = vld [vmem:[%s13158_s0 + $0x4e0] sm:$0xff] }
 0x18c   :  { %13835 = vst [vmem:[#allocation31_spill] sm:$0xff] %v5640_v1 }
 0x18e   :  { %v5591_v34 = vpop.f32.mrf.mxu0 }
 0x191   :  { %4748 = vmatmul.msk.f32.gmra.mxu0 %vm284_vm1, %v69_v53  ;;  %v70_v53 = vld [vmem:[%s13158_s0 + $0x190] sm:$0xff] }
 0x192   :  { %4801 = vmatmul.msk.f32.gmra.mxu1 %vm284_vm1, %v122_v21  ;;  %v5642_v21 = vpop.f32.mrf.mxu2  ;;  %4899 = vmatmul.msk.f32.gmra.mxu3 %vm284_vm1, %v220_v28  ;;  %v5662_v1 = vpop.f32.mrf.mxu1  ;;  %v221_v28 = vld [vmem:[%s13158_s0 + $0x648] sm:$0xff] }
 0x193   :  { %13836 = vst [vmem:[#allocation32_spill] sm:$0xff] %v5642_v21  ;;  %4855 = vmatmul.msk.f32.gmra.mxu2 %vm284_vm1, %v176_v26  ;;  %v177_v26 = vld [vmem:[%s13158_s0 + $0x4e8] sm:$0xff] }
 0x194   :  { %13837 = vst [vmem:[#allocation33_spill] sm:$0xff] %v5662_v1 }
 0x196   :  { %v5613_v8 = vpop.f32.mrf.mxu0 }
 0x199   :  { %4749 = vmatmul.msk.f32.gmra.mxu0 %vm284_vm1, %v70_v53  ;;  %v71_v53 = vld [vmem:[%s13158_s0 + $0x198] sm:$0xff] }
 0x19a   :  { %4802 = vmatmul.msk.f32.gmra.mxu1 %vm284_vm1, %v123_v50  ;;  %v5664_v50 = vpop.f32.mrf.mxu2  ;;  %4900 = vmatmul.msk.f32.gmra.mxu3 %vm284_vm1, %v221_v28  ;;  %v5684_v1 = vpop.f32.mrf.mxu1  ;;  %v222_v28 = vld [vmem:[%s13158_s0 + $0x650] sm:$0xff] }
 0x19b   :  { %13838 = vst [vmem:[#allocation34_spill] sm:$0xff] %v5664_v50  ;;  %4856 = vmatmul.msk.f32.gmra.mxu2 %vm284_vm1, %v177_v26  ;;  %v178_v26 = vld [vmem:[%s13158_s0 + $0x4f0] sm:$0xff] }
 0x19c   :  { %13839 = vst [vmem:[#allocation35_spill] sm:$0xff] %v5684_v1 }
 0x19e   :  { %v5635_v16 = vpop.f32.mrf.mxu0 }
 0x1a1   :  { %4750 = vmatmul.msk.f32.gmra.mxu0 %vm284_vm1, %v71_v53  ;;  %v72_v53 = vld [vmem:[%s13158_s0 + $0x1a0] sm:$0xff] }
 0x1a2   :  { %4803 = vmatmul.msk.f32.gmra.mxu1 %vm284_vm1, %v124_v60  ;;  %v5686_v60 = vpop.f32.mrf.mxu2  ;;  %4901 = vmatmul.msk.f32.gmra.mxu3 %vm284_vm1, %v222_v28  ;;  %v5706_v1 = vpop.f32.mrf.mxu1  ;;  %v223_v28 = vld [vmem:[%s13158_s0 + $0x658] sm:$0xff] }
 0x1a3   :  { %13840 = vst [vmem:[#allocation36_spill] sm:$0xff] %v5686_v60  ;;  %4857 = vmatmul.msk.f32.gmra.mxu2 %vm284_vm1, %v178_v26  ;;  %v179_v26 = vld [vmem:[%s13158_s0 + $0x4f8] sm:$0xff] }
 0x1a4   :  { %13841 = vst [vmem:[#allocation37_spill] sm:$0xff] %v5706_v1 }
 0x1a6   :  { %v5657_v21 = vpop.f32.mrf.mxu0 }
 0x1a9   :  { %4751 = vmatmul.msk.f32.gmra.mxu0 %vm284_vm1, %v72_v53  ;;  %v73_v53 = vld [vmem:[%s13158_s0 + $0x1a8] sm:$0xff] }
 0x1aa   :  { %4804 = vmatmul.msk.f32.gmra.mxu1 %vm284_vm1, %v125_v56  ;;  %v5708_v56 = vpop.f32.mrf.mxu2  ;;  %4902 = vmatmul.msk.f32.gmra.mxu3 %vm284_vm1, %v223_v28  ;;  %v5728_v1 = vpop.f32.mrf.mxu1  ;;  %v224_v28 = vld [vmem:[%s13158_s0 + $0x660] sm:$0xff] }
 0x1ab   :  { %13842 = vst [vmem:[#allocation38_spill] sm:$0xff] %v5708_v56  ;;  %4858 = vmatmul.msk.f32.gmra.mxu2 %vm284_vm1, %v179_v26  ;;  %v180_v26 = vld [vmem:[%s13158_s0 + $0x500] sm:$0xff] }
 0x1ac   :  { %13843 = vst [vmem:[#allocation39_spill] sm:$0xff] %v5728_v1 }
 0x1ae   :  { %v5679_v50 = vpop.f32.mrf.mxu0 }
 0x1b1   :  { %4752 = vmatmul.msk.f32.gmra.mxu0 %vm284_vm1, %v73_v53  ;;  %v74_v53 = vld [vmem:[%s13158_s0 + $0x1b0] sm:$0xff] }
 0x1b2   :  { %4805 = vmatmul.msk.f32.gmra.mxu1 %vm284_vm1, %v126_v10  ;;  %v5730_v10 = vpop.f32.mrf.mxu2  ;;  %4903 = vmatmul.msk.f32.gmra.mxu3 %vm284_vm1, %v224_v28  ;;  %v5750_v1 = vpop.f32.mrf.mxu1  ;;  %v225_v28 = vld [vmem:[%s13158_s0 + $0x668] sm:$0xff] }
 0x1b3   :  { %13844 = vst [vmem:[#allocation40_spill] sm:$0xff] %v5730_v10  ;;  %4859 = vmatmul.msk.f32.gmra.mxu2 %vm284_vm1, %v180_v26  ;;  %v181_v26 = vld [vmem:[%s13158_s0 + $0x508] sm:$0xff] }
 0x1b4   :  { %13845 = vst [vmem:[#allocation41_spill] sm:$0xff] %v5750_v1 }
 0x1b6   :  { %v5701_v60 = vpop.f32.mrf.mxu0 }
 0x1b9   :  { %4753 = vmatmul.msk.f32.gmra.mxu0 %vm284_vm1, %v74_v53  ;;  %v75_v53 = vld [vmem:[%s13158_s0 + $0x1b8] sm:$0xff] }
 0x1ba   :  { %4806 = vmatmul.msk.f32.gmra.mxu1 %vm284_vm1, %v127_v46  ;;  %v5752_v46 = vpop.f32.mrf.mxu2  ;;  %4904 = vmatmul.msk.f32.gmra.mxu3 %vm284_vm1, %v225_v28  ;;  %v5772_v1 = vpop.f32.mrf.mxu1  ;;  %v226_v28 = vld [vmem:[%s13158_s0 + $0x670] sm:$0xff] }
 0x1bb   :  { %13846 = vst [vmem:[#allocation42_spill] sm:$0xff] %v5752_v46  ;;  %4860 = vmatmul.msk.f32.gmra.mxu2 %vm284_vm1, %v181_v26  ;;  %v182_v26 = vld [vmem:[%s13158_s0 + $0x510] sm:$0xff] }
 0x1bc   :  { %13847 = vst [vmem:[#allocation43_spill] sm:$0xff] %v5772_v1 }
 0x1be   :  { %v5723_v56 = vpop.f32.mrf.mxu0 }
 0x1c1   :  { %4754 = vmatmul.msk.f32.gmra.mxu0 %vm284_vm1, %v75_v53  ;;  %v76_v53 = vld [vmem:[%s13158_s0 + $0x1c0] sm:$0xff] }
 0x1c2   :  { %4807 = vmatmul.msk.f32.gmra.mxu1 %vm284_vm1, %v128_v18  ;;  %v5774_v18 = vpop.f32.mrf.mxu2  ;;  %4905 = vmatmul.msk.f32.gmra.mxu3 %vm284_vm1, %v226_v28  ;;  %v5794_v1 = vpop.f32.mrf.mxu1  ;;  %v227_v28 = vld [vmem:[%s13158_s0 + $0x678] sm:$0xff] }
 0x1c3   :  { %13848 = vst [vmem:[#allocation44_spill] sm:$0xff] %v5774_v18  ;;  %4861 = vmatmul.msk.f32.gmra.mxu2 %vm284_vm1, %v182_v26  ;;  %v5900_v26 = vld [vmem:[%s13159_s2] ss:$0 sm:$0xff] }
 0x1c4   :  { %13849 = vst [vmem:[#allocation45_spill] sm:$0xff] %v5794_v1  ;;  %v5940_v40 = vadd.f32 %v5900_v26, %v5127_v33  ;;  %v5971_v19 = vadd.f32 %v5900_v26, %v5147_v39  ;;  %v5985_v9 = vadd.f32 %v5900_v26, %v5157_v42  ;;  %v6001_v42 = vadd.f32 %v5900_v26, %v5167_v45 }
 0x1c6   :  { %v5745_v10 = vpop.f32.mrf.mxu0  ;;  %13868 = vst [vmem:[#allocation64_spill] sm:$0xff] %v5940_v40  ;;  %v2365_v4 = vmul.f32 %v5971_v19, %v5971_v19  ;;  %v2366_v45 = vmul.f32 %v5985_v9, %v5985_v9 }
 0x1c7   :  { %13870 = vst [vmem:[#allocation66_spill] sm:$0xff] %v5971_v19 }
 0x1c8   :  { %13872 = vst [vmem:[#allocation68_spill] sm:$0xff] %v5985_v9 }
 0x1c9   :  { %4755 = vmatmul.msk.f32.gmra.mxu0 %vm284_vm1, %v76_v53  ;;  %v77_v53 = vld [vmem:[%s13158_s0 + $0x1c8] sm:$0xff]  ;;  %13875 = vst [vmem:[#allocation71_spill] sm:$0xff] %v6001_v42 }
 0x1ca   :  { %4808 = vmatmul.msk.f32.gmra.mxu1 %vm284_vm1, %v129_v0  ;;  %v5796_v0 = vpop.f32.mrf.mxu2  ;;  %4906 = vmatmul.msk.f32.gmra.mxu3 %vm284_vm1, %v227_v28  ;;  %v5816_v1 = vpop.f32.mrf.mxu1  ;;  %v228_v28 = vld [vmem:[%s13158_s0 + $0x680] sm:$0xff] }
 0x1cb   :  { %13850 = vst [vmem:[#allocation46_spill] sm:$0xff] %v5796_v0 }
 0x1cc   :  { %13851 = vst [vmem:[#allocation47_spill] sm:$0xff] %v5816_v1 }
 0x1ce   :  { %v5767_v46 = vpop.f32.mrf.mxu0 }
 0x1d1   :  { %4756 = vmatmul.msk.f32.gmra.mxu0 %vm284_vm1, %v77_v53  ;;  %v78_v53 = vld [vmem:[%s13158_s0 + $0x1d0] sm:$0xff] }
 0x1d2   :  { %4809 = vmatmul.msk.f32.gmra.mxu1 %vm284_vm1, %v130_v49  ;;  %v5818_v49 = vpop.f32.mrf.mxu2  ;;  %4907 = vmatmul.msk.f32.gmra.mxu3 %vm284_vm1, %v228_v28  ;;  %v5838_v1 = vpop.f32.mrf.mxu1  ;;  %v229_v28 = vld [vmem:[%s13158_s0 + $0x688] sm:$0xff] }
 0x1d3   :  { %13852 = vst [vmem:[#allocation48_spill] sm:$0xff] %v5818_v49 }
 0x1d4   :  { %13853 = vst [vmem:[#allocation49_spill] sm:$0xff] %v5838_v1  ;;  %v5866_v1 = vpop.f32.mrf.mxu3 }
 0x1d5   :  { %13858 = vst [vmem:[#allocation54_spill] sm:$0xff] %v5866_v1 }
 0x1d6   :  { %v5789_v18 = vpop.f32.mrf.mxu0 }
 0x1d9   :  { %4757 = vmatmul.msk.f32.gmra.mxu0 %vm284_vm1, %v78_v53  ;;  %v79_v53 = vld [vmem:[%s13158_s0 + $0x1d8] sm:$0xff] }
 0x1da   :  { %4810 = vmatmul.msk.f32.gmra.mxu1 %vm284_vm1, %v131_v35  ;;  %v5840_v35 = vpop.f32.mrf.mxu2  ;;  %4908 = vmatmul.msk.f32.gmra.mxu3 %vm284_vm1, %v229_v28  ;;  %v230_v28 = vld [vmem:[%s13158_s0 + $0x690] sm:$0xff] }
 0x1db   :  { %13854 = vst [vmem:[#allocation50_spill] sm:$0xff] %v5840_v35  ;;  %v5862_v35 = vpop.f32.mrf.mxu1 }
 0x1dc   :  { %13856 = vst [vmem:[#allocation52_spill] sm:$0xff] %v5862_v35 }
 0x1dd   :  { %v5890_v35 = vpop.f32.mrf.mxu3 }
 0x1de   :  { %v5811_v0 = vpop.f32.mrf.mxu0  ;;  %13861 = vst [vmem:[#allocation57_spill] sm:$0xff] %v5890_v35  ;;  %v231_v35 = vld [vmem:[%s13158_s0 + $0x698] sm:$0xff] }
 0x1e1   :  { %4758 = vmatmul.msk.f32.gmra.mxu0 %vm284_vm1, %v79_v53  ;;  %v80_v53 = vld [vmem:[%s13158_s0 + $0x1e0] sm:$0xff] }
 0x1e2   :  { %4811 = vmatmul.msk.f32.gmra.mxu1 %vm284_vm1, %v132_v15  ;;  %v5864_v15 = vpop.f32.mrf.mxu2  ;;  %4909 = vmatmul.msk.f32.gmra.mxu3 %vm284_vm1, %v230_v28  ;;  %v183_v28 = vld [vmem:[%s13158_s0 + $0x518] sm:$0xff] }
 0x1e3   :  { %13857 = vst [vmem:[#allocation53_spill] sm:$0xff] %v5864_v15  ;;  %v5886_v15 = vpop.f32.mrf.mxu1  ;;  %4862 = vmatmul.msk.f32.gmra.mxu2 %vm284_vm1, %v183_v28  ;;  %v5927_v28 = vadd.f32 %v5900_v26, %v5117_v30 }
 0x1e4   :  { %13859 = vst [vmem:[#allocation55_spill] sm:$0xff] %v5886_v15  ;;  %v83_v15 = vld [vmem:[%s13158_s0 + $0x1f8] sm:$0xff] }
 0x1e5   :  { %13865 = vst [vmem:[#allocation61_spill] sm:$0xff] %v5927_v28  ;;  %v2362_v33 = vmul.f32 %v5927_v28, %v5927_v28  ;;  %v1846_v25 = vsel %vm1842_vm2, %v5927_v28, 0.0 }
 0x1e6   :  { %v5833_v49 = vpop.f32.mrf.mxu0 }
 0x1e9   :  { %4759 = vmatmul.msk.f32.gmra.mxu0 %vm284_vm1, %v80_v53  ;;  %v81_v53 = vld [vmem:[%s13158_s0 + $0x1e8] sm:$0xff] }
 0x1ea   :  { %4812 = vmatmul.msk.f32.gmra.mxu1 %vm284_vm1, %v133_v6  ;;  %v5888_v6 = vpop.f32.mrf.mxu2  ;;  %4910 = vmatmul.msk.f32.gmra.mxu3 %vm284_vm1, %v231_v35 }
 0x1eb   :  { %13860 = vst [vmem:[#allocation56_spill] sm:$0xff] %v5888_v6  ;;  %v5923_v55 = vpop.f32.mrf.mxu1 }
 0x1ec   :  { %13864 = vst [vmem:[#allocation60_spill] sm:$0xff] %v5923_v55 }
 0x1ee   :  { %v5857_v23 = vpop.f32.mrf.mxu0 }
 0x1f1   :  { %4760 = vmatmul.msk.f32.gmra.mxu0 %vm284_vm1, %v81_v53  ;;  %v82_v53 = vld [vmem:[%s13158_s0 + $0x1f0] sm:$0xff] }
 0x1f2   :  { %4813 = vmatmul.msk.f32.gmra.mxu1 %vm284_vm1, %v134_v62  ;;  %v5912_v62 = vadd.f32 %v5900_v26, %v5107_v27  ;;  %v5929_v35 = vpop.f32.mrf.mxu2  ;;  %v5931_v27 = vpop.f32.mrf.mxu3 }
 0x1f3   :  { %13866 = vst [vmem:[#allocation62_spill] sm:$0xff] %v5929_v35  ;;  %v232_v35 = vld [vmem:[%s13158_s0 + $0x6a0] sm:$0xff] }
 0x1f4   :  { %13862 = vst [vmem:[#allocation58_spill] sm:$0xff] %v5912_v62  ;;  %v2361_v47 = vmul.f32 %v5912_v62, %v5912_v62  ;;  %v1844_v55 = vsel %vm1842_vm2, %v5912_v62, 0.0  ;;  %4911 = vmatmul.msk.f32.gmra.mxu3 %vm284_vm1, %v232_v35  ;;  %v2363_v62 = vmul.f32 %v5940_v40, %v5940_v40 }
 0x1f5   :  { %13867 = vst [vmem:[#allocation63_spill] sm:$0xff] %v5931_v27  ;;  %v184_v27 = vld [vmem:[%s13158_s0 + $0x520] sm:$0xff] }
 0x1f6   :  { %v5881_v1 = vpop.f32.mrf.mxu0  ;;  %4863 = vmatmul.msk.f32.gmra.mxu2 %vm284_vm1, %v184_v27  ;;  %v2617_v32 = vsel %vm1842_vm2, %v2361_v47, 0.0  ;;  %v1848_v47 = vsel %vm1842_vm2, %v5940_v40, 0.0 }
 0x1f9   :  { %4761 = vmatmul.msk.f32.gmra.mxu0 %vm284_vm1, %v82_v53  ;;  %v5916_v53 = vadd.f32 %v5900_v26, %v5097_v24  ;;  %v135_v24 = vld [vmem:[%s13158_s0 + $0x398] sm:$0xff] }
 0x1fa   :  { %4814 = vmatmul.msk.f32.gmra.mxu1 %vm284_vm1, %v135_v24  ;;  %v5987_v39 = vpop.f32.mrf.mxu2 }
 0x1fb   :  { %13863 = vst [vmem:[#allocation59_spill] sm:$0xff] %v5916_v53  ;;  %v2360_v30 = vmul.f32 %v5916_v53, %v5916_v53  ;;  %v1843_v24 = vsel %vm1842_vm2, %v5916_v53, 0.0  ;;  %v2619_v53 = vsel %vm1842_vm2, %v2362_v33, 0.0  ;;  %v136_v33 = vld [vmem:[%s13158_s0 + $0x3a0] sm:$0xff] }
 0x1fc   :  { %v1845_v27 = vadd.f32 %v1844_v55, %v1843_v24  ;;  %13873 = vst [vmem:[#allocation69_spill] sm:$0xff] %v5987_v39 }
 0x1fe   :  { %v5918_v6 = vpop.f32.mrf.mxu0  ;;  %v1847_v24 = vadd.f32 %v1846_v25, %v1845_v27 }
 0x1ff   :  { %v5976_v35 = vpop.f32.mrf.mxu1 }
 0x200   :  { %13871 = vst [vmem:[#allocation67_spill] sm:$0xff] %v5976_v35  ;;  %v2621_v35 = vsel %vm1842_vm2, %v2363_v62, 0.0  ;;  %v1849_v25 = vadd.f32 %v1848_v47, %v1847_v24  ;;  %v233_v62 = vld [vmem:[%s13158_s0 + $0x6a8] sm:$0xff]  ;;  %v2625_v24 = vsel %vm1842_vm2, %v2365_v4, 0.0  ;;  %v1856_v4 = vsel %vm1842_vm2, %v6001_v42, 0.0 }
 0x201   :  { %4762 = vmatmul.msk.f32.gmra.mxu0 %vm284_vm1, %v83_v15  ;;  %v5958_v15 = vadd.f32 %v5900_v26, %v5137_v36  ;;  %v2616_v36 = vsel %vm1842_vm2, %v2360_v30, 0.0  ;;  %v5989_v30 = vpop.f32.mrf.mxu3  ;;  %4912 = vmatmul.msk.f32.gmra.mxu3 %vm284_vm1, %v233_v62 }
 0x202   :  { %13874 = vst [vmem:[#allocation70_spill] sm:$0xff] %v5989_v30  ;;  %v2618_v55 = vadd.f32 %v2617_v32, %v2616_v36  ;;  %4815 = vmatmul.msk.f32.gmra.mxu1 %vm284_vm1, %v136_v33  ;;  %v185_v36 = vld [vmem:[%s13158_s0 + $0x528] sm:$0xff]  ;;  %v2367_v33 = vmul.f32 %v6001_v42, %v6001_v42 }
 0x203   :  { %13869 = vst [vmem:[#allocation65_spill] sm:$0xff] %v5958_v15  ;;  %v2364_v28 = vmul.f32 %v5958_v15, %v5958_v15  ;;  %v1850_v40 = vsel %vm1842_vm2, %v5958_v15, 0.0  ;;  %v1852_v15 = vsel %vm1842_vm2, %v5971_v19, 0.0  ;;  %4864 = vmatmul.msk.f32.gmra.mxu2 %vm284_vm1, %v185_v36  ;;  %v6028_v19 = vadd.f32 %v5900_v26, %v5187_v51  ;;  %v6043_v51 = vpop.f32.mrf.mxu2 }
 0x204   :  { %v2620_v32 = vadd.f32 %v2619_v53, %v2618_v55  ;;  %v6017_v53 = vadd.f32 %v5900_v26, %v5177_v48  ;;  %v1851_v55 = vadd.f32 %v1850_v40, %v1849_v25  ;;  %v2627_v40 = vsel %vm1842_vm2, %v2366_v45, 0.0 }
 0x205   :  { %v2623_v27 = vsel %vm1842_vm2, %v2364_v28, 0.0  ;;  %v1854_v28 = vsel %vm1842_vm2, %v5985_v9, 0.0  ;;  %13877 = vst [vmem:[#allocation73_spill] sm:$0xff] %v6028_v19  ;;  %v2629_v45 = vsel %vm1842_vm2, %v2367_v33, 0.0  ;;  %v234_v33 = vld [vmem:[%s13158_s0 + $0x6b0] sm:$0xff] }
 0x206   :  { %v5974_v14 = vpop.f32.mrf.mxu0  ;;  %13876 = vst [vmem:[#allocation72_spill] sm:$0xff] %v6017_v53  ;;  %v2622_v47 = vadd.f32 %v2621_v35, %v2620_v32  ;;  %v1853_v30 = vadd.f32 %v1852_v15, %v1851_v55  ;;  %v2368_v35 = vmul.f32 %v6017_v53, %v6017_v53  ;;  %v6041_v32 = vadd.f32 %v5900_v26, %v5197_v54 }
 0x207   :  { %v6032_v36 = vpop.f32.mrf.mxu1  ;;  %v2369_v55 = vmul.f32 %v6028_v19, %v6028_v19  ;;  %v6057_v54 = vadd.f32 %v5900_v26, %v5207_v57 }
 0x208   :  { %v2624_v48 = vadd.f32 %v2623_v27, %v2622_v47  ;;  %13878 = vst [vmem:[#allocation74_spill] sm:$0xff] %v6041_v32  ;;  %v1855_v62 = vadd.f32 %v1854_v28, %v1853_v30  ;;  %v137_v27 = vld [vmem:[%s13158_s0 + $0x3a8] sm:$0xff]  ;;  %v1858_v47 = vsel %vm1842_vm2, %v6017_v53, 0.0  ;;  %v186_v28 = vld [vmem:[%s13158_s0 + $0x530] sm:$0xff]  ;;  %v1860_v53 = vsel %vm1842_vm2, %v6028_v19, 0.0 }
 0x209   :  { %v6045_v25 = vpop.f32.mrf.mxu3  ;;  %13880 = vst [vmem:[#allocation76_spill] sm:$0xff] %v6057_v54  ;;  %v2370_v57 = vmul.f32 %v6041_v32, %v6041_v32  ;;  %4913 = vmatmul.msk.f32.gmra.mxu3 %vm284_vm1, %v234_v33  ;;  %v6084_v19 = vadd.f32 %v5900_v26, %v5237_v2 }
 0x20a   :  { %13879 = vst [vmem:[#allocation75_spill] sm:$0xff] %v6045_v25  ;;  %v2626_v15 = vadd.f32 %v2625_v24, %v2624_v48  ;;  %4816 = vmatmul.msk.f32.gmra.mxu1 %vm284_vm1, %v137_v27  ;;  %v1857_v30 = vadd.f32 %v1856_v4, %v1855_v62  ;;  %v2631_v48 = vsel %vm1842_vm2, %v2368_v35, 0.0  ;;  %v2633_v62 = vsel %vm1842_vm2, %v2369_v55, 0.0 }
 0x20b   :  { %4865 = vmatmul.msk.f32.gmra.mxu2 %vm284_vm1, %v186_v28  ;;  %v1862_v35 = vsel %vm1842_vm2, %v6041_v32, 0.0  ;;  %v2371_v27 = vmul.f32 %v6057_v54, %v6057_v54  ;;  %13882 = vst [vmem:[#allocation78_spill] sm:$0xff] %v6084_v19  ;;  %v6099_v2 = vpop.f32.mrf.mxu2 }
 0x20c   :  { %v2628_v24 = vadd.f32 %v2627_v40, %v2626_v15  ;;  %v6073_v40 = vadd.f32 %v5900_v26, %v5221_v61  ;;  %v1859_v15 = vadd.f32 %v1858_v47, %v1857_v30  ;;  %v1864_v47 = vsel %vm1842_vm2, %v6057_v54, 0.0 }
 0x20e   :  { %v6030_v39 = vpop.f32.mrf.mxu0  ;;  %13881 = vst [vmem:[#allocation77_spill] sm:$0xff] %v6073_v40  ;;  %v2630_v4 = vadd.f32 %v2629_v45, %v2628_v24  ;;  %v1861_v42 = vadd.f32 %v1860_v53, %v1859_v15  ;;  %v2635_v45 = vsel %vm1842_vm2, %v2370_v57, 0.0  ;;  %v2372_v55 = vmul.f32 %v6073_v40, %v6073_v40 }
 0x20f   :  { %v6088_v28 = vpop.f32.mrf.mxu1  ;;  %v6097_v24 = vadd.f32 %v5900_v26, %v5253_v7  ;;  %v2637_v57 = vsel %vm1842_vm2, %v2371_v27, 0.0  ;;  %v2373_v15 = vmul.f32 %v6084_v19, %v6084_v19  ;;  %v6113_v7 = vadd.f32 %v5900_v26, %v5269_v12  ;;  %v235_v27 = vld [vmem:[%s13158_s0 + $0x6b8] sm:$0xff] }
 0x210   :  { %v2632_v61 = vadd.f32 %v2631_v48, %v2630_v4  ;;  %v1863_v33 = vadd.f32 %v1862_v35, %v1861_v42  ;;  %v138_v48 = vld [vmem:[%s13158_s0 + $0x3b0] sm:$0xff]  ;;  %v1866_v4 = vsel %vm1842_vm2, %v6073_v40, 0.0  ;;  %v187_v35 = vld [vmem:[%s13158_s0 + $0x538] sm:$0xff]  ;;  %v1868_v40 = vsel %vm1842_vm2, %v6084_v19, 0.0 }
 0x211   :  { %13883 = vst [vmem:[#allocation79_spill] sm:$0xff] %v6097_v24  ;;  %v6101_v30 = vpop.f32.mrf.mxu3  ;;  %v2374_v12 = vmul.f32 %v6097_v24, %v6097_v24  ;;  %4914 = vmatmul.msk.f32.gmra.mxu3 %vm284_vm1, %v235_v27  ;;  %v6140_v19 = vadd.f32 %v5900_v26, %v5301_v22 }
 0x212   :  { %13884 = vst [vmem:[#allocation80_spill] sm:$0xff] %v6101_v30  ;;  %v2634_v53 = vadd.f32 %v2633_v62, %v2632_v61  ;;  %4817 = vmatmul.msk.f32.gmra.mxu1 %vm284_vm1, %v138_v48  ;;  %v1865_v42 = vadd.f32 %v1864_v47, %v1863_v33  ;;  %v2639_v61 = vsel %vm1842_vm2, %v2372_v55, 0.0  ;;  %v2641_v33 = vsel %vm1842_vm2, %v2373_v15, 0.0 }
 0x213   :  { %13885 = vst [vmem:[#allocation81_spill] sm:$0xff] %v6113_v7  ;;  %4866 = vmatmul.msk.f32.gmra.mxu2 %vm284_vm1, %v187_v35  ;;  %v1870_v55 = vsel %vm1842_vm2, %v6097_v24, 0.0  ;;  %v2375_v48 = vmul.f32 %v6113_v7, %v6113_v7  ;;  %v6155_v22 = vpop.f32.mrf.mxu2 }
 0x214   :  { %v2636_v62 = vadd.f32 %v2635_v45, %v2634_v53  ;;  %v6129_v45 = vadd.f32 %v5900_v26, %v5285_v17  ;;  %v1867_v53 = vadd.f32 %v1866_v4, %v1865_v42  ;;  %13887 = vst [vmem:[#allocation83_spill] sm:$0xff] %v6140_v19  ;;  %v1872_v4 = vsel %vm1842_vm2, %v6113_v7, 0.0 }
 0x216   :  { %v6086_v9 = vpop.f32.mrf.mxu0  ;;  %13886 = vst [vmem:[#allocation82_spill] sm:$0xff] %v6129_v45  ;;  %v2638_v47 = vadd.f32 %v2637_v57, %v2636_v62  ;;  %v1869_v54 = vadd.f32 %v1868_v40, %v1867_v53  ;;  %v2643_v57 = vsel %vm1842_vm2, %v2374_v12, 0.0  ;;  %v2376_v15 = vmul.f32 %v6129_v45, %v6129_v45 }
 0x217   :  { %v6144_v35 = vpop.f32.mrf.mxu1  ;;  %v6153_v62 = vadd.f32 %v5900_v26, %v5317_v29  ;;  %v2645_v12 = vsel %vm1842_vm2, %v2375_v48, 0.0  ;;  %v2377_v53 = vmul.f32 %v6140_v19, %v6140_v19  ;;  %v6169_v29 = vadd.f32 %v5900_v26, %v5333_v37  ;;  %v236_v48 = vld [vmem:[%s13158_s0 + $0x6c0] sm:$0xff] }
 0x218   :  { %v2640_v17 = vadd.f32 %v2639_v61, %v2638_v47  ;;  %v1871_v27 = vadd.f32 %v1870_v55, %v1869_v54  ;;  %v139_v61 = vld [vmem:[%s13158_s0 + $0x3b8] sm:$0xff]  ;;  %v1874_v47 = vsel %vm1842_vm2, %v6129_v45, 0.0  ;;  %v188_v55 = vld [vmem:[%s13158_s0 + $0x540] sm:$0xff]  ;;  %v1876_v45 = vsel %vm1842_vm2, %v6140_v19, 0.0 }
 0x219   :  { %13888 = vst [vmem:[#allocation84_spill] sm:$0xff] %v6153_v62  ;;  %v6157_v42 = vpop.f32.mrf.mxu3  ;;  %v2378_v37 = vmul.f32 %v6153_v62, %v6153_v62  ;;  %4915 = vmatmul.msk.f32.gmra.mxu3 %vm284_vm1, %v236_v48  ;;  %v6196_v19 = vadd.f32 %v5900_v26, %v5365_v52 }
 0x21a   :  { %13889 = vst [vmem:[#allocation85_spill] sm:$0xff] %v6157_v42  ;;  %v2642_v40 = vadd.f32 %v2641_v33, %v2640_v17  ;;  %4818 = vmatmul.msk.f32.gmra.mxu1 %vm284_vm1, %v139_v61  ;;  %v1873_v54 = vadd.f32 %v1872_v4, %v1871_v27  ;;  %v2647_v17 = vsel %vm1842_vm2, %v2376_v15, 0.0  ;;  %v2649_v27 = vsel %vm1842_vm2, %v2377_v53, 0.0 }
 0x21b   :  { %13890 = vst [vmem:[#allocation86_spill] sm:$0xff] %v6169_v29  ;;  %4867 = vmatmul.msk.f32.gmra.mxu2 %vm284_vm1, %v188_v55  ;;  %v1878_v15 = vsel %vm1842_vm2, %v6153_v62, 0.0  ;;  %v2379_v61 = vmul.f32 %v6169_v29, %v6169_v29  ;;  %v6211_v52 = vpop.f32.mrf.mxu2 }
 0x21c   :  { %v2644_v33 = vadd.f32 %v2643_v57, %v2642_v40  ;;  %v6185_v57 = vadd.f32 %v5900_v26, %v5349_v44  ;;  %v1875_v40 = vadd.f32 %v1874_v47, %v1873_v54  ;;  %13892 = vst [vmem:[#allocation88_spill] sm:$0xff] %v6196_v19  ;;  %v1880_v47 = vsel %vm1842_vm2, %v6169_v29, 0.0 }
 0x21e   :  { %v6142_v32 = vpop.f32.mrf.mxu0  ;;  %13891 = vst [vmem:[#allocation87_spill] sm:$0xff] %v6185_v57  ;;  %v2646_v4 = vadd.f32 %v2645_v12, %v2644_v33  ;;  %v1877_v7 = vadd.f32 %v1876_v45, %v1875_v40  ;;  %v2651_v12 = vsel %vm1842_vm2, %v2378_v37, 0.0  ;;  %v2380_v53 = vmul.f32 %v6185_v57, %v6185_v57 }
 0x21f   :  { %v6200_v55 = vpop.f32.mrf.mxu1  ;;  %v6209_v33 = vadd.f32 %v5900_v26, %v5381_v59  ;;  %v2653_v37 = vsel %vm1842_vm2, %v2379_v61, 0.0  ;;  %v2381_v40 = vmul.f32 %v6196_v19, %v6196_v19  ;;  %v6225_v59 = vadd.f32 %v5900_v26, %v5397_v3  ;;  %v237_v61 = vld [vmem:[%s13158_s0 + $0x6c8] sm:$0xff] }
 0x220   :  { %v2648_v44 = vadd.f32 %v2647_v17, %v2646_v4  ;;  %v1879_v48 = vadd.f32 %v1878_v15, %v1877_v7  ;;  %v140_v17 = vld [vmem:[%s13158_s0 + $0x3c0] sm:$0xff]  ;;  %v1882_v4 = vsel %vm1842_vm2, %v6185_v57, 0.0  ;;  %v189_v15 = vld [vmem:[%s13158_s0 + $0x548] sm:$0xff]  ;;  %v1884_v57 = vsel %vm1842_vm2, %v6196_v19, 0.0 }
 0x221   :  { %13893 = vst [vmem:[#allocation89_spill] sm:$0xff] %v6209_v33  ;;  %v6213_v54 = vpop.f32.mrf.mxu3  ;;  %v2382_v3 = vmul.f32 %v6209_v33, %v6209_v33  ;;  %4916 = vmatmul.msk.f32.gmra.mxu3 %vm284_vm1, %v237_v61  ;;  %v6252_v19 = vadd.f32 %v5900_v26, %v5429_v20 }
 0x222   :  { %13894 = vst [vmem:[#allocation90_spill] sm:$0xff] %v6213_v54  ;;  %v2650_v45 = vadd.f32 %v2649_v27, %v2648_v44  ;;  %4819 = vmatmul.msk.f32.gmra.mxu1 %vm284_vm1, %v140_v17  ;;  %v1881_v7 = vadd.f32 %v1880_v47, %v1879_v48  ;;  %v2655_v44 = vsel %vm1842_vm2, %v2380_v53, 0.0  ;;  %v2657_v48 = vsel %vm1842_vm2, %v2381_v40, 0.0 }
 0x223   :  { %13895 = vst [vmem:[#allocation91_spill] sm:$0xff] %v6225_v59  ;;  %4868 = vmatmul.msk.f32.gmra.mxu2 %vm284_vm1, %v189_v15  ;;  %v1886_v53 = vsel %vm1842_vm2, %v6209_v33, 0.0  ;;  %v2383_v17 = vmul.f32 %v6225_v59, %v6225_v59  ;;  %v6267_v20 = vpop.f32.mrf.mxu2 }
 0x224   :  { %v2652_v27 = vadd.f32 %v2651_v12, %v2650_v45  ;;  %v6241_v12 = vadd.f32 %v5900_v26, %v5413_v11  ;;  %v1883_v45 = vadd.f32 %v1882_v4, %v1881_v7  ;;  %13897 = vst [vmem:[#allocation93_spill] sm:$0xff] %v6252_v19  ;;  %v1888_v4 = vsel %vm1842_vm2, %v6225_v59, 0.0 }
 0x226   :  { %v6198_v24 = vpop.f32.mrf.mxu0  ;;  %13896 = vst [vmem:[#allocation92_spill] sm:$0xff] %v6241_v12  ;;  %v2654_v47 = vadd.f32 %v2653_v37, %v2652_v27  ;;  %v1885_v29 = vadd.f32 %v1884_v57, %v1883_v45  ;;  %v2659_v37 = vsel %vm1842_vm2, %v2382_v3, 0.0  ;;  %v2384_v40 = vmul.f32 %v6241_v12, %v6241_v12 }
 0x227   :  { %v6256_v15 = vpop.f32.mrf.mxu1  ;;  %v6265_v27 = vadd.f32 %v5900_v26, %v5445_v31  ;;  %v2661_v3 = vsel %vm1842_vm2, %v2383_v17, 0.0  ;;  %v2385_v45 = vmul.f32 %v6252_v19, %v6252_v19  ;;  %v6281_v31 = vadd.f32 %v5900_v26, %v5461_v43  ;;  %v238_v17 = vld [vmem:[%s13158_s0 + $0x6d0] sm:$0xff] }
 0x228   :  { %v2656_v11 = vadd.f32 %v2655_v44, %v2654_v47  ;;  %v1887_v61 = vadd.f32 %v1886_v53, %v1885_v29  ;;  %v141_v44 = vld [vmem:[%s13158_s0 + $0x3c8] sm:$0xff]  ;;  %v1890_v47 = vsel %vm1842_vm2, %v6241_v12, 0.0  ;;  %v190_v53 = vld [vmem:[%s13158_s0 + $0x550] sm:$0xff]  ;;  %v1892_v12 = vsel %vm1842_vm2, %v6252_v19, 0.0 }
 0x229   :  { %13898 = vst [vmem:[#allocation94_spill] sm:$0xff] %v6265_v27  ;;  %v6269_v7 = vpop.f32.mrf.mxu3  ;;  %v2386_v43 = vmul.f32 %v6265_v27, %v6265_v27  ;;  %4917 = vmatmul.msk.f32.gmra.mxu3 %vm284_vm1, %v238_v17  ;;  %v6308_v19 = vadd.f32 %v5900_v26, %v5503_v13 }
 0x22a   :  { %13899 = vst [vmem:[#allocation95_spill] sm:$0xff] %v6269_v7  ;;  %v2658_v57 = vadd.f32 %v2657_v48, %v2656_v11  ;;  %4820 = vmatmul.msk.f32.gmra.mxu1 %vm284_vm1, %v141_v44  ;;  %v1889_v29 = vadd.f32 %v1888_v4, %v1887_v61  ;;  %v2663_v11 = vsel %vm1842_vm2, %v2384_v40, 0.0  ;;  %v2665_v61 = vsel %vm1842_vm2, %v2385_v45, 0.0 }
 0x22b   :  { %13900 = vst [vmem:[#allocation96_spill] sm:$0xff] %v6281_v31  ;;  %4869 = vmatmul.msk.f32.gmra.mxu2 %vm284_vm1, %v190_v53  ;;  %v1894_v40 = vsel %vm1842_vm2, %v6265_v27, 0.0  ;;  %v2387_v44 = vmul.f32 %v6281_v31, %v6281_v31  ;;  %v6323_v13 = vpop.f32.mrf.mxu2 }
 0x22c   :  { %v2660_v48 = vadd.f32 %v2659_v37, %v2658_v57  ;;  %v6297_v37 = vadd.f32 %v5900_v26, %v5481_v58  ;;  %v1891_v57 = vadd.f32 %v1890_v47, %v1889_v29  ;;  %13902 = vst [vmem:[#allocation98_spill] sm:$0xff] %v6308_v19  ;;  %v1896_v47 = vsel %vm1842_vm2, %v6281_v31, 0.0 }
 0x22e   :  { %v6254_v62 = vpop.f32.mrf.mxu0  ;;  %13901 = vst [vmem:[#allocation97_spill] sm:$0xff] %v6297_v37  ;;  %v2662_v4 = vadd.f32 %v2661_v3, %v2660_v48  ;;  %v1893_v59 = vadd.f32 %v1892_v12, %v1891_v57  ;;  %v2667_v3 = vsel %vm1842_vm2, %v2386_v43, 0.0  ;;  %v2388_v45 = vmul.f32 %v6297_v37, %v6297_v37 }
 0x22f   :  { %v6312_v53 = vpop.f32.mrf.mxu1  ;;  %v6321_v48 = vadd.f32 %v5900_v26, %v5525_v38  ;;  %v2669_v43 = vsel %vm1842_vm2, %v2387_v44, 0.0  ;;  %v2389_v57 = vmul.f32 %v6308_v19, %v6308_v19  ;;  %v6337_v38 = vadd.f32 %v5900_v26, %v5547_v5  ;;  %v239_v44 = vld [vmem:[%s13158_s0 + $0x6d8] sm:$0xff] }
 0x230   :  { %v2664_v58 = vadd.f32 %v2663_v11, %v2662_v4  ;;  %v1895_v17 = vadd.f32 %v1894_v40, %v1893_v59  ;;  %v142_v11 = vld [vmem:[%s13158_s0 + $0x3d0] sm:$0xff]  ;;  %v1898_v4 = vsel %vm1842_vm2, %v6297_v37, 0.0  ;;  %v191_v40 = vld [vmem:[%s13158_s0 + $0x558] sm:$0xff]  ;;  %v1900_v37 = vsel %vm1842_vm2, %v6308_v19, 0.0 }
 0x231   :  { %13903 = vst [vmem:[#allocation99_spill] sm:$0xff] %v6321_v48  ;;  %v6325_v29 = vpop.f32.mrf.mxu3  ;;  %v2390_v5 = vmul.f32 %v6321_v48, %v6321_v48  ;;  %4918 = vmatmul.msk.f32.gmra.mxu3 %vm284_vm1, %v239_v44  ;;  %v6364_v19 = vadd.f32 %v5900_v26, %v5591_v34 }
 0x232   :  { %13904 = vst [vmem:[#allocation100_spill] sm:$0xff] %v6325_v29  ;;  %v2666_v12 = vadd.f32 %v2665_v61, %v2664_v58  ;;  %4821 = vmatmul.msk.f32.gmra.mxu1 %vm284_vm1, %v142_v11  ;;  %v1897_v59 = vadd.f32 %v1896_v47, %v1895_v17  ;;  %v2671_v58 = vsel %vm1842_vm2, %v2388_v45, 0.0  ;;  %v2673_v17 = vsel %vm1842_vm2, %v2389_v57, 0.0 }
 0x233   :  { %13905 = vst [vmem:[#allocation101_spill] sm:$0xff] %v6337_v38  ;;  %4870 = vmatmul.msk.f32.gmra.mxu2 %vm284_vm1, %v191_v40  ;;  %v1902_v45 = vsel %vm1842_vm2, %v6321_v48, 0.0  ;;  %v2391_v11 = vmul.f32 %v6337_v38, %v6337_v38  ;;  %v6379_v34 = vpop.f32.mrf.mxu2 }
 0x234   :  { %v2668_v61 = vadd.f32 %v2667_v3, %v2666_v12  ;;  %v6353_v3 = vadd.f32 %v5900_v26, %v5569_v41  ;;  %v1899_v12 = vadd.f32 %v1898_v4, %v1897_v59  ;;  %13907 = vst [vmem:[#allocation103_spill] sm:$0xff] %v6364_v19  ;;  %v1904_v4 = vsel %vm1842_vm2, %v6337_v38, 0.0 }
 0x236   :  { %v6310_v33 = vpop.f32.mrf.mxu0  ;;  %13906 = vst [vmem:[#allocation102_spill] sm:$0xff] %v6353_v3  ;;  %v2670_v47 = vadd.f32 %v2669_v43, %v2668_v61  ;;  %v1901_v31 = vadd.f32 %v1900_v37, %v1899_v12  ;;  %v2675_v43 = vsel %vm1842_vm2, %v2390_v5, 0.0  ;;  %v2392_v57 = vmul.f32 %v6353_v3, %v6353_v3 }
 0x237   :  { %v6368_v40 = vpop.f32.mrf.mxu1  ;;  %v6377_v61 = vadd.f32 %v5900_v26, %v5613_v8  ;;  %v2677_v5 = vsel %vm1842_vm2, %v2391_v11, 0.0  ;;  %v2393_v12 = vmul.f32 %v6364_v19, %v6364_v19  ;;  %v6393_v8 = vadd.f32 %v5900_v26, %v5635_v16  ;;  %v240_v11 = vld [vmem:[%s13158_s0 + $0x6e0] sm:$0xff] }
 0x238   :  { %v2672_v41 = vadd.f32 %v2671_v58, %v2670_v47  ;;  %v1903_v44 = vadd.f32 %v1902_v45, %v1901_v31  ;;  %v143_v58 = vld [vmem:[%s13158_s0 + $0x3d8] sm:$0xff]  ;;  %v1906_v47 = vsel %vm1842_vm2, %v6353_v3, 0.0  ;;  %v192_v45 = vld [vmem:[%s13158_s0 + $0x560] sm:$0xff]  ;;  %v1908_v3 = vsel %vm1842_vm2, %v6364_v19, 0.0 }
 0x239   :  { %13908 = vst [vmem:[#allocation104_spill] sm:$0xff] %v6377_v61  ;;  %v6381_v59 = vpop.f32.mrf.mxu3  ;;  %v2394_v16 = vmul.f32 %v6377_v61, %v6377_v61  ;;  %4919 = vmatmul.msk.f32.gmra.mxu3 %vm284_vm1, %v240_v11  ;;  %v6420_v19 = vadd.f32 %v5900_v26, %v5679_v50 }
 0x23a   :  { %13909 = vst [vmem:[#allocation105_spill] sm:$0xff] %v6381_v59  ;;  %v2674_v37 = vadd.f32 %v2673_v17, %v2672_v41  ;;  %4822 = vmatmul.msk.f32.gmra.mxu1 %vm284_vm1, %v143_v58  ;;  %v1905_v31 = vadd.f32 %v1904_v4, %v1903_v44  ;;  %v2679_v41 = vsel %vm1842_vm2, %v2392_v57, 0.0  ;;  %v2681_v44 = vsel %vm1842_vm2, %v2393_v12, 0.0 }
 0x23b   :  { %13910 = vst [vmem:[#allocation106_spill] sm:$0xff] %v6393_v8  ;;  %4871 = vmatmul.msk.f32.gmra.mxu2 %vm284_vm1, %v192_v45  ;;  %v1910_v57 = vsel %vm1842_vm2, %v6377_v61, 0.0  ;;  %v2395_v58 = vmul.f32 %v6393_v8, %v6393_v8  ;;  %v6435_v50 = vpop.f32.mrf.mxu2 }
 0x23c   :  { %v2676_v17 = vadd.f32 %v2675_v43, %v2674_v37  ;;  %v6409_v43 = vadd.f32 %v5900_v26, %v5657_v21  ;;  %v1907_v37 = vadd.f32 %v1906_v47, %v1905_v31  ;;  %13912 = vst [vmem:[#allocation108_spill] sm:$0xff] %v6420_v19  ;;  %v1912_v47 = vsel %vm1842_vm2, %v6393_v8, 0.0 }
 0x23e   :  { %v6366_v27 = vpop.f32.mrf.mxu0  ;;  %13911 = vst [vmem:[#allocation107_spill] sm:$0xff] %v6409_v43  ;;  %v2678_v4 = vadd.f32 %v2677_v5, %v2676_v17  ;;  %v1909_v38 = vadd.f32 %v1908_v3, %v1907_v37  ;;  %v2683_v5 = vsel %vm1842_vm2, %v2394_v16, 0.0  ;;  %v2396_v12 = vmul.f32 %v6409_v43, %v6409_v43 }
 0x23f   :  { %v6424_v45 = vpop.f32.mrf.mxu1  ;;  %v6433_v17 = vadd.f32 %v5900_v26, %v5701_v60  ;;  %v2685_v16 = vsel %vm1842_vm2, %v2395_v58, 0.0  ;;  %v2397_v37 = vmul.f32 %v6420_v19, %v6420_v19  ;;  %v6449_v60 = vadd.f32 %v5900_v26, %v5723_v56  ;;  %v241_v58 = vld [vmem:[%s13158_s0 + $0x6e8] sm:$0xff] }
 0x240   :  { %v2680_v21 = vadd.f32 %v2679_v41, %v2678_v4  ;;  %v1911_v11 = vadd.f32 %v1910_v57, %v1909_v38  ;;  %v144_v41 = vld [vmem:[%s13158_s0 + $0x3e0] sm:$0xff]  ;;  %v1914_v4 = vsel %vm1842_vm2, %v6409_v43, 0.0  ;;  %v193_v57 = vld [vmem:[%s13158_s0 + $0x568] sm:$0xff]  ;;  %v1916_v43 = vsel %vm1842_vm2, %v6420_v19, 0.0 }
 0x241   :  { %13913 = vst [vmem:[#allocation109_spill] sm:$0xff] %v6433_v17  ;;  %v6437_v31 = vpop.f32.mrf.mxu3  ;;  %v2398_v56 = vmul.f32 %v6433_v17, %v6433_v17  ;;  %4920 = vmatmul.msk.f32.gmra.mxu3 %vm284_vm1, %v241_v58  ;;  %v6476_v19 = vadd.f32 %v5900_v26, %v5767_v46 }
 0x242   :  { %13914 = vst [vmem:[#allocation110_spill] sm:$0xff] %v6437_v31  ;;  %v2682_v3 = vadd.f32 %v2681_v44, %v2680_v21  ;;  %4823 = vmatmul.msk.f32.gmra.mxu1 %vm284_vm1, %v144_v41  ;;  %v1913_v38 = vadd.f32 %v1912_v47, %v1911_v11  ;;  %v2687_v21 = vsel %vm1842_vm2, %v2396_v12, 0.0  ;;  %v2689_v11 = vsel %vm1842_vm2, %v2397_v37, 0.0 }
 0x243   :  { %13915 = vst [vmem:[#allocation111_spill] sm:$0xff] %v6449_v60  ;;  %4872 = vmatmul.msk.f32.gmra.mxu2 %vm284_vm1, %v193_v57  ;;  %v1918_v12 = vsel %vm1842_vm2, %v6433_v17, 0.0  ;;  %v2399_v41 = vmul.f32 %v6449_v60, %v6449_v60  ;;  %v6491_v46 = vpop.f32.mrf.mxu2 }
 0x244   :  { %v2684_v44 = vadd.f32 %v2683_v5, %v2682_v3  ;;  %v6465_v5 = vadd.f32 %v5900_v26, %v5745_v10  ;;  %v1915_v3 = vadd.f32 %v1914_v4, %v1913_v38  ;;  %13917 = vst [vmem:[#allocation113_spill] sm:$0xff] %v6476_v19  ;;  %v1920_v4 = vsel %vm1842_vm2, %v6449_v60, 0.0 }
 0x246   :  { %v6422_v48 = vpop.f32.mrf.mxu0  ;;  %13916 = vst [vmem:[#allocation112_spill] sm:$0xff] %v6465_v5  ;;  %v2686_v47 = vadd.f32 %v2685_v16, %v2684_v44  ;;  %v1917_v8 = vadd.f32 %v1916_v43, %v1915_v3  ;;  %v2691_v16 = vsel %vm1842_vm2, %v2398_v56, 0.0  ;;  %v2400_v37 = vmul.f32 %v6465_v5, %v6465_v5 }
 0x247   :  { %v6480_v57 = vpop.f32.mrf.mxu1  ;;  %v6489_v44 = vadd.f32 %v5900_v26, %v5789_v18  ;;  %v2693_v56 = vsel %vm1842_vm2, %v2399_v41, 0.0  ;;  %v2401_v3 = vmul.f32 %v6476_v19, %v6476_v19  ;;  %v6505_v18 = vadd.f32 %v5900_v26, %v5811_v0  ;;  %v242_v41 = vld [vmem:[%s13158_s0 + $0x6f0] sm:$0xff] }
 0x248   :  { %v2688_v10 = vadd.f32 %v2687_v21, %v2686_v47  ;;  %v1919_v58 = vadd.f32 %v1918_v12, %v1917_v8  ;;  %v145_v21 = vld [vmem:[%s13158_s0 + $0x3e8] sm:$0xff]  ;;  %v1922_v47 = vsel %vm1842_vm2, %v6465_v5, 0.0  ;;  %v194_v12 = vld [vmem:[%s13158_s0 + $0x570] sm:$0xff]  ;;  %v1924_v5 = vsel %vm1842_vm2, %v6476_v19, 0.0 }
 0x249   :  { %13918 = vst [vmem:[#allocation114_spill] sm:$0xff] %v6489_v44  ;;  %v6493_v38 = vpop.f32.mrf.mxu3  ;;  %v2402_v0 = vmul.f32 %v6489_v44, %v6489_v44  ;;  %4921 = vmatmul.msk.f32.gmra.mxu3 %vm284_vm1, %v242_v41  ;;  %v6532_v19 = vadd.f32 %v5900_v26, %v5857_v23 }
 0x24a   :  { %13919 = vst [vmem:[#allocation115_spill] sm:$0xff] %v6493_v38  ;;  %v2690_v43 = vadd.f32 %v2689_v11, %v2688_v10  ;;  %4824 = vmatmul.msk.f32.gmra.mxu1 %vm284_vm1, %v145_v21  ;;  %v1921_v8 = vadd.f32 %v1920_v4, %v1919_v58  ;;  %v2695_v10 = vsel %vm1842_vm2, %v2400_v37, 0.0  ;;  %v2697_v58 = vsel %vm1842_vm2, %v2401_v3, 0.0 }
 0x24b   :  { %13920 = vst [vmem:[#allocation116_spill] sm:$0xff] %v6505_v18  ;;  %4873 = vmatmul.msk.f32.gmra.mxu2 %vm284_vm1, %v194_v12  ;;  %v1926_v37 = vsel %vm1842_vm2, %v6489_v44, 0.0  ;;  %v2403_v21 = vmul.f32 %v6505_v18, %v6505_v18  ;;  %v6547_v23 = vpop.f32.mrf.mxu2 }
 0x24c   :  { %v2692_v11 = vadd.f32 %v2691_v16, %v2690_v43  ;;  %v6521_v16 = vadd.f32 %v5900_v26, %v5833_v49  ;;  %v1923_v43 = vadd.f32 %v1922_v47, %v1921_v8  ;;  %13922 = vst [vmem:[#allocation118_spill] sm:$0xff] %v6532_v19  ;;  %v1928_v47 = vsel %vm1842_vm2, %v6505_v18, 0.0 }
 0x24e   :  { %v6478_v61 = vpop.f32.mrf.mxu0  ;;  %13921 = vst [vmem:[#allocation117_spill] sm:$0xff] %v6521_v16  ;;  %v2694_v4 = vadd.f32 %v2693_v56, %v2692_v11  ;;  %v1925_v60 = vadd.f32 %v1924_v5, %v1923_v43  ;;  %v2699_v56 = vsel %vm1842_vm2, %v2402_v0, 0.0  ;;  %v2404_v3 = vmul.f32 %v6521_v16, %v6521_v16 }
 0x24f   :  { %v6536_v12 = vpop.f32.mrf.mxu1  ;;  %v6545_v11 = vadd.f32 %v5900_v26, %v5881_v1  ;;  %v2701_v0 = vsel %vm1842_vm2, %v2403_v21, 0.0  ;;  %v2405_v43 = vmul.f32 %v6532_v19, %v6532_v19  ;;  %v6561_v1 = vadd.f32 %v5900_v26, %v5918_v6  ;;  %v243_v21 = vld [vmem:[%s13158_s0 + $0x6f8] sm:$0xff] }
 0x250   :  { %v2696_v49 = vadd.f32 %v2695_v10, %v2694_v4  ;;  %v1927_v41 = vadd.f32 %v1926_v37, %v1925_v60  ;;  %v146_v10 = vld [vmem:[%s13158_s0 + $0x3f0] sm:$0xff]  ;;  %v1930_v4 = vsel %vm1842_vm2, %v6521_v16, 0.0  ;;  %v195_v37 = vld [vmem:[%s13158_s0 + $0x578] sm:$0xff]  ;;  %v1932_v16 = vsel %vm1842_vm2, %v6532_v19, 0.0 }
 0x251   :  { %13923 = vst [vmem:[#allocation119_spill] sm:$0xff] %v6545_v11  ;;  %v6549_v8 = vpop.f32.mrf.mxu3  ;;  %v2406_v6 = vmul.f32 %v6545_v11, %v6545_v11  ;;  %4922 = vmatmul.msk.f32.gmra.mxu3 %vm284_vm1, %v243_v21  ;;  %v6588_v19 = vadd.f32 %v5900_v26, %v6030_v39 }
 0x252   :  { %13924 = vst [vmem:[#allocation120_spill] sm:$0xff] %v6549_v8  ;;  %v2698_v5 = vadd.f32 %v2697_v58, %v2696_v49  ;;  %4825 = vmatmul.msk.f32.gmra.mxu1 %vm284_vm1, %v146_v10  ;;  %v1929_v60 = vadd.f32 %v1928_v47, %v1927_v41  ;;  %v2703_v49 = vsel %vm1842_vm2, %v2404_v3, 0.0  ;;  %v2705_v41 = vsel %vm1842_vm2, %v2405_v43, 0.0 }
 0x253   :  { %13925 = vst [vmem:[#allocation121_spill] sm:$0xff] %v6561_v1  ;;  %4874 = vmatmul.msk.f32.gmra.mxu2 %vm284_vm1, %v195_v37  ;;  %v1934_v3 = vsel %vm1842_vm2, %v6545_v11, 0.0  ;;  %v2407_v10 = vmul.f32 %v6561_v1, %v6561_v1  ;;  %v6603_v39 = vpop.f32.mrf.mxu2 }
 0x254   :  { %v2700_v58 = vadd.f32 %v2699_v56, %v2698_v5  ;;  %v6577_v56 = vadd.f32 %v5900_v26, %v5974_v14  ;;  %v1931_v5 = vadd.f32 %v1930_v4, %v1929_v60  ;;  %13927 = vst [vmem:[#allocation123_spill] sm:$0xff] %v6588_v19  ;;  %v1936_v4 = vsel %vm1842_vm2, %v6561_v1, 0.0 }
 0x256   :  { %v6534_v17 = vpop.f32.mrf.mxu0  ;;  %13926 = vst [vmem:[#allocation122_spill] sm:$0xff] %v6577_v56  ;;  %v2702_v47 = vadd.f32 %v2701_v0, %v2700_v58  ;;  %v1933_v18 = vadd.f32 %v1932_v16, %v1931_v5  ;;  %v2707_v0 = vsel %vm1842_vm2, %v2406_v6, 0.0  ;;  %v2408_v43 = vmul.f32 %v6577_v56, %v6577_v56 }
 0x257   :  { %v6592_v37 = vpop.f32.mrf.mxu1  ;;  %v6601_v58 = vadd.f32 %v5900_v26, %v6086_v9  ;;  %v2709_v6 = vsel %vm1842_vm2, %v2407_v10, 0.0  ;;  %v2409_v5 = vmul.f32 %v6588_v19, %v6588_v19  ;;  %v6617_v9 = vadd.f32 %v5900_v26, %v6142_v32  ;;  %v244_v10 = vld [vmem:[%s13158_s0 + $0x700] sm:$0xff] }
 0x258   :  { %v2704_v14 = vadd.f32 %v2703_v49, %v2702_v47  ;;  %v1935_v21 = vadd.f32 %v1934_v3, %v1933_v18  ;;  %v147_v49 = vld [vmem:[%s13158_s0 + $0x3f8] sm:$0xff]  ;;  %v1938_v47 = vsel %vm1842_vm2, %v6577_v56, 0.0  ;;  %v196_v3 = vld [vmem:[%s13158_s0 + $0x580] sm:$0xff]  ;;  %v1940_v56 = vsel %vm1842_vm2, %v6588_v19, 0.0 }
 0x259   :  { %13928 = vst [vmem:[#allocation124_spill] sm:$0xff] %v6601_v58  ;;  %v6605_v60 = vpop.f32.mrf.mxu3  ;;  %v2410_v32 = vmul.f32 %v6601_v58, %v6601_v58  ;;  %4923 = vmatmul.msk.f32.gmra.mxu3 %vm284_vm1, %v244_v10  ;;  %v6644_v19 = vadd.f32 %v5900_v26, %v6254_v62 }
 0x25a   :  { %13929 = vst [vmem:[#allocation125_spill] sm:$0xff] %v6605_v60  ;;  %v2706_v16 = vadd.f32 %v2705_v41, %v2704_v14  ;;  %4826 = vmatmul.msk.f32.gmra.mxu1 %vm284_vm1, %v147_v49  ;;  %v1937_v18 = vadd.f32 %v1936_v4, %v1935_v21  ;;  %v2711_v14 = vsel %vm1842_vm2, %v2408_v43, 0.0  ;;  %v2713_v21 = vsel %vm1842_vm2, %v2409_v5, 0.0 }
 0x25b   :  { %13930 = vst [vmem:[#allocation126_spill] sm:$0xff] %v6617_v9  ;;  %4875 = vmatmul.msk.f32.gmra.mxu2 %vm284_vm1, %v196_v3  ;;  %v1942_v43 = vsel %vm1842_vm2, %v6601_v58, 0.0  ;;  %v2411_v49 = vmul.f32 %v6617_v9, %v6617_v9  ;;  %v197_v58 = vld [vmem:[%s13158_s0 + $0x588] sm:$0xff] }
 0x25c   :  { %v2708_v41 = vadd.f32 %v2707_v0, %v2706_v16  ;;  %v6633_v0 = vadd.f32 %v5900_v26, %v6198_v24  ;;  %v1939_v16 = vadd.f32 %v1938_v47, %v1937_v18  ;;  %13932 = vst [vmem:[#allocation128_spill] sm:$0xff] %v6644_v19  ;;  %v1944_v47 = vsel %vm1842_vm2, %v6617_v9, 0.0  ;;  %v6657_v18 = vpop.f32.mrf.mxu2 }
 0x25e   :  { %v6590_v44 = vpop.f32.mrf.mxu0  ;;  %13931 = vst [vmem:[#allocation127_spill] sm:$0xff] %v6633_v0  ;;  %v2710_v4 = vadd.f32 %v2709_v6, %v2708_v41  ;;  %v1941_v1 = vadd.f32 %v1940_v56, %v1939_v16  ;;  %v2715_v6 = vsel %vm1842_vm2, %v2410_v32, 0.0  ;;  %v2412_v5 = vmul.f32 %v6633_v0, %v6633_v0 }
 0x25f   :  { %v6646_v3 = vpop.f32.mrf.mxu1  ;;  %v6655_v41 = vadd.f32 %v5900_v26, %v6310_v33  ;;  %v1946_v32 = vsel %vm1842_vm2, %v6633_v0, 0.0  ;;  %v6668_v16 = vadd.f32 %v5900_v26, %v6366_v27  ;;  %v6683_v27 = vadd.f32 %v5900_v26, %v6422_v48 }
 0x260   :  { %v2712_v24 = vadd.f32 %v2711_v14, %v2710_v4  ;;  %v1943_v10 = vadd.f32 %v1942_v43, %v1941_v1  ;;  %v2717_v14 = vsel %vm1842_vm2, %v2411_v49, 0.0  ;;  %v2413_v4 = vmul.f32 %v6644_v19, %v6644_v19  ;;  %v245_v1 = vld [vmem:[%s13158_s0 + $0x708] sm:$0xff] }
 0x261   :  { %13933 = vst [vmem:[#allocation129_spill] sm:$0xff] %v6655_v41  ;;  %v6659_v62 = vpop.f32.mrf.mxu3  ;;  %v1948_v43 = vsel %vm1842_vm2, %v6644_v19, 0.0  ;;  %v2414_v49 = vmul.f32 %v6655_v41, %v6655_v41  ;;  %4924 = vmatmul.msk.f32.gmra.mxu3 %vm284_vm1, %v245_v1 }
 0x262   :  { %13934 = vst [vmem:[#allocation130_spill] sm:$0xff] %v6659_v62  ;;  %v2714_v56 = vadd.f32 %v2713_v21, %v2712_v24  ;;  %v1945_v9 = vadd.f32 %v1944_v47, %v1943_v10  ;;  %v2719_v21 = vsel %vm1842_vm2, %v2412_v5, 0.0  ;;  %v2721_v47 = vsel %vm1842_vm2, %v2413_v4, 0.0 }
 0x263   :  { %13935 = vst [vmem:[#allocation131_spill] sm:$0xff] %v6668_v16  ;;  %4876 = vmatmul.msk.f32.gmra.mxu2 %vm284_vm1, %v197_v58  ;;  %v1950_v5 = vsel %vm1842_vm2, %v6655_v41, 0.0  ;;  %v6694_v10 = vadd.f32 %v5900_v26, %v6478_v61  ;;  %v6705_v4 = vadd.f32 %v5900_v26, %v6534_v17  ;;  %v198_v41 = vld [vmem:[%s13158_s0 + $0x590] sm:$0xff] }
 0x264   :  { %v2716_v33 = vadd.f32 %v2715_v6, %v2714_v56  ;;  %13936 = vst [vmem:[#allocation132_spill] sm:$0xff] %v6683_v27  ;;  %v1947_v6 = vadd.f32 %v1946_v32, %v1945_v9  ;;  %v2415_v56 = vmul.f32 %v6668_v16, %v6668_v16  ;;  %v1952_v9 = vsel %vm1842_vm2, %v6668_v16, 0.0 }
 0x265   :  { %13937 = vst [vmem:[#allocation133_spill] sm:$0xff] %v6694_v10  ;;  %v2416_v32 = vmul.f32 %v6683_v27, %v6683_v27 }
 0x266   :  { %v1254_v11 = vpop.f32.mrf.mxu0  ;;  %v2718_v24 = vadd.f32 %v2717_v14, %v2716_v33  ;;  %v1949_v19 = vadd.f32 %v1948_v43, %v1947_v6  ;;  %v2723_v14 = vsel %vm1842_vm2, %v2414_v49, 0.0  ;;  %13938 = vst [vmem:[#allocation134_spill] sm:$0xff] %v6705_v4  ;;  %v6707_v33 = vpop.f32.mrf.mxu2  ;;  %v2725_v43 = vsel %vm1842_vm2, %v2415_v56, 0.0 }
 0x267   :  { %v6696_v58 = vpop.f32.mrf.mxu1  ;;  %v1954_v49 = vsel %vm1842_vm2, %v6683_v27, 0.0  ;;  %v6718_v6 = vadd.f32 %v5900_v26, %v6590_v44  ;;  %v2418_v56 = vmul.f32 %v6705_v4, %v6705_v4  ;;  %v6732_v44 = vadd.f32 %v5900_v26, %v1254_v11 }
 0x268   :  { %v2720_v48 = vadd.f32 %v2719_v21, %v2718_v24  ;;  %v1951_v21 = vadd.f32 %v1950_v5, %v1949_v19  ;;  %v2417_v24 = vmul.f32 %v6694_v10, %v6694_v10  ;;  %v246_v19 = vld [vmem:[%s13158_s0 + $0x710] sm:$0xff]  ;;  %v1956_v5 = vsel %vm1842_vm2, %v6694_v10, 0.0 }
 0x269   :  { %v6709_v61 = vpop.f32.mrf.mxu3  ;;  %13940 = vst [vmem:[#allocation136_spill] sm:$0xff] %v6718_v6  ;;  %4925 = vmatmul.msk.f32.gmra.mxu3 %vm284_vm1, %v246_v19 }
 0x26a   :  { %13939 = vst [vmem:[#allocation135_spill] sm:$0xff] %v6709_v61  ;;  %v2722_v1 = vadd.f32 %v2721_v47, %v2720_v48  ;;  %v1953_v16 = vadd.f32 %v1952_v9, %v1951_v21  ;;  %v2727_v47 = vsel %vm1842_vm2, %v2416_v32, 0.0  ;;  %v2729_v9 = vsel %vm1842_vm2, %v2417_v24, 0.0 }
 0x26b   :  { %13941 = vst [vmem:[#allocation137_spill] sm:$0xff] %v6732_v44  ;;  %4877 = vmatmul.msk.f32.gmra.mxu2 %vm284_vm1, %v198_v41  ;;  %v1958_v32 = vsel %vm1842_vm2, %v6705_v4, 0.0  ;;  %v2731_v41 = vsel %vm1842_vm2, %v2418_v56, 0.0 }
 0x26c   :  { %v2724_v17 = vadd.f32 %v2723_v14, %v2722_v1  ;;  %v1955_v14 = vadd.f32 %v1954_v49, %v1953_v16  ;;  %v2419_v1 = vmul.f32 %v6718_v6, %v6718_v6  ;;  %v1960_v16 = vsel %vm1842_vm2, %v6718_v6, 0.0 }
 0x26e   :  { %v1257_v0 = vpop.f32.mrf.mxu0  ;;  %v2726_v48 = vadd.f32 %v2725_v43, %v2724_v17  ;;  %v1957_v11 = vadd.f32 %v1956_v5, %v1955_v14  ;;  %v2420_v43 = vmul.f32 %v6732_v44, %v6732_v44  ;;  %v6754_v24 = vpop.f32.mrf.mxu2  ;;  %v1962_v5 = vsel %vm1842_vm2, %v6732_v44, 0.0 }
 0x26f   :  { %v6742_v21 = vadd.f32 %v5900_v26, %v1257_v0  ;;  %v6744_v61 = vpop.f32.mrf.mxu1 }
 0x270   :  { %v2728_v10 = vadd.f32 %v2727_v47, %v2726_v48  ;;  %v1959_v19 = vadd.f32 %v1958_v32, %v1957_v11  ;;  %v2733_v47 = vsel %vm1842_vm2, %v2419_v1, 0.0 }
 0x271   :  { %13942 = vst [vmem:[#allocation138_spill] sm:$0xff] %v6742_v21  ;;  %v6756_v0 = vpop.f32.mrf.mxu3  ;;  %v2421_v56 = vmul.f32 %v6742_v21, %v6742_v21 }
 0x272   :  { %13944 = vst [vmem:[#allocation140_spill] sm:$0xff] %v6756_v0  ;;  %v2730_v17 = vadd.f32 %v2729_v9, %v2728_v10  ;;  %v1961_v14 = vadd.f32 %v1960_v16, %v1959_v19  ;;  %v2735_v10 = vsel %vm1842_vm2, %v2420_v43, 0.0  ;;  %v1964_v9 = vsel %vm1842_vm2, %v6742_v21, 0.0 }
 0x273   :  { %v2737_v43 = vsel %vm1842_vm2, %v2421_v56, 0.0 }
 0x274   :  { %v2732_v48 = vadd.f32 %v2731_v41, %v2730_v17  ;;  %v1963_v11 = vadd.f32 %v1962_v5, %v1961_v14  ;;  %v6779_v41 = vld [vmem:[%s13159_s2] ss:$0 sm:$0xff] }
 0x275   :  { %v6783_v16 = vadd.f32 %v6779_v41, %v5226_v63 }
 0x276   :  { %v1260_v27 = vpop.f32.mrf.mxu0  ;;  %v2734_v1 = vadd.f32 %v2733_v47, %v2732_v48  ;;  %v13946_v47 = vld [vmem:[#allocation2_spill] sm:$0xff]  ;;  %v6798_v63 = vpop.f32.mrf.mxu2 }
 0x277   :  { %v6752_v49 = vadd.f32 %v5900_v26, %v1260_v27  ;;  %v199_v26 = vld [vmem:[%s13158_s0 + $0x598] sm:$0xff]  ;;  %13945 = vst [vmem:[#allocation141_spill] sm:$0xff] %v6783_v16  ;;  %v6792_v5 = vadd.f32 %v6779_v41, %v13946_v47 }
 0x278   :  { %v247_v27 = vld [vmem:[%s13158_s0 + $0x718] sm:$0xff]  ;;  %4878 = vmatmul.msk.f32.gmra.mxu2 %vm284_vm1, %v199_v26  ;;  %v2736_v19 = vadd.f32 %v2735_v10, %v2734_v1  ;;  %v1965_v26 = vadd.f32 %v1964_v9, %v1963_v11  ;;  %v2424_v10 = vmul.f32 %v6783_v16, %v6783_v16  ;;  %v13950_v9 = vld [vmem:[#allocation3_spill] sm:$0xff] }
 0x279   :  { %13943 = vst [vmem:[#allocation139_spill] sm:$0xff] %v6752_v49  ;;  %v2422_v32 = vmul.f32 %v6752_v49, %v6752_v49  ;;  %4926 = vmatmul.msk.f32.gmra.mxu3 %vm284_vm1, %v247_v27  ;;  %v1966_v17 = vsel %vm1842_vm2, %v6752_v49, 0.0  ;;  %v6788_v27 = vpop.f32.mrf.mxu1  ;;  %v6800_v56 = vpop.f32.mrf.mxu3  ;;  %v6806_v1 = vadd.f32 %v6779_v41, %v13950_v9  ;;  %v13952_v9 = vld [vmem:[#allocation4_spill] sm:$0xff]  ;;  %v1972_v4 = vsel %vm1842_vm2, %v6792_v5, 0.0 }
 0x27a   :  { %13947 = vst [vmem:[#allocation2_spill] sm:$0xff] %v6792_v5  ;;  %v2738_v44 = vadd.f32 %v2737_v43, %v2736_v19  ;;  %v1967_v49 = vadd.f32 %v1966_v17, %v1965_v26  ;;  %v200_v43 = vld [vmem:[%s13158_s0 + $0x5a0] sm:$0xff]  ;;  %v1970_v19 = vsel %vm1842_vm2, %v6783_v16, 0.0  ;;  %v2425_v26 = vmul.f32 %v6792_v5, %v6792_v5 }
 0x27b   :  { %v2739_v48 = vsel %vm1842_vm2, %v2422_v32, 0.0  ;;  %13949 = vst [vmem:[#allocation143_spill] sm:$0xff] %v6800_v56  ;;  %v248_v17 = vld [vmem:[%s13158_s0 + $0x720] sm:$0xff]  ;;  %v6824_v6 = vadd.f32 %v6779_v41, %v13952_v9  ;;  %v2426_v16 = vmul.f32 %v6806_v1, %v6806_v1 }
 0x27c   :  { %13951 = vst [vmem:[#allocation3_spill] sm:$0xff] %v6806_v1  ;;  %v2740_v32 = vadd.f32 %v2739_v48, %v2738_v44 }
 0x27d   :  { %13953 = vst [vmem:[#allocation4_spill] sm:$0xff] %v6824_v6 }
 0x27e   :  { %v1263_v21 = vpop.f32.mrf.mxu0 }
 0x27f   :  { %v6796_v14 = vadd.f32 %v6779_v41, %v1263_v21 }
 0x280   :  { %4879 = vmatmul.msk.f32.gmra.mxu2 %vm284_vm1, %v200_v43  ;;  %v2745_v43 = vsel %vm1842_vm2, %v2425_v26, 0.0  ;;  %v2747_v26 = vsel %vm1842_vm2, %v2426_v16, 0.0  ;;  %v249_v16 = vld [vmem:[%s13158_s0 + $0x728] sm:$0xff] }
 0x281   :  { %13948 = vst [vmem:[#allocation142_spill] sm:$0xff] %v6796_v14  ;;  %v1968_v11 = vsel %vm1842_vm2, %v6796_v14, 0.0  ;;  %v2423_v21 = vmul.f32 %v6796_v14, %v6796_v14  ;;  %4927 = vmatmul.msk.f32.gmra.mxu3 %vm284_vm1, %v248_v17  ;;  %v13954_v14 = vld [vmem:[#allocation5_spill] sm:$0xff] }
 0x282   :  { %v1969_v47 = vadd.f32 %v1968_v11, %v1967_v49  ;;  %v2743_v11 = vsel %vm1842_vm2, %v2424_v10, 0.0  ;;  %v6836_v9 = vadd.f32 %v6779_v41, %v13954_v14  ;;  %v2427_v10 = vmul.f32 %v6824_v6, %v6824_v6 }
 0x283   :  { %v2741_v44 = vsel %vm1842_vm2, %v2423_v21, 0.0 }
 0x284   :  { %v1971_v49 = vadd.f32 %v1970_v19, %v1969_v47  ;;  %v2742_v48 = vadd.f32 %v2741_v44, %v2740_v32  ;;  %13955 = vst [vmem:[#allocation5_spill] sm:$0xff] %v6836_v9  ;;  %v1974_v47 = vsel %vm1842_vm2, %v6806_v1, 0.0  ;;  %v13956_v32 = vld [vmem:[#allocation6_spill] sm:$0xff]  ;;  %v6847_v19 = vpop.f32.mrf.mxu2  ;;  %v6849_v44 = vpop.f32.mrf.mxu3 }
 0x285   :  { %v6845_v17 = vadd.f32 %v6779_v41, %v13956_v32  ;;  %13958 = vst [vmem:[#allocation144_spill] sm:$0xff] %v6849_v44 }
 0x286   :  { %v1973_v56 = vadd.f32 %v1972_v4, %v1971_v49  ;;  %v2744_v21 = vadd.f32 %v2743_v11, %v2742_v48  ;;  %v6851_v4 = vpop.f32.mrf.mxu1  ;;  %v1976_v49 = vsel %vm1842_vm2, %v6824_v6, 0.0  ;;  %v2428_v48 = vmul.f32 %v6836_v9, %v6836_v9  ;;  %v13959_v11 = vld [vmem:[#allocation7_spill] sm:$0xff]  ;;  %v13963_v6 = vld [vmem:[#allocation9_spill] sm:$0xff] }
 0x287   :  { %13957 = vst [vmem:[#allocation6_spill] sm:$0xff] %v6845_v17  ;;  %v6860_v32 = vadd.f32 %v6779_v41, %v13959_v11  ;;  %v13961_v11 = vld [vmem:[#allocation8_spill] sm:$0xff]  ;;  %v6886_v44 = vadd.f32 %v6779_v41, %v13963_v6 }
 0x288   :  { %v1975_v14 = vadd.f32 %v1974_v47, %v1973_v56  ;;  %v2746_v5 = vadd.f32 %v2745_v43, %v2744_v21  ;;  %v201_v56 = vld [vmem:[%s13158_s0 + $0x5a8] sm:$0xff]  ;;  %v2749_v21 = vsel %vm1842_vm2, %v2427_v10, 0.0  ;;  %v1978_v43 = vsel %vm1842_vm2, %v6836_v9, 0.0 }
 0x289   :  { %13960 = vst [vmem:[#allocation7_spill] sm:$0xff] %v6860_v32  ;;  %v2429_v47 = vmul.f32 %v6845_v17, %v6845_v17  ;;  %4880 = vmatmul.msk.f32.gmra.mxu2 %vm284_vm1, %v201_v56  ;;  %4928 = vmatmul.msk.f32.gmra.mxu3 %vm284_vm1, %v249_v16  ;;  %v1980_v10 = vsel %vm1842_vm2, %v6845_v17, 0.0  ;;  %v2430_v9 = vmul.f32 %v6860_v32, %v6860_v32 }
 0x28a   :  { %v1977_v1 = vadd.f32 %v1976_v49, %v1975_v14  ;;  %v2748_v0 = vadd.f32 %v2747_v26, %v2746_v5  ;;  %v6875_v14 = vadd.f32 %v6779_v41, %v13961_v11  ;;  %v2751_v49 = vsel %vm1842_vm2, %v2428_v48, 0.0  ;;  %13964 = vst [vmem:[#allocation9_spill] sm:$0xff] %v6886_v44  ;;  %v13965_v48 = vld [vmem:[#allocation10_spill] sm:$0xff] }
 0x28b   :  { %v2753_v56 = vsel %vm1842_vm2, %v2429_v47, 0.0  ;;  %v6895_v16 = vadd.f32 %v6779_v41, %v13965_v48 }
 0x28c   :  { %13962 = vst [vmem:[#allocation8_spill] sm:$0xff] %v6875_v14  ;;  %v1979_v5 = vadd.f32 %v1978_v43, %v1977_v1  ;;  %v2750_v26 = vadd.f32 %v2749_v21, %v2748_v0  ;;  %v1982_v1 = vsel %vm1842_vm2, %v6860_v32, 0.0  ;;  %v2431_v0 = vmul.f32 %v6875_v14, %v6875_v14  ;;  %v6897_v21 = vpop.f32.mrf.mxu2  ;;  %v6899_v43 = vpop.f32.mrf.mxu3 }
 0x28d   :  { %13966 = vst [vmem:[#allocation10_spill] sm:$0xff] %v6895_v16  ;;  %v1984_v47 = vsel %vm1842_vm2, %v6875_v14, 0.0  ;;  %v13972_v14 = vld [vmem:[#allocation13_spill] sm:$0xff] }
 0x28e   :  { %v1981_v11 = vadd.f32 %v1980_v10, %v1979_v5  ;;  %v2752_v62 = vadd.f32 %v2751_v49, %v2750_v26  ;;  %13967 = vst [vmem:[#allocation145_spill] sm:$0xff] %v6899_v43  ;;  %v2755_v5 = vsel %vm1842_vm2, %v2430_v9, 0.0  ;;  %v2432_v26 = vmul.f32 %v6886_v44, %v6886_v44  ;;  %v13968_v49 = vld [vmem:[#allocation11_spill] sm:$0xff]  ;;  %v6910_v60 = vpop.f32.mrf.mxu1  ;;  %v250_v9 = vld [vmem:[%s13158_s0 + $0x730] sm:$0xff] }
 0x28f   :  { %v6908_v10 = vadd.f32 %v6779_v41, %v13968_v49  ;;  %v6936_v43 = vadd.f32 %v6779_v41, %v13972_v14 }
 0x290   :  { %v1983_v6 = vadd.f32 %v1982_v1, %v1981_v11  ;;  %v2754_v17 = vadd.f32 %v2753_v56, %v2752_v62  ;;  %v202_v62 = vld [vmem:[%s13158_s0 + $0x5b0] sm:$0xff]  ;;  %v2757_v11 = vsel %vm1842_vm2, %v2431_v0, 0.0  ;;  %v1986_v56 = vsel %vm1842_vm2, %v6886_v44, 0.0 }
 0x291   :  { %13969 = vst [vmem:[#allocation11_spill] sm:$0xff] %v6908_v10  ;;  %v2433_v1 = vmul.f32 %v6895_v16, %v6895_v16  ;;  %4881 = vmatmul.msk.f32.gmra.mxu2 %vm284_vm1, %v202_v62  ;;  %4929 = vmatmul.msk.f32.gmra.mxu3 %vm284_vm1, %v250_v9  ;;  %v2759_v49 = vsel %vm1842_vm2, %v2432_v26, 0.0  ;;  %v1988_v0 = vsel %vm1842_vm2, %v6895_v16, 0.0  ;;  %v2434_v44 = vmul.f32 %v6908_v10, %v6908_v10  ;;  %v13974_v26 = vld [vmem:[#allocation14_spill] sm:$0xff] }
 0x292   :  { %v1985_v48 = vadd.f32 %v1984_v47, %v1983_v6  ;;  %v2756_v32 = vadd.f32 %v2755_v5, %v2754_v17  ;;  %v13970_v6 = vld [vmem:[#allocation12_spill] sm:$0xff]  ;;  %13973 = vst [vmem:[#allocation13_spill] sm:$0xff] %v6936_v43  ;;  %v6945_v9 = vadd.f32 %v6779_v41, %v13974_v26 }
 0x293   :  { %v6925_v17 = vadd.f32 %v6779_v41, %v13970_v6  ;;  %v2761_v62 = vsel %vm1842_vm2, %v2433_v1, 0.0 }
 0x294   :  { %v1987_v5 = vadd.f32 %v1986_v56, %v1985_v48  ;;  %v2758_v47 = vadd.f32 %v2757_v11, %v2756_v32  ;;  %v1990_v48 = vsel %vm1842_vm2, %v6908_v10, 0.0  ;;  %13975 = vst [vmem:[#allocation14_spill] sm:$0xff] %v6945_v9  ;;  %v6947_v11 = vpop.f32.mrf.mxu2  ;;  %v6949_v56 = vpop.f32.mrf.mxu3 }
 0x295   :  { %13971 = vst [vmem:[#allocation12_spill] sm:$0xff] %v6925_v17  ;;  %v2435_v32 = vmul.f32 %v6925_v17, %v6925_v17  ;;  %v1992_v1 = vsel %vm1842_vm2, %v6925_v17, 0.0  ;;  %v13981_v17 = vld [vmem:[#allocation17_spill] sm:$0xff] }
 0x296   :  { %v1989_v6 = vadd.f32 %v1988_v0, %v1987_v5  ;;  %v2760_v8 = vadd.f32 %v2759_v49, %v2758_v47  ;;  %13976 = vst [vmem:[#allocation146_spill] sm:$0xff] %v6949_v56  ;;  %v2763_v5 = vsel %vm1842_vm2, %v2434_v44, 0.0  ;;  %v2436_v47 = vmul.f32 %v6936_v43, %v6936_v43  ;;  %v13977_v49 = vld [vmem:[#allocation15_spill] sm:$0xff]  ;;  %v203_v56 = vld [vmem:[%s13158_s0 + $0x5b8] sm:$0xff] }
 0x297   :  { %v6958_v0 = vadd.f32 %v6779_v41, %v13977_v49  ;;  %v2765_v44 = vsel %vm1842_vm2, %v2435_v32, 0.0  ;;  %v1996_v49 = vsel %vm1842_vm2, %v6945_v9, 0.0 }
 0x298   :  { %v1991_v14 = vadd.f32 %v1990_v48, %v1989_v6  ;;  %v2762_v16 = vadd.f32 %v2761_v62, %v2760_v8  ;;  %v251_v8 = vld [vmem:[%s13158_s0 + $0x738] sm:$0xff]  ;;  %v1994_v6 = vsel %vm1842_vm2, %v6936_v43, 0.0  ;;  %v2437_v62 = vmul.f32 %v6945_v9, %v6945_v9  ;;  %v13979_v48 = vld [vmem:[#allocation16_spill] sm:$0xff] }
 0x299   :  { %13978 = vst [vmem:[#allocation15_spill] sm:$0xff] %v6958_v0  ;;  %4882 = vmatmul.msk.f32.gmra.mxu2 %vm284_vm1, %v203_v56  ;;  %4930 = vmatmul.msk.f32.gmra.mxu3 %vm284_vm1, %v251_v8  ;;  %v2767_v32 = vsel %vm1842_vm2, %v2436_v47, 0.0  ;;  %v2438_v43 = vmul.f32 %v6958_v0, %v6958_v0 }
 0x29a   :  { %v1993_v26 = vadd.f32 %v1992_v1, %v1991_v14  ;;  %v2764_v10 = vadd.f32 %v2763_v5, %v2762_v16  ;;  %v6973_v14 = vadd.f32 %v6779_v41, %v13979_v48  ;;  %v6977_v1 = vpop.f32.mrf.mxu1  ;;  %v6986_v48 = vadd.f32 %v6779_v41, %v13981_v17 }
 0x29b   :  { %v2769_v8 = vsel %vm1842_vm2, %v2437_v62, 0.0 }
 0x29c   :  { %13980 = vst [vmem:[#allocation16_spill] sm:$0xff] %v6973_v14  ;;  %v1995_v16 = vadd.f32 %v1994_v6, %v1993_v26  ;;  %v2766_v5 = vadd.f32 %v2765_v44, %v2764_v10  ;;  %v1998_v10 = vsel %vm1842_vm2, %v6958_v0, 0.0  ;;  %v2439_v47 = vmul.f32 %v6973_v14, %v6973_v14  ;;  %v13983_v26 = vld [vmem:[#allocation19_spill] sm:$0xff]  ;;  %v6997_v6 = vpop.f32.mrf.mxu2  ;;  %v6999_v9 = vpop.f32.mrf.mxu3 }
 0x29d   :  { %13982 = vst [vmem:[#allocation17_spill] sm:$0xff] %v6986_v48  ;;  %v6995_v44 = vadd.f32 %v6779_v41, %v13983_v26  ;;  %v2000_v62 = vsel %vm1842_vm2, %v6973_v14, 0.0 }
 0x29e   :  { %v1997_v38 = vadd.f32 %v1996_v49, %v1995_v16  ;;  %v2768_v56 = vadd.f32 %v2767_v32, %v2766_v5  ;;  %13985 = vst [vmem:[#allocation147_spill] sm:$0xff] %v6999_v9  ;;  %v2771_v16 = vsel %vm1842_vm2, %v2438_v43, 0.0  ;;  %v2440_v5 = vmul.f32 %v6986_v48, %v6986_v48  ;;  %v13986_v32 = vld [vmem:[#allocation21_spill] sm:$0xff]  ;;  %v204_v9 = vld [vmem:[%s13158_s0 + $0x5c0] sm:$0xff] }
 0x29f   :  { %13984 = vst [vmem:[#allocation19_spill] sm:$0xff] %v6995_v44  ;;  %v7008_v49 = vadd.f32 %v6779_v41, %v13986_v32  ;;  %v2773_v43 = vsel %vm1842_vm2, %v2439_v47, 0.0  ;;  %v2004_v47 = vsel %vm1842_vm2, %v6995_v44, 0.0 }
 0x2a0   :  { %v1999_v17 = vadd.f32 %v1998_v10, %v1997_v38  ;;  %v2770_v31 = vadd.f32 %v2769_v8, %v2768_v56  ;;  %v252_v38 = vld [vmem:[%s13158_s0 + $0x740] sm:$0xff]  ;;  %v2002_v56 = vsel %vm1842_vm2, %v6986_v48, 0.0  ;;  %v2441_v8 = vmul.f32 %v6995_v44, %v6995_v44  ;;  %v13988_v10 = vld [vmem:[#allocation23_spill] sm:$0xff]  ;;  %v13990_v48 = vld [vmem:[#allocation25_spill] sm:$0xff] }
 0x2a1   :  { %13987 = vst [vmem:[#allocation21_spill] sm:$0xff] %v7008_v49  ;;  %4883 = vmatmul.msk.f32.gmra.mxu2 %vm284_vm1, %v204_v9  ;;  %4931 = vmatmul.msk.f32.gmra.mxu3 %vm284_vm1, %v252_v38  ;;  %v2442_v32 = vmul.f32 %v7008_v49, %v7008_v49  ;;  %v7034_v14 = vadd.f32 %v6779_v41, %v13990_v48 }
 0x2a2   :  { %v2001_v26 = vadd.f32 %v2000_v62, %v1999_v17  ;;  %v2772_v0 = vadd.f32 %v2771_v16, %v2770_v31  ;;  %v7023_v17 = vadd.f32 %v6779_v41, %v13988_v10  ;;  %v2775_v62 = vsel %vm1842_vm2, %v2440_v5, 0.0  ;;  %v7036_v29 = vpop.f32.mrf.mxu1 }
 0x2a3   :  { %13991 = vst [vmem:[#allocation25_spill] sm:$0xff] %v7034_v14  ;;  %v2777_v9 = vsel %vm1842_vm2, %v2441_v8, 0.0 }
 0x2a4   :  { %13989 = vst [vmem:[#allocation23_spill] sm:$0xff] %v7023_v17  ;;  %v2003_v31 = vadd.f32 %v2002_v56, %v2001_v26  ;;  %v2774_v16 = vadd.f32 %v2773_v43, %v2772_v0  ;;  %v2006_v0 = vsel %vm1842_vm2, %v7008_v49, 0.0  ;;  %v2443_v5 = vmul.f32 %v7023_v17, %v7023_v17  ;;  %v13992_v26 = vld [vmem:[#allocation27_spill] sm:$0xff]  ;;  %v7047_v43 = vpop.f32.mrf.mxu2  ;;  %v7049_v48 = vpop.f32.mrf.mxu3 }
 0x2a5   :  { %v7045_v38 = vadd.f32 %v6779_v41, %v13992_v26  ;;  %13994 = vst [vmem:[#allocation148_spill] sm:$0xff] %v7049_v48  ;;  %v2008_v8 = vsel %vm1842_vm2, %v7023_v17, 0.0  ;;  %v205_v48 = vld [vmem:[%s13158_s0 + $0x5c8] sm:$0xff] }
 0x2a6   :  { %v2005_v10 = vadd.f32 %v2004_v47, %v2003_v31  ;;  %v2776_v59 = vadd.f32 %v2775_v62, %v2774_v16  ;;  %v2779_v16 = vsel %vm1842_vm2, %v2442_v32, 0.0  ;;  %v2444_v62 = vmul.f32 %v7034_v14, %v7034_v14  ;;  %v13995_v47 = vld [vmem:[#allocation29_spill] sm:$0xff] }
 0x2a7   :  { %13993 = vst [vmem:[#allocation27_spill] sm:$0xff] %v7045_v38  ;;  %v7058_v49 = vadd.f32 %v6779_v41, %v13995_v47  ;;  %v2781_v32 = vsel %vm1842_vm2, %v2443_v5, 0.0  ;;  %v2012_v5 = vsel %vm1842_vm2, %v7045_v38, 0.0 }
 0x2a8   :  { %v2007_v56 = vadd.f32 %v2006_v0, %v2005_v10  ;;  %v2778_v31 = vadd.f32 %v2777_v9, %v2776_v59  ;;  %v253_v59 = vld [vmem:[%s13158_s0 + $0x748] sm:$0xff]  ;;  %v2010_v10 = vsel %vm1842_vm2, %v7034_v14, 0.0  ;;  %v2445_v9 = vmul.f32 %v7045_v38, %v7045_v38  ;;  %v13999_v14 = vld [vmem:[#allocation33_spill] sm:$0xff] }
 0x2a9   :  { %13996 = vst [vmem:[#allocation29_spill] sm:$0xff] %v7058_v49  ;;  %v13997_v0 = vld [vmem:[#allocation31_spill] sm:$0xff]  ;;  %4884 = vmatmul.msk.f32.gmra.mxu2 %vm284_vm1, %v205_v48  ;;  %4932 = vmatmul.msk.f32.gmra.mxu3 %vm284_vm1, %v253_v59  ;;  %v2446_v47 = vmul.f32 %v7058_v49, %v7058_v49  ;;  %v7084_v17 = vadd.f32 %v6779_v41, %v13999_v14 }
 0x2aa   :  { %v2009_v26 = vadd.f32 %v2008_v8, %v2007_v56  ;;  %v2780_v44 = vadd.f32 %v2779_v16, %v2778_v31  ;;  %v7073_v56 = vadd.f32 %v6779_v41, %v13997_v0  ;;  %v2783_v8 = vsel %vm1842_vm2, %v2444_v62, 0.0  ;;  %v14001_v62 = vld [vmem:[#allocation35_spill] sm:$0xff] }
 0x2ab   :  { %14000 = vst [vmem:[#allocation33_spill] sm:$0xff] %v7084_v17  ;;  %v2785_v48 = vsel %vm1842_vm2, %v2445_v9, 0.0  ;;  %v7093_v59 = vadd.f32 %v6779_v41, %v14001_v62  ;;  %v2787_v9 = vsel %vm1842_vm2, %v2446_v47, 0.0  ;;  %v254_v47 = vld [vmem:[%s13158_s0 + $0x750] sm:$0xff] }
 0x2ac   :  { %13998 = vst [vmem:[#allocation31_spill] sm:$0xff] %v7073_v56  ;;  %v2011_v31 = vadd.f32 %v2010_v10, %v2009_v26  ;;  %v2782_v16 = vadd.f32 %v2781_v32, %v2780_v44  ;;  %v2014_v26 = vsel %vm1842_vm2, %v7058_v49, 0.0  ;;  %v2447_v44 = vmul.f32 %v7073_v56, %v7073_v56  ;;  %v7095_v32 = vpop.f32.mrf.mxu2  ;;  %v7097_v10 = vpop.f32.mrf.mxu3 }
 0x2ad   :  { %14002 = vst [vmem:[#allocation35_spill] sm:$0xff] %v7093_v59 }
 0x2ae   :  { %v2013_v0 = vadd.f32 %v2012_v5, %v2011_v31  ;;  %v2784_v7 = vadd.f32 %v2783_v8, %v2782_v16  ;;  %14003 = vst [vmem:[#allocation149_spill] sm:$0xff] %v7097_v10  ;;  %v7099_v31 = vpop.f32.mrf.mxu1  ;;  %v2016_v16 = vsel %vm1842_vm2, %v7073_v56, 0.0  ;;  %v2448_v8 = vmul.f32 %v7084_v17, %v7084_v17  ;;  %v14004_v5 = vld [vmem:[#allocation37_spill] sm:$0xff] }
 0x2af   :  { %v7108_v62 = vadd.f32 %v6779_v41, %v14004_v5  ;;  %v14006_v5 = vld [vmem:[#allocation39_spill] sm:$0xff]  ;;  %v14008_v56 = vld [vmem:[#allocation41_spill] sm:$0xff] }
 0x2b0   :  { %v2015_v14 = vadd.f32 %v2014_v26, %v2013_v0  ;;  %v2786_v38 = vadd.f32 %v2785_v48, %v2784_v7  ;;  %v206_v7 = vld [vmem:[%s13158_s0 + $0x5d0] sm:$0xff]  ;;  %v2789_v0 = vsel %vm1842_vm2, %v2447_v44, 0.0  ;;  %v2018_v48 = vsel %vm1842_vm2, %v7084_v17, 0.0 }
 0x2b1   :  { %14005 = vst [vmem:[#allocation37_spill] sm:$0xff] %v7108_v62  ;;  %v2449_v26 = vmul.f32 %v7093_v59, %v7093_v59  ;;  %4885 = vmatmul.msk.f32.gmra.mxu2 %vm284_vm1, %v206_v7  ;;  %4933 = vmatmul.msk.f32.gmra.mxu3 %vm284_vm1, %v254_v47  ;;  %v2020_v44 = vsel %vm1842_vm2, %v7093_v59, 0.0  ;;  %v2450_v17 = vmul.f32 %v7108_v62, %v7108_v62 }
 0x2b2   :  { %v2017_v49 = vadd.f32 %v2016_v16, %v2015_v14  ;;  %v2788_v54 = vadd.f32 %v2787_v9, %v2786_v38  ;;  %v7123_v14 = vadd.f32 %v6779_v41, %v14006_v5  ;;  %v2791_v16 = vsel %vm1842_vm2, %v2448_v8, 0.0  ;;  %v14010_v8 = vld [vmem:[#allocation43_spill] sm:$0xff] }
 0x2b3   :  { %v7134_v10 = vadd.f32 %v6779_v41, %v14008_v56  ;;  %v2793_v7 = vsel %vm1842_vm2, %v2449_v26, 0.0  ;;  %v7143_v47 = vadd.f32 %v6779_v41, %v14010_v8 }
 0x2b4   :  { %14007 = vst [vmem:[#allocation39_spill] sm:$0xff] %v7123_v14  ;;  %v2019_v38 = vadd.f32 %v2018_v48, %v2017_v49  ;;  %v2790_v9 = vadd.f32 %v2789_v0, %v2788_v54  ;;  %v2022_v49 = vsel %vm1842_vm2, %v7108_v62, 0.0  ;;  %v2451_v54 = vmul.f32 %v7123_v14, %v7123_v14  ;;  %v7145_v0 = vpop.f32.mrf.mxu2  ;;  %v7147_v48 = vpop.f32.mrf.mxu3 }
 0x2b5   :  { %14009 = vst [vmem:[#allocation41_spill] sm:$0xff] %v7134_v10  ;;  %v2024_v26 = vsel %vm1842_vm2, %v7123_v14, 0.0  ;;  %v14017_v14 = vld [vmem:[#allocation49_spill] sm:$0xff] }
 0x2b6   :  { %v2021_v5 = vadd.f32 %v2020_v44, %v2019_v38  ;;  %v2792_v42 = vadd.f32 %v2791_v16, %v2790_v9  ;;  %14011 = vst [vmem:[#allocation43_spill] sm:$0xff] %v7143_v47  ;;  %v2795_v38 = vsel %vm1842_vm2, %v2450_v17, 0.0  ;;  %v2452_v9 = vmul.f32 %v7134_v10, %v7134_v10  ;;  %v14013_v16 = vld [vmem:[#allocation45_spill] sm:$0xff]  ;;  %v7158_v30 = vpop.f32.mrf.mxu1 }
 0x2b7   :  { %14012 = vst [vmem:[#allocation150_spill] sm:$0xff] %v7147_v48  ;;  %v7156_v44 = vadd.f32 %v6779_v41, %v14013_v16  ;;  %v255_v17 = vld [vmem:[%s13158_s0 + $0x758] sm:$0xff]  ;;  %v7184_v48 = vadd.f32 %v6779_v41, %v14017_v14 }
 0x2b8   :  { %v2023_v56 = vadd.f32 %v2022_v49, %v2021_v5  ;;  %v2794_v59 = vadd.f32 %v2793_v7, %v2792_v42  ;;  %v207_v42 = vld [vmem:[%s13158_s0 + $0x5d8] sm:$0xff]  ;;  %v2797_v5 = vsel %vm1842_vm2, %v2451_v54, 0.0  ;;  %v2026_v7 = vsel %vm1842_vm2, %v7134_v10, 0.0 }
 0x2b9   :  { %14014 = vst [vmem:[#allocation45_spill] sm:$0xff] %v7156_v44  ;;  %v2453_v49 = vmul.f32 %v7143_v47, %v7143_v47  ;;  %4886 = vmatmul.msk.f32.gmra.mxu2 %vm284_vm1, %v207_v42  ;;  %4934 = vmatmul.msk.f32.gmra.mxu3 %vm284_vm1, %v255_v17  ;;  %v2799_v16 = vsel %vm1842_vm2, %v2452_v9, 0.0  ;;  %v2028_v54 = vsel %vm1842_vm2, %v7143_v47, 0.0  ;;  %v2454_v10 = vmul.f32 %v7156_v44, %v7156_v44  ;;  %v14019_v9 = vld [vmem:[#allocation52_spill] sm:$0xff] }
 0x2ba   :  { %v2025_v8 = vadd.f32 %v2024_v26, %v2023_v56  ;;  %v2796_v62 = vadd.f32 %v2795_v38, %v2794_v59  ;;  %v14015_v56 = vld [vmem:[#allocation47_spill] sm:$0xff]  ;;  %14018 = vst [vmem:[#allocation49_spill] sm:$0xff] %v7184_v48  ;;  %v7193_v17 = vadd.f32 %v6779_v41, %v14019_v9 }
 0x2bb   :  { %v7173_v59 = vadd.f32 %v6779_v41, %v14015_v56  ;;  %v2801_v42 = vsel %vm1842_vm2, %v2453_v49, 0.0 }
 0x2bc   :  { %v2027_v38 = vadd.f32 %v2026_v7, %v2025_v8  ;;  %v2798_v26 = vadd.f32 %v2797_v5, %v2796_v62  ;;  %v2030_v8 = vsel %vm1842_vm2, %v7156_v44, 0.0  ;;  %14020 = vst [vmem:[#allocation52_spill] sm:$0xff] %v7193_v17  ;;  %v7195_v5 = vpop.f32.mrf.mxu2  ;;  %v7197_v7 = vpop.f32.mrf.mxu3 }
 0x2bd   :  { %14016 = vst [vmem:[#allocation47_spill] sm:$0xff] %v7173_v59  ;;  %v2455_v62 = vmul.f32 %v7173_v59, %v7173_v59  ;;  %v2032_v49 = vsel %vm1842_vm2, %v7173_v59, 0.0  ;;  %v14027_v59 = vld [vmem:[#allocation67_spill] sm:$0xff] }
 0x2be   :  { %v2029_v56 = vadd.f32 %v2028_v54, %v2027_v38  ;;  %v2800_v25 = vadd.f32 %v2799_v16, %v2798_v26  ;;  %14021 = vst [vmem:[#allocation151_spill] sm:$0xff] %v7195_v5  ;;  %v2803_v38 = vsel %vm1842_vm2, %v2454_v10, 0.0  ;;  %v2456_v26 = vmul.f32 %v7184_v48, %v7184_v48  ;;  %v14023_v16 = vld [vmem:[#allocation55_spill] sm:$0xff] }
 0x2bf   :  { %14022 = vst [vmem:[#allocation152_spill] sm:$0xff] %v7197_v7  ;;  %v7206_v54 = vadd.f32 %v6779_v41, %v14023_v16  ;;  %v208_v7 = vld [vmem:[%s13158_s0 + $0x5e0] sm:$0xff]  ;;  %v2805_v10 = vsel %vm1842_vm2, %v2455_v62, 0.0  ;;  %v2036_v16 = vsel %vm1842_vm2, %v7193_v17, 0.0 }
 0x2c0   :  { %v2031_v14 = vadd.f32 %v2030_v8, %v2029_v56  ;;  %v2802_v47 = vadd.f32 %v2801_v42, %v2800_v25  ;;  %v256_v25 = vld [vmem:[%s13158_s0 + $0x760] sm:$0xff]  ;;  %v2034_v56 = vsel %vm1842_vm2, %v7184_v48, 0.0  ;;  %v2457_v42 = vmul.f32 %v7193_v17, %v7193_v17  ;;  %v14025_v8 = vld [vmem:[#allocation60_spill] sm:$0xff] }
 0x2c1   :  { %14024 = vst [vmem:[#allocation55_spill] sm:$0xff] %v7206_v54  ;;  %4887 = vmatmul.msk.f32.gmra.mxu2 %vm284_vm1, %v208_v7  ;;  %4935 = vmatmul.msk.f32.gmra.mxu3 %vm284_vm1, %v256_v25  ;;  %v2807_v62 = vsel %vm1842_vm2, %v2456_v26, 0.0  ;;  %v2458_v48 = vmul.f32 %v7206_v54, %v7206_v54 }
 0x2c2   :  { %v2033_v9 = vadd.f32 %v2032_v49, %v2031_v14  ;;  %v2804_v44 = vadd.f32 %v2803_v38, %v2802_v47  ;;  %v7221_v14 = vadd.f32 %v6779_v41, %v14025_v8  ;;  %v7225_v49 = vpop.f32.mrf.mxu1  ;;  %v7234_v8 = vadd.f32 %v6779_v41, %v14027_v59 }
 0x2c3   :  { %v2809_v25 = vsel %vm1842_vm2, %v2457_v42, 0.0 }
 0x2c4   :  { %14026 = vst [vmem:[#allocation60_spill] sm:$0xff] %v7221_v14  ;;  %v2035_v47 = vadd.f32 %v2034_v56, %v2033_v9  ;;  %v2806_v38 = vadd.f32 %v2805_v10, %v2804_v44  ;;  %v2038_v44 = vsel %vm1842_vm2, %v7206_v54, 0.0  ;;  %v2459_v26 = vmul.f32 %v7221_v14, %v7221_v14  ;;  %v7245_v10 = vpop.f32.mrf.mxu2  ;;  %v7247_v56 = vpop.f32.mrf.mxu3  ;;  %v209_v54 = vld [vmem:[%s13158_s0 + $0x5e8] sm:$0xff] }
 0x2c5   :  { %14028 = vst [vmem:[#allocation67_spill] sm:$0xff] %v7234_v8  ;;  %v7243_v9 = vadd.f32 %v6779_v41, %v6032_v36  ;;  %v2040_v42 = vsel %vm1842_vm2, %v7221_v14, 0.0 }
 0x2c6   :  { %v2037_v5 = vadd.f32 %v2036_v16, %v2035_v47  ;;  %v2808_v7 = vadd.f32 %v2807_v62, %v2806_v38  ;;  %v2811_v47 = vsel %vm1842_vm2, %v2458_v48, 0.0  ;;  %v2460_v38 = vmul.f32 %v7234_v8, %v7234_v8  ;;  %v257_v48 = vld [vmem:[%s13158_s0 + $0x768] sm:$0xff] }
 0x2c7   :  { %14029 = vst [vmem:[#allocation153_spill] sm:$0xff] %v7243_v9  ;;  %v7256_v62 = vadd.f32 %v6779_v41, %v6088_v28  ;;  %v7271_v28 = vadd.f32 %v6779_v41, %v6144_v35 }
 0x2c8   :  { %v2039_v59 = vadd.f32 %v2038_v44, %v2037_v5  ;;  %v2810_v17 = vadd.f32 %v2809_v25, %v2808_v7  ;;  %v2813_v5 = vsel %vm1842_vm2, %v2459_v26, 0.0  ;;  %v2042_v7 = vsel %vm1842_vm2, %v7234_v8, 0.0 }
 0x2c9   :  { %14030 = vst [vmem:[#allocation154_spill] sm:$0xff] %v7256_v62  ;;  %v2461_v25 = vmul.f32 %v7243_v9, %v7243_v9  ;;  %4888 = vmatmul.msk.f32.gmra.mxu2 %vm284_vm1, %v209_v54  ;;  %4936 = vmatmul.msk.f32.gmra.mxu3 %vm284_vm1, %v257_v48  ;;  %v2044_v26 = vsel %vm1842_vm2, %v7243_v9, 0.0 }
 0x2ca   :  { %v2041_v36 = vadd.f32 %v2040_v42, %v2039_v59  ;;  %v2812_v16 = vadd.f32 %v2811_v47, %v2810_v17  ;;  %14031 = vst [vmem:[#allocation155_spill] sm:$0xff] %v7271_v28  ;;  %v2815_v59 = vsel %vm1842_vm2, %v2460_v38, 0.0  ;;  %v2462_v47 = vmul.f32 %v7256_v62, %v7256_v62  ;;  %v7284_v14 = vpop.f32.mrf.mxu1 }
 0x2cb   :  { %v7282_v42 = vadd.f32 %v6779_v41, %v6200_v55  ;;  %v2817_v54 = vsel %vm1842_vm2, %v2461_v25, 0.0  ;;  %v2463_v38 = vmul.f32 %v7271_v28, %v7271_v28  ;;  %v2048_v25 = vsel %vm1842_vm2, %v7271_v28, 0.0 }
 0x2cc   :  { %v2043_v17 = vadd.f32 %v2042_v7, %v2041_v36  ;;  %v2814_v44 = vadd.f32 %v2813_v5, %v2812_v16  ;;  %v2046_v36 = vsel %vm1842_vm2, %v7256_v62, 0.0  ;;  %v7293_v16 = vadd.f32 %v6779_v41, %v6256_v15  ;;  %v7295_v48 = vpop.f32.mrf.mxu2  ;;  %v7297_v55 = vpop.f32.mrf.mxu3  ;;  %v210_v62 = vld [vmem:[%s13158_s0 + $0x5f0] sm:$0xff] }
 0x2cd   :  { %14032 = vst [vmem:[#allocation156_spill] sm:$0xff] %v7282_v42 }
 0x2ce   :  { %v2045_v35 = vadd.f32 %v2044_v26, %v2043_v17  ;;  %v2816_v8 = vadd.f32 %v2815_v59, %v2814_v44  ;;  %14033 = vst [vmem:[#allocation157_spill] sm:$0xff] %v7293_v16  ;;  %v2819_v17 = vsel %vm1842_vm2, %v2462_v47, 0.0  ;;  %v2464_v44 = vmul.f32 %v7282_v42, %v7282_v42 }
 0x2cf   :  { %v7306_v59 = vadd.f32 %v6779_v41, %v6312_v53  ;;  %v2821_v47 = vsel %vm1842_vm2, %v2463_v38, 0.0  ;;  %v7321_v53 = vadd.f32 %v6779_v41, %v6368_v40  ;;  %v2052_v38 = vsel %vm1842_vm2, %v7293_v16, 0.0 }
 0x2d0   :  { %v2047_v5 = vadd.f32 %v2046_v36, %v2045_v35  ;;  %v2818_v7 = vadd.f32 %v2817_v54, %v2816_v8  ;;  %v258_v8 = vld [vmem:[%s13158_s0 + $0x770] sm:$0xff]  ;;  %v2050_v35 = vsel %vm1842_vm2, %v7282_v42, 0.0  ;;  %v2465_v54 = vmul.f32 %v7293_v16, %v7293_v16 }
 0x2d1   :  { %14034 = vst [vmem:[#allocation158_spill] sm:$0xff] %v7306_v59  ;;  %4889 = vmatmul.msk.f32.gmra.mxu2 %vm284_vm1, %v210_v62  ;;  %4937 = vmatmul.msk.f32.gmra.mxu3 %vm284_vm1, %v258_v8 }
 0x2d2   :  { %v2049_v15 = vadd.f32 %v2048_v25, %v2047_v5  ;;  %v2820_v26 = vadd.f32 %v2819_v17, %v2818_v7  ;;  %14035 = vst [vmem:[#allocation159_spill] sm:$0xff] %v7321_v53  ;;  %v2823_v7 = vsel %vm1842_vm2, %v2464_v44, 0.0  ;;  %v2466_v17 = vmul.f32 %v7306_v59, %v7306_v59 }
 0x2d3   :  { %v7332_v25 = vadd.f32 %v6779_v41, %v6424_v45  ;;  %v2825_v62 = vsel %vm1842_vm2, %v2465_v54, 0.0  ;;  %v2467_v44 = vmul.f32 %v7321_v53, %v7321_v53 }
 0x2d4   :  { %v2051_v36 = vadd.f32 %v2050_v35, %v2049_v15  ;;  %v2822_v5 = vadd.f32 %v2821_v47, %v2820_v26  ;;  %v2054_v15 = vsel %vm1842_vm2, %v7306_v59, 0.0  ;;  %v7341_v26 = vadd.f32 %v6779_v41, %v6480_v57  ;;  %v7343_v8 = vpop.f32.mrf.mxu2  ;;  %v7345_v47 = vpop.f32.mrf.mxu3 }
 0x2d5   :  { %14036 = vst [vmem:[#allocation160_spill] sm:$0xff] %v7332_v25  ;;  %v2827_v54 = vsel %vm1842_vm2, %v2466_v17, 0.0  ;;  %v7356_v57 = vadd.f32 %v6779_v41, %v6536_v12  ;;  %v259_v17 = vld [vmem:[%s13158_s0 + $0x778] sm:$0xff]  ;;  %v7371_v12 = vadd.f32 %v6779_v41, %v6592_v37 }
 0x2d6   :  { %v2053_v40 = vadd.f32 %v2052_v38, %v2051_v36  ;;  %v2824_v42 = vadd.f32 %v2823_v7, %v2822_v5  ;;  %14037 = vst [vmem:[#allocation161_spill] sm:$0xff] %v7341_v26  ;;  %v7347_v36 = vpop.f32.mrf.mxu1  ;;  %v2056_v5 = vsel %vm1842_vm2, %v7321_v53, 0.0  ;;  %v2468_v7 = vmul.f32 %v7332_v25, %v7332_v25 }
 0x2d7   :  { %14038 = vst [vmem:[#allocation162_spill] sm:$0xff] %v7356_v57 }
 0x2d8   :  { %v2055_v45 = vadd.f32 %v2054_v15, %v2053_v40  ;;  %v2826_v35 = vadd.f32 %v2825_v62, %v2824_v42  ;;  %v211_v42 = vld [vmem:[%s13158_s0 + $0x5f8] sm:$0xff]  ;;  %v2829_v40 = vsel %vm1842_vm2, %v2467_v44, 0.0  ;;  %v2058_v62 = vsel %vm1842_vm2, %v7332_v25, 0.0  ;;  %14039 = vst [vmem:[#allocation163_spill] sm:$0xff] %v7371_v12 }
 0x2d9   :  { %v2469_v15 = vmul.f32 %v7341_v26, %v7341_v26  ;;  %4890 = vmatmul.msk.f32.gmra.mxu2 %vm284_vm1, %v211_v42  ;;  %4938 = vmatmul.msk.f32.gmra.mxu3 %vm284_vm1, %v259_v17  ;;  %v2060_v44 = vsel %vm1842_vm2, %v7341_v26, 0.0  ;;  %v7382_v25 = vadd.f32 %v6779_v41, %v6646_v3 }
 0x2da   :  { %v2057_v38 = vadd.f32 %v2056_v5, %v2055_v45  ;;  %v2828_v59 = vadd.f32 %v2827_v54, %v2826_v35  ;;  %v2831_v54 = vsel %vm1842_vm2, %v2468_v7, 0.0  ;;  %v2470_v5 = vmul.f32 %v7356_v57, %v7356_v57 }
 0x2db   :  { %14040 = vst [vmem:[#allocation164_spill] sm:$0xff] %v7382_v25  ;;  %v2833_v42 = vsel %vm1842_vm2, %v2469_v15, 0.0  ;;  %v7391_v7 = vadd.f32 %v6779_v41, %v6696_v58  ;;  %v2064_v15 = vsel %vm1842_vm2, %v7371_v12, 0.0 }
 0x2dc   :  { %v2059_v45 = vadd.f32 %v2058_v62, %v2057_v38  ;;  %v2830_v35 = vadd.f32 %v2829_v40, %v2828_v59  ;;  %v2062_v38 = vsel %vm1842_vm2, %v7356_v57, 0.0  ;;  %v2471_v59 = vmul.f32 %v7371_v12, %v7371_v12  ;;  %v7393_v17 = vpop.f32.mrf.mxu2  ;;  %v7395_v40 = vpop.f32.mrf.mxu3 }
 0x2dd   :  { %14041 = vst [vmem:[#allocation165_spill] sm:$0xff] %v7391_v7 }
 0x2de   :  { %v2061_v37 = vadd.f32 %v2060_v44, %v2059_v45  ;;  %v2832_v53 = vadd.f32 %v2831_v54, %v2830_v35  ;;  %v2835_v45 = vsel %vm1842_vm2, %v2470_v5, 0.0  ;;  %v2472_v35 = vmul.f32 %v7382_v25, %v7382_v25  ;;  %v7406_v57 = vpop.f32.mrf.mxu1 }
 0x2df   :  { %v7404_v54 = vadd.f32 %v6779_v41, %v6744_v61  ;;  %v2837_v5 = vsel %vm1842_vm2, %v2471_v59, 0.0  ;;  %v7418_v61 = vadd.f32 %v6779_v41, %v6788_v27 }
 0x2e0   :  { %v2063_v3 = vadd.f32 %v2062_v38, %v2061_v37  ;;  %v2834_v62 = vadd.f32 %v2833_v42, %v2832_v53  ;;  %v260_v53 = vld [vmem:[%s13158_s0 + $0x780] sm:$0xff]  ;;  %v2066_v37 = vsel %vm1842_vm2, %v7382_v25, 0.0  ;;  %v2473_v42 = vmul.f32 %v7391_v7, %v7391_v7 }
 0x2e1   :  { %14042 = vst [vmem:[#allocation166_spill] sm:$0xff] %v7404_v54  ;;  %4939 = vmatmul.msk.f32.gmra.mxu3 %vm284_vm1, %v260_v53  ;;  %v2474_v59 = vmul.f32 %v7404_v54, %v7404_v54 }
 0x2e2   :  { %v2836_v58 = vadd.f32 %v2835_v45, %v2834_v62  ;;  %v2065_v44 = vadd.f32 %v2064_v15, %v2063_v3  ;;  %14043 = vst [vmem:[#allocation167_spill] sm:$0xff] %v7418_v61  ;;  %v2839_v62 = vsel %vm1842_vm2, %v2472_v35, 0.0  ;;  %v2068_v45 = vsel %vm1842_vm2, %v7391_v7, 0.0 }
 0x2e3   :  { %v7428_v15 = vadd.f32 %v6779_v41, %v6851_v4  ;;  %v2841_v27 = vsel %vm1842_vm2, %v2473_v42, 0.0  ;;  %v2475_v35 = vmul.f32 %v7418_v61, %v7418_v61  ;;  %v2072_v42 = vsel %vm1842_vm2, %v7418_v61, 0.0 }
 0x2e4   :  { %v2838_v38 = vadd.f32 %v2837_v5, %v2836_v58  ;;  %v2067_v3 = vadd.f32 %v2066_v37, %v2065_v44  ;;  %v2070_v58 = vsel %vm1842_vm2, %v7404_v54, 0.0  ;;  %v7437_v44 = vadd.f32 %v6779_v41, %v6910_v60  ;;  %v7439_v53 = vpop.f32.mrf.mxu2  ;;  %v7441_v5 = vpop.f32.mrf.mxu3  ;;  %v261_v54 = vld [vmem:[%s13158_s0 + $0x788] sm:$0xff] }
 0x2e5   :  { %14044 = vst [vmem:[#allocation168_spill] sm:$0xff] %v7428_v15 }
 0x2e6   :  { %v2840_v25 = vadd.f32 %v2839_v62, %v2838_v38  ;;  %v2069_v12 = vadd.f32 %v2068_v45, %v2067_v3  ;;  %14045 = vst [vmem:[#allocation169_spill] sm:$0xff] %v7437_v44  ;;  %v2843_v38 = vsel %vm1842_vm2, %v2474_v59, 0.0  ;;  %v2476_v3 = vmul.f32 %v7428_v15, %v7428_v15 }
 0x2e7   :  { %v7450_v62 = vadd.f32 %v6779_v41, %v6977_v1  ;;  %v2477_v59 = vmul.f32 %v7437_v44, %v7437_v44 }
 0x2e8   :  { %v2842_v4 = vadd.f32 %v2841_v27, %v2840_v25  ;;  %v2071_v37 = vadd.f32 %v2070_v58, %v2069_v12  ;;  %v2845_v25 = vsel %vm1842_vm2, %v2475_v35, 0.0  ;;  %v2074_v12 = vsel %vm1842_vm2, %v7428_v15, 0.0 }
 0x2e9   :  { %14046 = vst [vmem:[#allocation170_spill] sm:$0xff] %v7450_v62  ;;  %v7462_v27 = vadd.f32 %v6779_v41, %v7036_v29  ;;  %4940 = vmatmul.msk.f32.gmra.mxu3 %vm284_vm1, %v261_v54  ;;  %v2076_v35 = vsel %vm1842_vm2, %v7437_v44, 0.0  ;;  %v2849_v61 = vsel %vm1842_vm2, %v2477_v59, 0.0  ;;  %v2078_v54 = vsel %vm1842_vm2, %v7450_v62, 0.0 }
 0x2ea   :  { %v2844_v60 = vadd.f32 %v2843_v38, %v2842_v4  ;;  %v2073_v45 = vadd.f32 %v2072_v42, %v2071_v37  ;;  %v1452_v4 = vpop.f32.mrf.mxu1  ;;  %v2847_v37 = vsel %vm1842_vm2, %v2476_v3, 0.0  ;;  %v2478_v38 = vmul.f32 %v7450_v62, %v7450_v62  ;;  %v262_v62 = vld [vmem:[%s13158_s0 + $0x790] sm:$0xff] }
 0x2eb   :  { %14047 = vst [vmem:[#allocation171_spill] sm:$0xff] %v7462_v27  ;;  %v7472_v42 = vadd.f32 %v6779_v41, %v7099_v31  ;;  %v2479_v3 = vmul.f32 %v7462_v27, %v7462_v27 }
 0x2ec   :  { %v2846_v1 = vadd.f32 %v2845_v25, %v2844_v60  ;;  %v2075_v58 = vadd.f32 %v2074_v12, %v2073_v45  ;;  %v7481_v60 = vadd.f32 %v6779_v41, %v7158_v30  ;;  %v7483_v45 = vpop.f32.mrf.mxu2  ;;  %v7485_v25 = vpop.f32.mrf.mxu3  ;;  %v2851_v59 = vsel %vm1842_vm2, %v2478_v38, 0.0 }
 0x2ed   :  { %14048 = vst [vmem:[#allocation172_spill] sm:$0xff] %v7472_v42  ;;  %v7506_v38 = vadd.f32 %v6779_v41, %v7284_v14 }
 0x2ee   :  { %v2848_v15 = vadd.f32 %v2847_v37, %v2846_v1  ;;  %v2077_v29 = vadd.f32 %v2076_v35, %v2075_v58  ;;  %14049 = vst [vmem:[#allocation173_spill] sm:$0xff] %v7481_v60  ;;  %v7489_v1 = vadd.f32 %v6779_v41, %v7225_v49  ;;  %v2080_v58 = vsel %vm1842_vm2, %v7462_v27, 0.0 }
 0x2ef   :  { %v2480_v37 = vmul.f32 %v7472_v42, %v7472_v42  ;;  %v2082_v49 = vsel %vm1842_vm2, %v7472_v42, 0.0  ;;  %14051 = vst [vmem:[#allocation175_spill] sm:$0xff] %v7506_v38 }
 0x2f0   :  { %v2850_v31 = vadd.f32 %v2849_v61, %v2848_v15  ;;  %v2079_v12 = vadd.f32 %v2078_v54, %v2077_v29  ;;  %14050 = vst [vmem:[#allocation174_spill] sm:$0xff] %v7489_v1  ;;  %v2853_v61 = vsel %vm1842_vm2, %v2479_v3, 0.0  ;;  %v2481_v15 = vmul.f32 %v7481_v60, %v7481_v60 }
 0x2f1   :  { %4941 = vmatmul.msk.f32.gmra.mxu3 %vm284_vm1, %v262_v62  ;;  %v2084_v3 = vsel %vm1842_vm2, %v7481_v60, 0.0  ;;  %v2086_v62 = vsel %vm1842_vm2, %v7489_v1, 0.0 }
 0x2f2   :  { %v2852_v30 = vadd.f32 %v2851_v59, %v2850_v31  ;;  %v2081_v35 = vadd.f32 %v2080_v58, %v2079_v12  ;;  %v2482_v31 = vmul.f32 %v7489_v1, %v7489_v1  ;;  %v2855_v12 = vsel %vm1842_vm2, %v2480_v37, 0.0  ;;  %v1455_v14 = vpop.f32.mrf.mxu1 }
 0x2f3   :  { %v7516_v59 = vadd.f32 %v6779_v41, %v7347_v36  ;;  %v2857_v27 = vsel %vm1842_vm2, %v2481_v15, 0.0  ;;  %v7525_v37 = vadd.f32 %v6779_v41, %v7406_v57  ;;  %v2088_v15 = vsel %vm1842_vm2, %v7506_v38, 0.0 }
 0x2f4   :  { %v2854_v29 = vadd.f32 %v2853_v61, %v2852_v30  ;;  %v2083_v54 = vadd.f32 %v2082_v49, %v2081_v35  ;;  %v2483_v30 = vmul.f32 %v7506_v38, %v7506_v38  ;;  %v7527_v35 = vpop.f32.mrf.mxu2  ;;  %v7529_v61 = vpop.f32.mrf.mxu3  ;;  %v7540_v57 = vadd.f32 %v6779_v41, %v1455_v14 }
 0x2f5   :  { %14052 = vst [vmem:[#allocation176_spill] sm:$0xff] %v7516_v59 }
 0x2f6   :  { %v2856_v58 = vadd.f32 %v2855_v12, %v2854_v29  ;;  %v2085_v42 = vadd.f32 %v2084_v3, %v2083_v54  ;;  %14053 = vst [vmem:[#allocation177_spill] sm:$0xff] %v7525_v37  ;;  %v2859_v29 = vsel %vm1842_vm2, %v2482_v31, 0.0  ;;  %v2484_v54 = vmul.f32 %v7516_v59, %v7516_v59 }
 0x2f7   :  { %v7537_v12 = vadd.f32 %v6779_v41, %v1452_v4  ;;  %14055 = vst [vmem:[#allocation179_spill] sm:$0xff] %v7540_v57  ;;  %v2090_v31 = vsel %vm1842_vm2, %v7516_v59, 0.0  ;;  %v14056_v4 = vld [vmem:[#allocation18_spill] sm:$0xff] }
 0x2f8   :  { %v2858_v36 = vadd.f32 %v2857_v27, %v2856_v58  ;;  %v2087_v49 = vadd.f32 %v2086_v62, %v2085_v42  ;;  %v263_v27 = vld [vmem:[%s13158_s0 + $0x798] sm:$0xff]  ;;  %v2861_v42 = vsel %vm1842_vm2, %v2483_v30, 0.0  ;;  %v2485_v58 = vmul.f32 %v7525_v37, %v7525_v37 }
 0x2f9   :  { %14054 = vst [vmem:[#allocation178_spill] sm:$0xff] %v7537_v12  ;;  %4942 = vmatmul.msk.f32.gmra.mxu3 %vm284_vm1, %v263_v27  ;;  %v7553_v14 = vadd.f32 %v6779_v41, %v14056_v4  ;;  %v2486_v30 = vmul.f32 %v7537_v12, %v7537_v12  ;;  %v14058_v27 = vld [vmem:[#allocation20_spill] sm:$0xff] }
 0x2fa   :  { %v2860_v3 = vadd.f32 %v2859_v29, %v2858_v36  ;;  %v2089_v1 = vadd.f32 %v2088_v15, %v2087_v49  ;;  %v2863_v49 = vsel %vm1842_vm2, %v2484_v54, 0.0  ;;  %v2092_v29 = vsel %vm1842_vm2, %v7525_v37, 0.0 }
 0x2fb   :  { %14057 = vst [vmem:[#allocation18_spill] sm:$0xff] %v7553_v14  ;;  %v2487_v15 = vmul.f32 %v7540_v57, %v7540_v57  ;;  %v7564_v60 = vadd.f32 %v6779_v41, %v14058_v27  ;;  %v2096_v54 = vsel %vm1842_vm2, %v7540_v57, 0.0  ;;  %v264_v57 = vld [vmem:[%s13158_s0 + $0x7a0] sm:$0xff] }
 0x2fc   :  { %v2862_v62 = vadd.f32 %v2861_v42, %v2860_v3  ;;  %v2091_v36 = vadd.f32 %v2090_v31, %v2089_v1  ;;  %v2865_v3 = vsel %vm1842_vm2, %v2485_v58, 0.0  ;;  %v2094_v1 = vsel %vm1842_vm2, %v7537_v12, 0.0  ;;  %v7571_v42 = vpop.f32.mrf.mxu2  ;;  %v7573_v31 = vpop.f32.mrf.mxu3 }
 0x2fd   :  { %14059 = vst [vmem:[#allocation20_spill] sm:$0xff] %v7564_v60  ;;  %v2867_v58 = vsel %vm1842_vm2, %v2486_v30, 0.0 }
 0x2fe   :  { %v2864_v59 = vadd.f32 %v2863_v49, %v2862_v62  ;;  %v2093_v38 = vadd.f32 %v2092_v29, %v2091_v36  ;;  %v2488_v62 = vmul.f32 %v7553_v14, %v7553_v14  ;;  %v14060_v36 = vld [vmem:[#allocation22_spill] sm:$0xff]  ;;  %v2869_v29 = vsel %vm1842_vm2, %v2487_v15, 0.0 }
 0x2ff   :  { %v7579_v49 = vadd.f32 %v6779_v41, %v14060_v36  ;;  %v7603_v36 = vld [vmem:[%s13159_s2] ss:$0 sm:$0xff] }
 0x300   :  { %v2866_v4 = vadd.f32 %v2865_v3, %v2864_v59  ;;  %v2095_v37 = vadd.f32 %v2094_v1, %v2093_v38  ;;  %v2098_v38 = vsel %vm1842_vm2, %v7553_v14, 0.0  ;;  %v2489_v59 = vmul.f32 %v7564_v60, %v7564_v60  ;;  %v14062_v3 = vld [vmem:[#allocation24_spill] sm:$0xff] }
 0x301   :  { %14061 = vst [vmem:[#allocation22_spill] sm:$0xff] %v7579_v49  ;;  %v7592_v1 = vadd.f32 %v6779_v41, %v14062_v3  ;;  %4943 = vmatmul.msk.f32.gmra.mxu3 %vm284_vm1, %v264_v57 }
 0x302   :  { %v2868_v27 = vadd.f32 %v2867_v58, %v2866_v4  ;;  %v2097_v12 = vadd.f32 %v2096_v54, %v2095_v37  ;;  %v2871_v37 = vsel %vm1842_vm2, %v2488_v62, 0.0  ;;  %v2100_v54 = vsel %vm1842_vm2, %v7564_v60, 0.0  ;;  %v14064_v58 = vld [vmem:[#allocation26_spill] sm:$0xff] }
 0x303   :  { %14063 = vst [vmem:[#allocation24_spill] sm:$0xff] %v7592_v1  ;;  %v2490_v4 = vmul.f32 %v7579_v49, %v7579_v49  ;;  %v7607_v41 = vadd.f32 %v7603_v36, %v14064_v58  ;;  %v2102_v62 = vsel %vm1842_vm2, %v7579_v49, 0.0 }
 0x304   :  { %v2099_v30 = vadd.f32 %v2098_v38, %v2097_v12  ;;  %v2870_v15 = vadd.f32 %v2869_v29, %v2868_v27  ;;  %v2873_v29 = vsel %vm1842_vm2, %v2489_v59, 0.0  ;;  %v2491_v27 = vmul.f32 %v7592_v1, %v7592_v1  ;;  %v14066_v38 = vld [vmem:[#allocation28_spill] sm:$0xff]  ;;  %v7618_v60 = vpop.f32.mrf.mxu3  ;;  %v7620_v58 = vpop.f32.mrf.mxu2 }
 0x305   :  { %14065 = vst [vmem:[#allocation26_spill] sm:$0xff] %v7607_v41  ;;  %v7616_v3 = vadd.f32 %v7603_v36, %v14066_v38  ;;  %v2104_v59 = vsel %vm1842_vm2, %v7592_v1, 0.0 }
 0x306   :  { %v2101_v57 = vadd.f32 %v2100_v54, %v2099_v30  ;;  %v2872_v12 = vadd.f32 %v2871_v37, %v2870_v15  ;;  %v2875_v30 = vsel %vm1842_vm2, %v2490_v4, 0.0  ;;  %v2492_v15 = vmul.f32 %v7607_v41, %v7607_v41  ;;  %v14068_v37 = vld [vmem:[#allocation30_spill] sm:$0xff] }
 0x307   :  { %14067 = vst [vmem:[#allocation28_spill] sm:$0xff] %v7616_v3  ;;  %v7629_v54 = vadd.f32 %v7603_v36, %v14068_v37  ;;  %v2106_v4 = vsel %vm1842_vm2, %v7607_v41, 0.0  ;;  %v14072_v37 = vld [vmem:[#allocation34_spill] sm:$0xff] }
 0x308   :  { %v2103_v14 = vadd.f32 %v2102_v62, %v2101_v57  ;;  %v2874_v44 = vadd.f32 %v2873_v29, %v2872_v12  ;;  %v265_v57 = vld [vmem:[%s13158_s0 + $0x7a8] sm:$0xff]  ;;  %v2877_v12 = vsel %vm1842_vm2, %v2491_v27, 0.0  ;;  %v2493_v29 = vmul.f32 %v7616_v3, %v7616_v3  ;;  %v14070_v62 = vld [vmem:[#allocation32_spill] sm:$0xff] }
 0x309   :  { %14069 = vst [vmem:[#allocation30_spill] sm:$0xff] %v7629_v54  ;;  %v7641_v1 = vadd.f32 %v7603_v36, %v14070_v62  ;;  %4944 = vmatmul.msk.f32.gmra.mxu3 %vm284_vm1, %v265_v57  ;;  %v2494_v27 = vmul.f32 %v7629_v54, %v7629_v54  ;;  %v7651_v41 = vadd.f32 %v7603_v36, %v14072_v37 }
 0x30a   :  { %v2105_v38 = vadd.f32 %v2104_v59, %v2103_v14  ;;  %v2876_v49 = vadd.f32 %v2875_v30, %v2874_v44  ;;  %v2879_v30 = vsel %vm1842_vm2, %v2492_v15, 0.0  ;;  %v2108_v59 = vsel %vm1842_vm2, %v7616_v3, 0.0  ;;  %v14074_v15 = vld [vmem:[#allocation36_spill] sm:$0xff] }
 0x30b   :  { %14071 = vst [vmem:[#allocation32_spill] sm:$0xff] %v7641_v1  ;;  %v2881_v62 = vsel %vm1842_vm2, %v2493_v29, 0.0  ;;  %v7660_v57 = vadd.f32 %v7603_v36, %v14074_v15  ;;  %v2883_v37 = vsel %vm1842_vm2, %v2494_v27, 0.0  ;;  %v2496_v29 = vmul.f32 %v7651_v41, %v7651_v41 }
 0x30c   :  { %v2107_v14 = vadd.f32 %v2106_v4, %v2105_v38  ;;  %v2878_v44 = vadd.f32 %v2877_v12, %v2876_v49  ;;  %14073 = vst [vmem:[#allocation34_spill] sm:$0xff] %v7651_v41  ;;  %v2110_v38 = vsel %vm1842_vm2, %v7629_v54, 0.0  ;;  %v2495_v49 = vmul.f32 %v7641_v1, %v7641_v1  ;;  %v7662_v12 = vpop.f32.mrf.mxu3  ;;  %v7673_v15 = vpop.f32.mrf.mxu2 }
 0x30d   :  { %14075 = vst [vmem:[#allocation36_spill] sm:$0xff] %v7660_v57  ;;  %v2114_v27 = vsel %vm1842_vm2, %v7651_v41, 0.0  ;;  %v14080_v41 = vld [vmem:[#allocation42_spill] sm:$0xff] }
 0x30e   :  { %v2109_v7 = vadd.f32 %v2108_v59, %v2107_v14  ;;  %v2880_v26 = vadd.f32 %v2879_v30, %v2878_v44  ;;  %v2112_v14 = vsel %vm1842_vm2, %v7641_v1, 0.0  ;;  %v14076_v44 = vld [vmem:[#allocation38_spill] sm:$0xff]  ;;  %v7695_v1 = vadd.f32 %v7603_v36, %v14080_v41 }
 0x30f   :  { %v7671_v30 = vadd.f32 %v7603_v36, %v14076_v44 }
 0x310   :  { %v2111_v4 = vadd.f32 %v2110_v38, %v2109_v7  ;;  %v2882_v3 = vadd.f32 %v2881_v62, %v2880_v26  ;;  %v266_v26 = vld [vmem:[%s13158_s0 + $0x7b0] sm:$0xff]  ;;  %v2885_v7 = vsel %vm1842_vm2, %v2495_v49, 0.0  ;;  %v2497_v62 = vmul.f32 %v7660_v57, %v7660_v57  ;;  %14081 = vst [vmem:[#allocation42_spill] sm:$0xff] %v7695_v1 }
 0x311   :  { %14077 = vst [vmem:[#allocation38_spill] sm:$0xff] %v7671_v30  ;;  %v14078_v38 = vld [vmem:[#allocation40_spill] sm:$0xff]  ;;  %4945 = vmatmul.msk.f32.gmra.mxu3 %vm284_vm1, %v266_v26  ;;  %v2498_v49 = vmul.f32 %v7671_v30, %v7671_v30 }
 0x312   :  { %v2113_v59 = vadd.f32 %v2112_v14, %v2111_v4  ;;  %v2884_v54 = vadd.f32 %v2883_v37, %v2882_v3  ;;  %v7685_v44 = vadd.f32 %v7603_v36, %v14078_v38  ;;  %v2887_v37 = vsel %vm1842_vm2, %v2496_v29, 0.0  ;;  %v14082_v29 = vld [vmem:[#allocation44_spill] sm:$0xff] }
 0x313   :  { %v2116_v14 = vsel %vm1842_vm2, %v7660_v57, 0.0  ;;  %v2889_v38 = vsel %vm1842_vm2, %v2497_v62, 0.0  ;;  %v7704_v26 = vadd.f32 %v7603_v36, %v14082_v29  ;;  %v2891_v41 = vsel %vm1842_vm2, %v2498_v49, 0.0  ;;  %v267_v29 = vld [vmem:[%s13158_s0 + $0x7b8] sm:$0xff] }
 0x314   :  { %14079 = vst [vmem:[#allocation40_spill] sm:$0xff] %v7685_v44  ;;  %v2115_v3 = vadd.f32 %v2114_v27, %v2113_v59  ;;  %v2886_v4 = vadd.f32 %v2885_v7, %v2884_v54  ;;  %v2118_v59 = vsel %vm1842_vm2, %v7671_v30, 0.0  ;;  %v2499_v54 = vmul.f32 %v7685_v44, %v7685_v44  ;;  %v7706_v7 = vpop.f32.mrf.mxu3 }
 0x315   :  { %14083 = vst [vmem:[#allocation44_spill] sm:$0xff] %v7704_v26  ;;  %v2500_v62 = vmul.f32 %v7695_v1, %v7695_v1  ;;  %v2501_v49 = vmul.f32 %v7704_v26, %v7704_v26 }
 0x316   :  { %v2117_v16 = vadd.f32 %v2116_v14, %v2115_v3  ;;  %v2888_v28 = vadd.f32 %v2887_v37, %v2886_v4  ;;  %14084 = vst [vmem:[#allocation180_spill] sm:$0xff] %v7706_v7  ;;  %v2120_v3 = vsel %vm1842_vm2, %v7685_v44, 0.0  ;;  %v14085_v4 = vld [vmem:[#allocation46_spill] sm:$0xff] }
 0x317   :  { %v7715_v37 = vadd.f32 %v7603_v36, %v14085_v4 }
 0x318   :  { %v2119_v27 = vadd.f32 %v2118_v59, %v2117_v16  ;;  %v2890_v57 = vadd.f32 %v2889_v38, %v2888_v28  ;;  %v2893_v28 = vsel %vm1842_vm2, %v2499_v54, 0.0  ;;  %v2122_v16 = vsel %vm1842_vm2, %v7695_v1, 0.0  ;;  %v14087_v38 = vld [vmem:[#allocation48_spill] sm:$0xff]  ;;  %v14089_v1 = vld [vmem:[#allocation50_spill] sm:$0xff] }
 0x319   :  { %14086 = vst [vmem:[#allocation46_spill] sm:$0xff] %v7715_v37  ;;  %v7727_v59 = vadd.f32 %v7603_v36, %v14087_v38  ;;  %4946 = vmatmul.msk.f32.gmra.mxu3 %vm284_vm1, %v267_v29  ;;  %v2124_v54 = vsel %vm1842_vm2, %v7704_v26, 0.0  ;;  %v2502_v4 = vmul.f32 %v7715_v37, %v7715_v37  ;;  %v7739_v44 = vadd.f32 %v7603_v36, %v14089_v1 }
 0x31a   :  { %v2121_v14 = vadd.f32 %v2120_v3, %v2119_v27  ;;  %v2892_v30 = vadd.f32 %v2891_v41, %v2890_v57  ;;  %v7730_v41 = vpop.f32.mrf.mxu2  ;;  %v2895_v3 = vsel %vm1842_vm2, %v2500_v62, 0.0  ;;  %v2897_v29 = vsel %vm1842_vm2, %v2501_v49, 0.0 }
 0x31b   :  { %14088 = vst [vmem:[#allocation48_spill] sm:$0xff] %v7727_v59  ;;  %v2503_v62 = vmul.f32 %v7727_v59, %v7727_v59  ;;  %v2899_v1 = vsel %vm1842_vm2, %v2502_v4, 0.0  ;;  %v2504_v49 = vmul.f32 %v7739_v44, %v7739_v44  ;;  %v2130_v4 = vsel %vm1842_vm2, %v7739_v44, 0.0 }
 0x31c   :  { %v2123_v27 = vadd.f32 %v2122_v16, %v2121_v14  ;;  %v2894_v57 = vadd.f32 %v2893_v28, %v2892_v30  ;;  %14090 = vst [vmem:[#allocation50_spill] sm:$0xff] %v7739_v44  ;;  %v2126_v30 = vsel %vm1842_vm2, %v7715_v37, 0.0  ;;  %v14091_v14 = vld [vmem:[#allocation53_spill] sm:$0xff]  ;;  %v7750_v16 = vpop.f32.mrf.mxu3 }
 0x31d   :  { %v7748_v28 = vadd.f32 %v7603_v36, %v14091_v14  ;;  %14093 = vst [vmem:[#allocation181_spill] sm:$0xff] %v7750_v16  ;;  %v268_v14 = vld [vmem:[%s13158_s0 + $0x7c0] sm:$0xff] }
 0x31e   :  { %v2125_v38 = vadd.f32 %v2124_v54, %v2123_v27  ;;  %v2896_v9 = vadd.f32 %v2895_v3, %v2894_v57  ;;  %v2128_v27 = vsel %vm1842_vm2, %v7727_v59, 0.0  ;;  %v14094_v57 = vld [vmem:[#allocation56_spill] sm:$0xff] }
 0x31f   :  { %14092 = vst [vmem:[#allocation53_spill] sm:$0xff] %v7748_v28  ;;  %v7759_v3 = vadd.f32 %v7603_v36, %v14094_v57  ;;  %v14097_v57 = vld [vmem:[#allocation69_spill] sm:$0xff] }
 0x320   :  { %v2127_v26 = vadd.f32 %v2126_v30, %v2125_v38  ;;  %v2898_v7 = vadd.f32 %v2897_v29, %v2896_v9  ;;  %v2901_v9 = vsel %vm1842_vm2, %v2503_v62, 0.0  ;;  %v2505_v38 = vmul.f32 %v7748_v28, %v7748_v28  ;;  %v14096_v29 = vld [vmem:[#allocation62_spill] sm:$0xff] }
 0x321   :  { %14095 = vst [vmem:[#allocation56_spill] sm:$0xff] %v7759_v3  ;;  %v7771_v30 = vadd.f32 %v7603_v36, %v14096_v29  ;;  %4947 = vmatmul.msk.f32.gmra.mxu3 %vm284_vm1, %v268_v14  ;;  %v2506_v62 = vmul.f32 %v7759_v3, %v7759_v3  ;;  %v7781_v44 = vadd.f32 %v7603_v36, %v14097_v57 }
 0x322   :  { %v2129_v54 = vadd.f32 %v2128_v27, %v2127_v26  ;;  %v2900_v37 = vadd.f32 %v2899_v1, %v2898_v7  ;;  %v2903_v1 = vsel %vm1842_vm2, %v2504_v49, 0.0  ;;  %v2132_v27 = vsel %vm1842_vm2, %v7748_v28, 0.0  ;;  %v7783_v29 = vpop.f32.mrf.mxu2 }
 0x323   :  { %14098 = vst [vmem:[#allocation62_spill] sm:$0xff] %v7781_v44  ;;  %v2905_v14 = vsel %vm1842_vm2, %v2505_v38, 0.0  ;;  %v2507_v49 = vmul.f32 %v7771_v30, %v7771_v30  ;;  %v2508_v38 = vmul.f32 %v7781_v44, %v7781_v44 }
 0x324   :  { %v2131_v26 = vadd.f32 %v2130_v4, %v2129_v54  ;;  %v2902_v7 = vadd.f32 %v2901_v9, %v2900_v37  ;;  %v2134_v37 = vsel %vm1842_vm2, %v7759_v3, 0.0  ;;  %v7792_v54 = vadd.f32 %v7603_v36, %v6043_v51  ;;  %v7794_v9 = vpop.f32.mrf.mxu3  ;;  %v269_v51 = vld [vmem:[%s13158_s0 + $0x7c8] sm:$0xff] }
 0x326   :  { %v2133_v59 = vadd.f32 %v2132_v27, %v2131_v26  ;;  %v2904_v16 = vadd.f32 %v2903_v1, %v2902_v7  ;;  %14099 = vst [vmem:[#allocation69_spill] sm:$0xff] %v7792_v54  ;;  %v2907_v26 = vsel %vm1842_vm2, %v2506_v62, 0.0  ;;  %v2136_v7 = vsel %vm1842_vm2, %v7771_v30, 0.0 }
 0x327   :  { %v7803_v1 = vadd.f32 %v7603_v36, %v6099_v2  ;;  %v2509_v62 = vmul.f32 %v7792_v54, %v7792_v54 }
 0x328   :  { %v2135_v4 = vadd.f32 %v2134_v37, %v2133_v59  ;;  %v2906_v57 = vadd.f32 %v2905_v14, %v2904_v16  ;;  %v2909_v59 = vsel %vm1842_vm2, %v2507_v49, 0.0  ;;  %v2138_v16 = vsel %vm1842_vm2, %v7781_v44, 0.0 }
 0x329   :  { %v7815_v14 = vadd.f32 %v7603_v36, %v6155_v22  ;;  %4948 = vmatmul.msk.f32.gmra.mxu3 %vm284_vm1, %v269_v51  ;;  %v2510_v49 = vmul.f32 %v7803_v1, %v7803_v1  ;;  %v2913_v22 = vsel %vm1842_vm2, %v2509_v62, 0.0 }
 0x32a   :  { %v2137_v27 = vadd.f32 %v2136_v7, %v2135_v4  ;;  %v2908_v3 = vadd.f32 %v2907_v26, %v2906_v57  ;;  %v2911_v4 = vsel %vm1842_vm2, %v2508_v38, 0.0  ;;  %v2140_v57 = vsel %vm1842_vm2, %v7792_v54, 0.0 }
 0x32b   :  { %14100 = vst [vmem:[#allocation182_spill] sm:$0xff] %v7815_v14  ;;  %v7825_v26 = vadd.f32 %v7603_v36, %v6211_v52  ;;  %v7834_v38 = vadd.f32 %v7603_v36, %v6267_v20  ;;  %v7838_v52 = vpop.f32.mrf.mxu2  ;;  %v2144_v62 = vsel %vm1842_vm2, %v7815_v14, 0.0 }
 0x32c   :  { %v2139_v2 = vadd.f32 %v2138_v16, %v2137_v27  ;;  %v2910_v37 = vadd.f32 %v2909_v59, %v2908_v3  ;;  %v2142_v27 = vsel %vm1842_vm2, %v7803_v1, 0.0  ;;  %v2511_v3 = vmul.f32 %v7815_v14, %v7815_v14  ;;  %v7836_v51 = vpop.f32.mrf.mxu3 }
 0x32d   :  { %14101 = vst [vmem:[#allocation183_spill] sm:$0xff] %v7825_v26 }
 0x32e   :  { %v2141_v7 = vadd.f32 %v2140_v57, %v2139_v2  ;;  %v2912_v44 = vadd.f32 %v2911_v4, %v2910_v37  ;;  %14102 = vst [vmem:[#allocation184_spill] sm:$0xff] %v7834_v38  ;;  %v2915_v2 = vsel %vm1842_vm2, %v2510_v49, 0.0  ;;  %v2512_v37 = vmul.f32 %v7825_v26, %v7825_v26 }
 0x32f   :  { %v7847_v4 = vadd.f32 %v7603_v36, %v6323_v13  ;;  %v2146_v49 = vsel %vm1842_vm2, %v7825_v26, 0.0 }
 0x330   :  { %v2143_v59 = vadd.f32 %v2142_v27, %v2141_v7  ;;  %v2914_v16 = vadd.f32 %v2913_v22, %v2912_v44  ;;  %v270_v44 = vld [vmem:[%s13158_s0 + $0x7d0] sm:$0xff]  ;;  %v2917_v7 = vsel %vm1842_vm2, %v2511_v3, 0.0  ;;  %v2513_v22 = vmul.f32 %v7834_v38, %v7834_v38 }
 0x331   :  { %14103 = vst [vmem:[#allocation185_spill] sm:$0xff] %v7847_v4  ;;  %v7859_v27 = vadd.f32 %v7603_v36, %v6379_v34  ;;  %4949 = vmatmul.msk.f32.gmra.mxu3 %vm284_vm1, %v270_v44  ;;  %v2514_v3 = vmul.f32 %v7847_v4, %v7847_v4 }
 0x332   :  { %v2145_v20 = vadd.f32 %v2144_v62, %v2143_v59  ;;  %v2916_v57 = vadd.f32 %v2915_v2, %v2914_v16  ;;  %v2919_v16 = vsel %vm1842_vm2, %v2512_v37, 0.0  ;;  %v2148_v2 = vsel %vm1842_vm2, %v7834_v38, 0.0 }
 0x333   :  { %14104 = vst [vmem:[#allocation186_spill] sm:$0xff] %v7859_v27  ;;  %v7869_v62 = vadd.f32 %v7603_v36, %v6435_v50  ;;  %v2921_v34 = vsel %vm1842_vm2, %v2513_v22, 0.0  ;;  %v2515_v37 = vmul.f32 %v7859_v27, %v7859_v27  ;;  %v2923_v50 = vsel %vm1842_vm2, %v2514_v3, 0.0 }
 0x334   :  { %v2147_v13 = vadd.f32 %v2146_v49, %v2145_v20  ;;  %v2918_v59 = vadd.f32 %v2917_v7, %v2916_v57  ;;  %v2150_v20 = vsel %vm1842_vm2, %v7847_v4, 0.0  ;;  %v7878_v57 = vadd.f32 %v7603_v36, %v6491_v46  ;;  %v7880_v44 = vpop.f32.mrf.mxu3  ;;  %v7891_v46 = vpop.f32.mrf.mxu2 }
 0x335   :  { %14105 = vst [vmem:[#allocation187_spill] sm:$0xff] %v7869_v62  ;;  %v2516_v22 = vmul.f32 %v7869_v62, %v7869_v62  ;;  %v2154_v3 = vsel %vm1842_vm2, %v7869_v62, 0.0 }
 0x336   :  { %v2149_v26 = vadd.f32 %v2148_v2, %v2147_v13  ;;  %v2920_v14 = vadd.f32 %v2919_v16, %v2918_v59  ;;  %14106 = vst [vmem:[#allocation188_spill] sm:$0xff] %v7878_v57  ;;  %v2152_v13 = vsel %vm1842_vm2, %v7859_v27, 0.0  ;;  %v7889_v59 = vadd.f32 %v7603_v36, %v6547_v23 }
 0x337   :  { %v7903_v23 = vadd.f32 %v7603_v36, %v6603_v39 }
 0x338   :  { %v2922_v7 = vadd.f32 %v2921_v34, %v2920_v14  ;;  %v2151_v49 = vadd.f32 %v2150_v20, %v2149_v26  ;;  %v271_v14 = vld [vmem:[%s13158_s0 + $0x7d8] sm:$0xff]  ;;  %v2925_v26 = vsel %vm1842_vm2, %v2515_v37, 0.0  ;;  %v2517_v34 = vmul.f32 %v7878_v57, %v7878_v57 }
 0x339   :  { %14107 = vst [vmem:[#allocation189_spill] sm:$0xff] %v7903_v23  ;;  %4950 = vmatmul.msk.f32.gmra.mxu3 %vm284_vm1, %v271_v14  ;;  %v2518_v37 = vmul.f32 %v7889_v59, %v7889_v59 }
 0x33a   :  { %v2153_v16 = vadd.f32 %v2152_v13, %v2151_v49  ;;  %v2924_v2 = vadd.f32 %v2923_v50, %v2922_v7  ;;  %v2927_v49 = vsel %vm1842_vm2, %v2516_v22, 0.0  ;;  %v2156_v50 = vsel %vm1842_vm2, %v7878_v57, 0.0 }
 0x33b   :  { %v7913_v13 = vadd.f32 %v7603_v36, %v6657_v18  ;;  %v2929_v39 = vsel %vm1842_vm2, %v2517_v34, 0.0  ;;  %v2519_v22 = vmul.f32 %v7903_v23, %v7903_v23  ;;  %v2931_v18 = vsel %vm1842_vm2, %v2518_v37, 0.0 }
 0x33c   :  { %v2155_v20 = vadd.f32 %v2154_v3, %v2153_v16  ;;  %v2926_v7 = vadd.f32 %v2925_v26, %v2924_v2  ;;  %v2158_v16 = vsel %vm1842_vm2, %v7889_v59, 0.0  ;;  %v7922_v2 = vadd.f32 %v7603_v36, %v6707_v33  ;;  %v7924_v14 = vpop.f32.mrf.mxu3  ;;  %v272_v33 = vld [vmem:[%s13158_s0 + $0x7e0] sm:$0xff] }
 0x33d   :  { %14108 = vst [vmem:[#allocation190_spill] sm:$0xff] %v7913_v13  ;;  %v2520_v34 = vmul.f32 %v7913_v13, %v7913_v13 }
 0x33e   :  { %v2157_v62 = vadd.f32 %v2156_v50, %v2155_v20  ;;  %v2928_v27 = vadd.f32 %v2927_v49, %v2926_v7  ;;  %14109 = vst [vmem:[#allocation191_spill] sm:$0xff] %v7922_v2  ;;  %v2160_v20 = vsel %vm1842_vm2, %v7903_v23, 0.0  ;;  %v7933_v7 = vadd.f32 %v7603_v36, %v6754_v24 }
 0x33f   :  { %v2521_v37 = vmul.f32 %v7922_v2, %v7922_v2 }
 0x340   :  { %v2159_v26 = vadd.f32 %v2158_v16, %v2157_v62  ;;  %v2930_v3 = vadd.f32 %v2929_v39, %v2928_v27  ;;  %v2933_v27 = vsel %vm1842_vm2, %v2519_v22, 0.0  ;;  %v2162_v62 = vsel %vm1842_vm2, %v7913_v13, 0.0 }
 0x341   :  { %v7945_v39 = vadd.f32 %v7603_v36, %v6798_v63  ;;  %4951 = vmatmul.msk.f32.gmra.mxu3 %vm284_vm1, %v272_v33  ;;  %v2164_v22 = vsel %vm1842_vm2, %v7922_v2, 0.0  ;;  %v2937_v33 = vsel %vm1842_vm2, %v2521_v37, 0.0 }
 0x342   :  { %v2161_v49 = vadd.f32 %v2160_v20, %v2159_v26  ;;  %v2932_v50 = vadd.f32 %v2931_v18, %v2930_v3  ;;  %v7948_v26 = vpop.f32.mrf.mxu2  ;;  %v2935_v3 = vsel %vm1842_vm2, %v2520_v34, 0.0  ;;  %v2522_v18 = vmul.f32 %v7933_v7, %v7933_v7 }
 0x343   :  { %v7957_v20 = vadd.f32 %v7603_v36, %v6847_v19  ;;  %v2523_v34 = vmul.f32 %v7945_v39, %v7945_v39 }
 0x344   :  { %v2163_v24 = vadd.f32 %v2162_v62, %v2161_v49  ;;  %v2934_v16 = vadd.f32 %v2933_v27, %v2932_v50  ;;  %v2166_v49 = vsel %vm1842_vm2, %v7933_v7, 0.0  ;;  %v7966_v50 = vadd.f32 %v7603_v36, %v6897_v21  ;;  %v7968_v27 = vpop.f32.mrf.mxu3  ;;  %v273_v21 = vld [vmem:[%s13158_s0 + $0x7e8] sm:$0xff] }
 0x345   :  { %14110 = vst [vmem:[#allocation192_spill] sm:$0xff] %v7957_v20  ;;  %v2939_v19 = vsel %vm1842_vm2, %v2522_v18, 0.0  ;;  %v2524_v37 = vmul.f32 %v7957_v20, %v7957_v20  ;;  %v2170_v18 = vsel %vm1842_vm2, %v7957_v20, 0.0 }
 0x346   :  { %v2165_v63 = vadd.f32 %v2164_v22, %v2163_v24  ;;  %v2936_v13 = vadd.f32 %v2935_v3, %v2934_v16  ;;  %14111 = vst [vmem:[#allocation193_spill] sm:$0xff] %v7966_v50  ;;  %v2168_v24 = vsel %vm1842_vm2, %v7945_v39, 0.0  ;;  %v7977_v16 = vadd.f32 %v7603_v36, %v6947_v11 }
 0x348   :  { %v2167_v62 = vadd.f32 %v2166_v49, %v2165_v63  ;;  %v2938_v2 = vadd.f32 %v2937_v33, %v2936_v13  ;;  %14112 = vst [vmem:[#allocation194_spill] sm:$0xff] %v7977_v16  ;;  %v2941_v13 = vsel %vm1842_vm2, %v2523_v34, 0.0  ;;  %v2525_v63 = vmul.f32 %v7966_v50, %v7966_v50 }
 0x349   :  { %v7989_v33 = vadd.f32 %v7603_v36, %v6997_v6  ;;  %4952 = vmatmul.msk.f32.gmra.mxu3 %vm284_vm1, %v273_v21  ;;  %v2943_v49 = vsel %vm1842_vm2, %v2524_v37, 0.0  ;;  %v2526_v34 = vmul.f32 %v7977_v16, %v7977_v16 }
 0x34a   :  { %v2169_v3 = vadd.f32 %v2168_v24, %v2167_v62  ;;  %v2940_v22 = vadd.f32 %v2939_v19, %v2938_v2  ;;  %v2172_v62 = vsel %vm1842_vm2, %v7966_v50, 0.0  ;;  %v7999_v19 = vadd.f32 %v7603_v36, %v7047_v43  ;;  %v8001_v6 = vpop.f32.mrf.mxu2 }
 0x34b   :  { %14113 = vst [vmem:[#allocation195_spill] sm:$0xff] %v7989_v33  ;;  %v2945_v21 = vsel %vm1842_vm2, %v2525_v63, 0.0  ;;  %v2527_v37 = vmul.f32 %v7989_v33, %v7989_v33 }
 0x34c   :  { %v2171_v11 = vadd.f32 %v2170_v18, %v2169_v3  ;;  %v2942_v2 = vadd.f32 %v2941_v13, %v2940_v22  ;;  %14114 = vst [vmem:[#allocation196_spill] sm:$0xff] %v7999_v19  ;;  %v2174_v3 = vsel %vm1842_vm2, %v7977_v16, 0.0  ;;  %v8010_v22 = vadd.f32 %v7603_v36, %v7095_v32  ;;  %v8012_v13 = vpop.f32.mrf.mxu3  ;;  %v274_v32 = vld [vmem:[%s13158_s0 + $0x7f0] sm:$0xff] }
 0x34d   :  { %v2528_v63 = vmul.f32 %v7999_v19, %v7999_v19 }
 0x34e   :  { %v2173_v24 = vadd.f32 %v2172_v62, %v2171_v11  ;;  %v2944_v20 = vadd.f32 %v2943_v49, %v2942_v2  ;;  %14115 = vst [vmem:[#allocation197_spill] sm:$0xff] %v8010_v22  ;;  %v2947_v11 = vsel %vm1842_vm2, %v2526_v34, 0.0  ;;  %v2176_v2 = vsel %vm1842_vm2, %v7989_v33, 0.0 }
 0x34f   :  { %v8021_v49 = vadd.f32 %v7603_v36, %v7145_v0  ;;  %v2178_v34 = vsel %vm1842_vm2, %v7999_v19, 0.0  ;;  %v14314_v28 = vld [vmem:[#allocation194_spill] sm:$0xff] }
 0x350   :  { %v2175_v43 = vadd.f32 %v2174_v3, %v2173_v24  ;;  %v2946_v18 = vadd.f32 %v2945_v21, %v2944_v20  ;;  %v2949_v20 = vsel %vm1842_vm2, %v2527_v37, 0.0  ;;  %v2529_v24 = vmul.f32 %v8010_v22, %v8010_v22  ;;  %v14117_v21 = vld [vmem:[#allocation151_spill] sm:$0xff] }
 0x351   :  { %14116 = vst [vmem:[#allocation198_spill] sm:$0xff] %v8021_v49  ;;  %v8033_v3 = vadd.f32 %v7603_v36, %v14117_v21  ;;  %4953 = vmatmul.msk.f32.gmra.mxu3 %vm284_vm1, %v274_v32  ;;  %v2530_v37 = vmul.f32 %v8021_v49, %v8021_v49 }
 0x352   :  { %v2177_v62 = vadd.f32 %v2176_v2, %v2175_v43  ;;  %v2948_v16 = vadd.f32 %v2947_v11, %v2946_v18  ;;  %v2951_v18 = vsel %vm1842_vm2, %v2528_v63, 0.0  ;;  %v2180_v11 = vsel %vm1842_vm2, %v8010_v22, 0.0 }
 0x353   :  { %14118 = vst [vmem:[#allocation151_spill] sm:$0xff] %v8033_v3  ;;  %v8043_v2 = vadd.f32 %v7603_v36, %v7245_v10  ;;  %v2953_v21 = vsel %vm1842_vm2, %v2529_v24, 0.0  ;;  %v8052_v63 = vadd.f32 %v7603_v36, %v7295_v48  ;;  %v8056_v10 = vpop.f32.mrf.mxu2  ;;  %v2184_v24 = vsel %vm1842_vm2, %v8033_v3, 0.0  ;;  %v14316_v4 = vld [vmem:[#allocation196_spill] sm:$0xff] }
 0x354   :  { %v2179_v0 = vadd.f32 %v2178_v34, %v2177_v62  ;;  %v2950_v43 = vadd.f32 %v2949_v20, %v2948_v16  ;;  %v2182_v62 = vsel %vm1842_vm2, %v8021_v49, 0.0  ;;  %v2531_v16 = vmul.f32 %v8033_v3, %v8033_v3  ;;  %v8054_v32 = vpop.f32.mrf.mxu3 }
 0x355   :  { %14119 = vst [vmem:[#allocation199_spill] sm:$0xff] %v8043_v2 }
 0x356   :  { %v2181_v19 = vadd.f32 %v2180_v11, %v2179_v0  ;;  %v2952_v33 = vadd.f32 %v2951_v18, %v2950_v43  ;;  %14120 = vst [vmem:[#allocation200_spill] sm:$0xff] %v8052_v63  ;;  %v2955_v0 = vsel %vm1842_vm2, %v2530_v37, 0.0  ;;  %v2532_v43 = vmul.f32 %v8043_v2, %v8043_v2 }
 0x357   :  { %v8065_v18 = vadd.f32 %v7603_v36, %v7343_v8  ;;  %v2186_v37 = vsel %vm1842_vm2, %v8043_v2, 0.0 }
 0x358   :  { %v2183_v20 = vadd.f32 %v2182_v62, %v2181_v19  ;;  %v2954_v34 = vadd.f32 %v2953_v21, %v2952_v33  ;;  %v275_v33 = vld [vmem:[%s13158_s0 + $0x7f8] sm:$0xff]  ;;  %v2957_v19 = vsel %vm1842_vm2, %v2531_v16, 0.0  ;;  %v2533_v21 = vmul.f32 %v8052_v63, %v8052_v63 }
 0x359   :  { %14121 = vst [vmem:[#allocation201_spill] sm:$0xff] %v8065_v18  ;;  %v8077_v62 = vadd.f32 %v7603_v36, %v7393_v17  ;;  %4954 = vmatmul.msk.f32.gmra.mxu3 %vm284_vm1, %v275_v33  ;;  %v2534_v16 = vmul.f32 %v8065_v18, %v8065_v18 }
 0x35a   :  { %v2185_v48 = vadd.f32 %v2184_v24, %v2183_v20  ;;  %v2956_v11 = vadd.f32 %v2955_v0, %v2954_v34  ;;  %v2959_v34 = vsel %vm1842_vm2, %v2532_v43, 0.0  ;;  %v2188_v0 = vsel %vm1842_vm2, %v8052_v63, 0.0 }
 0x35b   :  { %14122 = vst [vmem:[#allocation202_spill] sm:$0xff] %v8077_v62  ;;  %v8087_v24 = vadd.f32 %v7603_v36, %v7439_v53  ;;  %v2961_v17 = vsel %vm1842_vm2, %v2533_v21, 0.0  ;;  %v2535_v43 = vmul.f32 %v8077_v62, %v8077_v62  ;;  %v2963_v53 = vsel %vm1842_vm2, %v2534_v16, 0.0 }
 0x35c   :  { %v2187_v8 = vadd.f32 %v2186_v37, %v2185_v48  ;;  %v2958_v20 = vadd.f32 %v2957_v19, %v2956_v11  ;;  %v2190_v48 = vsel %vm1842_vm2, %v8065_v18, 0.0  ;;  %v8096_v11 = vadd.f32 %v7603_v36, %v7483_v45  ;;  %v8098_v33 = vpop.f32.mrf.mxu3  ;;  %v8109_v45 = vpop.f32.mrf.mxu2 }
 0x35d   :  { %14123 = vst [vmem:[#allocation203_spill] sm:$0xff] %v8087_v24  ;;  %v2536_v21 = vmul.f32 %v8087_v24, %v8087_v24  ;;  %v2965_v18 = vsel %vm1842_vm2, %v2535_v43, 0.0  ;;  %v8118_v16 = vadd.f32 %v7603_v36, %v7571_v42 }
 0x35e   :  { %v2189_v2 = vadd.f32 %v2188_v0, %v2187_v8  ;;  %v2960_v3 = vadd.f32 %v2959_v34, %v2958_v20  ;;  %14124 = vst [vmem:[#allocation204_spill] sm:$0xff] %v8096_v11  ;;  %v2192_v8 = vsel %vm1842_vm2, %v8077_v62, 0.0  ;;  %v8107_v20 = vadd.f32 %v7603_v36, %v7527_v35 }
 0x35f   :  { %14126 = vst [vmem:[#allocation206_spill] sm:$0xff] %v8118_v16  ;;  %v2967_v35 = vsel %vm1842_vm2, %v2536_v21, 0.0  ;;  %v8136_v21 = vadd.f32 %v7603_v36, %v7673_v15 }
 0x360   :  { %v2191_v19 = vadd.f32 %v2190_v48, %v2189_v2  ;;  %v2962_v37 = vadd.f32 %v2961_v17, %v2960_v3  ;;  %14125 = vst [vmem:[#allocation205_spill] sm:$0xff] %v8107_v20  ;;  %v2194_v3 = vsel %vm1842_vm2, %v8087_v24, 0.0  ;;  %v2537_v2 = vmul.f32 %v8096_v11, %v8096_v11 }
 0x361   :  { %v2538_v43 = vmul.f32 %v8107_v20, %v8107_v20  ;;  %v2198_v42 = vsel %vm1842_vm2, %v8107_v20, 0.0  ;;  %14128 = vst [vmem:[#allocation208_spill] sm:$0xff] %v8136_v21 }
 0x362   :  { %v2193_v34 = vadd.f32 %v2192_v8, %v2191_v19  ;;  %v2964_v0 = vadd.f32 %v2963_v53, %v2962_v37  ;;  %v2196_v19 = vsel %vm1842_vm2, %v8096_v11, 0.0  ;;  %v8127_v37 = vadd.f32 %v7603_v36, %v7620_v58 }
 0x363   :  { %v2969_v24 = vsel %vm1842_vm2, %v2537_v2, 0.0  ;;  %v2971_v58 = vsel %vm1842_vm2, %v2538_v43, 0.0  ;;  %v2541_v43 = vmul.f32 %v8136_v21, %v8136_v21 }
 0x364   :  { %v2966_v17 = vadd.f32 %v2965_v18, %v2964_v0  ;;  %v2195_v48 = vadd.f32 %v2194_v3, %v2193_v34  ;;  %14127 = vst [vmem:[#allocation207_spill] sm:$0xff] %v8127_v37  ;;  %v2539_v18 = vmul.f32 %v8118_v16, %v8118_v16  ;;  %v8138_v34 = vpop.f32.mrf.mxu3  ;;  %v2540_v2 = vmul.f32 %v8127_v37, %v8127_v37 }
 0x366   :  { %v2968_v53 = vadd.f32 %v2967_v35, %v2966_v17  ;;  %v2197_v8 = vadd.f32 %v2196_v19, %v2195_v48  ;;  %v2200_v17 = vsel %vm1842_vm2, %v8118_v16, 0.0  ;;  %v8147_v48 = vadd.f32 %v7603_v36, %v7730_v41  ;;  %v1644_v16 = vpop.f32.mrf.mxu2 }
 0x367   :  { %v2973_v15 = vsel %vm1842_vm2, %v2539_v18, 0.0  ;;  %v2975_v41 = vsel %vm1842_vm2, %v2540_v2, 0.0 }
 0x368   :  { %v2970_v0 = vadd.f32 %v2969_v24, %v2968_v53  ;;  %v2199_v3 = vadd.f32 %v2198_v42, %v2197_v8  ;;  %14129 = vst [vmem:[#allocation209_spill] sm:$0xff] %v8147_v48  ;;  %v2202_v24 = vsel %vm1842_vm2, %v8127_v37, 0.0  ;;  %v8156_v53 = vadd.f32 %v7603_v36, %v7783_v29 }
 0x369   :  { %v2542_v18 = vmul.f32 %v8147_v48, %v8147_v48  ;;  %v2977_v29 = vsel %vm1842_vm2, %v2541_v43, 0.0 }
 0x36a   :  { %v2972_v35 = vadd.f32 %v2971_v58, %v2970_v0  ;;  %v2201_v19 = vadd.f32 %v2200_v17, %v2199_v3  ;;  %14130 = vst [vmem:[#allocation210_spill] sm:$0xff] %v8156_v53  ;;  %v2204_v0 = vsel %vm1842_vm2, %v8136_v21, 0.0  ;;  %v8165_v3 = vadd.f32 %v7603_v36, %v7838_v52 }
 0x36b   :  { %v2543_v2 = vmul.f32 %v8156_v53, %v8156_v53  ;;  %v8180_v52 = vadd.f32 %v7603_v36, %v7948_v26  ;;  %v2979_v43 = vsel %vm1842_vm2, %v2542_v18, 0.0  ;;  %v8194_v26 = vadd.f32 %v7603_v36, %v8001_v6 }
 0x36c   :  { %v2974_v8 = vadd.f32 %v2973_v15, %v2972_v35  ;;  %v2203_v42 = vadd.f32 %v2202_v24, %v2201_v19  ;;  %14131 = vst [vmem:[#allocation211_spill] sm:$0xff] %v8165_v3  ;;  %v2206_v35 = vsel %vm1842_vm2, %v8147_v48, 0.0  ;;  %v8174_v19 = vadd.f32 %v7603_v36, %v7891_v46  ;;  %v8176_v15 = vpop.f32.mrf.mxu3 }
 0x36d   :  { %14133 = vst [vmem:[#allocation213_spill] sm:$0xff] %v8180_v52  ;;  %v2981_v46 = vsel %vm1842_vm2, %v2543_v2, 0.0  ;;  %v8203_v2 = vadd.f32 %v7603_v36, %v8056_v10 }
 0x36e   :  { %v2976_v58 = vadd.f32 %v2975_v41, %v2974_v8  ;;  %v2205_v17 = vadd.f32 %v2204_v0, %v2203_v42  ;;  %14132 = vst [vmem:[#allocation212_spill] sm:$0xff] %v8174_v19  ;;  %v2208_v8 = vsel %vm1842_vm2, %v8156_v53, 0.0  ;;  %v2544_v42 = vmul.f32 %v8165_v3, %v8165_v3 }
 0x36f   :  { %14134 = vst [vmem:[#allocation214_spill] sm:$0xff] %v8194_v26 }
 0x370   :  { %v2978_v24 = vadd.f32 %v2977_v29, %v2976_v58  ;;  %v2207_v21 = vadd.f32 %v2206_v35, %v2205_v17  ;;  %v2210_v58 = vsel %vm1842_vm2, %v8165_v3, 0.0  ;;  %v2545_v17 = vmul.f32 %v8174_v19, %v8174_v19  ;;  %14135 = vst [vmem:[#allocation215_spill] sm:$0xff] %v8203_v2  ;;  %v1647_v3 = vpop.f32.mrf.mxu2 }
 0x371   :  { %v2546_v35 = vmul.f32 %v8180_v52, %v8180_v52 }
 0x372   :  { %v2980_v41 = vadd.f32 %v2979_v43, %v2978_v24  ;;  %v2209_v0 = vadd.f32 %v2208_v8, %v2207_v21  ;;  %v2983_v24 = vsel %vm1842_vm2, %v2544_v42, 0.0  ;;  %v2212_v21 = vsel %vm1842_vm2, %v8174_v19, 0.0 }
 0x373   :  { %v2985_v6 = vsel %vm1842_vm2, %v2545_v17, 0.0  ;;  %v8212_v42 = vadd.f32 %v7603_v36, %v8109_v45  ;;  %v2548_v17 = vmul.f32 %v8203_v2, %v8203_v2 }
 0x374   :  { %v2982_v18 = vadd.f32 %v2981_v46, %v2980_v41  ;;  %v2211_v29 = vadd.f32 %v2210_v58, %v2209_v0  ;;  %v2214_v41 = vsel %vm1842_vm2, %v8180_v52, 0.0  ;;  %v2547_v0 = vmul.f32 %v8194_v26, %v8194_v26  ;;  %v8214_v46 = vpop.f32.mrf.mxu3 }
 0x375   :  { %14136 = vst [vmem:[#allocation216_spill] sm:$0xff] %v8212_v42 }
 0x376   :  { %v2984_v43 = vadd.f32 %v2983_v24, %v2982_v18  ;;  %v2213_v8 = vadd.f32 %v2212_v21, %v2211_v29  ;;  %v2987_v18 = vsel %vm1842_vm2, %v2546_v35, 0.0  ;;  %v2216_v29 = vsel %vm1842_vm2, %v8194_v26, 0.0 }
 0x377   :  { %v8222_v24 = vadd.f32 %v7603_v36, %v1644_v16  ;;  %v8225_v21 = vadd.f32 %v7603_v36, %v1647_v3  ;;  %v2989_v19 = vsel %vm1842_vm2, %v2547_v0, 0.0  ;;  %v2549_v35 = vmul.f32 %v8212_v42, %v8212_v42 }
 0x378   :  { %v2986_v58 = vadd.f32 %v2985_v6, %v2984_v43  ;;  %v2215_v10 = vadd.f32 %v2214_v41, %v2213_v8  ;;  %v2218_v43 = vsel %vm1842_vm2, %v8203_v2, 0.0  ;;  %v14139_v8 = vld [vmem:[#allocation51_spill] sm:$0xff]  ;;  %v2991_v26 = vsel %vm1842_vm2, %v2548_v17, 0.0 }
 0x379   :  { %14137 = vst [vmem:[#allocation217_spill] sm:$0xff] %v8222_v24  ;;  %v8234_v6 = vadd.f32 %v7603_v36, %v14139_v8  ;;  %v2220_v3 = vsel %vm1842_vm2, %v8212_v42, 0.0  ;;  %v2550_v0 = vmul.f32 %v8222_v24, %v8222_v24  ;;  %v2224_v17 = vsel %vm1842_vm2, %v8225_v21, 0.0 }
 0x37a   :  { %14138 = vst [vmem:[#allocation218_spill] sm:$0xff] %v8225_v21  ;;  %v2988_v45 = vadd.f32 %v2987_v18, %v2986_v58  ;;  %v2217_v52 = vadd.f32 %v2216_v29, %v2215_v10  ;;  %v2551_v58 = vmul.f32 %v8225_v21, %v8225_v21  ;;  %v14141_v29 = vld [vmem:[#allocation54_spill] sm:$0xff] }
 0x37b   :  { %14140 = vst [vmem:[#allocation51_spill] sm:$0xff] %v8234_v6  ;;  %v8245_v2 = vadd.f32 %v7603_v36, %v14141_v29  ;;  %v2226_v21 = vsel %vm1842_vm2, %v8234_v6, 0.0 }
 0x37c   :  { %v2990_v41 = vadd.f32 %v2989_v19, %v2988_v45  ;;  %v2219_v16 = vadd.f32 %v2218_v43, %v2217_v52  ;;  %v2993_v19 = vsel %vm1842_vm2, %v2549_v35, 0.0  ;;  %v2222_v52 = vsel %vm1842_vm2, %v8222_v24, 0.0  ;;  %v8252_v45 = vpop.f32.mrf.mxu3 }
 0x37d   :  { %14142 = vst [vmem:[#allocation54_spill] sm:$0xff] %v8245_v2  ;;  %v2997_v35 = vsel %vm1842_vm2, %v2551_v58, 0.0 }
 0x37e   :  { %v2992_v10 = vadd.f32 %v2991_v26, %v2990_v41  ;;  %v2221_v18 = vadd.f32 %v2220_v3, %v2219_v16  ;;  %v2552_v26 = vmul.f32 %v8234_v6, %v8234_v6  ;;  %v14143_v41 = vld [vmem:[#allocation57_spill] sm:$0xff]  ;;  %v2995_v3 = vsel %vm1842_vm2, %v2550_v0, 0.0 }
 0x37f   :  { %v8258_v16 = vadd.f32 %v7603_v36, %v14143_v41  ;;  %v2228_v0 = vsel %vm1842_vm2, %v8245_v2, 0.0 }
 0x380   :  { %v2994_v43 = vadd.f32 %v2993_v19, %v2992_v10  ;;  %v2223_v8 = vadd.f32 %v2222_v52, %v2221_v18  ;;  %v2553_v10 = vmul.f32 %v8245_v2, %v8245_v2  ;;  %v14145_v18 = vld [vmem:[#allocation63_spill] sm:$0xff]  ;;  %v2999_v41 = vsel %vm1842_vm2, %v2552_v26, 0.0 }
 0x381   :  { %14144 = vst [vmem:[#allocation57_spill] sm:$0xff] %v8258_v16  ;;  %v8268_v19 = vadd.f32 %v7603_v36, %v14145_v18  ;;  %v2554_v58 = vmul.f32 %v8258_v16, %v8258_v16  ;;  %v14149_v26 = vld [vmem:[#allocation75_spill] sm:$0xff] }
 0x382   :  { %v2996_v29 = vadd.f32 %v2995_v3, %v2994_v43  ;;  %v2225_v24 = vadd.f32 %v2224_v17, %v2223_v8  ;;  %v14147_v17 = vld [vmem:[#allocation70_spill] sm:$0xff]  ;;  %v3001_v6 = vsel %vm1842_vm2, %v2553_v10, 0.0 }
 0x383   :  { %14146 = vst [vmem:[#allocation63_spill] sm:$0xff] %v8268_v19  ;;  %v8277_v43 = vadd.f32 %v7603_v36, %v14147_v17  ;;  %v3003_v17 = vsel %vm1842_vm2, %v2554_v58, 0.0 }
 0x384   :  { %v2227_v52 = vadd.f32 %v2226_v21, %v2225_v24  ;;  %v2998_v42 = vadd.f32 %v2997_v35, %v2996_v29  ;;  %v2230_v24 = vsel %vm1842_vm2, %v8258_v16, 0.0  ;;  %v2555_v21 = vmul.f32 %v8268_v19, %v8268_v19  ;;  %v8288_v2 = vpop.f32.mrf.mxu3 }
 0x385   :  { %14148 = vst [vmem:[#allocation70_spill] sm:$0xff] %v8277_v43  ;;  %v8286_v35 = vadd.f32 %v7603_v36, %v14149_v26  ;;  %v2556_v10 = vmul.f32 %v8277_v43, %v8277_v43 }
 0x386   :  { %v2229_v8 = vadd.f32 %v2228_v0, %v2227_v52  ;;  %v3000_v3 = vadd.f32 %v2999_v41, %v2998_v42  ;;  %v2232_v42 = vsel %vm1842_vm2, %v8268_v19, 0.0  ;;  %v14151_v52 = vld [vmem:[#allocation80_spill] sm:$0xff]  ;;  %v3005_v26 = vsel %vm1842_vm2, %v2555_v21, 0.0 }
 0x387   :  { %14150 = vst [vmem:[#allocation75_spill] sm:$0xff] %v8286_v35  ;;  %v8297_v41 = vadd.f32 %v7603_v36, %v14151_v52  ;;  %v2557_v58 = vmul.f32 %v8286_v35, %v8286_v35  ;;  %v3007_v53 = vsel %vm1842_vm2, %v2556_v10, 0.0  ;;  %v14157_v10 = vld [vmem:[#allocation95_spill] sm:$0xff] }
 0x388   :  { %v2231_v29 = vadd.f32 %v2230_v24, %v2229_v8  ;;  %v3002_v18 = vadd.f32 %v3001_v6, %v3000_v3  ;;  %v2234_v6 = vsel %vm1842_vm2, %v8277_v43, 0.0  ;;  %v14153_v8 = vld [vmem:[#allocation85_spill] sm:$0xff] }
 0x389   :  { %14152 = vst [vmem:[#allocation80_spill] sm:$0xff] %v8297_v41  ;;  %v8306_v3 = vadd.f32 %v7603_v36, %v14153_v8  ;;  %v2558_v21 = vmul.f32 %v8297_v41, %v8297_v41  ;;  %v3009_v43 = vsel %vm1842_vm2, %v2557_v58, 0.0 }
 0x38a   :  { %v2233_v0 = vadd.f32 %v2232_v42, %v2231_v29  ;;  %v3004_v16 = vadd.f32 %v3003_v17, %v3002_v18  ;;  %v2236_v29 = vsel %vm1842_vm2, %v8286_v35, 0.0  ;;  %v14155_v18 = vld [vmem:[#allocation90_spill] sm:$0xff] }
 0x38b   :  { %14154 = vst [vmem:[#allocation85_spill] sm:$0xff] %v8306_v3  ;;  %v8315_v17 = vadd.f32 %v7603_v36, %v14155_v18  ;;  %v3011_v35 = vsel %vm1842_vm2, %v2558_v21, 0.0 }
 0x38c   :  { %v2235_v24 = vadd.f32 %v2234_v6, %v2233_v0  ;;  %v3006_v19 = vadd.f32 %v3005_v26, %v3004_v16  ;;  %v2238_v0 = vsel %vm1842_vm2, %v8297_v41, 0.0  ;;  %v2559_v16 = vmul.f32 %v8306_v3, %v8306_v3  ;;  %v8335_v41 = vpop.f32.mrf.mxu3 }
 0x38d   :  { %14156 = vst [vmem:[#allocation90_spill] sm:$0xff] %v8315_v17  ;;  %v8324_v26 = vadd.f32 %v7603_v36, %v14157_v10 }
 0x38e   :  { %v2237_v42 = vadd.f32 %v2236_v29, %v2235_v24  ;;  %v3008_v52 = vadd.f32 %v3007_v53, %v3006_v19  ;;  %v2240_v24 = vsel %vm1842_vm2, %v8306_v3, 0.0  ;;  %v2560_v53 = vmul.f32 %v8315_v17, %v8315_v17  ;;  %v14159_v19 = vld [vmem:[#allocation100_spill] sm:$0xff] }
 0x38f   :  { %14158 = vst [vmem:[#allocation95_spill] sm:$0xff] %v8324_v26  ;;  %v8333_v58 = vadd.f32 %v7603_v36, %v14159_v19  ;;  %v3013_v10 = vsel %vm1842_vm2, %v2559_v16, 0.0  ;;  %v2561_v21 = vmul.f32 %v8324_v26, %v8324_v26 }
 0x390   :  { %v2239_v6 = vadd.f32 %v2238_v0, %v2237_v42  ;;  %v3010_v8 = vadd.f32 %v3009_v43, %v3008_v52  ;;  %v2242_v43 = vsel %vm1842_vm2, %v8315_v17, 0.0  ;;  %v14161_v42 = vld [vmem:[#allocation105_spill] sm:$0xff]  ;;  %v3015_v19 = vsel %vm1842_vm2, %v2560_v53, 0.0 }
 0x391   :  { %14160 = vst [vmem:[#allocation100_spill] sm:$0xff] %v8333_v58  ;;  %v8344_v52 = vadd.f32 %v7603_v36, %v14161_v42  ;;  %v2562_v16 = vmul.f32 %v8333_v58, %v8333_v58  ;;  %v3017_v48 = vsel %vm1842_vm2, %v2561_v21, 0.0  ;;  %v14167_v21 = vld [vmem:[#allocation120_spill] sm:$0xff] }
 0x392   :  { %v2241_v29 = vadd.f32 %v2240_v24, %v2239_v6  ;;  %v3012_v18 = vadd.f32 %v3011_v35, %v3010_v8  ;;  %v2244_v35 = vsel %vm1842_vm2, %v8324_v26, 0.0  ;;  %v14163_v6 = vld [vmem:[#allocation110_spill] sm:$0xff] }
 0x393   :  { %14162 = vst [vmem:[#allocation105_spill] sm:$0xff] %v8344_v52  ;;  %v8353_v8 = vadd.f32 %v7603_v36, %v14163_v6  ;;  %v2563_v53 = vmul.f32 %v8344_v52, %v8344_v52  ;;  %v3019_v26 = vsel %vm1842_vm2, %v2562_v16, 0.0 }
 0x394   :  { %v2243_v0 = vadd.f32 %v2242_v43, %v2241_v29  ;;  %v3014_v3 = vadd.f32 %v3013_v10, %v3012_v18  ;;  %v2246_v29 = vsel %vm1842_vm2, %v8333_v58, 0.0  ;;  %v14165_v18 = vld [vmem:[#allocation115_spill] sm:$0xff] }
 0x395   :  { %14164 = vst [vmem:[#allocation110_spill] sm:$0xff] %v8353_v8  ;;  %v8362_v10 = vadd.f32 %v7603_v36, %v14165_v18  ;;  %v3021_v58 = vsel %vm1842_vm2, %v2563_v53, 0.0 }
 0x396   :  { %v2245_v24 = vadd.f32 %v2244_v35, %v2243_v0  ;;  %v3016_v17 = vadd.f32 %v3015_v19, %v3014_v3  ;;  %v2248_v0 = vsel %vm1842_vm2, %v8344_v52, 0.0  ;;  %v2564_v3 = vmul.f32 %v8353_v8, %v8353_v8  ;;  %v8382_v52 = vpop.f32.mrf.mxu3 }
 0x397   :  { %14166 = vst [vmem:[#allocation115_spill] sm:$0xff] %v8362_v10  ;;  %v8371_v19 = vadd.f32 %v7603_v36, %v14167_v21 }
 0x398   :  { %v2247_v43 = vadd.f32 %v2246_v29, %v2245_v24  ;;  %v3018_v42 = vadd.f32 %v3017_v48, %v3016_v17  ;;  %v2250_v24 = vsel %vm1842_vm2, %v8353_v8, 0.0  ;;  %v2565_v48 = vmul.f32 %v8362_v10, %v8362_v10  ;;  %v14169_v17 = vld [vmem:[#allocation125_spill] sm:$0xff] }
 0x399   :  { %14168 = vst [vmem:[#allocation120_spill] sm:$0xff] %v8371_v19  ;;  %v8380_v16 = vadd.f32 %v7603_v36, %v14169_v17  ;;  %v3023_v21 = vsel %vm1842_vm2, %v2564_v3, 0.0  ;;  %v2566_v53 = vmul.f32 %v8371_v19, %v8371_v19 }
 0x39a   :  { %v2249_v35 = vadd.f32 %v2248_v0, %v2247_v43  ;;  %v3020_v6 = vadd.f32 %v3019_v26, %v3018_v42  ;;  %v2252_v26 = vsel %vm1842_vm2, %v8362_v10, 0.0  ;;  %v14171_v43 = vld [vmem:[#allocation130_spill] sm:$0xff]  ;;  %v3025_v17 = vsel %vm1842_vm2, %v2565_v48, 0.0 }
 0x39b   :  { %14170 = vst [vmem:[#allocation125_spill] sm:$0xff] %v8380_v16  ;;  %v8391_v42 = vadd.f32 %v7603_v36, %v14171_v43  ;;  %v2567_v3 = vmul.f32 %v8380_v16, %v8380_v16  ;;  %v2256_v48 = vsel %vm1842_vm2, %v8380_v16, 0.0 }
 0x39c   :  { %v2251_v29 = vadd.f32 %v2250_v24, %v2249_v35  ;;  %v3022_v18 = vadd.f32 %v3021_v58, %v3020_v6  ;;  %v2254_v58 = vsel %vm1842_vm2, %v8371_v19, 0.0  ;;  %v8401_v35 = vld [vmem:[%s13159_s2] ss:$0 sm:$0xff]  ;;  %v14173_v6 = vld [vmem:[#allocation135_spill] sm:$0xff] }
 0x39d   :  { %14172 = vst [vmem:[#allocation130_spill] sm:$0xff] %v8391_v42  ;;  %v8405_v24 = vadd.f32 %v8401_v35, %v14173_v6  ;;  %v3029_v37 = vsel %vm1842_vm2, %v2567_v3, 0.0 }
 0x39e   :  { %v2253_v0 = vadd.f32 %v2252_v26, %v2251_v29  ;;  %v3024_v8 = vadd.f32 %v3023_v21, %v3022_v18  ;;  %v3027_v18 = vsel %vm1842_vm2, %v2566_v53, 0.0  ;;  %v2568_v21 = vmul.f32 %v8391_v42, %v8391_v42  ;;  %v14175_v26 = vld [vmem:[#allocation140_spill] sm:$0xff]  ;;  %v14177_v53 = vld [vmem:[#allocation143_spill] sm:$0xff] }
 0x39f   :  { %14174 = vst [vmem:[#allocation135_spill] sm:$0xff] %v8405_v24  ;;  %v8414_v43 = vadd.f32 %v8401_v35, %v14175_v26 }
 0x3a0   :  { %v2255_v36 = vadd.f32 %v2254_v58, %v2253_v0  ;;  %v3026_v29 = vadd.f32 %v3025_v17, %v3024_v8  ;;  %v2258_v0 = vsel %vm1842_vm2, %v8391_v42, 0.0  ;;  %v2569_v8 = vmul.f32 %v8405_v24, %v8405_v24  ;;  %v8434_v42 = vpop.f32.mrf.mxu3 }
 0x3a1   :  { %14176 = vst [vmem:[#allocation140_spill] sm:$0xff] %v8414_v43  ;;  %v8423_v17 = vadd.f32 %v8401_v35, %v14177_v53  ;;  %v3031_v16 = vsel %vm1842_vm2, %v2568_v21, 0.0  ;;  %v2570_v3 = vmul.f32 %v8414_v43, %v8414_v43 }
 0x3a2   :  { %v2257_v19 = vadd.f32 %v2256_v48, %v2255_v36  ;;  %v3028_v10 = vadd.f32 %v3027_v18, %v3026_v29  ;;  %v2260_v36 = vsel %vm1842_vm2, %v8405_v24, 0.0  ;;  %v14179_v29 = vld [vmem:[#allocation144_spill] sm:$0xff]  ;;  %v3033_v53 = vsel %vm1842_vm2, %v2569_v8, 0.0 }
 0x3a3   :  { %14178 = vst [vmem:[#allocation143_spill] sm:$0xff] %v8423_v17  ;;  %v8432_v18 = vadd.f32 %v8401_v35, %v14179_v29  ;;  %v3035_v29 = vsel %vm1842_vm2, %v2570_v3, 0.0 }
 0x3a4   :  { %v2259_v58 = vadd.f32 %v2258_v0, %v2257_v19  ;;  %v3030_v6 = vadd.f32 %v3029_v37, %v3028_v10  ;;  %v2262_v37 = vsel %vm1842_vm2, %v8414_v43, 0.0  ;;  %v2571_v10 = vmul.f32 %v8423_v17, %v8423_v17  ;;  %v14181_v19 = vld [vmem:[#allocation145_spill] sm:$0xff] }
 0x3a5   :  { %14180 = vst [vmem:[#allocation144_spill] sm:$0xff] %v8432_v18  ;;  %v8443_v21 = vadd.f32 %v8401_v35, %v14181_v19  ;;  %v2572_v8 = vmul.f32 %v8432_v18, %v8432_v18 }
 0x3a6   :  { %v2261_v48 = vadd.f32 %v2260_v36, %v2259_v58  ;;  %v3032_v26 = vadd.f32 %v3031_v16, %v3030_v6  ;;  %v2264_v16 = vsel %vm1842_vm2, %v8423_v17, 0.0  ;;  %v14183_v58 = vld [vmem:[#allocation146_spill] sm:$0xff]  ;;  %v3037_v20 = vsel %vm1842_vm2, %v2571_v10, 0.0  ;;  %v14187_v10 = vld [vmem:[#allocation148_spill] sm:$0xff]  ;;  %v14353_v38 = vld [vmem:[#allocation135_spill] sm:$0xff] }
 0x3a7   :  { %14182 = vst [vmem:[#allocation145_spill] sm:$0xff] %v8443_v21  ;;  %v8452_v6 = vadd.f32 %v8401_v35, %v14183_v58  ;;  %v2573_v3 = vmul.f32 %v8443_v21, %v8443_v21  ;;  %v3039_v17 = vsel %vm1842_vm2, %v2572_v8, 0.0 }
 0x3a8   :  { %v2263_v0 = vadd.f32 %v2262_v37, %v2261_v48  ;;  %v3034_v24 = vadd.f32 %v3033_v53, %v3032_v26  ;;  %v2266_v48 = vsel %vm1842_vm2, %v8432_v18, 0.0  ;;  %v14185_v26 = vld [vmem:[#allocation147_spill] sm:$0xff] }
 0x3a9   :  { %14184 = vst [vmem:[#allocation146_spill] sm:$0xff] %v8452_v6  ;;  %v8461_v53 = vadd.f32 %v8401_v35, %v14185_v26  ;;  %v3041_v18 = vsel %vm1842_vm2, %v2573_v3, 0.0 }
 0x3aa   :  { %v2265_v36 = vadd.f32 %v2264_v16, %v2263_v0  ;;  %v3036_v43 = vadd.f32 %v3035_v29, %v3034_v24  ;;  %v2268_v0 = vsel %vm1842_vm2, %v8443_v21, 0.0  ;;  %v2574_v24 = vmul.f32 %v8452_v6, %v8452_v6  ;;  %v8481_v21 = vpop.f32.mrf.mxu3  ;;  %v14355_v22 = vld [vmem:[#allocation143_spill] sm:$0xff] }
 0x3ab   :  { %14186 = vst [vmem:[#allocation147_spill] sm:$0xff] %v8461_v53  ;;  %v8470_v29 = vadd.f32 %v8401_v35, %v14187_v10 }
 0x3ac   :  { %v2267_v37 = vadd.f32 %v2266_v48, %v2265_v36  ;;  %v3038_v19 = vadd.f32 %v3037_v20, %v3036_v43  ;;  %v2270_v36 = vsel %vm1842_vm2, %v8452_v6, 0.0  ;;  %v2575_v20 = vmul.f32 %v8461_v53, %v8461_v53  ;;  %v14188_v43 = vld [vmem:[#allocation149_spill] sm:$0xff]  ;;  %v14356_v49 = vld [vmem:[#allocation144_spill] sm:$0xff] }
 0x3ad   :  { %v8479_v8 = vadd.f32 %v8401_v35, %v14188_v43  ;;  %v3043_v10 = vsel %vm1842_vm2, %v2574_v24, 0.0  ;;  %v2576_v3 = vmul.f32 %v8470_v29, %v8470_v29 }
 0x3ae   :  { %v2269_v16 = vadd.f32 %v2268_v0, %v2267_v37  ;;  %v3040_v58 = vadd.f32 %v3039_v17, %v3038_v19  ;;  %v2272_v17 = vsel %vm1842_vm2, %v8461_v53, 0.0  ;;  %v14189_v37 = vld [vmem:[#allocation150_spill] sm:$0xff]  ;;  %v3045_v43 = vsel %vm1842_vm2, %v2575_v20, 0.0 }
 0x3af   :  { %v8490_v19 = vadd.f32 %v8401_v35, %v14189_v37  ;;  %v2577_v24 = vmul.f32 %v8479_v8, %v8479_v8  ;;  %v3047_v11 = vsel %vm1842_vm2, %v2576_v3, 0.0 }
 0x3b0   :  { %v2271_v48 = vadd.f32 %v2270_v36, %v2269_v16  ;;  %v3042_v26 = vadd.f32 %v3041_v18, %v3040_v58  ;;  %v2274_v18 = vsel %vm1842_vm2, %v8470_v29, 0.0  ;;  %v14191_v16 = vld [vmem:[#allocation152_spill] sm:$0xff] }
 0x3b1   :  { %14190 = vst [vmem:[#allocation148_spill] sm:$0xff] %v8490_v19  ;;  %v8499_v58 = vadd.f32 %v8401_v35, %v14191_v16  ;;  %v2578_v20 = vmul.f32 %v8490_v19, %v8490_v19  ;;  %v3049_v37 = vsel %vm1842_vm2, %v2577_v24, 0.0 }
 0x3b2   :  { %v3044_v0 = vadd.f32 %v3043_v10, %v3042_v26  ;;  %v2273_v6 = vadd.f32 %v2272_v17, %v2271_v48  ;;  %v2276_v26 = vsel %vm1842_vm2, %v8479_v8, 0.0  ;;  %v8508_v48 = vadd.f32 %v8401_v35, %v7247_v56  ;;  %v14359_v63 = vld [vmem:[#allocation147_spill] sm:$0xff] }
 0x3b3   :  { %14192 = vst [vmem:[#allocation149_spill] sm:$0xff] %v8499_v58  ;;  %v2579_v3 = vmul.f32 %v8499_v58, %v8499_v58  ;;  %v3051_v16 = vsel %vm1842_vm2, %v2578_v20, 0.0  ;;  %v2280_v56 = vsel %vm1842_vm2, %v8499_v58, 0.0 }
 0x3b4   :  { %v2275_v36 = vadd.f32 %v2274_v18, %v2273_v6  ;;  %v3046_v53 = vadd.f32 %v3045_v43, %v3044_v0  ;;  %14193 = vst [vmem:[#allocation150_spill] sm:$0xff] %v8508_v48  ;;  %v2278_v6 = vsel %vm1842_vm2, %v8490_v19, 0.0  ;;  %v8517_v0 = vadd.f32 %v8401_v35, %v7297_v55 }
 0x3b5   :  { %v3053_v55 = vsel %vm1842_vm2, %v2579_v3, 0.0 }
 0x3b6   :  { %v2277_v10 = vadd.f32 %v2276_v26, %v2275_v36  ;;  %v3048_v17 = vadd.f32 %v3047_v11, %v3046_v53  ;;  %v2580_v11 = vmul.f32 %v8508_v48, %v8508_v48  ;;  %v8526_v53 = vadd.f32 %v8401_v35, %v7345_v47  ;;  %v8528_v26 = vpop.f32.mrf.mxu3 }
 0x3b7   :  { %v2581_v20 = vmul.f32 %v8517_v0, %v8517_v0 }
 0x3b8   :  { %v2279_v43 = vadd.f32 %v2278_v6, %v2277_v10  ;;  %v3050_v18 = vadd.f32 %v3049_v37, %v3048_v17  ;;  %v2282_v10 = vsel %vm1842_vm2, %v8508_v48, 0.0  ;;  %v8537_v17 = vadd.f32 %v8401_v35, %v7395_v40 }
 0x3b9   :  { %v3055_v47 = vsel %vm1842_vm2, %v2580_v11, 0.0  ;;  %v2582_v3 = vmul.f32 %v8526_v53, %v8526_v53  ;;  %v3057_v48 = vsel %vm1842_vm2, %v2581_v20, 0.0  ;;  %v2286_v40 = vsel %vm1842_vm2, %v8526_v53, 0.0 }
 0x3ba   :  { %v2281_v24 = vadd.f32 %v2280_v56, %v2279_v43  ;;  %v3052_v36 = vadd.f32 %v3051_v16, %v3050_v18  ;;  %14194 = vst [vmem:[#allocation152_spill] sm:$0xff] %v8537_v17  ;;  %v2284_v43 = vsel %vm1842_vm2, %v8517_v0, 0.0  ;;  %v8546_v18 = vadd.f32 %v8401_v35, %v7441_v5 }
 0x3bb   :  { %v2583_v11 = vmul.f32 %v8537_v17, %v8537_v17  ;;  %v2288_v5 = vsel %vm1842_vm2, %v8537_v17, 0.0 }
 0x3bc   :  { %v2283_v37 = vadd.f32 %v2282_v10, %v2281_v24  ;;  %v3054_v6 = vadd.f32 %v3053_v55, %v3052_v36  ;;  %v8555_v24 = vadd.f32 %v8401_v35, %v7485_v25  ;;  %v3059_v10 = vsel %vm1842_vm2, %v2582_v3, 0.0 }
 0x3bd   :  { %v2584_v20 = vmul.f32 %v8546_v18, %v8546_v18  ;;  %v2290_v25 = vsel %vm1842_vm2, %v8546_v18, 0.0  ;;  %v8573_v3 = vadd.f32 %v8401_v35, %v7573_v31 }
 0x3be   :  { %v2285_v16 = vadd.f32 %v2284_v43, %v2283_v37  ;;  %v3056_v56 = vadd.f32 %v3055_v47, %v3054_v6  ;;  %14195 = vst [vmem:[#allocation219_spill] sm:$0xff] %v8555_v24  ;;  %v8564_v37 = vadd.f32 %v8401_v35, %v7529_v61  ;;  %v3061_v43 = vsel %vm1842_vm2, %v2583_v11, 0.0 }
 0x3bf   :  { %14197 = vst [vmem:[#allocation221_spill] sm:$0xff] %v8573_v3  ;;  %v3063_v61 = vsel %vm1842_vm2, %v2584_v20, 0.0  ;;  %v2587_v20 = vmul.f32 %v8573_v3, %v8573_v3 }
 0x3c0   :  { %v2287_v36 = vadd.f32 %v2286_v40, %v2285_v16  ;;  %v3058_v55 = vadd.f32 %v3057_v48, %v3056_v56  ;;  %14196 = vst [vmem:[#allocation220_spill] sm:$0xff] %v8564_v37  ;;  %v2585_v48 = vmul.f32 %v8555_v24, %v8555_v24  ;;  %v8575_v40 = vpop.f32.mrf.mxu3  ;;  %v2586_v11 = vmul.f32 %v8564_v37, %v8564_v37 }
 0x3c2   :  { %v2289_v6 = vadd.f32 %v2288_v5, %v2287_v36  ;;  %v3060_v47 = vadd.f32 %v3059_v10, %v3058_v55  ;;  %v2292_v36 = vsel %vm1842_vm2, %v8555_v24, 0.0  ;;  %v8584_v55 = vadd.f32 %v8401_v35, %v7618_v60 }
 0x3c3   :  { %v3065_v31 = vsel %vm1842_vm2, %v2585_v48, 0.0  ;;  %v3067_v24 = vsel %vm1842_vm2, %v2586_v11, 0.0  ;;  %v2296_v60 = vsel %vm1842_vm2, %v8573_v3, 0.0 }
 0x3c4   :  { %v2291_v16 = vadd.f32 %v2290_v25, %v2289_v6  ;;  %v3062_v56 = vadd.f32 %v3061_v43, %v3060_v47  ;;  %14198 = vst [vmem:[#allocation222_spill] sm:$0xff] %v8584_v55  ;;  %v2294_v6 = vsel %vm1842_vm2, %v8564_v37, 0.0  ;;  %v8593_v47 = vadd.f32 %v8401_v35, %v7662_v12 }
 0x3c5   :  { %v2588_v48 = vmul.f32 %v8584_v55, %v8584_v55  ;;  %v3069_v37 = vsel %vm1842_vm2, %v2587_v20, 0.0  ;;  %v2298_v12 = vsel %vm1842_vm2, %v8584_v55, 0.0  ;;  %v8620_v20 = vadd.f32 %v8401_v35, %v7794_v9 }
 0x3c6   :  { %v2293_v10 = vadd.f32 %v2292_v36, %v2291_v16  ;;  %v3064_v5 = vadd.f32 %v3063_v61, %v3062_v56  ;;  %v14199_v16 = vld [vmem:[#allocation180_spill] sm:$0xff]  ;;  %v2589_v11 = vmul.f32 %v8593_v47, %v8593_v47  ;;  %v14363_v57 = vld [vmem:[#allocation221_spill] sm:$0xff] }
 0x3c7   :  { %v8602_v56 = vadd.f32 %v8401_v35, %v14199_v16  ;;  %v3071_v3 = vsel %vm1842_vm2, %v2588_v48, 0.0  ;;  %v14362_v54 = vld [vmem:[#allocation220_spill] sm:$0xff] }
 0x3c8   :  { %v2295_v43 = vadd.f32 %v2294_v6, %v2293_v10  ;;  %v3066_v25 = vadd.f32 %v3065_v31, %v3064_v5  ;;  %v14201_v10 = vld [vmem:[#allocation181_spill] sm:$0xff]  ;;  %v8622_v16 = vpop.f32.mrf.mxu3 }
 0x3c9   :  { %14200 = vst [vmem:[#allocation180_spill] sm:$0xff] %v8602_v56  ;;  %v8611_v5 = vadd.f32 %v8401_v35, %v14201_v10  ;;  %v3073_v10 = vsel %vm1842_vm2, %v2589_v11, 0.0  ;;  %v2592_v11 = vmul.f32 %v8620_v20, %v8620_v20 }
 0x3ca   :  { %v2297_v61 = vadd.f32 %v2296_v60, %v2295_v43  ;;  %v3068_v36 = vadd.f32 %v3067_v24, %v3066_v25  ;;  %v2300_v43 = vsel %vm1842_vm2, %v8593_v47, 0.0  ;;  %v2590_v24 = vmul.f32 %v8602_v56, %v8602_v56 }
 0x3cb   :  { %v2591_v48 = vmul.f32 %v8611_v5, %v8611_v5 }
 0x3cc   :  { %v2299_v31 = vadd.f32 %v2298_v12, %v2297_v61  ;;  %v3070_v6 = vadd.f32 %v3069_v37, %v3068_v36  ;;  %v2302_v37 = vsel %vm1842_vm2, %v8602_v56, 0.0  ;;  %v8631_v61 = vadd.f32 %v8401_v35, %v7836_v51 }
 0x3cd   :  { %v3075_v9 = vsel %vm1842_vm2, %v2590_v24, 0.0  ;;  %v3077_v56 = vsel %vm1842_vm2, %v2591_v48, 0.0  ;;  %v2306_v51 = vsel %vm1842_vm2, %v8620_v20, 0.0 }
 0x3ce   :  { %v2301_v25 = vadd.f32 %v2300_v43, %v2299_v31  ;;  %v3072_v60 = vadd.f32 %v3071_v3, %v3070_v6  ;;  %14202 = vst [vmem:[#allocation181_spill] sm:$0xff] %v8631_v61  ;;  %v2304_v3 = vsel %vm1842_vm2, %v8611_v5, 0.0  ;;  %v8640_v31 = vadd.f32 %v8401_v35, %v7880_v44 }
 0x3cf   :  { %v2593_v24 = vmul.f32 %v8631_v61, %v8631_v61  ;;  %v2308_v44 = vsel %vm1842_vm2, %v8631_v61, 0.0 }
 0x3d0   :  { %v2303_v36 = vadd.f32 %v2302_v37, %v2301_v25  ;;  %v3074_v12 = vadd.f32 %v3073_v10, %v3072_v60  ;;  %v8649_v25 = vadd.f32 %v8401_v35, %v7924_v14  ;;  %v3079_v37 = vsel %vm1842_vm2, %v2592_v11, 0.0 }
 0x3d1   :  { %v2594_v48 = vmul.f32 %v8640_v31, %v8640_v31  ;;  %v2310_v14 = vsel %vm1842_vm2, %v8640_v31, 0.0  ;;  %v8667_v11 = vadd.f32 %v8401_v35, %v8012_v13 }
 0x3d2   :  { %v2305_v6 = vadd.f32 %v2304_v3, %v2303_v36  ;;  %v3076_v43 = vadd.f32 %v3075_v9, %v3074_v12  ;;  %14203 = vst [vmem:[#allocation223_spill] sm:$0xff] %v8649_v25  ;;  %v8658_v36 = vadd.f32 %v8401_v35, %v7968_v27  ;;  %v3081_v3 = vsel %vm1842_vm2, %v2593_v24, 0.0 }
 0x3d3   :  { %v3083_v27 = vsel %vm1842_vm2, %v2594_v48, 0.0  ;;  %v2597_v48 = vmul.f32 %v8667_v11, %v8667_v11 }
 0x3d4   :  { %v2307_v60 = vadd.f32 %v2306_v51, %v2305_v6  ;;  %v3078_v10 = vadd.f32 %v3077_v56, %v3076_v43  ;;  %v2595_v56 = vmul.f32 %v8649_v25, %v8649_v25  ;;  %v8669_v51 = vpop.f32.mrf.mxu3  ;;  %v2596_v24 = vmul.f32 %v8658_v36, %v8658_v36 }
 0x3d6   :  { %v2309_v12 = vadd.f32 %v2308_v44, %v2307_v60  ;;  %v3080_v9 = vadd.f32 %v3079_v37, %v3078_v10  ;;  %v2312_v60 = vsel %vm1842_vm2, %v8649_v25, 0.0  ;;  %v8678_v10 = vadd.f32 %v8401_v35, %v8054_v32 }
 0x3d7   :  { %v3085_v13 = vsel %vm1842_vm2, %v2595_v56, 0.0  ;;  %v3087_v25 = vsel %vm1842_vm2, %v2596_v24, 0.0  ;;  %v2316_v32 = vsel %vm1842_vm2, %v8667_v11, 0.0 }
 0x3d8   :  { %v2311_v6 = vadd.f32 %v2310_v14, %v2309_v12  ;;  %v3082_v43 = vadd.f32 %v3081_v3, %v3080_v9  ;;  %v2314_v12 = vsel %vm1842_vm2, %v8658_v36, 0.0  ;;  %v8687_v9 = vadd.f32 %v8401_v35, %v8098_v33 }
 0x3d9   :  { %v2598_v56 = vmul.f32 %v8678_v10, %v8678_v10  ;;  %v2318_v33 = vsel %vm1842_vm2, %v8678_v10, 0.0  ;;  %v14365_v50 = vld [vmem:[#allocation223_spill] sm:$0xff] }
 0x3da   :  { %v2313_v37 = vadd.f32 %v2312_v60, %v2311_v6  ;;  %v3084_v44 = vadd.f32 %v3083_v27, %v3082_v43  ;;  %14204 = vst [vmem:[#allocation224_spill] sm:$0xff] %v8687_v9  ;;  %v8696_v6 = vadd.f32 %v8401_v35, %v8138_v34  ;;  %v3089_v60 = vsel %vm1842_vm2, %v2597_v48, 0.0 }
 0x3db   :  { %v2599_v24 = vmul.f32 %v8687_v9, %v8687_v9  ;;  %v2320_v34 = vsel %vm1842_vm2, %v8687_v9, 0.0  ;;  %v8714_v48 = vadd.f32 %v8401_v35, %v8214_v46 }
 0x3dc   :  { %v2315_v3 = vadd.f32 %v2314_v12, %v2313_v37  ;;  %v3086_v14 = vadd.f32 %v3085_v13, %v3084_v44  ;;  %14205 = vst [vmem:[#allocation225_spill] sm:$0xff] %v8696_v6  ;;  %v8705_v37 = vadd.f32 %v8401_v35, %v8176_v15  ;;  %v3091_v12 = vsel %vm1842_vm2, %v2598_v56, 0.0 }
 0x3dd   :  { %14207 = vst [vmem:[#allocation227_spill] sm:$0xff] %v8714_v48  ;;  %v3093_v15 = vsel %vm1842_vm2, %v2599_v24, 0.0  ;;  %v2602_v24 = vmul.f32 %v8714_v48, %v8714_v48 }
 0x3de   :  { %v2317_v43 = vadd.f32 %v2316_v32, %v2315_v3  ;;  %v3088_v27 = vadd.f32 %v3087_v25, %v3086_v14  ;;  %14206 = vst [vmem:[#allocation226_spill] sm:$0xff] %v8705_v37  ;;  %v2600_v25 = vmul.f32 %v8696_v6, %v8696_v6  ;;  %v8716_v32 = vpop.f32.mrf.mxu3  ;;  %v2601_v56 = vmul.f32 %v8705_v37, %v8705_v37 }
 0x3e0   :  { %v2319_v44 = vadd.f32 %v2318_v33, %v2317_v43  ;;  %v3090_v13 = vadd.f32 %v3089_v60, %v3088_v27  ;;  %v2322_v43 = vsel %vm1842_vm2, %v8696_v6, 0.0  ;;  %v8725_v27 = vadd.f32 %v8401_v35, %v8252_v45 }
 0x3e1   :  { %v3095_v46 = vsel %vm1842_vm2, %v2600_v25, 0.0  ;;  %v3097_v6 = vsel %vm1842_vm2, %v2601_v56, 0.0  ;;  %v2326_v45 = vsel %vm1842_vm2, %v8714_v48, 0.0 }
 0x3e2   :  { %v2321_v3 = vadd.f32 %v2320_v34, %v2319_v44  ;;  %v3092_v14 = vadd.f32 %v3091_v12, %v3090_v13  ;;  %14208 = vst [vmem:[#allocation228_spill] sm:$0xff] %v8725_v27  ;;  %v2324_v44 = vsel %vm1842_vm2, %v8705_v37, 0.0  ;;  %v8734_v13 = vadd.f32 %v8401_v35, %v8288_v2 }
 0x3e3   :  { %v2603_v25 = vmul.f32 %v8725_v27, %v8725_v27  ;;  %v2328_v2 = vsel %vm1842_vm2, %v8725_v27, 0.0 }
 0x3e4   :  { %v3094_v60 = vadd.f32 %v3093_v15, %v3092_v14  ;;  %v2323_v33 = vadd.f32 %v2322_v43, %v2321_v3  ;;  %14209 = vst [vmem:[#allocation229_spill] sm:$0xff] %v8734_v13  ;;  %v8743_v3 = vadd.f32 %v8401_v35, %v8335_v41  ;;  %v3099_v43 = vsel %vm1842_vm2, %v2602_v24, 0.0 }
 0x3e5   :  { %v2604_v56 = vmul.f32 %v8734_v13, %v8734_v13  ;;  %v2330_v41 = vsel %vm1842_vm2, %v8734_v13, 0.0  ;;  %v8761_v24 = vadd.f32 %v8401_v35, %v8434_v42 }
 0x3e6   :  { %v3096_v12 = vadd.f32 %v3095_v46, %v3094_v60  ;;  %v2325_v34 = vadd.f32 %v2324_v44, %v2323_v33  ;;  %14210 = vst [vmem:[#allocation230_spill] sm:$0xff] %v8743_v3  ;;  %v8752_v60 = vadd.f32 %v8401_v35, %v8382_v52  ;;  %v3101_v44 = vsel %vm1842_vm2, %v2603_v25, 0.0 }
 0x3e7   :  { %14212 = vst [vmem:[#allocation232_spill] sm:$0xff] %v8761_v24  ;;  %v3103_v52 = vsel %vm1842_vm2, %v2604_v56, 0.0  ;;  %v2607_v56 = vmul.f32 %v8761_v24, %v8761_v24 }
 0x3e8   :  { %v3098_v14 = vadd.f32 %v3097_v6, %v3096_v12  ;;  %v2327_v15 = vadd.f32 %v2326_v45, %v2325_v34  ;;  %14211 = vst [vmem:[#allocation231_spill] sm:$0xff] %v8752_v60  ;;  %v2605_v6 = vmul.f32 %v8743_v3, %v8743_v3  ;;  %v1836_v45 = vpop.f32.mrf.mxu3  ;;  %v2606_v25 = vmul.f32 %v8752_v60, %v8752_v60 }
 0x3ea   :  { %v3100_v33 = vadd.f32 %v3099_v43, %v3098_v14  ;;  %v2329_v46 = vadd.f32 %v2328_v2, %v2327_v15  ;;  %v2332_v14 = vsel %vm1842_vm2, %v8743_v3, 0.0  ;;  %v8770_v15 = vadd.f32 %v8401_v35, %v8481_v21 }
 0x3eb   :  { %v3105_v42 = vsel %vm1842_vm2, %v2605_v6, 0.0  ;;  %v8783_v21 = vadd.f32 %v8401_v35, %v8575_v40  ;;  %v2336_v6 = vsel %vm1842_vm2, %v8761_v24, 0.0  ;;  %v8797_v40 = vadd.f32 %v8401_v35, %v8622_v16 }
 0x3ec   :  { %v3102_v12 = vadd.f32 %v3101_v44, %v3100_v33  ;;  %v2331_v34 = vadd.f32 %v2330_v41, %v2329_v46  ;;  %14213 = vst [vmem:[#allocation233_spill] sm:$0xff] %v8770_v15  ;;  %v2334_v33 = vsel %vm1842_vm2, %v8752_v60, 0.0  ;;  %v8779_v46 = vadd.f32 %v8401_v35, %v8528_v26 }
 0x3ed   :  { %14215 = vst [vmem:[#allocation235_spill] sm:$0xff] %v8783_v21  ;;  %v3109_v60 = vsel %vm1842_vm2, %v2607_v56, 0.0  ;;  %v2338_v26 = vsel %vm1842_vm2, %v8770_v15, 0.0 }
 0x3ee   :  { %v3104_v43 = vadd.f32 %v3103_v52, %v3102_v12  ;;  %v2333_v2 = vadd.f32 %v2332_v14, %v2331_v34  ;;  %14214 = vst [vmem:[#allocation234_spill] sm:$0xff] %v8779_v46  ;;  %v3107_v12 = vsel %vm1842_vm2, %v2606_v25, 0.0  ;;  %v2608_v34 = vmul.f32 %v8770_v15, %v8770_v15 }
 0x3ef   :  { %14216 = vst [vmem:[#allocation236_spill] sm:$0xff] %v8797_v40  ;;  %v2340_v56 = vsel %vm1842_vm2, %v8779_v46, 0.0 }
 0x3f0   :  { %v3106_v44 = vadd.f32 %v3105_v42, %v3104_v43  ;;  %v2335_v41 = vadd.f32 %v2334_v33, %v2333_v2  ;;  %v2609_v43 = vmul.f32 %v8779_v46, %v8779_v46  ;;  %v2610_v42 = vmul.f32 %v8783_v21, %v8783_v21 }
 0x3f1   :  { %v3111_v33 = vsel %vm1842_vm2, %v2608_v34, 0.0  ;;  %v8815_v34 = vadd.f32 %v8401_v35, %v8716_v32 }
 0x3f2   :  { %v3108_v52 = vadd.f32 %v3107_v12, %v3106_v44  ;;  %v2337_v14 = vadd.f32 %v2336_v6, %v2335_v41  ;;  %v8806_v44 = vadd.f32 %v8401_v35, %v8669_v51  ;;  %v1839_v6 = vpop.f32.mrf.mxu3  ;;  %v3113_v16 = vsel %vm1842_vm2, %v2609_v43, 0.0 }
 0x3f3   :  { %14218 = vst [vmem:[#allocation238_spill] sm:$0xff] %v8815_v34  ;;  %v3115_v51 = vsel %vm1842_vm2, %v2610_v42, 0.0  ;;  %v2613_v42 = vmul.f32 %v8815_v34, %v8815_v34 }
 0x3f4   :  { %v3110_v25 = vadd.f32 %v3109_v60, %v3108_v52  ;;  %v2339_v2 = vadd.f32 %v2338_v26, %v2337_v14  ;;  %14217 = vst [vmem:[#allocation237_spill] sm:$0xff] %v8806_v44  ;;  %v2342_v60 = vsel %vm1842_vm2, %v8783_v21, 0.0  ;;  %v2611_v52 = vmul.f32 %v8797_v40, %v8797_v40  ;;  %v14372_v17 = vld [vmem:[#allocation235_spill] sm:$0xff] }
 0x3f5   :  { %v2612_v43 = vmul.f32 %v8806_v44, %v8806_v44  ;;  %v14371_v23 = vld [vmem:[#allocation234_spill] sm:$0xff] }
 0x3f6   :  { %v3112_v41 = vadd.f32 %v3111_v33, %v3110_v25  ;;  %v2341_v12 = vadd.f32 %v2340_v56, %v2339_v2  ;;  %v2344_v25 = vsel %vm1842_vm2, %v8797_v40, 0.0  ;;  %v8823_v2 = vadd.f32 %v8401_v35, %v1836_v45  ;;  %v14373_v62 = vld [vmem:[#allocation236_spill] sm:$0xff] }
 0x3f7   :  { %v8826_v33 = vadd.f32 %v8401_v35, %v1839_v6  ;;  %v3117_v32 = vsel %vm1842_vm2, %v2611_v52, 0.0  ;;  %v2348_v45 = vsel %vm1842_vm2, %v8815_v34, 0.0 }
 0x3f8   :  { %v3114_v14 = vadd.f32 %v3113_v16, %v3112_v41  ;;  %v2343_v26 = vadd.f32 %v2342_v60, %v2341_v12  ;;  %14219 = vst [vmem:[#allocation239_spill] sm:$0xff] %v8823_v2  ;;  %v2346_v41 = vsel %vm1842_vm2, %v8806_v44, 0.0  ;;  %v3119_v60 = vsel %vm1842_vm2, %v2612_v43, 0.0 }
 0x3f9   :  { %14220 = vst [vmem:[#allocation240_spill] sm:$0xff] %v8826_v33  ;;  %v2614_v35 = vmul.f32 %v8823_v2, %v8823_v2  ;;  %v2615_v6 = vmul.f32 %v8826_v33, %v8826_v33 }
 0x3fa   :  { %v3116_v56 = vadd.f32 %v3115_v51, %v3114_v14  ;;  %v2345_v21 = vadd.f32 %v2344_v25, %v2343_v26  ;;  %v3121_v26 = vsel %vm1842_vm2, %v2613_v42, 0.0  ;;  %v2350_v51 = vsel %vm1842_vm2, %v8823_v2, 0.0  ;;  %v14375_v58 = vld [vmem:[#allocation238_spill] sm:$0xff] }
 0x3fb   :  { %v14374_v19 = vld [vmem:[#allocation237_spill] sm:$0xff] }
 0x3fc   :  { %v3118_v12 = vadd.f32 %v3117_v32, %v3116_v56  ;;  %v2347_v16 = vadd.f32 %v2346_v41, %v2345_v21  ;;  %v2352_v21 = vsel %vm1842_vm2, %v8826_v33, 0.0  ;;  %v3123_v56 = vsel %vm1842_vm2, %v2614_v35, 0.0 }
 0x3fd   :  { %v3125_v32 = vsel %vm1842_vm2, %v2615_v6, 0.0 }
 0x3fe   :  { %v3120_v52 = vadd.f32 %v3119_v60, %v3118_v12  ;;  %v2349_v14 = vadd.f32 %v2348_v45, %v2347_v16 }
 0x3ff   :  { %v14376_v37 = vld [vmem:[#allocation239_spill] sm:$0xff] }
 0x400   :  { %v3122_v25 = vadd.f32 %v3121_v26, %v3120_v52  ;;  %v2351_v43 = vadd.f32 %v2350_v51, %v2349_v14  ;;  %v14377_v9 = vld [vmem:[#allocation240_spill] sm:$0xff] }
 0x402   :  { %v3124_v41 = vadd.f32 %v3123_v56, %v3122_v25  ;;  %v2353_v34 = vadd.f32 %v2352_v21, %v2351_v43  ;;  %v14223_v56 = vld [vmem:[#allocation2_spill] sm:$0xff] }
 0x404   :  { %v2354_v44 = vrot.slane %v2353_v34, 4  ;;  %v3126_v40 = vadd.f32 %v3125_v32, %v3124_v41  ;;  %v14224_v41 = vld [vmem:[#allocation3_spill] sm:$0xff]  ;;  %v14302_v32 = vld [vmem:[#allocation46_spill] sm:$0xff] }
 0x406   :  { %v2355_v12 = vadd.f32 %v2354_v44, %v2353_v34  ;;  %v3127_v16 = vrot.slane %v3126_v40, 4 }
 0x408   :  { %v2356_v60 = vrot.slane %v2355_v12, 2  ;;  %v3128_v42 = vadd.f32 %v3127_v16, %v3126_v40  ;;  %v14225_v16 = vld [vmem:[#allocation4_spill] sm:$0xff] }
 0x40a   :  { %v2357_v45 = vadd.f32 %v2356_v60, %v2355_v12  ;;  %v3129_v46 = vrot.slane %v3128_v42, 2  ;;  %v14300_v60 = vld [vmem:[#allocation42_spill] sm:$0xff] }
 0x40b   :  { %v14309_v12 = vld [vmem:[#allocation186_spill] sm:$0xff] }
 0x40c   :  { %v2358_v2 = vrot.slane %v2357_v45, 1  ;;  %v3130_v15 = vadd.f32 %v3129_v46, %v3128_v42  ;;  %v14226_v42 = vld [vmem:[#allocation5_spill] sm:$0xff] }
 0x40e   :  { %v2359_v24 = vadd.f32 %v2358_v2, %v2357_v45  ;;  %v3131_v33 = vrot.slane %v3130_v15, 1  ;;  %v14222_v2 = vld [vmem:[#allocation141_spill] sm:$0xff]  ;;  %v14310_v45 = vld [vmem:[#allocation187_spill] sm:$0xff] }
 0x410   :  { %v3132_v52 = vadd.f32 %v3131_v33, %v3130_v15  ;;  %v8847_v14 = vmul.f32 0.00048828125, %v2359_v24  ;;  %v14221_v15 = vld [vmem:[#allocation142_spill] sm:$0xff]  ;;  %v14241_v33 = vld [vmem:[#allocation19_spill] sm:$0xff] }
 0x412   :  { %v3134_v35 = vmul.f32 0.00048828125, %v3132_v52  ;;  %v3135_v6 = vmul.f32 %v8847_v14, %v8847_v14  ;;  %v14227_v52 = vld [vmem:[#allocation6_spill] sm:$0xff]  ;;  %v14378_v48 = vsub.f32 %v14221_v15, %v8847_v14  ;;  %v14379_v13 = vsub.f32 %v14222_v2, %v8847_v14 }
 0x413   :  { %v14380_v61 = vsub.f32 %v14223_v56, %v8847_v14 }
 0x414   :  { %v3136_v26 = vsub.f32 %v3134_v35, %v3135_v6  ;;  %v14247_v35 = vld [vmem:[#allocation31_spill] sm:$0xff]  ;;  %v14307_v6 = vld [vmem:[#allocation182_spill] sm:$0xff] }
 0x416   :  { %v3137_v51 = vmax.f32 %v3136_v26, 0.0  ;;  %v14358_v26 = vld [vmem:[#allocation146_spill] sm:$0xff] }
 0x418   :  { %v3139_v21 = vadd.f32 1e-05, %v3137_v51  ;;  %v14308_v51 = vld [vmem:[#allocation183_spill] sm:$0xff] }
 0x41a   :  { %4969 = vrsqrt.f32 %v3139_v21  ;;  %vm3146_vm3 = vweird.f32 %v3139_v21 }
 0x420   :  { %v4970_v44 = vpop.eup %4969 }
 0x421   :  { %v3141_v34 = vmul.f32 %v4970_v44, %v3139_v21  ;;  %vm3147_vm4 = vweird.f32 %v4970_v44 }
 0x422   :  { %vm8871_vm5 = vmor %vm3146_vm3, %vm3147_vm4 }
 0x423   :  { %v3142_v40 = vmul.f32 %v4970_v44, %v3141_v34  ;;  %v14364_v34 = vld [vmem:[#allocation180_spill] sm:$0xff] }
 0x425   :  { %v3143_v25 = vmul.f32 0.5, %v3142_v40  ;;  %v3138_v40 = vld [vmem:[%s13161_s3] sm:$0x1] }
 0x427   :  { %v3144_v43 = vsub.f32 1.5, %v3143_v25  ;;  %v14354_v25 = vld [vmem:[#allocation140_spill] sm:$0xff] }
 0x429   :  { %v3145_v46 = vmul.f32 %v4970_v44, %v3144_v43  ;;  %v14361_v43 = vld [vmem:[#allocation219_spill] sm:$0xff] }
 0x42b   :  { %v3149_v21 = vsel %vm8871_vm5, %v4970_v44, %v3145_v46  ;;  %v14298_v46 = vld [vmem:[#allocation38_spill] sm:$0xff]  ;;  %v14305_v44 = vld [vmem:[#allocation56_spill] sm:$0xff] }
 0x42c   :  { %v8910_v24 = vmul.f32 %v3149_v21, %v3138_v40  ;;  %v14303_v40 = vld [vmem:[#allocation48_spill] sm:$0xff] }
 0x42e   :  { %v9221_v55 = vperm.slane %v8910_v24, 0  ;;  %v14381_v24 = vsub.f32 %v14224_v41, %v8847_v14 }
 0x430   :  { %14367 = vst [vmem:[#allocation142_spill] sm:$0xff] %v9221_v55  ;;  %v9255_v27 = vmul.f32 %v9221_v55, %v14378_v48  ;;  %v9261_v3 = vmul.f32 %v9221_v55, %v14379_v13  ;;  %v9267_v21 = vmul.f32 %v9221_v55, %v14380_v61  ;;  %v9273_v15 = vmul.f32 %v9221_v55, %v14381_v24  ;;  %v14389_v24 = vld [vmem:[#allocation7_spill] sm:$0xff] }
 0x431   :  { %v14383_v48 = vsub.f32 %v14225_v16, %v8847_v14  ;;  %v14385_v13 = vsub.f32 %v14226_v42, %v8847_v14  ;;  %v14387_v61 = vsub.f32 %v14227_v52, %v8847_v14 }
 0x432   :  { %14382 = vst [vmem:[#allocation141_spill] sm:$0xff] %v9273_v15  ;;  %v14390_v15 = vsub.f32 %v14389_v24, %v8847_v14 }
 0x433   :  { %v9279_v2 = vmul.f32 %v9221_v55, %v14383_v48  ;;  %v9285_v56 = vmul.f32 %v9221_v55, %v14385_v13  ;;  %v9291_v41 = vmul.f32 %v9221_v55, %v14387_v61  ;;  %v14392_v48 = vld [vmem:[#allocation8_spill] sm:$0xff]  ;;  %v14395_v13 = vld [vmem:[#allocation9_spill] sm:$0xff]  ;;  %v14398_v61 = vld [vmem:[#allocation10_spill] sm:$0xff] }
 0x434   :  { %v9297_v16 = vmul.f32 %v9221_v55, %v14390_v15  ;;  %v14401_v15 = vld [vmem:[#allocation11_spill] sm:$0xff] }
 0x435   :  { %14384 = vst [vmem:[#allocation2_spill] sm:$0xff] %v9279_v2  ;;  %v14393_v2 = vsub.f32 %v14392_v48, %v8847_v14 }
 0x436   :  { %14386 = vst [vmem:[#allocation3_spill] sm:$0xff] %v9285_v56  ;;  %v14396_v56 = vsub.f32 %v14395_v13, %v8847_v14 }
 0x437   :  { %14388 = vst [vmem:[#allocation4_spill] sm:$0xff] %v9291_v41  ;;  %v9303_v42 = vmul.f32 %v9221_v55, %v14393_v2  ;;  %v14399_v41 = vsub.f32 %v14398_v61, %v8847_v14  ;;  %v14404_v2 = vld [vmem:[#allocation12_spill] sm:$0xff] }
 0x438   :  { %14391 = vst [vmem:[#allocation5_spill] sm:$0xff] %v9297_v16  ;;  %v9309_v52 = vmul.f32 %v9221_v55, %v14396_v56  ;;  %v14402_v16 = vsub.f32 %v14401_v15, %v8847_v14  ;;  %v14407_v56 = vld [vmem:[#allocation13_spill] sm:$0xff] }
 0x439   :  { %14394 = vst [vmem:[#allocation6_spill] sm:$0xff] %v9303_v42  ;;  %v9315_v24 = vmul.f32 %v9221_v55, %v14399_v41  ;;  %v14405_v42 = vsub.f32 %v14404_v2, %v8847_v14  ;;  %v14410_v41 = vld [vmem:[#allocation14_spill] sm:$0xff] }
 0x43a   :  { %14397 = vst [vmem:[#allocation19_spill] sm:$0xff] %v9309_v52  ;;  %v9321_v48 = vmul.f32 %v9221_v55, %v14402_v16  ;;  %v14408_v52 = vsub.f32 %v14407_v56, %v8847_v14  ;;  %v14412_v16 = vld [vmem:[#allocation15_spill] sm:$0xff] }
 0x43b   :  { %14400 = vst [vmem:[#allocation31_spill] sm:$0xff] %v9315_v24  ;;  %v9327_v13 = vmul.f32 %v9221_v55, %v14405_v42  ;;  %v14411_v24 = vsub.f32 %v14410_v41, %v8847_v14  ;;  %v14415_v42 = vld [vmem:[#allocation16_spill] sm:$0xff] }
 0x43c   :  { %14403 = vst [vmem:[#allocation38_spill] sm:$0xff] %v9321_v48  ;;  %v9333_v61 = vmul.f32 %v9221_v55, %v14408_v52  ;;  %v14413_v48 = vsub.f32 %v14412_v16, %v8847_v14  ;;  %v14418_v52 = vld [vmem:[#allocation17_spill] sm:$0xff] }
 0x43d   :  { %14406 = vst [vmem:[#allocation42_spill] sm:$0xff] %v9327_v13  ;;  %v9339_v15 = vmul.f32 %v9221_v55, %v14411_v24  ;;  %v14416_v13 = vsub.f32 %v14415_v42, %v8847_v14  ;;  %v14421_v24 = vsub.f32 %v14241_v33, %v8847_v14 }
 0x43e   :  { %14409 = vst [vmem:[#allocation46_spill] sm:$0xff] %v9333_v61  ;;  %v9345_v2 = vmul.f32 %v9221_v55, %v14413_v48  ;;  %v14419_v61 = vsub.f32 %v14418_v52, %v8847_v14  ;;  %v14423_v48 = vld [vmem:[#allocation21_spill] sm:$0xff] }
 0x43f   :  { %v9351_v56 = vmul.f32 %v9221_v55, %v14416_v13  ;;  %v9363_v16 = vmul.f32 %v9221_v55, %v14421_v24  ;;  %v14426_v13 = vld [vmem:[#allocation23_spill] sm:$0xff] }
 0x440   :  { %14414 = vst [vmem:[#allocation48_spill] sm:$0xff] %v9345_v2  ;;  %v9357_v41 = vmul.f32 %v9221_v55, %v14419_v61  ;;  %v14424_v2 = vsub.f32 %v14423_v48, %v8847_v14  ;;  %v14428_v61 = vld [vmem:[#allocation25_spill] sm:$0xff]  ;;  %v14431_v24 = vld [vmem:[#allocation27_spill] sm:$0xff] }
 0x441   :  { %14417 = vst [vmem:[#allocation56_spill] sm:$0xff] %v9351_v56  ;;  %v14427_v56 = vsub.f32 %v14426_v13, %v8847_v14 }
 0x442   :  { %14420 = vst [vmem:[#allocation182_spill] sm:$0xff] %v9357_v41  ;;  %v9369_v42 = vmul.f32 %v9221_v55, %v14424_v2  ;;  %v14429_v41 = vsub.f32 %v14428_v61, %v8847_v14  ;;  %v14434_v2 = vld [vmem:[#allocation29_spill] sm:$0xff] }
 0x443   :  { %14422 = vst [vmem:[#allocation183_spill] sm:$0xff] %v9363_v16  ;;  %v9375_v52 = vmul.f32 %v9221_v55, %v14427_v56  ;;  %v14432_v16 = vsub.f32 %v14431_v24, %v8847_v14  ;;  %v14437_v56 = vsub.f32 %v14247_v35, %v8847_v14 }
 0x444   :  { %14425 = vst [vmem:[#allocation186_spill] sm:$0xff] %v9369_v42  ;;  %v9381_v33 = vmul.f32 %v9221_v55, %v14429_v41  ;;  %v14435_v42 = vsub.f32 %v14434_v2, %v8847_v14  ;;  %v14439_v41 = vld [vmem:[#allocation33_spill] sm:$0xff] }
 0x445   :  { %v9387_v48 = vmul.f32 %v9221_v55, %v14432_v16  ;;  %v9399_v61 = vmul.f32 %v9221_v55, %v14437_v56  ;;  %v14442_v16 = vld [vmem:[#allocation35_spill] sm:$0xff] }
 0x446   :  { %14430 = vst [vmem:[#allocation187_spill] sm:$0xff] %v9381_v33  ;;  %v9393_v13 = vmul.f32 %v9221_v55, %v14435_v42  ;;  %v14440_v33 = vsub.f32 %v14439_v41, %v8847_v14  ;;  %v14445_v42 = vld [vmem:[#allocation37_spill] sm:$0xff]  ;;  %v14448_v56 = vld [vmem:[#allocation39_spill] sm:$0xff] }
 0x447   :  { %14433 = vst [vmem:[#allocation194_spill] sm:$0xff] %v9387_v48  ;;  %v14443_v48 = vsub.f32 %v14442_v16, %v8847_v14 }
 0x448   :  { %14436 = vst [vmem:[#allocation196_spill] sm:$0xff] %v9393_v13  ;;  %v9405_v24 = vmul.f32 %v9221_v55, %v14440_v33  ;;  %v14446_v13 = vsub.f32 %v14445_v42, %v8847_v14  ;;  %v14451_v33 = vld [vmem:[#allocation41_spill] sm:$0xff] }
 0x449   :  { %14438 = vst [vmem:[#allocation135_spill] sm:$0xff] %v9399_v61  ;;  %v9411_v2 = vmul.f32 %v9221_v55, %v14443_v48  ;;  %v14449_v61 = vsub.f32 %v14448_v56, %v8847_v14  ;;  %v14454_v48 = vld [vmem:[#allocation43_spill] sm:$0xff] }
 0x44a   :  { %14441 = vst [vmem:[#allocation140_spill] sm:$0xff] %v9405_v24  ;;  %v9417_v35 = vmul.f32 %v9221_v55, %v14446_v13  ;;  %v14452_v24 = vsub.f32 %v14451_v33, %v8847_v14  ;;  %v14457_v13 = vld [vmem:[#allocation45_spill] sm:$0xff] }
 0x44b   :  { %14444 = vst [vmem:[#allocation143_spill] sm:$0xff] %v9411_v2  ;;  %v9423_v41 = vmul.f32 %v9221_v55, %v14449_v61  ;;  %v14455_v2 = vsub.f32 %v14454_v48, %v8847_v14  ;;  %v14460_v61 = vld [vmem:[#allocation47_spill] sm:$0xff] }
 0x44c   :  { %14447 = vst [vmem:[#allocation144_spill] sm:$0xff] %v9417_v35  ;;  %v9429_v16 = vmul.f32 %v9221_v55, %v14452_v24  ;;  %v14458_v35 = vsub.f32 %v14457_v13, %v8847_v14  ;;  %v14463_v24 = vld [vmem:[#allocation49_spill] sm:$0xff] }
 0x44d   :  { %14450 = vst [vmem:[#allocation146_spill] sm:$0xff] %v9423_v41  ;;  %v9435_v42 = vmul.f32 %v9221_v55, %v14455_v2  ;;  %v14461_v41 = vsub.f32 %v14460_v61, %v8847_v14  ;;  %v14466_v2 = vld [vmem:[#allocation52_spill] sm:$0xff] }
 0x44e   :  { %14453 = vst [vmem:[#allocation147_spill] sm:$0xff] %v9429_v16  ;;  %v9441_v56 = vmul.f32 %v9221_v55, %v14458_v35  ;;  %v14464_v16 = vsub.f32 %v14463_v24, %v8847_v14  ;;  %v14469_v35 = vld [vmem:[#allocation55_spill] sm:$0xff] }
 0x44f   :  { %14456 = vst [vmem:[#allocation219_spill] sm:$0xff] %v9435_v42  ;;  %v9447_v33 = vmul.f32 %v9221_v55, %v14461_v41  ;;  %v14467_v42 = vsub.f32 %v14466_v2, %v8847_v14  ;;  %v14472_v41 = vld [vmem:[#allocation60_spill] sm:$0xff] }
 0x450   :  { %14459 = vst [vmem:[#allocation220_spill] sm:$0xff] %v9441_v56  ;;  %v9453_v48 = vmul.f32 %v9221_v55, %v14464_v16  ;;  %v14470_v56 = vsub.f32 %v14469_v35, %v8847_v14  ;;  %v14475_v16 = vld [vmem:[#allocation67_spill] sm:$0xff] }
 0x451   :  { %14462 = vst [vmem:[#allocation221_spill] sm:$0xff] %v9447_v33  ;;  %v9459_v13 = vmul.f32 %v9221_v55, %v14467_v42  ;;  %v14473_v33 = vsub.f32 %v14472_v41, %v8847_v14  ;;  %v14478_v42 = vld [vmem:[#allocation153_spill] sm:$0xff] }
 0x452   :  { %14465 = vst [vmem:[#allocation180_spill] sm:$0xff] %v9453_v48  ;;  %v9465_v61 = vmul.f32 %v9221_v55, %v14470_v56  ;;  %v14476_v48 = vsub.f32 %v14475_v16, %v8847_v14  ;;  %v14481_v56 = vld [vmem:[#allocation154_spill] sm:$0xff] }
 0x453   :  { %14468 = vst [vmem:[#allocation223_spill] sm:$0xff] %v9459_v13  ;;  %v9471_v24 = vmul.f32 %v9221_v55, %v14473_v33  ;;  %v14479_v13 = vsub.f32 %v14478_v42, %v8847_v14  ;;  %v14484_v33 = vld [vmem:[#allocation155_spill] sm:$0xff] }
 0x454   :  { %14471 = vst [vmem:[#allocation234_spill] sm:$0xff] %v9465_v61  ;;  %v9477_v2 = vmul.f32 %v9221_v55, %v14476_v48  ;;  %v14482_v61 = vsub.f32 %v14481_v56, %v8847_v14  ;;  %v14487_v48 = vld [vmem:[#allocation156_spill] sm:$0xff] }
 0x455   :  { %14474 = vst [vmem:[#allocation235_spill] sm:$0xff] %v9471_v24  ;;  %v9483_v35 = vmul.f32 %v9221_v55, %v14479_v13  ;;  %v14485_v24 = vsub.f32 %v14484_v33, %v8847_v14  ;;  %v14490_v13 = vld [vmem:[#allocation157_spill] sm:$0xff] }
 0x456   :  { %14477 = vst [vmem:[#allocation236_spill] sm:$0xff] %v9477_v2  ;;  %v9489_v41 = vmul.f32 %v9221_v55, %v14482_v61  ;;  %v14488_v2 = vsub.f32 %v14487_v48, %v8847_v14  ;;  %v14493_v61 = vld [vmem:[#allocation158_spill] sm:$0xff] }
 0x457   :  { %14480 = vst [vmem:[#allocation237_spill] sm:$0xff] %v9483_v35  ;;  %v9495_v16 = vmul.f32 %v9221_v55, %v14485_v24  ;;  %v14491_v35 = vsub.f32 %v14490_v13, %v8847_v14  ;;  %v14496_v24 = vld [vmem:[#allocation159_spill] sm:$0xff] }
 0x458   :  { %14483 = vst [vmem:[#allocation238_spill] sm:$0xff] %v9489_v41  ;;  %v9501_v42 = vmul.f32 %v9221_v55, %v14488_v2  ;;  %v14494_v41 = vsub.f32 %v14493_v61, %v8847_v14  ;;  %v14499_v2 = vld [vmem:[#allocation160_spill] sm:$0xff] }
 0x459   :  { %14486 = vst [vmem:[#allocation239_spill] sm:$0xff] %v9495_v16  ;;  %v9507_v56 = vmul.f32 %v9221_v55, %v14491_v35  ;;  %v14497_v16 = vsub.f32 %v14496_v24, %v8847_v14  ;;  %v14502_v35 = vld [vmem:[#allocation161_spill] sm:$0xff] }
 0x45a   :  { %14489 = vst [vmem:[#allocation240_spill] sm:$0xff] %v9501_v42  ;;  %v9513_v33 = vmul.f32 %v9221_v55, %v14494_v41  ;;  %v14500_v42 = vsub.f32 %v14499_v2, %v8847_v14  ;;  %v14505_v41 = vld [vmem:[#allocation162_spill] sm:$0xff] }
 0x45b   :  { %14492 = vst [vmem:[#allocation7_spill] sm:$0xff] %v9507_v56  ;;  %v9519_v48 = vmul.f32 %v9221_v55, %v14497_v16  ;;  %v14503_v56 = vsub.f32 %v14502_v35, %v8847_v14  ;;  %v14508_v16 = vld [vmem:[#allocation163_spill] sm:$0xff] }
 0x45c   :  { %14495 = vst [vmem:[#allocation8_spill] sm:$0xff] %v9513_v33  ;;  %v9525_v13 = vmul.f32 %v9221_v55, %v14500_v42  ;;  %v14506_v33 = vsub.f32 %v14505_v41, %v8847_v14  ;;  %v14511_v42 = vld [vmem:[#allocation164_spill] sm:$0xff] }
 0x45d   :  { %14498 = vst [vmem:[#allocation9_spill] sm:$0xff] %v9519_v48  ;;  %v9531_v61 = vmul.f32 %v9221_v55, %v14503_v56  ;;  %v14509_v48 = vsub.f32 %v14508_v16, %v8847_v14  ;;  %v14514_v56 = vld [vmem:[#allocation165_spill] sm:$0xff] }
 0x45e   :  { %14501 = vst [vmem:[#allocation10_spill] sm:$0xff] %v9525_v13  ;;  %v9537_v24 = vmul.f32 %v9221_v55, %v14506_v33  ;;  %v14512_v13 = vsub.f32 %v14511_v42, %v8847_v14  ;;  %v14517_v33 = vld [vmem:[#allocation166_spill] sm:$0xff] }
 0x45f   :  { %14504 = vst [vmem:[#allocation11_spill] sm:$0xff] %v9531_v61  ;;  %v9543_v2 = vmul.f32 %v9221_v55, %v14509_v48  ;;  %v14515_v61 = vsub.f32 %v14514_v56, %v8847_v14  ;;  %v14520_v48 = vld [vmem:[#allocation167_spill] sm:$0xff] }
 0x460   :  { %14507 = vst [vmem:[#allocation12_spill] sm:$0xff] %v9537_v24  ;;  %v9549_v35 = vmul.f32 %v9221_v55, %v14512_v13  ;;  %v14518_v24 = vsub.f32 %v14517_v33, %v8847_v14  ;;  %v14523_v13 = vld [vmem:[#allocation168_spill] sm:$0xff] }
 0x461   :  { %14510 = vst [vmem:[#allocation13_spill] sm:$0xff] %v9543_v2  ;;  %v9555_v41 = vmul.f32 %v9221_v55, %v14515_v61  ;;  %v14521_v2 = vsub.f32 %v14520_v48, %v8847_v14  ;;  %v14526_v61 = vld [vmem:[#allocation169_spill] sm:$0xff] }
 0x462   :  { %14513 = vst [vmem:[#allocation14_spill] sm:$0xff] %v9549_v35  ;;  %v9561_v16 = vmul.f32 %v9221_v55, %v14518_v24  ;;  %v14524_v35 = vsub.f32 %v14523_v13, %v8847_v14  ;;  %v14529_v24 = vld [vmem:[#allocation170_spill] sm:$0xff] }
 0x463   :  { %14516 = vst [vmem:[#allocation15_spill] sm:$0xff] %v9555_v41  ;;  %v9567_v42 = vmul.f32 %v9221_v55, %v14521_v2  ;;  %v14527_v41 = vsub.f32 %v14526_v61, %v8847_v14  ;;  %v14532_v2 = vld [vmem:[#allocation171_spill] sm:$0xff] }
 0x464   :  { %14519 = vst [vmem:[#allocation16_spill] sm:$0xff] %v9561_v16  ;;  %v9573_v56 = vmul.f32 %v9221_v55, %v14524_v35  ;;  %v14530_v16 = vsub.f32 %v14529_v24, %v8847_v14  ;;  %v14535_v35 = vld [vmem:[#allocation172_spill] sm:$0xff] }
 0x465   :  { %14522 = vst [vmem:[#allocation17_spill] sm:$0xff] %v9567_v42  ;;  %v9579_v33 = vmul.f32 %v9221_v55, %v14527_v41  ;;  %v14533_v42 = vsub.f32 %v14532_v2, %v8847_v14  ;;  %v14538_v41 = vld [vmem:[#allocation173_spill] sm:$0xff] }
 0x466   :  { %14525 = vst [vmem:[#allocation21_spill] sm:$0xff] %v9573_v56  ;;  %v9585_v48 = vmul.f32 %v9221_v55, %v14530_v16  ;;  %v14536_v56 = vsub.f32 %v14535_v35, %v8847_v14  ;;  %v14541_v16 = vld [vmem:[#allocation174_spill] sm:$0xff] }
 0x467   :  { %14528 = vst [vmem:[#allocation23_spill] sm:$0xff] %v9579_v33  ;;  %v9591_v13 = vmul.f32 %v9221_v55, %v14533_v42  ;;  %v14539_v33 = vsub.f32 %v14538_v41, %v8847_v14  ;;  %v14544_v42 = vld [vmem:[#allocation175_spill] sm:$0xff] }
 0x468   :  { %14531 = vst [vmem:[#allocation25_spill] sm:$0xff] %v9585_v48  ;;  %v9597_v61 = vmul.f32 %v9221_v55, %v14536_v56  ;;  %v14542_v48 = vsub.f32 %v14541_v16, %v8847_v14  ;;  %v14547_v56 = vld [vmem:[#allocation176_spill] sm:$0xff] }
 0x469   :  { %14534 = vst [vmem:[#allocation27_spill] sm:$0xff] %v9591_v13  ;;  %v9603_v24 = vmul.f32 %v9221_v55, %v14539_v33  ;;  %v14545_v13 = vsub.f32 %v14544_v42, %v8847_v14  ;;  %v14550_v33 = vld [vmem:[#allocation177_spill] sm:$0xff] }
 0x46a   :  { %14537 = vst [vmem:[#allocation29_spill] sm:$0xff] %v9597_v61  ;;  %v9609_v2 = vmul.f32 %v9221_v55, %v14542_v48  ;;  %v14548_v61 = vsub.f32 %v14547_v56, %v8847_v14  ;;  %v14553_v48 = vld [vmem:[#allocation178_spill] sm:$0xff] }
 0x46b   :  { %14540 = vst [vmem:[#allocation33_spill] sm:$0xff] %v9603_v24  ;;  %v9615_v35 = vmul.f32 %v9221_v55, %v14545_v13  ;;  %v14551_v24 = vsub.f32 %v14550_v33, %v8847_v14  ;;  %v14556_v13 = vld [vmem:[#allocation179_spill] sm:$0xff] }
 0x46c   :  { %14543 = vst [vmem:[#allocation35_spill] sm:$0xff] %v9609_v2  ;;  %v9621_v41 = vmul.f32 %v9221_v55, %v14548_v61  ;;  %v14554_v2 = vsub.f32 %v14553_v48, %v8847_v14  ;;  %v14559_v61 = vld [vmem:[#allocation18_spill] sm:$0xff] }
 0x46d   :  { %14546 = vst [vmem:[#allocation37_spill] sm:$0xff] %v9615_v35  ;;  %v9627_v16 = vmul.f32 %v9221_v55, %v14551_v24  ;;  %v14557_v35 = vsub.f32 %v14556_v13, %v8847_v14  ;;  %v14562_v24 = vld [vmem:[#allocation20_spill] sm:$0xff] }
 0x46e   :  { %14549 = vst [vmem:[#allocation39_spill] sm:$0xff] %v9621_v41  ;;  %v9633_v42 = vmul.f32 %v9221_v55, %v14554_v2  ;;  %v14560_v41 = vsub.f32 %v14559_v61, %v8847_v14  ;;  %v14565_v2 = vld [vmem:[#allocation22_spill] sm:$0xff] }
 0x46f   :  { %14552 = vst [vmem:[#allocation41_spill] sm:$0xff] %v9627_v16  ;;  %v9639_v56 = vmul.f32 %v9221_v55, %v14557_v35  ;;  %v14563_v16 = vsub.f32 %v14562_v24, %v8847_v14  ;;  %v14568_v35 = vld [vmem:[#allocation24_spill] sm:$0xff] }
 0x470   :  { %14555 = vst [vmem:[#allocation43_spill] sm:$0xff] %v9633_v42  ;;  %v9645_v33 = vmul.f32 %v9221_v55, %v14560_v41  ;;  %v14566_v42 = vsub.f32 %v14565_v2, %v8847_v14  ;;  %v14571_v41 = vld [vmem:[#allocation26_spill] sm:$0xff] }
 0x471   :  { %14558 = vst [vmem:[#allocation45_spill] sm:$0xff] %v9639_v56  ;;  %v9651_v48 = vmul.f32 %v9221_v55, %v14563_v16  ;;  %v14569_v56 = vsub.f32 %v14568_v35, %v8847_v14  ;;  %v14574_v16 = vld [vmem:[#allocation28_spill] sm:$0xff] }
 0x472   :  { %14561 = vst [vmem:[#allocation47_spill] sm:$0xff] %v9645_v33  ;;  %v9657_v13 = vmul.f32 %v9221_v55, %v14566_v42  ;;  %v14572_v33 = vsub.f32 %v14571_v41, %v8847_v14  ;;  %v14577_v42 = vld [vmem:[#allocation30_spill] sm:$0xff] }
 0x473   :  { %14564 = vst [vmem:[#allocation49_spill] sm:$0xff] %v9651_v48  ;;  %v9663_v61 = vmul.f32 %v9221_v55, %v14569_v56  ;;  %v14575_v48 = vsub.f32 %v14574_v16, %v8847_v14  ;;  %v14579_v56 = vld [vmem:[#allocation32_spill] sm:$0xff] }
 0x474   :  { %14567 = vst [vmem:[#allocation52_spill] sm:$0xff] %v9657_v13  ;;  %v9669_v24 = vmul.f32 %v9221_v55, %v14572_v33  ;;  %v14578_v13 = vsub.f32 %v14577_v42, %v8847_v14  ;;  %v14582_v33 = vld [vmem:[#allocation34_spill] sm:$0xff] }
 0x475   :  { %14570 = vst [vmem:[#allocation55_spill] sm:$0xff] %v9663_v61  ;;  %v9675_v2 = vmul.f32 %v9221_v55, %v14575_v48  ;;  %v14580_v61 = vsub.f32 %v14579_v56, %v8847_v14  ;;  %v14584_v48 = vld [vmem:[#allocation36_spill] sm:$0xff] }
 0x476   :  { %14573 = vst [vmem:[#allocation60_spill] sm:$0xff] %v9669_v24  ;;  %v9681_v35 = vmul.f32 %v9221_v55, %v14578_v13  ;;  %v14583_v24 = vsub.f32 %v14582_v33, %v8847_v14  ;;  %v14587_v13 = vsub.f32 %v14298_v46, %v8847_v14 }
 0x477   :  { %14576 = vst [vmem:[#allocation67_spill] sm:$0xff] %v9675_v2  ;;  %v9687_v41 = vmul.f32 %v9221_v55, %v14580_v61  ;;  %v14585_v2 = vsub.f32 %v14584_v48, %v8847_v14  ;;  %v14588_v61 = vld [vmem:[#allocation40_spill] sm:$0xff] }
 0x478   :  { %v9693_v16 = vmul.f32 %v9221_v55, %v14583_v24  ;;  %v9705_v56 = vmul.f32 %v9221_v55, %v14587_v13  ;;  %v14590_v24 = vsub.f32 %v14300_v60, %v8847_v14  ;;  %v14595_v13 = vsub.f32 %v14302_v32, %v8847_v14 }
 0x479   :  { %14581 = vst [vmem:[#allocation153_spill] sm:$0xff] %v9687_v41  ;;  %v9699_v42 = vmul.f32 %v9221_v55, %v14585_v2  ;;  %v14589_v41 = vsub.f32 %v14588_v61, %v8847_v14  ;;  %v14592_v2 = vld [vmem:[#allocation44_spill] sm:$0xff] }
 0x47a   :  { %v9717_v48 = vmul.f32 %v9221_v55, %v14590_v24  ;;  %v9729_v61 = vmul.f32 %v9221_v55, %v14595_v13  ;;  %v14597_v24 = vld [vmem:[#allocation50_spill] sm:$0xff]  ;;  %v14603_v13 = vsub.f32 %v14305_v44, %v8847_v14 }
 0x47b   :  { %14586 = vst [vmem:[#allocation154_spill] sm:$0xff] %v9699_v42  ;;  %v9711_v33 = vmul.f32 %v9221_v55, %v14589_v41  ;;  %v14593_v42 = vsub.f32 %v14592_v2, %v8847_v14  ;;  %v14596_v41 = vsub.f32 %v14303_v40, %v8847_v14 }
 0x47c   :  { %14591 = vst [vmem:[#allocation155_spill] sm:$0xff] %v9717_v48  ;;  %v14598_v48 = vsub.f32 %v14597_v24, %v8847_v14  ;;  %v9753_v40 = vmul.f32 %v9221_v55, %v14603_v13  ;;  %v14610_v13 = vsub.f32 %v7803_v1, %v8847_v14 }
 0x47d   :  { %v9723_v46 = vmul.f32 %v9221_v55, %v14593_v42  ;;  %v9735_v60 = vmul.f32 %v9221_v55, %v14596_v41  ;;  %v14600_v42 = vld [vmem:[#allocation53_spill] sm:$0xff]  ;;  %v14604_v41 = vsub.f32 %v7771_v30, %v8847_v14 }
 0x47e   :  { %v9741_v2 = vmul.f32 %v9221_v55, %v14598_v48  ;;  %v14605_v48 = vld [vmem:[#allocation62_spill] sm:$0xff]  ;;  %v9777_v30 = vmul.f32 %v9221_v55, %v14610_v13  ;;  %v14617_v13 = vld [vmem:[#allocation185_spill] sm:$0xff] }
 0x47f   :  { %14594 = vst [vmem:[#allocation156_spill] sm:$0xff] %v9723_v46  ;;  %v14601_v46 = vsub.f32 %v14600_v42, %v8847_v14  ;;  %v9759_v24 = vmul.f32 %v9221_v55, %v14604_v41  ;;  %v14612_v41 = vsub.f32 %v14307_v6, %v8847_v14 }
 0x480   :  { %14599 = vst [vmem:[#allocation157_spill] sm:$0xff] %v9741_v2  ;;  %v14606_v2 = vsub.f32 %v14605_v48, %v8847_v14 }
 0x481   :  { %v9747_v32 = vmul.f32 %v9221_v55, %v14601_v46  ;;  %v14607_v46 = vld [vmem:[#allocation69_spill] sm:$0xff]  ;;  %14611 = vst [vmem:[#allocation160_spill] sm:$0xff] %v9777_v30  ;;  %v9783_v48 = vmul.f32 %v9221_v55, %v14612_v41  ;;  %v14618_v30 = vsub.f32 %v14617_v13, %v8847_v14  ;;  %v14619_v41 = vsub.f32 %v14309_v12, %v8847_v14 }
 0x482   :  { %v9765_v42 = vmul.f32 %v9221_v55, %v14606_v2  ;;  %v14613_v2 = vsub.f32 %v14308_v51, %v8847_v14 }
 0x483   :  { %14602 = vst [vmem:[#allocation158_spill] sm:$0xff] %v9747_v32  ;;  %v14608_v32 = vsub.f32 %v14607_v46, %v8847_v14  ;;  %v9801_v6 = vmul.f32 %v9221_v55, %v14618_v30  ;;  %v9807_v51 = vmul.f32 %v9221_v55, %v14619_v41  ;;  %v14626_v30 = vsub.f32 %v7889_v59, %v8847_v14  ;;  %v14627_v41 = vld [vmem:[#allocation189_spill] sm:$0xff] }
 0x484   :  { %v9789_v46 = vmul.f32 %v9221_v55, %v14613_v2  ;;  %v14621_v2 = vsub.f32 %v14310_v45, %v8847_v14 }
 0x485   :  { %v9771_v44 = vmul.f32 %v9221_v55, %v14608_v32  ;;  %v14614_v32 = vld [vmem:[#allocation184_spill] sm:$0xff]  ;;  %14620 = vst [vmem:[#allocation162_spill] sm:$0xff] %v9807_v51  ;;  %v9825_v12 = vmul.f32 %v9221_v55, %v14626_v30  ;;  %v14628_v51 = vsub.f32 %v14627_v41, %v8847_v14  ;;  %v14635_v30 = vsub.f32 %v7933_v7, %v8847_v14 }
 0x487   :  { %14609 = vst [vmem:[#allocation159_spill] sm:$0xff] %v9771_v44  ;;  %v14615_v44 = vsub.f32 %v14614_v32, %v8847_v14  ;;  %v9813_v32 = vmul.f32 %v9221_v55, %v14621_v2  ;;  %v9831_v45 = vmul.f32 %v9221_v55, %v14628_v51  ;;  %v14629_v2 = vld [vmem:[#allocation190_spill] sm:$0xff]  ;;  %v9849_v41 = vmul.f32 %v9221_v55, %v14635_v30 }
 0x488   :  { %v14636_v51 = vsub.f32 %v7945_v39, %v8847_v14  ;;  %v14643_v30 = vsub.f32 %v14314_v28, %v8847_v14 }
 0x489   :  { %v9795_v1 = vmul.f32 %v9221_v55, %v14615_v44  ;;  %14622 = vst [vmem:[#allocation163_spill] sm:$0xff] %v9813_v32  ;;  %v14623_v44 = vld [vmem:[#allocation188_spill] sm:$0xff]  ;;  %v14630_v32 = vsub.f32 %v14629_v2, %v8847_v14 }
 0x48a   :  { %v9855_v2 = vmul.f32 %v9221_v55, %v14636_v51  ;;  %v9873_v39 = vmul.f32 %v9221_v55, %v14643_v30  ;;  %v14645_v51 = vld [vmem:[#allocation195_spill] sm:$0xff]  ;;  %v14653_v30 = vld [vmem:[#allocation198_spill] sm:$0xff] }
 0x48b   :  { %14616 = vst [vmem:[#allocation161_spill] sm:$0xff] %v9795_v1  ;;  %v14624_v1 = vsub.f32 %v14623_v44, %v8847_v14  ;;  %v9837_v44 = vmul.f32 %v9221_v55, %v14630_v32  ;;  %v14638_v32 = vld [vmem:[#allocation192_spill] sm:$0xff] }
 0x48c   :  { %14637 = vst [vmem:[#allocation167_spill] sm:$0xff] %v9855_v2  ;;  %v14646_v2 = vsub.f32 %v14645_v51, %v8847_v14 }
 0x48d   :  { %v9819_v13 = vmul.f32 %v9221_v55, %v14624_v1  ;;  %14631 = vst [vmem:[#allocation165_spill] sm:$0xff] %v9837_v44  ;;  %v14632_v1 = vld [vmem:[#allocation191_spill] sm:$0xff]  ;;  %v14639_v44 = vsub.f32 %v14638_v32, %v8847_v14 }
 0x48e   :  { %14644 = vst [vmem:[#allocation169_spill] sm:$0xff] %v9873_v39  ;;  %v9879_v32 = vmul.f32 %v9221_v55, %v14646_v2  ;;  %v14654_v39 = vsub.f32 %v14653_v30, %v8847_v14  ;;  %v14656_v2 = vld [vmem:[#allocation151_spill] sm:$0xff] }
 0x48f   :  { %14625 = vst [vmem:[#allocation164_spill] sm:$0xff] %v9819_v13  ;;  %v14633_v13 = vsub.f32 %v14632_v1, %v8847_v14  ;;  %v9861_v1 = vmul.f32 %v9221_v55, %v14639_v44  ;;  %v14648_v44 = vsub.f32 %v14316_v4, %v8847_v14 }
 0x490   :  { %14647 = vst [vmem:[#allocation170_spill] sm:$0xff] %v9879_v32  ;;  %v9897_v51 = vmul.f32 %v9221_v55, %v14654_v39  ;;  %v14657_v32 = vsub.f32 %v14656_v2, %v8847_v14  ;;  %v14665_v39 = vld [vmem:[#allocation201_spill] sm:$0xff] }
 0x491   :  { %v9843_v59 = vmul.f32 %v9221_v55, %v14633_v13  ;;  %v14640_v13 = vld [vmem:[#allocation193_spill] sm:$0xff] }
 0x492   :  { %14655 = vst [vmem:[#allocation173_spill] sm:$0xff] %v9897_v51  ;;  %v9903_v4 = vmul.f32 %v9221_v55, %v14657_v32  ;;  %v14666_v51 = vsub.f32 %v14665_v39, %v8847_v14  ;;  %v14668_v32 = vld [vmem:[#allocation202_spill] sm:$0xff] }
 0x493   :  { %14634 = vst [vmem:[#allocation166_spill] sm:$0xff] %v9843_v59  ;;  %v14641_v59 = vsub.f32 %v14640_v13, %v8847_v14  ;;  %v9885_v13 = vmul.f32 %v9221_v55, %v14648_v44  ;;  %v14659_v44 = vld [vmem:[#allocation199_spill] sm:$0xff] }
 0x494   :  { %14658 = vst [vmem:[#allocation174_spill] sm:$0xff] %v9903_v4  ;;  %v9921_v2 = vmul.f32 %v9221_v55, %v14666_v51  ;;  %v14669_v4 = vsub.f32 %v14668_v32, %v8847_v14  ;;  %v14677_v51 = vld [vmem:[#allocation205_spill] sm:$0xff] }
 0x495   :  { %v9867_v7 = vmul.f32 %v9221_v55, %v14641_v59  ;;  %14649 = vst [vmem:[#allocation171_spill] sm:$0xff] %v9885_v13  ;;  %v14650_v59 = vld [vmem:[#allocation197_spill] sm:$0xff]  ;;  %v14660_v13 = vsub.f32 %v14659_v44, %v8847_v14 }
 0x496   :  { %14667 = vst [vmem:[#allocation177_spill] sm:$0xff] %v9921_v2  ;;  %v9927_v44 = vmul.f32 %v9221_v55, %v14669_v4  ;;  %v14678_v2 = vsub.f32 %v14677_v51, %v8847_v14  ;;  %v14680_v4 = vld [vmem:[#allocation206_spill] sm:$0xff] }
 0x497   :  { %14642 = vst [vmem:[#allocation168_spill] sm:$0xff] %v9867_v7  ;;  %v14651_v7 = vsub.f32 %v14650_v59, %v8847_v14  ;;  %v9909_v59 = vmul.f32 %v9221_v55, %v14660_v13  ;;  %v14671_v13 = vld [vmem:[#allocation203_spill] sm:$0xff] }
 0x498   :  { %14670 = vst [vmem:[#allocation178_spill] sm:$0xff] %v9927_v44  ;;  %v9945_v32 = vmul.f32 %v9221_v55, %v14678_v2  ;;  %v14681_v44 = vsub.f32 %v14680_v4, %v8847_v14  ;;  %v14689_v2 = vld [vmem:[#allocation209_spill] sm:$0xff] }
 0x499   :  { %v9891_v28 = vmul.f32 %v9221_v55, %v14651_v7  ;;  %14661 = vst [vmem:[#allocation175_spill] sm:$0xff] %v9909_v59  ;;  %v14662_v7 = vld [vmem:[#allocation200_spill] sm:$0xff]  ;;  %v14672_v59 = vsub.f32 %v14671_v13, %v8847_v14 }
 0x49a   :  { %14679 = vst [vmem:[#allocation20_spill] sm:$0xff] %v9945_v32  ;;  %v9951_v13 = vmul.f32 %v9221_v55, %v14681_v44  ;;  %v14690_v32 = vsub.f32 %v14689_v2, %v8847_v14  ;;  %v14692_v44 = vld [vmem:[#allocation210_spill] sm:$0xff] }
 0x49b   :  { %14652 = vst [vmem:[#allocation172_spill] sm:$0xff] %v9891_v28  ;;  %v14663_v28 = vsub.f32 %v14662_v7, %v8847_v14  ;;  %v9933_v7 = vmul.f32 %v9221_v55, %v14672_v59  ;;  %v14683_v59 = vld [vmem:[#allocation207_spill] sm:$0xff] }
 0x49c   :  { %14682 = vst [vmem:[#allocation22_spill] sm:$0xff] %v9951_v13  ;;  %v9969_v4 = vmul.f32 %v9221_v55, %v14690_v32  ;;  %v14693_v13 = vsub.f32 %v14692_v44, %v8847_v14  ;;  %v14701_v32 = vld [vmem:[#allocation213_spill] sm:$0xff] }
 0x49d   :  { %v9915_v30 = vmul.f32 %v9221_v55, %v14663_v28  ;;  %14673 = vst [vmem:[#allocation179_spill] sm:$0xff] %v9933_v7  ;;  %v14674_v28 = vld [vmem:[#allocation204_spill] sm:$0xff]  ;;  %v14684_v7 = vsub.f32 %v14683_v59, %v8847_v14 }
 0x49e   :  { %14691 = vst [vmem:[#allocation28_spill] sm:$0xff] %v9969_v4  ;;  %v9975_v59 = vmul.f32 %v9221_v55, %v14693_v13  ;;  %v14702_v4 = vsub.f32 %v14701_v32, %v8847_v14  ;;  %v14704_v13 = vld [vmem:[#allocation214_spill] sm:$0xff] }
 0x49f   :  { %14664 = vst [vmem:[#allocation176_spill] sm:$0xff] %v9915_v30  ;;  %v14675_v30 = vsub.f32 %v14674_v28, %v8847_v14  ;;  %v9957_v28 = vmul.f32 %v9221_v55, %v14684_v7  ;;  %v14695_v7 = vld [vmem:[#allocation211_spill] sm:$0xff] }
 0x4a0   :  { %14694 = vst [vmem:[#allocation30_spill] sm:$0xff] %v9975_v59  ;;  %v9993_v44 = vmul.f32 %v9221_v55, %v14702_v4  ;;  %v14705_v59 = vsub.f32 %v14704_v13, %v8847_v14  ;;  %v14713_v4 = vld [vmem:[#allocation217_spill] sm:$0xff] }
 0x4a1   :  { %v9939_v39 = vmul.f32 %v9221_v55, %v14675_v30  ;;  %14685 = vst [vmem:[#allocation24_spill] sm:$0xff] %v9957_v28  ;;  %v14686_v30 = vld [vmem:[#allocation208_spill] sm:$0xff]  ;;  %v14696_v28 = vsub.f32 %v14695_v7, %v8847_v14 }
 0x4a2   :  { %14703 = vst [vmem:[#allocation36_spill] sm:$0xff] %v9993_v44  ;;  %v9999_v7 = vmul.f32 %v9221_v55, %v14705_v59  ;;  %v14714_v44 = vsub.f32 %v14713_v4, %v8847_v14  ;;  %v14716_v59 = vld [vmem:[#allocation218_spill] sm:$0xff] }
 0x4a3   :  { %14676 = vst [vmem:[#allocation18_spill] sm:$0xff] %v9939_v39  ;;  %v14687_v39 = vsub.f32 %v14686_v30, %v8847_v14  ;;  %v9981_v30 = vmul.f32 %v9221_v55, %v14696_v28  ;;  %v14707_v28 = vld [vmem:[#allocation215_spill] sm:$0xff] }
 0x4a4   :  { %14706 = vst [vmem:[#allocation40_spill] sm:$0xff] %v9999_v7  ;;  %v10017_v13 = vmul.f32 %v9221_v55, %v14714_v44  ;;  %v14717_v7 = vsub.f32 %v14716_v59, %v8847_v14  ;;  %v14725_v44 = vld [vmem:[#allocation57_spill] sm:$0xff] }
 0x4a5   :  { %v9963_v51 = vmul.f32 %v9221_v55, %v14687_v39  ;;  %14697 = vst [vmem:[#allocation32_spill] sm:$0xff] %v9981_v30  ;;  %v14698_v39 = vld [vmem:[#allocation212_spill] sm:$0xff]  ;;  %v14708_v30 = vsub.f32 %v14707_v28, %v8847_v14 }
 0x4a6   :  { %14715 = vst [vmem:[#allocation53_spill] sm:$0xff] %v10017_v13  ;;  %v10023_v28 = vmul.f32 %v9221_v55, %v14717_v7  ;;  %v14726_v13 = vsub.f32 %v14725_v44, %v8847_v14  ;;  %v14728_v7 = vld [vmem:[#allocation63_spill] sm:$0xff] }
 0x4a7   :  { %14688 = vst [vmem:[#allocation26_spill] sm:$0xff] %v9963_v51  ;;  %v14699_v51 = vsub.f32 %v14698_v39, %v8847_v14  ;;  %v10005_v39 = vmul.f32 %v9221_v55, %v14708_v30  ;;  %v14719_v30 = vld [vmem:[#allocation51_spill] sm:$0xff] }
 0x4a8   :  { %14718 = vst [vmem:[#allocation62_spill] sm:$0xff] %v10023_v28  ;;  %v10041_v59 = vmul.f32 %v9221_v55, %v14726_v13  ;;  %v14729_v28 = vsub.f32 %v14728_v7, %v8847_v14  ;;  %v14737_v13 = vld [vmem:[#allocation80_spill] sm:$0xff] }
 0x4a9   :  { %v9987_v2 = vmul.f32 %v9221_v55, %v14699_v51  ;;  %14709 = vst [vmem:[#allocation44_spill] sm:$0xff] %v10005_v39  ;;  %v14710_v51 = vld [vmem:[#allocation216_spill] sm:$0xff]  ;;  %v14720_v39 = vsub.f32 %v14719_v30, %v8847_v14 }
 0x4aa   :  { %14727 = vst [vmem:[#allocation185_spill] sm:$0xff] %v10041_v59  ;;  %v10047_v30 = vmul.f32 %v9221_v55, %v14729_v28  ;;  %v14738_v59 = vsub.f32 %v14737_v13, %v8847_v14  ;;  %v14740_v28 = vld [vmem:[#allocation85_spill] sm:$0xff] }
 0x4ab   :  { %14700 = vst [vmem:[#allocation34_spill] sm:$0xff] %v9987_v2  ;;  %v14711_v2 = vsub.f32 %v14710_v51, %v8847_v14  ;;  %v10029_v51 = vmul.f32 %v9221_v55, %v14720_v39  ;;  %v14731_v39 = vld [vmem:[#allocation70_spill] sm:$0xff] }
 0x4ac   :  { %14730 = vst [vmem:[#allocation188_spill] sm:$0xff] %v10047_v30  ;;  %v10065_v7 = vmul.f32 %v9221_v55, %v14738_v59  ;;  %v14741_v30 = vsub.f32 %v14740_v28, %v8847_v14  ;;  %v14749_v59 = vld [vmem:[#allocation100_spill] sm:$0xff] }
 0x4ad   :  { %v10011_v32 = vmul.f32 %v9221_v55, %v14711_v2  ;;  %14721 = vst [vmem:[#allocation69_spill] sm:$0xff] %v10029_v51  ;;  %v14722_v2 = vld [vmem:[#allocation54_spill] sm:$0xff]  ;;  %v14732_v51 = vsub.f32 %v14731_v39, %v8847_v14 }
 0x4ae   :  { %14739 = vst [vmem:[#allocation191_spill] sm:$0xff] %v10065_v7  ;;  %v10071_v39 = vmul.f32 %v9221_v55, %v14741_v30  ;;  %v14750_v7 = vsub.f32 %v14749_v59, %v8847_v14  ;;  %v14752_v30 = vld [vmem:[#allocation105_spill] sm:$0xff] }
 0x4af   :  { %14712 = vst [vmem:[#allocation50_spill] sm:$0xff] %v10011_v32  ;;  %v14723_v32 = vsub.f32 %v14722_v2, %v8847_v14  ;;  %v10053_v2 = vmul.f32 %v9221_v55, %v14732_v51  ;;  %v14743_v51 = vld [vmem:[#allocation90_spill] sm:$0xff] }
 0x4b0   :  { %14742 = vst [vmem:[#allocation192_spill] sm:$0xff] %v10071_v39  ;;  %v10089_v28 = vmul.f32 %v9221_v55, %v14750_v7  ;;  %v14753_v39 = vsub.f32 %v14752_v30, %v8847_v14  ;;  %v14760_v7 = vld [vmem:[#allocation120_spill] sm:$0xff] }
 0x4b1   :  { %v10035_v4 = vmul.f32 %v9221_v55, %v14723_v32  ;;  %14733 = vst [vmem:[#allocation189_spill] sm:$0xff] %v10053_v2  ;;  %v14734_v32 = vld [vmem:[#allocation75_spill] sm:$0xff]  ;;  %v14744_v2 = vsub.f32 %v14743_v51, %v8847_v14 }
 0x4b2   :  { %14751 = vst [vmem:[#allocation197_spill] sm:$0xff] %v10089_v28  ;;  %v10095_v51 = vmul.f32 %v9221_v55, %v14753_v39  ;;  %v14761_v28 = vsub.f32 %v14760_v7, %v8847_v14  ;;  %v14762_v39 = vld [vmem:[#allocation125_spill] sm:$0xff] }
 0x4b3   :  { %14724 = vst [vmem:[#allocation184_spill] sm:$0xff] %v10035_v4  ;;  %v14735_v4 = vsub.f32 %v14734_v32, %v8847_v14  ;;  %v10077_v32 = vmul.f32 %v9221_v55, %v14744_v2  ;;  %v14755_v2 = vld [vmem:[#allocation110_spill] sm:$0xff] }
 0x4b4   :  { %14754 = vst [vmem:[#allocation198_spill] sm:$0xff] %v10095_v51  ;;  %v10113_v30 = vmul.f32 %v9221_v55, %v14761_v28  ;;  %v14763_v51 = vsub.f32 %v14762_v39, %v8847_v14  ;;  %v14768_v28 = vsub.f32 %v14354_v25, %v8847_v14 }
 0x4b5   :  { %v10059_v44 = vmul.f32 %v9221_v55, %v14735_v4  ;;  %14745 = vst [vmem:[#allocation193_spill] sm:$0xff] %v10077_v32  ;;  %v14746_v4 = vld [vmem:[#allocation95_spill] sm:$0xff]  ;;  %v14756_v32 = vsub.f32 %v14755_v2, %v8847_v14 }
 0x4b6   :  { %v10119_v2 = vmul.f32 %v9221_v55, %v14763_v51  ;;  %v10137_v39 = vmul.f32 %v9221_v55, %v14768_v28  ;;  %v14769_v51 = vsub.f32 %v14355_v22, %v8847_v14  ;;  %v14773_v28 = vsub.f32 %v14358_v26, %v8847_v14 }
 0x4b7   :  { %14736 = vst [vmem:[#allocation190_spill] sm:$0xff] %v10059_v44  ;;  %v14747_v44 = vsub.f32 %v14746_v4, %v8847_v14  ;;  %v10101_v4 = vmul.f32 %v9221_v55, %v14756_v32  ;;  %v14764_v32 = vld [vmem:[#allocation130_spill] sm:$0xff] }
 0x4b8   :  { %v10161_v22 = vmul.f32 %v9221_v55, %v14773_v28  ;;  %v14780_v28 = vld [vmem:[#allocation148_spill] sm:$0xff] }
 0x4b9   :  { %v10083_v13 = vmul.f32 %v9221_v55, %v14747_v44  ;;  %14757 = vst [vmem:[#allocation151_spill] sm:$0xff] %v10101_v4  ;;  %v14758_v44 = vld [vmem:[#allocation115_spill] sm:$0xff]  ;;  %v14765_v4 = vsub.f32 %v14764_v32, %v8847_v14  ;;  %v10143_v32 = vmul.f32 %v9221_v55, %v14769_v51  ;;  %v14775_v51 = vsub.f32 %v14359_v63, %v8847_v14 }
 0x4ba   :  { %14774 = vst [vmem:[#allocation200_spill] sm:$0xff] %v10161_v22  ;;  %v14781_v22 = vsub.f32 %v14780_v28, %v8847_v14 }
 0x4bb   :  { %14748 = vst [vmem:[#allocation195_spill] sm:$0xff] %v10083_v13  ;;  %v14759_v13 = vsub.f32 %v14758_v44, %v8847_v14  ;;  %v10125_v44 = vmul.f32 %v9221_v55, %v14765_v4  ;;  %v14770_v4 = vsub.f32 %v14356_v49, %v8847_v14  ;;  %v10167_v49 = vmul.f32 %v9221_v55, %v14775_v51  ;;  %v14782_v51 = vld [vmem:[#allocation149_spill] sm:$0xff] }
 0x4bc   :  { %v10185_v63 = vmul.f32 %v9221_v55, %v14781_v22  ;;  %v14788_v22 = vsub.f32 %v8526_v53, %v8847_v14 }
 0x4bd   :  { %v10107_v59 = vmul.f32 %v9221_v55, %v14759_v13  ;;  %v14766_v13 = vsub.f32 %v14353_v38, %v8847_v14  ;;  %v10149_v38 = vmul.f32 %v9221_v55, %v14770_v4  ;;  %14776 = vst [vmem:[#allocation201_spill] sm:$0xff] %v10167_v49  ;;  %v14777_v4 = vsub.f32 %v8470_v29, %v8847_v14 }
 0x4be   :  { %v14783_v49 = vsub.f32 %v14782_v51, %v8847_v14  ;;  %v10209_v51 = vmul.f32 %v9221_v55, %v14788_v22  ;;  %v14794_v22 = vsub.f32 %v14362_v54, %v8847_v14 }
 0x4bf   :  { %v10131_v7 = vmul.f32 %v9221_v55, %v14766_v13  ;;  %v14771_v13 = vld [vmem:[#allocation145_spill] sm:$0xff] }
 0x4c0   :  { %v10191_v29 = vmul.f32 %v9221_v55, %v14783_v49  ;;  %v14789_v49 = vld [vmem:[#allocation152_spill] sm:$0xff] }
 0x4c1   :  { %14767 = vst [vmem:[#allocation199_spill] sm:$0xff] %v10131_v7  ;;  %v14772_v7 = vsub.f32 %v14771_v13, %v8847_v14  ;;  %v10173_v13 = vmul.f32 %v9221_v55, %v14777_v4  ;;  %v14785_v4 = vld [vmem:[#allocation150_spill] sm:$0xff] }
 0x4c2   :  { %14784 = vst [vmem:[#allocation203_spill] sm:$0xff] %v10191_v29  ;;  %v14790_v29 = vsub.f32 %v14789_v49, %v8847_v14  ;;  %v10233_v49 = vmul.f32 %v9221_v55, %v14794_v22  ;;  %v14800_v22 = vsub.f32 %v14364_v34, %v8847_v14 }
 0x4c3   :  { %v10155_v25 = vmul.f32 %v9221_v55, %v14772_v7  ;;  %14778 = vst [vmem:[#allocation202_spill] sm:$0xff] %v10173_v13  ;;  %v14779_v7 = vsub.f32 %v8479_v8, %v8847_v14  ;;  %v14786_v13 = vsub.f32 %v14785_v4, %v8847_v14 }
 0x4c4   :  { %v10215_v4 = vmul.f32 %v9221_v55, %v14790_v29  ;;  %v14795_v29 = vsub.f32 %v14363_v57, %v8847_v14  ;;  %v10257_v57 = vmul.f32 %v9221_v55, %v14800_v22  ;;  %v14805_v22 = vsub.f32 %v8640_v31, %v8847_v14 }
 0x4c5   :  { %v10179_v26 = vmul.f32 %v9221_v55, %v14779_v7  ;;  %v10197_v8 = vmul.f32 %v9221_v55, %v14786_v13  ;;  %v14787_v7 = vsub.f32 %v8517_v0, %v8847_v14  ;;  %v14791_v13 = vsub.f32 %v8546_v18, %v8847_v14 }
 0x4c6   :  { %v10239_v18 = vmul.f32 %v9221_v55, %v14795_v29  ;;  %v14801_v29 = vsub.f32 %v8611_v5, %v8847_v14  ;;  %v10281_v5 = vmul.f32 %v9221_v55, %v14805_v22  ;;  %v14813_v22 = vsub.f32 %v8678_v10, %v8847_v14  ;;  %v14821_v10 = vld [vmem:[#allocation226_spill] sm:$0xff] }
 0x4c7   :  { %v10203_v28 = vmul.f32 %v9221_v55, %v14787_v7  ;;  %v10221_v0 = vmul.f32 %v9221_v55, %v14791_v13  ;;  %v14793_v7 = vsub.f32 %v14361_v43, %v8847_v14  ;;  %v14796_v13 = vld [vmem:[#allocation222_spill] sm:$0xff] }
 0x4c8   :  { %14806 = vst [vmem:[#allocation206_spill] sm:$0xff] %v10281_v5 }
 0x4c9   :  { %14792 = vst [vmem:[#allocation204_spill] sm:$0xff] %v10221_v0  ;;  %v10227_v53 = vmul.f32 %v9221_v55, %v14793_v7  ;;  %v14797_v0 = vsub.f32 %v14796_v13, %v8847_v14  ;;  %v14798_v7 = vsub.f32 %v8593_v47, %v8847_v14  ;;  %v10263_v13 = vmul.f32 %v9221_v55, %v14801_v29 }
 0x4ca   :  { %v14807_v29 = vsub.f32 %v14365_v50, %v8847_v14  ;;  %v10305_v50 = vmul.f32 %v9221_v55, %v14813_v22  ;;  %v14822_v22 = vsub.f32 %v14821_v10, %v8847_v14 }
 0x4cb   :  { %v10245_v43 = vmul.f32 %v9221_v55, %v14797_v0  ;;  %v10251_v54 = vmul.f32 %v9221_v55, %v14798_v7  ;;  %v14802_v0 = vsub.f32 %v8620_v20, %v8847_v14  ;;  %v14803_v7 = vld [vmem:[#allocation181_spill] sm:$0xff] }
 0x4cc   :  { %v10287_v20 = vmul.f32 %v9221_v55, %v14807_v29  ;;  %14814 = vst [vmem:[#allocation210_spill] sm:$0xff] %v10305_v50  ;;  %v14815_v29 = vld [vmem:[#allocation224_spill] sm:$0xff]  ;;  %v10328_v50 = vmul.f32 %v9221_v55, %v14822_v22  ;;  %v14833_v22 = vld [vmem:[#allocation230_spill] sm:$0xff] }
 0x4cd   :  { %14799 = vst [vmem:[#allocation205_spill] sm:$0xff] %v10251_v54  ;;  %v10269_v47 = vmul.f32 %v9221_v55, %v14802_v0  ;;  %v14804_v54 = vsub.f32 %v14803_v7, %v8847_v14  ;;  %v14809_v0 = vsub.f32 %v8658_v36, %v8847_v14 }
 0x4ce   :  { %14808 = vst [vmem:[#allocation207_spill] sm:$0xff] %v10287_v20  ;;  %v14816_v20 = vsub.f32 %v14815_v29, %v8847_v14  ;;  %v14824_v29 = vld [vmem:[#allocation227_spill] sm:$0xff] }
 0x4cf   :  { %v10275_v34 = vmul.f32 %v9221_v55, %v14804_v54  ;;  %v10293_v7 = vmul.f32 %v9221_v55, %v14809_v0  ;;  %v14811_v54 = vsub.f32 %v8667_v11, %v8847_v14  ;;  %v14818_v0 = vld [vmem:[#allocation225_spill] sm:$0xff]  ;;  %14823 = vst [vmem:[#allocation213_spill] sm:$0xff] %v10328_v50  ;;  %v14834_v50 = vsub.f32 %v14833_v22, %v8847_v14 }
 0x4d0   :  { %v10311_v36 = vmul.f32 %v9221_v55, %v14816_v20  ;;  %v14825_v20 = vsub.f32 %v14824_v29, %v8847_v14 }
 0x4d1   :  { %14810 = vst [vmem:[#allocation208_spill] sm:$0xff] %v10293_v7  ;;  %v10299_v31 = vmul.f32 %v9221_v55, %v14811_v54  ;;  %v14819_v7 = vsub.f32 %v14818_v0, %v8847_v14  ;;  %v10322_v54 = vld [vmem:[%s13160_s4] ss:$0 sm:$0xff]  ;;  %v14827_v0 = vld [vmem:[#allocation228_spill] sm:$0xff]  ;;  %v10352_v29 = vmul.f32 %v9221_v55, %v14834_v50  ;;  %v14841_v50 = vsub.f32 %v14371_v23, %v8847_v14 }
 0x4d2   :  { %14817 = vst [vmem:[#allocation211_spill] sm:$0xff] %v10311_v36  ;;  %v10334_v36 = vmul.f32 %v9221_v55, %v14825_v20  ;;  %v14835_v20 = vld [vmem:[#allocation231_spill] sm:$0xff] }
 0x4d3   :  { %14812 = vst [vmem:[#allocation209_spill] sm:$0xff] %v10299_v31  ;;  %v10317_v11 = vmul.f32 %v9221_v55, %v14819_v7  ;;  %v14828_v7 = vsub.f32 %v14827_v0, %v8847_v14  ;;  %v14830_v31 = vld [vmem:[#allocation229_spill] sm:$0xff] }
 0x4d4   :  { %14826 = vst [vmem:[#allocation214_spill] sm:$0xff] %v10334_v36  ;;  %v14831_v5 = vsub.f32 %v14830_v31, %v8847_v14  ;;  %v14836_v36 = vsub.f32 %v14835_v20, %v8847_v14  ;;  %v10376_v20 = vmul.f32 %v9221_v55, %v14841_v50  ;;  %v14845_v50 = vsub.f32 %v14375_v58, %v8847_v14 }
 0x4d5   :  { %14820 = vst [vmem:[#allocation212_spill] sm:$0xff] %v10317_v11  ;;  %v10340_v11 = vmul.f32 %v9221_v55, %v14828_v7  ;;  %v14837_v7 = vld [vmem:[#allocation232_spill] sm:$0xff]  ;;  %v10420_v58 = vadd.f32 %v10322_v54, %v9261_v3 }
 0x4d6   :  { %v10346_v10 = vmul.f32 %v9221_v55, %v14831_v5  ;;  %v10358_v0 = vmul.f32 %v9221_v55, %v14836_v36  ;;  %v14839_v5 = vld [vmem:[#allocation233_spill] sm:$0xff]  ;;  %v14842_v36 = vsub.f32 %v14372_v17, %v8847_v14  ;;  %v10400_v17 = vmul.f32 %v9221_v55, %v14845_v50 }
 0x4d7   :  { %14829 = vst [vmem:[#allocation215_spill] sm:$0xff] %v10340_v11  ;;  %v14838_v11 = vsub.f32 %v14837_v7, %v8847_v14  ;;  %v14851_v50 = vld [vmem:[#allocation141_spill] sm:$0xff] }
 0x4d8   :  { %14832 = vst [vmem:[#allocation216_spill] sm:$0xff] %v10346_v10  ;;  %v14840_v10 = vsub.f32 %v14839_v5, %v8847_v14  ;;  %v10382_v7 = vmul.f32 %v9221_v55, %v14842_v36  ;;  %v14846_v36 = vsub.f32 %v14376_v37, %v8847_v14  ;;  %v10424_v37 = vadd.f32 %v10322_v54, %v9267_v21 }
 0x4d9   :  { %v10364_v31 = vmul.f32 %v9221_v55, %v14838_v11  ;;  %v14843_v11 = vsub.f32 %v14373_v62, %v8847_v14  ;;  %14849 = vst [vmem:[#allocation218_spill] sm:$0xff] %v10420_v58  ;;  %v14859_v58 = vld [vmem:[#allocation5_spill] sm:$0xff] }
 0x4da   :  { %v10370_v22 = vmul.f32 %v9221_v55, %v14840_v10  ;;  %v14844_v10 = vsub.f32 %v14374_v19, %v8847_v14  ;;  %v10406_v62 = vmul.f32 %v9221_v55, %v14846_v36  ;;  %14850 = vst [vmem:[#allocation51_spill] sm:$0xff] %v10424_v37  ;;  %v10428_v36 = vadd.f32 %v10322_v54, %v14851_v50  ;;  %v14861_v37 = vld [vmem:[#allocation6_spill] sm:$0xff] }
 0x4db   :  { %v10388_v5 = vmul.f32 %v9221_v55, %v14843_v11  ;;  %v14847_v11 = vsub.f32 %v14377_v9, %v8847_v14  ;;  %v14853_v9 = vld [vmem:[#allocation2_spill] sm:$0xff]  ;;  %v10444_v21 = vadd.f32 %v10322_v54, %v14859_v58  ;;  %v10448_v50 = vadd.f32 %v10322_v54, %v14861_v37 }
 0x4dc   :  { %v10394_v23 = vmul.f32 %v9221_v55, %v14844_v10  ;;  %v10416_v10 = vadd.f32 %v10322_v54, %v9255_v27  ;;  %14852 = vst [vmem:[#allocation54_spill] sm:$0xff] %v10428_v36  ;;  %v14863_v36 = vld [vmem:[#allocation19_spill] sm:$0xff] }
 0x4dd   :  { %v10412_v19 = vmul.f32 %v9221_v55, %v14847_v11  ;;  %v10432_v11 = vadd.f32 %v10322_v54, %v14853_v9  ;;  %v14855_v55 = vld [vmem:[#allocation3_spill] sm:$0xff]  ;;  %14860 = vst [vmem:[#allocation75_spill] sm:$0xff] %v10444_v21  ;;  %v10452_v9 = vadd.f32 %v10322_v54, %v14863_v36  ;;  %v14871_v21 = vld [vmem:[#allocation46_spill] sm:$0xff]  ;;  %v10472_v36 = vadd.f32 %v10322_v54, %v9339_v15 }
 0x4de   :  { %14848 = vst [vmem:[#allocation217_spill] sm:$0xff] %v10416_v10  ;;  %v10436_v27 = vadd.f32 %v10322_v54, %v14855_v55  ;;  %v14857_v10 = vld [vmem:[#allocation4_spill] sm:$0xff]  ;;  %v10468_v37 = vadd.f32 %v10322_v54, %v14871_v21 }
 0x4df   :  { %14854 = vst [vmem:[#allocation57_spill] sm:$0xff] %v10432_v11  ;;  %v10440_v3 = vadd.f32 %v10322_v54, %v14857_v10  ;;  %v14865_v11 = vld [vmem:[#allocation31_spill] sm:$0xff] }
 0x4e0   :  { %14856 = vst [vmem:[#allocation63_spill] sm:$0xff] %v10436_v27  ;;  %v10456_v55 = vadd.f32 %v10322_v54, %v14865_v11  ;;  %v14867_v27 = vld [vmem:[#allocation38_spill] sm:$0xff] }
 0x4e1   :  { %14858 = vst [vmem:[#allocation70_spill] sm:$0xff] %v10440_v3  ;;  %v10460_v10 = vadd.f32 %v10322_v54, %v14867_v27  ;;  %v14869_v3 = vld [vmem:[#allocation42_spill] sm:$0xff] }
 0x4e2   :  { %14862 = vst [vmem:[#allocation80_spill] sm:$0xff] %v10448_v50  ;;  %v10464_v58 = vadd.f32 %v10322_v54, %v14869_v3 }
 0x4e3   :  { %14864 = vst [vmem:[#allocation85_spill] sm:$0xff] %v10452_v9  ;;  %v14874_v9 = vld [vmem:[#allocation48_spill] sm:$0xff] }
 0x4e4   :  { %14866 = vst [vmem:[#allocation90_spill] sm:$0xff] %v10456_v55  ;;  %v10476_v11 = vadd.f32 %v10322_v54, %v14874_v9  ;;  %v14876_v55 = vld [vmem:[#allocation56_spill] sm:$0xff]  ;;  %v10496_v9 = vadd.f32 %v10322_v54, %v9375_v52 }
 0x4e5   :  { %14868 = vst [vmem:[#allocation95_spill] sm:$0xff] %v10460_v10  ;;  %v10480_v27 = vadd.f32 %v10322_v54, %v14876_v55  ;;  %v14878_v10 = vld [vmem:[#allocation182_spill] sm:$0xff] }
 0x4e6   :  { %14870 = vst [vmem:[#allocation100_spill] sm:$0xff] %v10464_v58  ;;  %v10484_v3 = vadd.f32 %v10322_v54, %v14878_v10  ;;  %v14880_v58 = vld [vmem:[#allocation183_spill] sm:$0xff] }
 0x4e7   :  { %14872 = vst [vmem:[#allocation105_spill] sm:$0xff] %v10468_v37  ;;  %v10488_v21 = vadd.f32 %v10322_v54, %v14880_v58  ;;  %v14882_v37 = vld [vmem:[#allocation186_spill] sm:$0xff] }
 0x4e8   :  { %14873 = vst [vmem:[#allocation110_spill] sm:$0xff] %v10472_v36  ;;  %v10492_v15 = vadd.f32 %v10322_v54, %v14882_v37 }
 0x4e9   :  { %14875 = vst [vmem:[#allocation115_spill] sm:$0xff] %v10476_v11  ;;  %v14885_v11 = vld [vmem:[#allocation187_spill] sm:$0xff] }
 0x4ea   :  { %14877 = vst [vmem:[#allocation120_spill] sm:$0xff] %v10480_v27  ;;  %v10500_v55 = vadd.f32 %v10322_v54, %v14885_v11  ;;  %v14887_v27 = vld [vmem:[#allocation194_spill] sm:$0xff] }
 0x4eb   :  { %14879 = vst [vmem:[#allocation125_spill] sm:$0xff] %v10484_v3  ;;  %v10504_v10 = vadd.f32 %v10322_v54, %v14887_v27  ;;  %v14889_v3 = vld [vmem:[#allocation196_spill] sm:$0xff] }
 0x4ec   :  { %14881 = vst [vmem:[#allocation130_spill] sm:$0xff] %v10488_v21  ;;  %v10508_v58 = vadd.f32 %v10322_v54, %v14889_v3  ;;  %v14891_v21 = vld [vmem:[#allocation135_spill] sm:$0xff] }
 0x4ed   :  { %14883 = vst [vmem:[#allocation145_spill] sm:$0xff] %v10492_v15  ;;  %v10512_v37 = vadd.f32 %v10322_v54, %v14891_v21  ;;  %v14893_v15 = vld [vmem:[#allocation140_spill] sm:$0xff] }
 0x4ee   :  { %14884 = vst [vmem:[#allocation148_spill] sm:$0xff] %v10496_v9  ;;  %v10516_v52 = vadd.f32 %v10322_v54, %v14893_v15  ;;  %v14895_v9 = vld [vmem:[#allocation143_spill] sm:$0xff] }
 0x4ef   :  { %14886 = vst [vmem:[#allocation149_spill] sm:$0xff] %v10500_v55  ;;  %v10520_v11 = vadd.f32 %v10322_v54, %v14895_v9  ;;  %v14897_v55 = vld [vmem:[#allocation144_spill] sm:$0xff] }
 0x4f0   :  { %14888 = vst [vmem:[#allocation150_spill] sm:$0xff] %v10504_v10  ;;  %v10524_v27 = vadd.f32 %v10322_v54, %v14897_v55  ;;  %v14899_v10 = vld [vmem:[#allocation146_spill] sm:$0xff] }
 0x4f1   :  { %14890 = vst [vmem:[#allocation152_spill] sm:$0xff] %v10508_v58  ;;  %v10528_v3 = vadd.f32 %v10322_v54, %v14899_v10  ;;  %v14901_v58 = vld [vmem:[#allocation147_spill] sm:$0xff] }
 0x4f2   :  { %14892 = vst [vmem:[#allocation222_spill] sm:$0xff] %v10512_v37  ;;  %v10532_v21 = vadd.f32 %v10322_v54, %v14901_v58  ;;  %v14903_v37 = vld [vmem:[#allocation219_spill] sm:$0xff] }
 0x4f3   :  { %14894 = vst [vmem:[#allocation181_spill] sm:$0xff] %v10516_v52  ;;  %v10536_v15 = vadd.f32 %v10322_v54, %v14903_v37  ;;  %v14905_v52 = vld [vmem:[#allocation220_spill] sm:$0xff] }
 0x4f4   :  { %14896 = vst [vmem:[#allocation224_spill] sm:$0xff] %v10520_v11  ;;  %v10540_v9 = vadd.f32 %v10322_v54, %v14905_v52  ;;  %v14907_v11 = vld [vmem:[#allocation221_spill] sm:$0xff] }
 0x4f5   :  { %14898 = vst [vmem:[#allocation225_spill] sm:$0xff] %v10524_v27  ;;  %v10544_v55 = vadd.f32 %v10322_v54, %v14907_v11  ;;  %v14909_v27 = vld [vmem:[#allocation180_spill] sm:$0xff] }
 0x4f6   :  { %14900 = vst [vmem:[#allocation226_spill] sm:$0xff] %v10528_v3  ;;  %v10548_v10 = vadd.f32 %v10322_v54, %v14909_v27  ;;  %v14911_v3 = vld [vmem:[#allocation223_spill] sm:$0xff] }
 0x4f7   :  { %14902 = vst [vmem:[#allocation227_spill] sm:$0xff] %v10532_v21  ;;  %v10552_v58 = vadd.f32 %v10322_v54, %v14911_v3  ;;  %v14913_v21 = vld [vmem:[#allocation234_spill] sm:$0xff] }
 0x4f8   :  { %14904 = vst [vmem:[#allocation228_spill] sm:$0xff] %v10536_v15  ;;  %v10556_v37 = vadd.f32 %v10322_v54, %v14913_v21  ;;  %v14915_v15 = vld [vmem:[#allocation235_spill] sm:$0xff] }
 0x4f9   :  { %14906 = vst [vmem:[#allocation229_spill] sm:$0xff] %v10540_v9  ;;  %v10560_v52 = vadd.f32 %v10322_v54, %v14915_v15  ;;  %v14917_v9 = vld [vmem:[#allocation236_spill] sm:$0xff] }
 0x4fa   :  { %14908 = vst [vmem:[#allocation230_spill] sm:$0xff] %v10544_v55  ;;  %v10564_v11 = vadd.f32 %v10322_v54, %v14917_v9  ;;  %v14919_v55 = vld [vmem:[#allocation237_spill] sm:$0xff] }
 0x4fb   :  { %14910 = vst [vmem:[#allocation231_spill] sm:$0xff] %v10548_v10  ;;  %v10568_v27 = vadd.f32 %v10322_v54, %v14919_v55  ;;  %v14921_v10 = vld [vmem:[#allocation238_spill] sm:$0xff] }
 0x4fc   :  { %14912 = vst [vmem:[#allocation232_spill] sm:$0xff] %v10552_v58  ;;  %v10572_v3 = vadd.f32 %v10322_v54, %v14921_v10  ;;  %v14923_v58 = vld [vmem:[#allocation239_spill] sm:$0xff] }
 0x4fd   :  { %14914 = vst [vmem:[#allocation233_spill] sm:$0xff] %v10556_v37  ;;  %v10576_v21 = vadd.f32 %v10322_v54, %v14923_v58  ;;  %v14925_v37 = vld [vmem:[#allocation240_spill] sm:$0xff] }
 0x4fe   :  { %14916 = vst [vmem:[#allocation141_spill] sm:$0xff] %v10560_v52  ;;  %v10580_v15 = vadd.f32 %v10322_v54, %v14925_v37  ;;  %v14927_v52 = vld [vmem:[#allocation7_spill] sm:$0xff] }
 0x4ff   :  { %14918 = vst [vmem:[#allocation2_spill] sm:$0xff] %v10564_v11  ;;  %v10584_v9 = vadd.f32 %v10322_v54, %v14927_v52  ;;  %v14929_v11 = vld [vmem:[#allocation8_spill] sm:$0xff] }
 0x500   :  { %14920 = vst [vmem:[#allocation3_spill] sm:$0xff] %v10568_v27  ;;  %v10588_v55 = vadd.f32 %v10322_v54, %v14929_v11  ;;  %v14931_v27 = vld [vmem:[#allocation9_spill] sm:$0xff] }
 0x501   :  { %14922 = vst [vmem:[#allocation4_spill] sm:$0xff] %v10572_v3  ;;  %v10592_v10 = vadd.f32 %v10322_v54, %v14931_v27  ;;  %v14933_v3 = vld [vmem:[#allocation10_spill] sm:$0xff] }
 0x502   :  { %14924 = vst [vmem:[#allocation5_spill] sm:$0xff] %v10576_v21  ;;  %v10596_v58 = vadd.f32 %v10322_v54, %v14933_v3  ;;  %v14935_v21 = vld [vmem:[#allocation11_spill] sm:$0xff] }
 0x503   :  { %14926 = vst [vmem:[#allocation6_spill] sm:$0xff] %v10580_v15  ;;  %v10600_v37 = vadd.f32 %v10322_v54, %v14935_v21  ;;  %v14937_v15 = vld [vmem:[#allocation12_spill] sm:$0xff] }
 0x504   :  { %14928 = vst [vmem:[#allocation19_spill] sm:$0xff] %v10584_v9  ;;  %v10604_v52 = vadd.f32 %v10322_v54, %v14937_v15  ;;  %v14939_v9 = vld [vmem:[#allocation13_spill] sm:$0xff] }
 0x505   :  { %14930 = vst [vmem:[#allocation31_spill] sm:$0xff] %v10588_v55  ;;  %v10608_v11 = vadd.f32 %v10322_v54, %v14939_v9  ;;  %v14941_v55 = vld [vmem:[#allocation14_spill] sm:$0xff] }
 0x506   :  { %14932 = vst [vmem:[#allocation38_spill] sm:$0xff] %v10592_v10  ;;  %v10612_v27 = vadd.f32 %v10322_v54, %v14941_v55  ;;  %v14943_v10 = vld [vmem:[#allocation15_spill] sm:$0xff] }
 0x507   :  { %14934 = vst [vmem:[#allocation42_spill] sm:$0xff] %v10596_v58  ;;  %v10616_v3 = vadd.f32 %v10322_v54, %v14943_v10  ;;  %v14945_v58 = vld [vmem:[#allocation16_spill] sm:$0xff] }
 0x508   :  { %14936 = vst [vmem:[#allocation46_spill] sm:$0xff] %v10600_v37  ;;  %v10620_v21 = vadd.f32 %v10322_v54, %v14945_v58  ;;  %v14947_v37 = vld [vmem:[#allocation17_spill] sm:$0xff] }
 0x509   :  { %14938 = vst [vmem:[#allocation48_spill] sm:$0xff] %v10604_v52  ;;  %v10624_v15 = vadd.f32 %v10322_v54, %v14947_v37  ;;  %v14949_v52 = vld [vmem:[#allocation21_spill] sm:$0xff] }
 0x50a   :  { %14940 = vst [vmem:[#allocation56_spill] sm:$0xff] %v10608_v11  ;;  %v10628_v9 = vadd.f32 %v10322_v54, %v14949_v52  ;;  %v14951_v11 = vld [vmem:[#allocation23_spill] sm:$0xff] }
 0x50b   :  { %14942 = vst [vmem:[#allocation182_spill] sm:$0xff] %v10612_v27  ;;  %v10632_v55 = vadd.f32 %v10322_v54, %v14951_v11  ;;  %v14953_v27 = vld [vmem:[#allocation25_spill] sm:$0xff] }
 0x50c   :  { %14944 = vst [vmem:[#allocation183_spill] sm:$0xff] %v10616_v3  ;;  %v10636_v10 = vadd.f32 %v10322_v54, %v14953_v27  ;;  %v14955_v3 = vld [vmem:[#allocation27_spill] sm:$0xff] }
 0x50d   :  { %14946 = vst [vmem:[#allocation186_spill] sm:$0xff] %v10620_v21  ;;  %v10640_v58 = vadd.f32 %v10322_v54, %v14955_v3  ;;  %v14957_v21 = vld [vmem:[#allocation29_spill] sm:$0xff] }
 0x50e   :  { %14948 = vst [vmem:[#allocation187_spill] sm:$0xff] %v10624_v15  ;;  %v10644_v37 = vadd.f32 %v10322_v54, %v14957_v21  ;;  %v14959_v15 = vld [vmem:[#allocation33_spill] sm:$0xff] }
 0x50f   :  { %14950 = vst [vmem:[#allocation194_spill] sm:$0xff] %v10628_v9  ;;  %v10648_v52 = vadd.f32 %v10322_v54, %v14959_v15  ;;  %v14961_v9 = vld [vmem:[#allocation35_spill] sm:$0xff] }
 0x510   :  { %14952 = vst [vmem:[#allocation196_spill] sm:$0xff] %v10632_v55  ;;  %v10652_v11 = vadd.f32 %v10322_v54, %v14961_v9  ;;  %v14963_v55 = vld [vmem:[#allocation37_spill] sm:$0xff] }
 0x511   :  { %14954 = vst [vmem:[#allocation135_spill] sm:$0xff] %v10636_v10  ;;  %v10656_v27 = vadd.f32 %v10322_v54, %v14963_v55  ;;  %v14965_v10 = vld [vmem:[#allocation39_spill] sm:$0xff] }
 0x512   :  { %14956 = vst [vmem:[#allocation140_spill] sm:$0xff] %v10640_v58  ;;  %v10660_v3 = vadd.f32 %v10322_v54, %v14965_v10  ;;  %v14967_v58 = vld [vmem:[#allocation41_spill] sm:$0xff] }
 0x513   :  { %14958 = vst [vmem:[#allocation143_spill] sm:$0xff] %v10644_v37  ;;  %v10664_v21 = vadd.f32 %v10322_v54, %v14967_v58  ;;  %v14969_v37 = vld [vmem:[#allocation43_spill] sm:$0xff] }
 0x514   :  { %14960 = vst [vmem:[#allocation144_spill] sm:$0xff] %v10648_v52  ;;  %v10668_v15 = vadd.f32 %v10322_v54, %v14969_v37  ;;  %v14971_v52 = vld [vmem:[#allocation45_spill] sm:$0xff] }
 0x515   :  { %14962 = vst [vmem:[#allocation146_spill] sm:$0xff] %v10652_v11  ;;  %v10672_v9 = vadd.f32 %v10322_v54, %v14971_v52  ;;  %v14973_v11 = vld [vmem:[#allocation47_spill] sm:$0xff] }
 0x516   :  { %14964 = vst [vmem:[#allocation147_spill] sm:$0xff] %v10656_v27  ;;  %v10676_v55 = vadd.f32 %v10322_v54, %v14973_v11  ;;  %v14975_v27 = vld [vmem:[#allocation49_spill] sm:$0xff] }
 0x517   :  { %14966 = vst [vmem:[#allocation219_spill] sm:$0xff] %v10660_v3  ;;  %v10680_v10 = vadd.f32 %v10322_v54, %v14975_v27  ;;  %v14977_v3 = vld [vmem:[#allocation52_spill] sm:$0xff]  ;;  %v10700_v27 = vadd.f32 %v10322_v54, %v9681_v35  ;;  %v10720_v35 = vadd.f32 %v10322_v54, %v9711_v33 }
 0x518   :  { %14968 = vst [vmem:[#allocation220_spill] sm:$0xff] %v10664_v21  ;;  %v10684_v58 = vadd.f32 %v10322_v54, %v14977_v3  ;;  %v14979_v21 = vld [vmem:[#allocation55_spill] sm:$0xff] }
 0x519   :  { %14970 = vst [vmem:[#allocation221_spill] sm:$0xff] %v10668_v15  ;;  %v10688_v37 = vadd.f32 %v10322_v54, %v14979_v21  ;;  %v14981_v15 = vld [vmem:[#allocation60_spill] sm:$0xff]  ;;  %v10708_v21 = vadd.f32 %v10322_v54, %v9693_v16 }
 0x51a   :  { %14972 = vst [vmem:[#allocation180_spill] sm:$0xff] %v10672_v9  ;;  %v10692_v52 = vadd.f32 %v10322_v54, %v14981_v15  ;;  %v14983_v9 = vld [vmem:[#allocation67_spill] sm:$0xff] }
 0x51b   :  { %14974 = vst [vmem:[#allocation223_spill] sm:$0xff] %v10676_v55  ;;  %v10696_v11 = vadd.f32 %v10322_v54, %v14983_v9  ;;  %v10716_v9 = vadd.f32 %v10322_v54, %v9705_v56  ;;  %v10736_v56 = vadd.f32 %v10322_v54, %v9735_v60  ;;  %v10756_v60 = vadd.f32 %v10322_v54, %v9765_v42 }
 0x51c   :  { %14976 = vst [vmem:[#allocation234_spill] sm:$0xff] %v10680_v10  ;;  %v14986_v10 = vld [vmem:[#allocation153_spill] sm:$0xff] }
 0x51d   :  { %14978 = vst [vmem:[#allocation235_spill] sm:$0xff] %v10684_v58  ;;  %v10704_v3 = vadd.f32 %v10322_v54, %v14986_v10 }
 0x51e   :  { %14980 = vst [vmem:[#allocation236_spill] sm:$0xff] %v10688_v37  ;;  %v14989_v37 = vld [vmem:[#allocation154_spill] sm:$0xff] }
 0x51f   :  { %14982 = vst [vmem:[#allocation237_spill] sm:$0xff] %v10692_v52  ;;  %v10712_v15 = vadd.f32 %v10322_v54, %v14989_v37  ;;  %v10732_v37 = vadd.f32 %v10322_v54, %v9729_v61  ;;  %v10752_v61 = vadd.f32 %v10322_v54, %v9759_v24  ;;  %v10772_v24 = vadd.f32 %v10322_v54, %v9789_v46 }
 0x520   :  { %14984 = vst [vmem:[#allocation238_spill] sm:$0xff] %v10696_v11 }
 0x521   :  { %14985 = vst [vmem:[#allocation239_spill] sm:$0xff] %v10700_v27  ;;  %v14993_v27 = vld [vmem:[#allocation155_spill] sm:$0xff] }
 0x522   :  { %14987 = vst [vmem:[#allocation240_spill] sm:$0xff] %v10704_v3  ;;  %v10724_v10 = vadd.f32 %v10322_v54, %v14993_v27  ;;  %v14995_v3 = vld [vmem:[#allocation156_spill] sm:$0xff] }
 0x523   :  { %14988 = vst [vmem:[#allocation7_spill] sm:$0xff] %v10708_v21  ;;  %v10728_v16 = vadd.f32 %v10322_v54, %v14995_v3  ;;  %v10748_v3 = vadd.f32 %v10322_v54, %v9753_v40  ;;  %v10768_v40 = vadd.f32 %v10322_v54, %v9783_v48 }
 0x524   :  { %14990 = vst [vmem:[#allocation8_spill] sm:$0xff] %v10712_v15 }
 0x525   :  { %14991 = vst [vmem:[#allocation9_spill] sm:$0xff] %v10716_v9  ;;  %v14999_v9 = vld [vmem:[#allocation157_spill] sm:$0xff] }
 0x526   :  { %14992 = vst [vmem:[#allocation10_spill] sm:$0xff] %v10720_v35  ;;  %v10740_v33 = vadd.f32 %v10322_v54, %v14999_v9  ;;  %v15001_v35 = vld [vmem:[#allocation158_spill] sm:$0xff] }
 0x527   :  { %14994 = vst [vmem:[#allocation11_spill] sm:$0xff] %v10724_v10  ;;  %v10744_v27 = vadd.f32 %v10322_v54, %v15001_v35 }
 0x528   :  { %14996 = vst [vmem:[#allocation12_spill] sm:$0xff] %v10728_v16  ;;  %v15225_v16 = vld [vmem:[#allocation117_spill] sm:$0xff] }
 0x529   :  { %14997 = vst [vmem:[#allocation13_spill] sm:$0xff] %v10732_v37  ;;  %v15224_v37 = vld [vmem:[#allocation116_spill] sm:$0xff] }
 0x52a   :  { %14998 = vst [vmem:[#allocation14_spill] sm:$0xff] %v10736_v56  ;;  %v15006_v56 = vld [vmem:[#allocation159_spill] sm:$0xff] }
 0x52b   :  { %15000 = vst [vmem:[#allocation15_spill] sm:$0xff] %v10740_v33  ;;  %v10760_v9 = vadd.f32 %v10322_v54, %v15006_v56  ;;  %v15008_v33 = vld [vmem:[#allocation160_spill] sm:$0xff]  ;;  %v10780_v56 = vadd.f32 %v10322_v54, %v9801_v6  ;;  %v10800_v6 = vadd.f32 %v10322_v54, %v9831_v45  ;;  %v10820_v45 = vadd.f32 %v10322_v54, %v9861_v1 }
 0x52c   :  { %15002 = vst [vmem:[#allocation16_spill] sm:$0xff] %v10744_v27  ;;  %v10764_v35 = vadd.f32 %v10322_v54, %v15008_v33  ;;  %v15223_v27 = vld [vmem:[#allocation114_spill] sm:$0xff] }
 0x52d   :  { %15003 = vst [vmem:[#allocation17_spill] sm:$0xff] %v10748_v3  ;;  %v15222_v3 = vld [vmem:[#allocation142_spill] sm:$0xff] }
 0x52e   :  { %15004 = vst [vmem:[#allocation21_spill] sm:$0xff] %v10752_v61  ;;  %v15012_v61 = vld [vmem:[#allocation161_spill] sm:$0xff] }
 0x52f   :  { %15005 = vst [vmem:[#allocation23_spill] sm:$0xff] %v10756_v60  ;;  %v10776_v42 = vadd.f32 %v10322_v54, %v15012_v61  ;;  %v10796_v61 = vadd.f32 %v10322_v54, %v9825_v12 }
 0x530   :  { %15007 = vst [vmem:[#allocation25_spill] sm:$0xff] %v10760_v9  ;;  %v15015_v9 = vld [vmem:[#allocation162_spill] sm:$0xff] }
 0x531   :  { %15009 = vst [vmem:[#allocation27_spill] sm:$0xff] %v10764_v35  ;;  %v10784_v33 = vadd.f32 %v10322_v54, %v15015_v9  ;;  %v15017_v35 = vld [vmem:[#allocation163_spill] sm:$0xff] }
 0x532   :  { %15010 = vst [vmem:[#allocation29_spill] sm:$0xff] %v10768_v40  ;;  %v10788_v48 = vadd.f32 %v10322_v54, %v15017_v35  ;;  %v15019_v40 = vld [vmem:[#allocation164_spill] sm:$0xff] }
 0x533   :  { %15011 = vst [vmem:[#allocation33_spill] sm:$0xff] %v10772_v24  ;;  %v10792_v46 = vadd.f32 %v10322_v54, %v15019_v40  ;;  %v10812_v40 = vadd.f32 %v10322_v54, %v9849_v41 }
 0x534   :  { %15013 = vst [vmem:[#allocation35_spill] sm:$0xff] %v10776_v42 }
 0x535   :  { %15014 = vst [vmem:[#allocation37_spill] sm:$0xff] %v10780_v56  ;;  %v15023_v56 = vld [vmem:[#allocation165_spill] sm:$0xff] }
 0x536   :  { %15016 = vst [vmem:[#allocation39_spill] sm:$0xff] %v10784_v33  ;;  %v10804_v9 = vadd.f32 %v10322_v54, %v15023_v56  ;;  %v15025_v33 = vld [vmem:[#allocation166_spill] sm:$0xff] }
 0x537   :  { %15018 = vst [vmem:[#allocation41_spill] sm:$0xff] %v10788_v48  ;;  %v10808_v35 = vadd.f32 %v10322_v54, %v15025_v33 }
 0x538   :  { %15020 = vst [vmem:[#allocation43_spill] sm:$0xff] %v10792_v46  ;;  %v15028_v46 = vld [vmem:[#allocation167_spill] sm:$0xff] }
 0x539   :  { %15021 = vst [vmem:[#allocation45_spill] sm:$0xff] %v10796_v61  ;;  %v10816_v12 = vadd.f32 %v10322_v54, %v15028_v46 }
 0x53a   :  { %15022 = vst [vmem:[#allocation47_spill] sm:$0xff] %v10800_v6  ;;  %v15031_v6 = vld [vmem:[#allocation168_spill] sm:$0xff] }
 0x53b   :  { %15024 = vst [vmem:[#allocation49_spill] sm:$0xff] %v10804_v9  ;;  %v10824_v56 = vadd.f32 %v10322_v54, %v15031_v6  ;;  %v15033_v9 = vld [vmem:[#allocation169_spill] sm:$0xff] }
 0x53c   :  { %15026 = vst [vmem:[#allocation52_spill] sm:$0xff] %v10808_v35  ;;  %v10828_v33 = vadd.f32 %v10322_v54, %v15033_v9  ;;  %v15035_v35 = vld [vmem:[#allocation170_spill] sm:$0xff] }
 0x53d   :  { %15027 = vst [vmem:[#allocation55_spill] sm:$0xff] %v10812_v40  ;;  %v10832_v41 = vadd.f32 %v10322_v54, %v15035_v35  ;;  %v15037_v40 = vld [vmem:[#allocation171_spill] sm:$0xff] }
 0x53e   :  { %15029 = vst [vmem:[#allocation60_spill] sm:$0xff] %v10816_v12  ;;  %v10836_v46 = vadd.f32 %v10322_v54, %v15037_v40  ;;  %v15039_v12 = vld [vmem:[#allocation172_spill] sm:$0xff] }
 0x53f   :  { %15030 = vst [vmem:[#allocation67_spill] sm:$0xff] %v10820_v45  ;;  %v10840_v1 = vadd.f32 %v10322_v54, %v15039_v12  ;;  %v15041_v45 = vld [vmem:[#allocation173_spill] sm:$0xff] }
 0x540   :  { %15032 = vst [vmem:[#allocation153_spill] sm:$0xff] %v10824_v56  ;;  %v10844_v6 = vadd.f32 %v10322_v54, %v15041_v45  ;;  %v15043_v56 = vld [vmem:[#allocation174_spill] sm:$0xff] }
 0x541   :  { %15034 = vst [vmem:[#allocation154_spill] sm:$0xff] %v10828_v33  ;;  %v10848_v9 = vadd.f32 %v10322_v54, %v15043_v56  ;;  %v15045_v33 = vld [vmem:[#allocation175_spill] sm:$0xff] }
 0x542   :  { %15036 = vst [vmem:[#allocation155_spill] sm:$0xff] %v10832_v41  ;;  %v10852_v35 = vadd.f32 %v10322_v54, %v15045_v33  ;;  %v15047_v41 = vld [vmem:[#allocation176_spill] sm:$0xff] }
 0x543   :  { %15038 = vst [vmem:[#allocation156_spill] sm:$0xff] %v10836_v46  ;;  %v10856_v40 = vadd.f32 %v10322_v54, %v15047_v41  ;;  %v15049_v46 = vld [vmem:[#allocation177_spill] sm:$0xff] }
 0x544   :  { %15040 = vst [vmem:[#allocation157_spill] sm:$0xff] %v10840_v1  ;;  %v10860_v12 = vadd.f32 %v10322_v54, %v15049_v46  ;;  %v15051_v1 = vld [vmem:[#allocation178_spill] sm:$0xff] }
 0x545   :  { %15042 = vst [vmem:[#allocation158_spill] sm:$0xff] %v10844_v6  ;;  %v10864_v45 = vadd.f32 %v10322_v54, %v15051_v1  ;;  %v15053_v6 = vld [vmem:[#allocation179_spill] sm:$0xff] }
 0x546   :  { %15044 = vst [vmem:[#allocation159_spill] sm:$0xff] %v10848_v9  ;;  %v10868_v56 = vadd.f32 %v10322_v54, %v15053_v6  ;;  %v15055_v9 = vld [vmem:[#allocation18_spill] sm:$0xff] }
 0x547   :  { %15046 = vst [vmem:[#allocation160_spill] sm:$0xff] %v10852_v35  ;;  %v10872_v33 = vadd.f32 %v10322_v54, %v15055_v9  ;;  %v15057_v35 = vld [vmem:[#allocation20_spill] sm:$0xff] }
 0x548   :  { %15048 = vst [vmem:[#allocation161_spill] sm:$0xff] %v10856_v40  ;;  %v10876_v41 = vadd.f32 %v10322_v54, %v15057_v35  ;;  %v15059_v40 = vld [vmem:[#allocation22_spill] sm:$0xff] }
 0x549   :  { %15050 = vst [vmem:[#allocation162_spill] sm:$0xff] %v10860_v12  ;;  %v10880_v46 = vadd.f32 %v10322_v54, %v15059_v40  ;;  %v15061_v12 = vld [vmem:[#allocation24_spill] sm:$0xff] }
 0x54a   :  { %15052 = vst [vmem:[#allocation163_spill] sm:$0xff] %v10864_v45  ;;  %v10884_v1 = vadd.f32 %v10322_v54, %v15061_v12  ;;  %v15063_v45 = vld [vmem:[#allocation26_spill] sm:$0xff] }
 0x54b   :  { %15054 = vst [vmem:[#allocation164_spill] sm:$0xff] %v10868_v56  ;;  %v10888_v6 = vadd.f32 %v10322_v54, %v15063_v45  ;;  %v15065_v56 = vld [vmem:[#allocation28_spill] sm:$0xff] }
 0x54c   :  { %15056 = vst [vmem:[#allocation165_spill] sm:$0xff] %v10872_v33  ;;  %v10892_v9 = vadd.f32 %v10322_v54, %v15065_v56  ;;  %v15067_v33 = vld [vmem:[#allocation30_spill] sm:$0xff] }
 0x54d   :  { %15058 = vst [vmem:[#allocation166_spill] sm:$0xff] %v10876_v41  ;;  %v10896_v35 = vadd.f32 %v10322_v54, %v15067_v33  ;;  %v15069_v41 = vld [vmem:[#allocation32_spill] sm:$0xff] }
 0x54e   :  { %15060 = vst [vmem:[#allocation167_spill] sm:$0xff] %v10880_v46  ;;  %v10900_v40 = vadd.f32 %v10322_v54, %v15069_v41  ;;  %v15071_v46 = vld [vmem:[#allocation34_spill] sm:$0xff] }
 0x54f   :  { %15062 = vst [vmem:[#allocation168_spill] sm:$0xff] %v10884_v1  ;;  %v10904_v12 = vadd.f32 %v10322_v54, %v15071_v46  ;;  %v15073_v1 = vld [vmem:[#allocation36_spill] sm:$0xff] }
 0x550   :  { %15064 = vst [vmem:[#allocation169_spill] sm:$0xff] %v10888_v6  ;;  %v10908_v45 = vadd.f32 %v10322_v54, %v15073_v1  ;;  %v15075_v6 = vld [vmem:[#allocation40_spill] sm:$0xff] }
 0x551   :  { %15066 = vst [vmem:[#allocation170_spill] sm:$0xff] %v10892_v9  ;;  %v10912_v56 = vadd.f32 %v10322_v54, %v15075_v6  ;;  %v15077_v9 = vld [vmem:[#allocation44_spill] sm:$0xff] }
 0x552   :  { %15068 = vst [vmem:[#allocation171_spill] sm:$0xff] %v10896_v35  ;;  %v10916_v33 = vadd.f32 %v10322_v54, %v15077_v9  ;;  %v15079_v35 = vld [vmem:[#allocation50_spill] sm:$0xff] }
 0x553   :  { %15070 = vst [vmem:[#allocation172_spill] sm:$0xff] %v10900_v40  ;;  %v10920_v41 = vadd.f32 %v10322_v54, %v15079_v35  ;;  %v15081_v40 = vld [vmem:[#allocation53_spill] sm:$0xff] }
 0x554   :  { %15072 = vst [vmem:[#allocation173_spill] sm:$0xff] %v10904_v12  ;;  %v10924_v46 = vadd.f32 %v10322_v54, %v15081_v40  ;;  %v15083_v12 = vld [vmem:[#allocation62_spill] sm:$0xff] }
 0x555   :  { %15074 = vst [vmem:[#allocation174_spill] sm:$0xff] %v10908_v45  ;;  %v10928_v1 = vadd.f32 %v10322_v54, %v15083_v12  ;;  %v15085_v45 = vld [vmem:[#allocation69_spill] sm:$0xff] }
 0x556   :  { %15076 = vst [vmem:[#allocation175_spill] sm:$0xff] %v10912_v56  ;;  %v10932_v6 = vadd.f32 %v10322_v54, %v15085_v45  ;;  %v15087_v56 = vld [vmem:[#allocation184_spill] sm:$0xff] }
 0x557   :  { %15078 = vst [vmem:[#allocation176_spill] sm:$0xff] %v10916_v33  ;;  %v10936_v9 = vadd.f32 %v10322_v54, %v15087_v56  ;;  %v15089_v33 = vld [vmem:[#allocation185_spill] sm:$0xff] }
 0x558   :  { %15080 = vst [vmem:[#allocation177_spill] sm:$0xff] %v10920_v41  ;;  %v10940_v35 = vadd.f32 %v10322_v54, %v15089_v33  ;;  %v15091_v41 = vld [vmem:[#allocation188_spill] sm:$0xff] }
 0x559   :  { %15082 = vst [vmem:[#allocation178_spill] sm:$0xff] %v10924_v46  ;;  %v10944_v40 = vadd.f32 %v10322_v54, %v15091_v41  ;;  %v15093_v46 = vld [vmem:[#allocation189_spill] sm:$0xff] }
 0x55a   :  { %15084 = vst [vmem:[#allocation179_spill] sm:$0xff] %v10928_v1  ;;  %v10948_v12 = vadd.f32 %v10322_v54, %v15093_v46  ;;  %v15095_v1 = vld [vmem:[#allocation190_spill] sm:$0xff] }
 0x55b   :  { %15086 = vst [vmem:[#allocation18_spill] sm:$0xff] %v10932_v6  ;;  %v10952_v45 = vadd.f32 %v10322_v54, %v15095_v1  ;;  %v15097_v6 = vld [vmem:[#allocation191_spill] sm:$0xff] }
 0x55c   :  { %15088 = vst [vmem:[#allocation20_spill] sm:$0xff] %v10936_v9  ;;  %v10956_v56 = vadd.f32 %v10322_v54, %v15097_v6  ;;  %v15099_v9 = vld [vmem:[#allocation192_spill] sm:$0xff] }
 0x55d   :  { %15090 = vst [vmem:[#allocation22_spill] sm:$0xff] %v10940_v35  ;;  %v10960_v33 = vadd.f32 %v10322_v54, %v15099_v9  ;;  %v15101_v35 = vld [vmem:[#allocation193_spill] sm:$0xff] }
 0x55e   :  { %15092 = vst [vmem:[#allocation24_spill] sm:$0xff] %v10944_v40  ;;  %v10964_v41 = vadd.f32 %v10322_v54, %v15101_v35  ;;  %v15103_v40 = vld [vmem:[#allocation195_spill] sm:$0xff]  ;;  %v10984_v35 = vadd.f32 %v10322_v54, %v10107_v59  ;;  %v11004_v59 = vadd.f32 %v10322_v54, %v10137_v39 }
 0x55f   :  { %15094 = vst [vmem:[#allocation26_spill] sm:$0xff] %v10948_v12  ;;  %v10968_v46 = vadd.f32 %v10322_v54, %v15103_v40  ;;  %v15105_v12 = vld [vmem:[#allocation197_spill] sm:$0xff]  ;;  %v10988_v40 = vadd.f32 %v10322_v54, %v10113_v30  ;;  %v11008_v30 = vadd.f32 %v10322_v54, %v10143_v32 }
 0x560   :  { %15096 = vst [vmem:[#allocation28_spill] sm:$0xff] %v10952_v45  ;;  %v10972_v1 = vadd.f32 %v10322_v54, %v15105_v12  ;;  %v15107_v45 = vld [vmem:[#allocation198_spill] sm:$0xff]  ;;  %v10992_v12 = vadd.f32 %v10322_v54, %v10119_v2  ;;  %v11012_v2 = vadd.f32 %v10322_v54, %v10149_v38  ;;  %v11032_v38 = vadd.f32 %v10322_v54, %v10179_v26 }
 0x561   :  { %15098 = vst [vmem:[#allocation30_spill] sm:$0xff] %v10956_v56  ;;  %v10976_v6 = vadd.f32 %v10322_v54, %v15107_v45  ;;  %v15109_v56 = vld [vmem:[#allocation151_spill] sm:$0xff]  ;;  %v10996_v45 = vadd.f32 %v10322_v54, %v10125_v44  ;;  %v11016_v44 = vadd.f32 %v10322_v54, %v10155_v25  ;;  %v11036_v25 = vadd.f32 %v10322_v54, %v10185_v63 }
 0x562   :  { %15100 = vst [vmem:[#allocation32_spill] sm:$0xff] %v10960_v33  ;;  %v10980_v9 = vadd.f32 %v10322_v54, %v15109_v56  ;;  %v11052_v26 = vadd.f32 %v10322_v54, %v10209_v51  ;;  %v11056_v63 = vadd.f32 %v10322_v54, %v10215_v4  ;;  %v11072_v51 = vadd.f32 %v10322_v54, %v10239_v18 }
 0x563   :  { %15102 = vst [vmem:[#allocation34_spill] sm:$0xff] %v10964_v41  ;;  %v11076_v4 = vadd.f32 %v10322_v54, %v10245_v43  ;;  %v11092_v18 = vadd.f32 %v10322_v54, %v10269_v47  ;;  %v11096_v43 = vadd.f32 %v10322_v54, %v10275_v34 }
 0x564   :  { %15104 = vst [vmem:[#allocation36_spill] sm:$0xff] %v10968_v46  ;;  %v15221_v46 = vld [vmem:[#allocation113_spill] sm:$0xff] }
 0x565   :  { %15106 = vst [vmem:[#allocation40_spill] sm:$0xff] %v10972_v1  ;;  %v15220_v1 = vld [vmem:[#allocation112_spill] sm:$0xff] }
 0x566   :  { %15108 = vst [vmem:[#allocation44_spill] sm:$0xff] %v10976_v6  ;;  %v15115_v6 = vld [vmem:[#allocation199_spill] sm:$0xff] }
 0x567   :  { %15110 = vst [vmem:[#allocation50_spill] sm:$0xff] %v10980_v9  ;;  %v11000_v56 = vadd.f32 %v10322_v54, %v15115_v6  ;;  %v15219_v9 = vld [vmem:[#allocation111_spill] sm:$0xff] }
 0x568   :  { %15111 = vst [vmem:[#allocation53_spill] sm:$0xff] %v10984_v35  ;;  %v15218_v35 = vld [vmem:[#allocation109_spill] sm:$0xff] }
 0x569   :  { %15112 = vst [vmem:[#allocation62_spill] sm:$0xff] %v10988_v40  ;;  %v15217_v40 = vld [vmem:[#allocation108_spill] sm:$0xff] }
 0x56a   :  { %15113 = vst [vmem:[#allocation69_spill] sm:$0xff] %v10992_v12  ;;  %v15216_v12 = vld [vmem:[#allocation107_spill] sm:$0xff] }
 0x56b   :  { %15114 = vst [vmem:[#allocation184_spill] sm:$0xff] %v10996_v45  ;;  %v15121_v45 = vld [vmem:[#allocation200_spill] sm:$0xff] }
 0x56c   :  { %15116 = vst [vmem:[#allocation185_spill] sm:$0xff] %v11000_v56  ;;  %v11020_v6 = vadd.f32 %v10322_v54, %v15121_v45  ;;  %v15123_v56 = vld [vmem:[#allocation201_spill] sm:$0xff] }
 0x56d   :  { %15117 = vst [vmem:[#allocation188_spill] sm:$0xff] %v11004_v59  ;;  %v11024_v39 = vadd.f32 %v10322_v54, %v15123_v56  ;;  %v15125_v59 = vld [vmem:[#allocation202_spill] sm:$0xff]  ;;  %v11044_v56 = vadd.f32 %v10322_v54, %v10197_v8  ;;  %v11064_v8 = vadd.f32 %v10322_v54, %v10227_v53  ;;  %v11084_v53 = vadd.f32 %v10322_v54, %v10257_v57 }
 0x56e   :  { %15118 = vst [vmem:[#allocation189_spill] sm:$0xff] %v11008_v30  ;;  %v11028_v32 = vadd.f32 %v10322_v54, %v15125_v59  ;;  %v11048_v59 = vadd.f32 %v10322_v54, %v10203_v28  ;;  %v11068_v28 = vadd.f32 %v10322_v54, %v10233_v49  ;;  %v11088_v49 = vadd.f32 %v10322_v54, %v10263_v13  ;;  %v15215_v30 = vld [vmem:[#allocation106_spill] sm:$0xff] }
 0x56f   :  { %15119 = vst [vmem:[#allocation190_spill] sm:$0xff] %v11012_v2  ;;  %v15214_v2 = vld [vmem:[#allocation104_spill] sm:$0xff] }
 0x570   :  { %15120 = vst [vmem:[#allocation191_spill] sm:$0xff] %v11016_v44  ;;  %v15129_v44 = vld [vmem:[#allocation203_spill] sm:$0xff] }
 0x571   :  { %15122 = vst [vmem:[#allocation192_spill] sm:$0xff] %v11020_v6  ;;  %v11040_v45 = vadd.f32 %v10322_v54, %v15129_v44  ;;  %v15213_v6 = vld [vmem:[#allocation103_spill] sm:$0xff] }
 0x572   :  { %15124 = vst [vmem:[#allocation193_spill] sm:$0xff] %v11024_v39  ;;  %v15212_v39 = vld [vmem:[#allocation102_spill] sm:$0xff] }
 0x573   :  { %15126 = vst [vmem:[#allocation195_spill] sm:$0xff] %v11028_v32  ;;  %v15211_v32 = vld [vmem:[#allocation101_spill] sm:$0xff] }
 0x574   :  { %15127 = vst [vmem:[#allocation197_spill] sm:$0xff] %v11032_v38  ;;  %v15210_v38 = vld [vmem:[#allocation99_spill] sm:$0xff] }
 0x575   :  { %15128 = vst [vmem:[#allocation198_spill] sm:$0xff] %v11036_v25  ;;  %v15135_v25 = vld [vmem:[#allocation204_spill] sm:$0xff] }
 0x576   :  { %15130 = vst [vmem:[#allocation151_spill] sm:$0xff] %v11040_v45  ;;  %v11060_v44 = vadd.f32 %v10322_v54, %v15135_v25  ;;  %v15209_v45 = vld [vmem:[#allocation98_spill] sm:$0xff] }
 0x577   :  { %15131 = vst [vmem:[#allocation199_spill] sm:$0xff] %v11044_v56  ;;  %v15208_v56 = vld [vmem:[#allocation97_spill] sm:$0xff] }
 0x578   :  { %15132 = vst [vmem:[#allocation200_spill] sm:$0xff] %v11048_v59  ;;  %v15207_v59 = vld [vmem:[#allocation96_spill] sm:$0xff] }
 0x579   :  { %15133 = vst [vmem:[#allocation201_spill] sm:$0xff] %v11052_v26  ;;  %v15206_v26 = vld [vmem:[#allocation94_spill] sm:$0xff] }
 0x57a   :  { %15134 = vst [vmem:[#allocation202_spill] sm:$0xff] %v11056_v63  ;;  %v15141_v63 = vld [vmem:[#allocation205_spill] sm:$0xff] }
 0x57b   :  { %15136 = vst [vmem:[#allocation203_spill] sm:$0xff] %v11060_v44  ;;  %v11080_v25 = vadd.f32 %v10322_v54, %v15141_v63  ;;  %v15205_v44 = vld [vmem:[#allocation93_spill] sm:$0xff] }
 0x57c   :  { %15137 = vst [vmem:[#allocation204_spill] sm:$0xff] %v11064_v8  ;;  %v15204_v8 = vld [vmem:[#allocation92_spill] sm:$0xff] }
 0x57d   :  { %15138 = vst [vmem:[#allocation241_spill] sm:$0xff] %v11068_v28  ;;  %v15203_v28 = vld [vmem:[#allocation91_spill] sm:$0xff] }
 0x57e   :  { %15139 = vst [vmem:[#allocation242_spill] sm:$0xff] %v11072_v51  ;;  %v15202_v51 = vld [vmem:[#allocation89_spill] sm:$0xff] }
 0x57f   :  { %15140 = vst [vmem:[#allocation243_spill] sm:$0xff] %v11076_v4  ;;  %v15147_v4 = vld [vmem:[#allocation206_spill] sm:$0xff] }
 0x580   :  { %15142 = vst [vmem:[#allocation205_spill] sm:$0xff] %v11080_v25  ;;  %v11100_v63 = vadd.f32 %v10322_v54, %v15147_v4  ;;  %v15149_v25 = vld [vmem:[#allocation207_spill] sm:$0xff] }
 0x581   :  { %15143 = vst [vmem:[#allocation244_spill] sm:$0xff] %v11084_v53  ;;  %v11104_v57 = vadd.f32 %v10322_v54, %v15149_v25  ;;  %v15151_v53 = vld [vmem:[#allocation208_spill] sm:$0xff] }
 0x582   :  { %15144 = vst [vmem:[#allocation245_spill] sm:$0xff] %v11088_v49  ;;  %v11108_v13 = vadd.f32 %v10322_v54, %v15151_v53  ;;  %v15153_v49 = vld [vmem:[#allocation209_spill] sm:$0xff] }
 0x583   :  { %15145 = vst [vmem:[#allocation246_spill] sm:$0xff] %v11092_v18  ;;  %v11112_v47 = vadd.f32 %v10322_v54, %v15153_v49  ;;  %v15155_v18 = vld [vmem:[#allocation210_spill] sm:$0xff] }
 0x584   :  { %15146 = vst [vmem:[#allocation247_spill] sm:$0xff] %v11096_v43  ;;  %v11116_v34 = vadd.f32 %v10322_v54, %v15155_v18  ;;  %v15157_v43 = vld [vmem:[#allocation211_spill] sm:$0xff] }
 0x585   :  { %15148 = vst [vmem:[#allocation206_spill] sm:$0xff] %v11100_v63  ;;  %v11120_v4 = vadd.f32 %v10322_v54, %v15157_v43  ;;  %v15159_v63 = vld [vmem:[#allocation212_spill] sm:$0xff] }
 0x586   :  { %15150 = vst [vmem:[#allocation207_spill] sm:$0xff] %v11104_v57  ;;  %v11124_v25 = vadd.f32 %v10322_v54, %v15159_v63  ;;  %v15161_v57 = vld [vmem:[#allocation213_spill] sm:$0xff]  ;;  %v11144_v63 = vadd.f32 %v10322_v54, %v10352_v29  ;;  %v11164_v29 = vadd.f32 %v10322_v54, %v10382_v7  ;;  %v11184_v7 = vadd.f32 %v10322_v54, %v10412_v19  ;;  %v15186_v19 = vld [vmem:[#allocation68_spill] sm:$0xff] }
 0x587   :  { %15152 = vst [vmem:[#allocation208_spill] sm:$0xff] %v11108_v13  ;;  %v11128_v53 = vadd.f32 %v10322_v54, %v15161_v57  ;;  %v15163_v13 = vld [vmem:[#allocation214_spill] sm:$0xff]  ;;  %v11148_v57 = vadd.f32 %v10322_v54, %v10358_v0  ;;  %v11168_v0 = vadd.f32 %v10322_v54, %v10388_v5 }
 0x588   :  { %15154 = vst [vmem:[#allocation209_spill] sm:$0xff] %v11112_v47  ;;  %v11132_v49 = vadd.f32 %v10322_v54, %v15163_v13  ;;  %v15165_v47 = vld [vmem:[#allocation215_spill] sm:$0xff]  ;;  %v11152_v13 = vadd.f32 %v10322_v54, %v10364_v31  ;;  %v11172_v31 = vadd.f32 %v10322_v54, %v10394_v23  ;;  %v15182_v23 = vld [vmem:[#allocation61_spill] sm:$0xff] }
 0x589   :  { %15156 = vst [vmem:[#allocation210_spill] sm:$0xff] %v11116_v34  ;;  %v11136_v18 = vadd.f32 %v10322_v54, %v15165_v47  ;;  %v15167_v34 = vld [vmem:[#allocation216_spill] sm:$0xff]  ;;  %v11156_v47 = vadd.f32 %v10322_v54, %v10370_v22  ;;  %v11176_v22 = vadd.f32 %v10322_v54, %v10400_v17 }
 0x58a   :  { %15158 = vst [vmem:[#allocation211_spill] sm:$0xff] %v11120_v4  ;;  %v11140_v43 = vadd.f32 %v10322_v54, %v15167_v34  ;;  %v11160_v34 = vadd.f32 %v10322_v54, %v10376_v20  ;;  %v11180_v20 = vadd.f32 %v10322_v54, %v10406_v62  ;;  %v15183_v17 = vld [vmem:[#allocation64_spill] sm:$0xff] }
 0x58b   :  { %15160 = vst [vmem:[#allocation212_spill] sm:$0xff] %v11124_v25  ;;  %v15200_v25 = vld [vmem:[#allocation87_spill] sm:$0xff]  ;;  %v15201_v4 = vld [vmem:[#allocation88_spill] sm:$0xff] }
 0x58c   :  { %15162 = vst [vmem:[#allocation213_spill] sm:$0xff] %v11128_v53  ;;  %v15199_v53 = vld [vmem:[#allocation86_spill] sm:$0xff] }
 0x58d   :  { %15164 = vst [vmem:[#allocation214_spill] sm:$0xff] %v11132_v49  ;;  %v15198_v49 = vld [vmem:[#allocation84_spill] sm:$0xff] }
 0x58e   :  { %15166 = vst [vmem:[#allocation215_spill] sm:$0xff] %v11136_v18  ;;  %v15197_v18 = vld [vmem:[#allocation83_spill] sm:$0xff] }
 0x58f   :  { %15168 = vst [vmem:[#allocation216_spill] sm:$0xff] %v11140_v43  ;;  %v15196_v43 = vld [vmem:[#allocation82_spill] sm:$0xff] }
 0x590   :  { %15169 = vst [vmem:[#allocation248_spill] sm:$0xff] %v11144_v63  ;;  %v15195_v63 = vld [vmem:[#allocation81_spill] sm:$0xff] }
 0x591   :  { %15170 = vst [vmem:[#allocation249_spill] sm:$0xff] %v11148_v57 }
 0x592   :  { %15171 = vst [vmem:[#allocation250_spill] sm:$0xff] %v11152_v13 }
 0x593   :  { %15172 = vst [vmem:[#allocation251_spill] sm:$0xff] %v11156_v47  ;;  %v15184_v47 = vld [vmem:[#allocation65_spill] sm:$0xff] }
 0x594   :  { %15173 = vst [vmem:[#allocation252_spill] sm:$0xff] %v11160_v34  ;;  %v3155_v62 = vsub.f32 %v15184_v47, %v8847_v14  ;;  %v15191_v47 = vld [vmem:[#allocation76_spill] sm:$0xff] }
 0x595   :  { %15174 = vst [vmem:[#allocation253_spill] sm:$0xff] %v11164_v29  ;;  %v15180_v29 = vld [vmem:[#allocation59_spill] sm:$0xff] }
 0x596   :  { %15175 = vst [vmem:[#allocation254_spill] sm:$0xff] %v11168_v0  ;;  %v3151_v5 = vsub.f32 %v15180_v29, %v8847_v14  ;;  %v15181_v0 = vld [vmem:[#allocation58_spill] sm:$0xff]  ;;  %v15187_v29 = vld [vmem:[#allocation71_spill] sm:$0xff] }
 0x597   :  { %15176 = vst [vmem:[#allocation255_spill] sm:$0xff] %v11172_v31  ;;  %v3152_v34 = vsub.f32 %v15181_v0, %v8847_v14  ;;  %v3153_v31 = vsub.f32 %v15182_v23, %v8847_v14  ;;  %v3158_v57 = vsub.f32 %v15187_v29, %v8847_v14  ;;  %v15188_v0 = vld [vmem:[#allocation72_spill] sm:$0xff]  ;;  %v15189_v23 = vld [vmem:[#allocation73_spill] sm:$0xff]  ;;  %v15194_v29 = vld [vmem:[#allocation79_spill] sm:$0xff] }
 0x598   :  { %15177 = vst [vmem:[#allocation256_spill] sm:$0xff] %v11176_v22  ;;  %v3154_v22 = vsub.f32 %v15183_v17, %v8847_v14  ;;  %v15190_v17 = vld [vmem:[#allocation74_spill] sm:$0xff]  ;;  %v3410_v41 = vmul.f32 %v15222_v3, %v3151_v5  ;;  %v3414_v5 = vmul.f32 %v15222_v3, %v3155_v62  ;;  %v15241_v50 = vsub.f32 %v15188_v0, %v8847_v14 }
 0x599   :  { %15178 = vst [vmem:[#allocation257_spill] sm:$0xff] %v11180_v20  ;;  %v15185_v20 = vld [vmem:[#allocation66_spill] sm:$0xff]  ;;  %v3411_v10 = vmul.f32 %v15222_v3, %v3152_v34  ;;  %v3412_v11 = vmul.f32 %v15222_v3, %v3153_v31  ;;  %v15243_v61 = vsub.f32 %v15189_v23, %v8847_v14 }
 0x59a   :  { %15179 = vst [vmem:[#allocation258_spill] sm:$0xff] %v11184_v7  ;;  %v3156_v13 = vsub.f32 %v15185_v20, %v8847_v14  ;;  %v3157_v7 = vsub.f32 %v15186_v19, %v8847_v14  ;;  %v15192_v20 = vld [vmem:[#allocation77_spill] sm:$0xff]  ;;  %v15193_v19 = vld [vmem:[#allocation78_spill] sm:$0xff]  ;;  %v3413_v55 = vmul.f32 %v15222_v3, %v3154_v22  ;;  %v3670_v31 = vadd.f32 %v10322_v54, %v3410_v41 }
 0x59b   :  { %v3671_v22 = vadd.f32 %v10322_v54, %v3411_v10  ;;  %v3672_v41 = vadd.f32 %v10322_v54, %v3412_v11  ;;  %v3674_v11 = vadd.f32 %v10322_v54, %v3414_v5  ;;  %v15248_v58 = vsub.f32 %v15192_v20, %v8847_v14 }
 0x59c   :  { %v3415_v34 = vmul.f32 %v15222_v3, %v3156_v13  ;;  %v3416_v62 = vmul.f32 %v15222_v3, %v3157_v7  ;;  %v3417_v13 = vmul.f32 %v15222_v3, %v3158_v57  ;;  %v3673_v10 = vadd.f32 %v10322_v54, %v3413_v55 }
 0x59d   :  { %v3418_v7 = vmul.f32 %v15222_v3, %v15241_v50  ;;  %v3926_v15 = vmul.f32 0.1, %v3670_v31  ;;  %v3419_v57 = vmul.f32 %v15222_v3, %v15243_v61  ;;  %v3927_v52 = vmul.f32 0.1, %v3671_v22 }
 0x59e   :  { %v3675_v55 = vadd.f32 %v10322_v54, %v3415_v34  ;;  %v15245_v50 = vsub.f32 %v15190_v17, %v8847_v14  ;;  %v3676_v5 = vadd.f32 %v10322_v54, %v3416_v62  ;;  %v3928_v48 = vmul.f32 0.1, %v3672_v41 }
 0x59f   :  { %v15247_v61 = vsub.f32 %v15191_v47, %v8847_v14  ;;  %v3677_v34 = vadd.f32 %v10322_v54, %v3417_v13  ;;  %v3929_v60 = vmul.f32 0.1, %v3673_v10  ;;  %v3422_v17 = vmul.f32 %v15222_v3, %v15248_v58 }
 0x5a0   :  { %v3420_v0 = vmul.f32 %v15222_v3, %v15245_v50  ;;  %v3678_v50 = vadd.f32 %v10322_v54, %v3418_v7  ;;  %v3930_v62 = vmul.f32 0.1, %v3674_v11  ;;  %v4182_v36 = vmax.f32 %v3670_v31, %v3926_v15 }
 0x5a1   :  { %v3421_v23 = vmul.f32 %v15222_v3, %v15247_v61  ;;  %v15249_v33 = vsub.f32 %v15193_v19, %v8847_v14  ;;  %v3679_v47 = vadd.f32 %v10322_v54, %v3419_v57  ;;  %v3931_v61 = vmul.f32 0.1, %v3675_v55 }
 0x5a2   :  { %v4183_v24 = vmax.f32 %v3671_v22, %v3927_v52  ;;  %v15250_v13 = vsub.f32 %v15194_v29, %v8847_v14  ;;  %v3680_v58 = vadd.f32 %v10322_v54, %v3420_v0  ;;  %v3932_v42 = vmul.f32 0.1, %v3676_v5  ;;  %4438 = vst.msk [vmem:[%s13162_s5] sm:$0xff] %vm1842_vm2, %v4182_v36 }
 0x5a3   :  { %v3423_v21 = vmul.f32 %v15222_v3, %v15249_v33  ;;  %v4184_v7 = vmax.f32 %v3672_v41, %v3928_v48  ;;  %v15251_v15 = vsub.f32 %v15195_v63, %v8847_v14  ;;  %v11364_v33 = vadd.f32 %v10322_v54, %v3421_v23 }
 0x5a4   :  { %v3424_v20 = vmul.f32 %v15222_v3, %v15250_v13  ;;  %v3933_v31 = vmul.f32 0.1, %v3677_v34  ;;  %v4185_v57 = vmax.f32 %v3673_v10, %v3929_v60  ;;  %v15252_v52 = vsub.f32 %v15196_v43, %v8847_v14  ;;  %4439 = vst.msk [vmem:[%s13162_s5 + $0x8] sm:$0xff] %vm1842_vm2, %v4183_v24 }
 0x5a5   :  { %v3425_v19 = vmul.f32 %v15222_v3, %v15251_v15  ;;  %v11371_v22 = vadd.f32 %v10322_v54, %v3422_v17  ;;  %v3934_v0 = vmul.f32 0.1, %v3678_v50  ;;  %v4186_v48 = vmax.f32 %v3674_v11, %v3930_v62  ;;  %4440 = vst.msk [vmem:[%s13162_s5 + $0x10] sm:$0xff] %vm1842_vm2, %v4184_v7 }
 0x5a6   :  { %v3426_v29 = vmul.f32 %v15222_v3, %v15252_v52  ;;  %v15253_v63 = vsub.f32 %v15197_v18, %v8847_v14  ;;  %v11382_v41 = vadd.f32 %v10322_v54, %v3423_v21  ;;  %v3935_v43 = vmul.f32 0.1, %v3679_v47  ;;  %4441 = vst.msk [vmem:[%s13162_s5 + $0x18] sm:$0xff] %vm1842_vm2, %v4185_v57 }
 0x5a7   :  { %v4187_v10 = vmax.f32 %v3675_v55, %v3931_v61  ;;  %v15254_v11 = vsub.f32 %v15198_v49, %v8847_v14  ;;  %v11393_v23 = vadd.f32 %v10322_v54, %v3424_v20  ;;  %v3936_v18 = vmul.f32 0.1, %v3680_v58  ;;  %4442 = vst.msk [vmem:[%s13162_s5 + $0x20] sm:$0xff] %vm1842_vm2, %v4186_v48 }
 0x5a8   :  { %v3427_v60 = vmul.f32 %v15222_v3, %v15253_v63  ;;  %v4188_v17 = vmax.f32 %v3676_v5, %v3932_v42  ;;  %v15255_v21 = vsub.f32 %v15199_v53, %v8847_v14  ;;  %v11404_v55 = vadd.f32 %v10322_v54, %v3425_v19 }
 0x5a9   :  { %v3428_v36 = vmul.f32 %v15222_v3, %v15254_v11  ;;  %v3937_v49 = vmul.f32 0.1, %v11364_v33  ;;  %v4189_v62 = vmax.f32 %v3677_v34, %v3933_v31  ;;  %v15256_v42 = vsub.f32 %v15200_v25, %v8847_v14  ;;  %4443 = vst.msk [vmem:[%s13162_s5 + $0x28] sm:$0xff] %vm1842_vm2, %v4187_v10 }
 0x5aa   :  { %v3429_v24 = vmul.f32 %v15222_v3, %v15255_v21  ;;  %v11416_v53 = vadd.f32 %v10322_v54, %v3426_v29  ;;  %v3938_v61 = vmul.f32 0.1, %v11371_v22  ;;  %v4190_v13 = vmax.f32 %v3678_v50, %v3934_v0  ;;  %4444 = vst.msk [vmem:[%s13162_s5 + $0x30] sm:$0xff] %vm1842_vm2, %v4188_v17 }
 0x5ab   :  { %v3430_v5 = vmul.f32 %v15222_v3, %v15256_v42  ;;  %v15257_v34 = vsub.f32 %v15201_v4, %v8847_v14  ;;  %v11428_v25 = vadd.f32 %v10322_v54, %v3427_v60  ;;  %v3939_v7 = vmul.f32 0.1, %v11382_v41  ;;  %4445 = vst.msk [vmem:[%s13162_s5 + $0x38] sm:$0xff] %vm1842_vm2, %v4189_v62 }
 0x5ac   :  { %v4191_v15 = vmax.f32 %v3679_v47, %v3935_v43  ;;  %v15258_v50 = vsub.f32 %v15202_v51, %v8847_v14  ;;  %v11440_v4 = vadd.f32 %v10322_v54, %v3428_v36  ;;  %v3940_v31 = vmul.f32 0.1, %v11393_v23  ;;  %4446 = vst.msk [vmem:[%s13162_s5 + $0x40] sm:$0xff] %vm1842_vm2, %v4190_v13 }
 0x5ad   :  { %v3431_v20 = vmul.f32 %v15222_v3, %v15257_v34  ;;  %v4192_v57 = vmax.f32 %v3680_v58, %v3936_v18  ;;  %v15259_v47 = vsub.f32 %v15203_v28, %v8847_v14  ;;  %v11452_v51 = vadd.f32 %v10322_v54, %v3429_v24 }
 0x5ae   :  { %v3432_v19 = vmul.f32 %v15222_v3, %v15258_v50  ;;  %v3941_v29 = vmul.f32 0.1, %v11404_v55  ;;  %v4193_v0 = vmax.f32 %v11364_v33, %v3937_v49  ;;  %v15260_v58 = vsub.f32 %v15204_v8, %v8847_v14  ;;  %4447 = vst.msk [vmem:[%s13162_s5 + $0x48] sm:$0xff] %vm1842_vm2, %v4191_v15 }
 0x5af   :  { %v3433_v52 = vmul.f32 %v15222_v3, %v15259_v47  ;;  %v11465_v28 = vadd.f32 %v10322_v54, %v3430_v5  ;;  %v3942_v63 = vmul.f32 0.1, %v11416_v53  ;;  %v4194_v60 = vmax.f32 %v11371_v22, %v3938_v61  ;;  %4448 = vst.msk [vmem:[%s13162_s5 + $0x50] sm:$0xff] %vm1842_vm2, %v4192_v57 }
 0x5b0   :  { %v3434_v48 = vmul.f32 %v15222_v3, %v15260_v58  ;;  %v15261_v33 = vsub.f32 %v15205_v44, %v8847_v14  ;;  %v11478_v8 = vadd.f32 %v10322_v54, %v3431_v20  ;;  %v3943_v10 = vmul.f32 0.1, %v11428_v25  ;;  %4449 = vst.msk [vmem:[%s13162_s5 + $0x58] sm:$0xff] %vm1842_vm2, %v4193_v0 }
 0x5b1   :  { %v4195_v11 = vmax.f32 %v11382_v41, %v3939_v7  ;;  %v15262_v22 = vsub.f32 %v15206_v26, %v8847_v14  ;;  %v11491_v44 = vadd.f32 %v10322_v54, %v3432_v19  ;;  %v3944_v18 = vmul.f32 0.1, %v11440_v4  ;;  %4450 = vst.msk [vmem:[%s13162_s5 + $0x60] sm:$0xff] %vm1842_vm2, %v4194_v60 }
 0x5b2   :  { %v3435_v43 = vmul.f32 %v15222_v3, %v15261_v33  ;;  %v4196_v17 = vmax.f32 %v11393_v23, %v3940_v31  ;;  %v15263_v41 = vsub.f32 %v15207_v59, %v8847_v14  ;;  %v11504_v26 = vadd.f32 %v10322_v54, %v3433_v52 }
 0x5b3   :  { %v3436_v36 = vmul.f32 %v15222_v3, %v15262_v22  ;;  %v3945_v24 = vmul.f32 0.1, %v11452_v51  ;;  %v4197_v49 = vmax.f32 %v11404_v55, %v3941_v29  ;;  %v15264_v23 = vsub.f32 %v15208_v56, %v8847_v14  ;;  %4451 = vst.msk [vmem:[%s13162_s5 + $0x68] sm:$0xff] %vm1842_vm2, %v4195_v11 }
 0x5b4   :  { %v3437_v21 = vmul.f32 %v15222_v3, %v15263_v41  ;;  %v11517_v59 = vadd.f32 %v10322_v54, %v3434_v48  ;;  %v3946_v42 = vmul.f32 0.1, %v11465_v28  ;;  %v4198_v5 = vmax.f32 %v11416_v53, %v3942_v63  ;;  %4452 = vst.msk [vmem:[%s13162_s5 + $0x70] sm:$0xff] %vm1842_vm2, %v4196_v17 }
 0x5b5   :  { %v3438_v62 = vmul.f32 %v15222_v3, %v15264_v23  ;;  %v15265_v55 = vsub.f32 %v15209_v45, %v8847_v14  ;;  %v11530_v56 = vadd.f32 %v10322_v54, %v3435_v43  ;;  %v3947_v13 = vmul.f32 0.1, %v11478_v8  ;;  %4453 = vst.msk [vmem:[%s13162_s5 + $0x78] sm:$0xff] %vm1842_vm2, %v4197_v49 }
 0x5b6   :  { %v4199_v34 = vmax.f32 %v11428_v25, %v3943_v10  ;;  %v15266_v53 = vsub.f32 %v15210_v38, %v8847_v14  ;;  %v11543_v45 = vadd.f32 %v10322_v54, %v3436_v36  ;;  %v3948_v7 = vmul.f32 0.1, %v11491_v44  ;;  %4454 = vst.msk [vmem:[%s13162_s5 + $0x80] sm:$0xff] %vm1842_vm2, %v4198_v5 }
 0x5b7   :  { %v3439_v61 = vmul.f32 %v15222_v3, %v15265_v55  ;;  %v4200_v15 = vmax.f32 %v11440_v4, %v3944_v18  ;;  %v15267_v25 = vsub.f32 %v15211_v32, %v8847_v14  ;;  %v11556_v38 = vadd.f32 %v10322_v54, %v3437_v21 }
 0x5b8   :  { %v3440_v20 = vmul.f32 %v15222_v3, %v15266_v53  ;;  %v3949_v19 = vmul.f32 0.1, %v11504_v26  ;;  %v4201_v31 = vmax.f32 %v11452_v51, %v3945_v24  ;;  %v15268_v4 = vsub.f32 %v15212_v39, %v8847_v14  ;;  %4455 = vst.msk [vmem:[%s13162_s5 + $0x88] sm:$0xff] %vm1842_vm2, %v4199_v34 }
 0x5b9   :  { %v3441_v50 = vmul.f32 %v15222_v3, %v15267_v25  ;;  %v11569_v32 = vadd.f32 %v10322_v54, %v3438_v62  ;;  %v3950_v47 = vmul.f32 0.1, %v11517_v59  ;;  %v4202_v52 = vmax.f32 %v11465_v28, %v3946_v42  ;;  %4456 = vst.msk [vmem:[%s13162_s5 + $0x90] sm:$0xff] %vm1842_vm2, %v4200_v15 }
 0x5ba   :  { %v3442_v57 = vmul.f32 %v15222_v3, %v15268_v4  ;;  %v15269_v51 = vsub.f32 %v15213_v6, %v8847_v14  ;;  %v11582_v39 = vadd.f32 %v10322_v54, %v3439_v61  ;;  %v3951_v0 = vmul.f32 0.1, %v11530_v56  ;;  %4457 = vst.msk [vmem:[%s13162_s5 + $0x98] sm:$0xff] %vm1842_vm2, %v4201_v31 }
 0x5bb   :  { %v4203_v58 = vmax.f32 %v11478_v8, %v3947_v13  ;;  %v15270_v48 = vsub.f32 %v15214_v2, %v8847_v14  ;;  %v11595_v6 = vadd.f32 %v10322_v54, %v3440_v20  ;;  %v3952_v63 = vmul.f32 0.1, %v11543_v45  ;;  %4458 = vst.msk [vmem:[%s13162_s5 + $0xa0] sm:$0xff] %vm1842_vm2, %v4202_v52 }
 0x5bc   :  { %v3443_v29 = vmul.f32 %v15222_v3, %v15269_v51  ;;  %v4204_v60 = vmax.f32 %v11491_v44, %v3948_v7  ;;  %v15271_v33 = vsub.f32 %v15215_v30, %v8847_v14  ;;  %v11608_v2 = vadd.f32 %v10322_v54, %v3441_v50  ;;  %v15281_v51 = vld [vmem:[#allocation118_spill] sm:$0xff] }
 0x5bd   :  { %v3444_v28 = vmul.f32 %v15222_v3, %v15270_v48  ;;  %v3953_v8 = vmul.f32 0.1, %v11556_v38  ;;  %v4205_v10 = vmax.f32 %v11504_v26, %v3949_v19  ;;  %v15272_v11 = vsub.f32 %v15216_v12, %v8847_v14  ;;  %4459 = vst.msk [vmem:[%s13162_s5 + $0xa8] sm:$0xff] %vm1842_vm2, %v4203_v58  ;;  %v15283_v48 = vld [vmem:[#allocation119_spill] sm:$0xff] }
 0x5be   :  { %v3445_v43 = vmul.f32 %v15222_v3, %v15271_v33  ;;  %v11621_v30 = vadd.f32 %v10322_v54, %v3442_v57  ;;  %v3954_v36 = vmul.f32 0.1, %v11569_v32  ;;  %v4206_v44 = vmax.f32 %v11517_v59, %v3950_v47  ;;  %4460 = vst.msk [vmem:[%s13162_s5 + $0xb0] sm:$0xff] %vm1842_vm2, %v4204_v60 }
 0x5bf   :  { %v3446_v22 = vmul.f32 %v15222_v3, %v15272_v11  ;;  %v15273_v18 = vsub.f32 %v15217_v40, %v8847_v14  ;;  %v11634_v12 = vadd.f32 %v10322_v54, %v3443_v29  ;;  %v3955_v41 = vmul.f32 0.1, %v11582_v39  ;;  %4461 = vst.msk [vmem:[%s13162_s5 + $0xb8] sm:$0xff] %vm1842_vm2, %v4205_v10 }
 0x5c0   :  { %v4207_v21 = vmax.f32 %v11530_v56, %v3951_v0  ;;  %v15274_v26 = vsub.f32 %v15218_v35, %v8847_v14  ;;  %v11647_v40 = vadd.f32 %v10322_v54, %v3444_v28  ;;  %v3956_v49 = vmul.f32 0.1, %v11595_v6  ;;  %4462 = vst.msk [vmem:[%s13162_s5 + $0xc0] sm:$0xff] %vm1842_vm2, %v4206_v44 }
 0x5c1   :  { %v3447_v17 = vmul.f32 %v15222_v3, %v15273_v18  ;;  %v4208_v23 = vmax.f32 %v11543_v45, %v3952_v63  ;;  %v15275_v62 = vsub.f32 %v15219_v9, %v8847_v14  ;;  %v11660_v35 = vadd.f32 %v10322_v54, %v3445_v43  ;;  %v15285_v43 = vld [vmem:[#allocation121_spill] sm:$0xff] }
 0x5c2   :  { %v3448_v24 = vmul.f32 %v15222_v3, %v15274_v26  ;;  %v3957_v42 = vmul.f32 0.1, %v11608_v2  ;;  %v4209_v5 = vmax.f32 %v11556_v38, %v3953_v8  ;;  %v15276_v55 = vsub.f32 %v15220_v1, %v8847_v14  ;;  %4463 = vst.msk [vmem:[%s13162_s5 + $0xc8] sm:$0xff] %vm1842_vm2, %v4207_v21 }
 0x5c3   :  { %v3449_v59 = vmul.f32 %v15222_v3, %v15275_v62  ;;  %v11673_v9 = vadd.f32 %v10322_v54, %v3446_v22  ;;  %v3958_v56 = vmul.f32 0.1, %v11621_v30  ;;  %v4210_v13 = vmax.f32 %v11569_v32, %v3954_v36  ;;  %4464 = vst.msk [vmem:[%s13162_s5 + $0xd0] sm:$0xff] %vm1842_vm2, %v4208_v23  ;;  %v15291_v23 = vld [vmem:[#allocation124_spill] sm:$0xff] }
 0x5c4   :  { %v3450_v61 = vmul.f32 %v15222_v3, %v15276_v55  ;;  %v15277_v34 = vsub.f32 %v15221_v46, %v8847_v14  ;;  %v11686_v1 = vadd.f32 %v10322_v54, %v3447_v17  ;;  %v3959_v20 = vmul.f32 0.1, %v11634_v12  ;;  %4465 = vst.msk [vmem:[%s13162_s5 + $0xd8] sm:$0xff] %vm1842_vm2, %v4209_v5  ;;  %v15293_v55 = vld [vmem:[#allocation126_spill] sm:$0xff] }
 0x5c5   :  { %v4211_v45 = vmax.f32 %v11582_v39, %v3955_v41  ;;  %v15278_v7 = vsub.f32 %v15223_v27, %v8847_v14  ;;  %v11699_v46 = vadd.f32 %v10322_v54, %v3448_v24  ;;  %v3960_v25 = vmul.f32 0.1, %v11647_v40  ;;  %4466 = vst.msk [vmem:[%s13162_s5 + $0xe0] sm:$0xff] %vm1842_vm2, %v4210_v13  ;;  %v15289_v41 = vld [vmem:[#allocation123_spill] sm:$0xff] }
 0x5c6   :  { %v3451_v53 = vmul.f32 %v15222_v3, %v15277_v34  ;;  %v4212_v50 = vmax.f32 %v11595_v6, %v3956_v49  ;;  %v15279_v38 = vsub.f32 %v15224_v37, %v8847_v14  ;;  %v11712_v27 = vadd.f32 %v10322_v54, %v3449_v59 }
 0x5c7   :  { %v3452_v15 = vmul.f32 %v15222_v3, %v15278_v7  ;;  %v3961_v31 = vmul.f32 0.1, %v11660_v35  ;;  %v4213_v4 = vmax.f32 %v11608_v2, %v3957_v42  ;;  %v15280_v57 = vsub.f32 %v15225_v16, %v8847_v14  ;;  %4467 = vst.msk [vmem:[%s13162_s5 + $0xe8] sm:$0xff] %vm1842_vm2, %v4211_v45 }
 0x5c8   :  { %v3453_v19 = vmul.f32 %v15222_v3, %v15279_v38  ;;  %v11725_v37 = vadd.f32 %v10322_v54, %v3450_v61  ;;  %v3962_v47 = vmul.f32 0.1, %v11673_v9  ;;  %v4214_v52 = vmax.f32 %v11621_v30, %v3958_v56  ;;  %4468 = vst.msk [vmem:[%s13162_s5 + $0xf0] sm:$0xff] %vm1842_vm2, %v4212_v50  ;;  %v15287_v30 = vld [vmem:[#allocation122_spill] sm:$0xff] }
 0x5c9   :  { %v3454_v32 = vmul.f32 %v15222_v3, %v15280_v57  ;;  %v15282_v29 = vsub.f32 %v15281_v51, %v8847_v14  ;;  %v11738_v16 = vadd.f32 %v10322_v54, %v3451_v53  ;;  %v3963_v0 = vmul.f32 0.1, %v11686_v1  ;;  %4469 = vst.msk [vmem:[%s13162_s5 + $0xf8] sm:$0xff] %vm1842_vm2, %v4213_v4  ;;  %v15295_v53 = vld [vmem:[#allocation127_spill] sm:$0xff] }
 0x5ca   :  { %v4215_v58 = vmax.f32 %v11634_v12, %v3959_v20  ;;  %v15284_v28 = vsub.f32 %v15283_v48, %v8847_v14  ;;  %v11751_v63 = vadd.f32 %v10322_v54, %v3452_v15  ;;  %v3964_v60 = vmul.f32 0.1, %v11699_v46  ;;  %4470 = vst.msk [vmem:[%s13162_s5 + $0x100] sm:$0xff] %vm1842_vm2, %v4214_v52  ;;  %v15301_v52 = vld [vmem:[#allocation131_spill] sm:$0xff] }
 0x5cb   :  { %v3455_v39 = vmul.f32 %v15222_v3, %v15282_v29  ;;  %v4216_v33 = vmax.f32 %v11647_v40, %v3960_v25  ;;  %v15286_v2 = vsub.f32 %v15285_v43, %v8847_v14  ;;  %v11764_v10 = vadd.f32 %v10322_v54, %v3453_v19 }
 0x5cc   :  { %v3456_v6 = vmul.f32 %v15222_v3, %v15284_v28  ;;  %v3965_v11 = vmul.f32 0.1, %v11712_v27  ;;  %v4217_v22 = vmax.f32 %v11660_v35, %v3961_v31  ;;  %v15288_v36 = vsub.f32 %v15287_v30, %v8847_v14  ;;  %4471 = vst.msk [vmem:[%s13162_s5 + $0x108] sm:$0xff] %vm1842_vm2, %v4215_v58  ;;  %v15299_v31 = vld [vmem:[#allocation129_spill] sm:$0xff]  ;;  %v15303_v58 = vld [vmem:[#allocation132_spill] sm:$0xff] }
 0x5cd   :  { %v3457_v8 = vmul.f32 %v15222_v3, %v15286_v2  ;;  %v11777_v18 = vadd.f32 %v10322_v54, %v3454_v32  ;;  %v3966_v17 = vmul.f32 0.1, %v11725_v37  ;;  %v4218_v12 = vmax.f32 %v11673_v9, %v3962_v47  ;;  %4472 = vst.msk [vmem:[%s13162_s5 + $0x110] sm:$0xff] %vm1842_vm2, %v4216_v33  ;;  %v15305_v33 = vld [vmem:[#allocation133_spill] sm:$0xff] }
 0x5ce   :  { %v3458_v44 = vmul.f32 %v15222_v3, %v15288_v36  ;;  %v15290_v21 = vsub.f32 %v15289_v41, %v8847_v14  ;;  %v11790_v24 = vadd.f32 %v10322_v54, %v3455_v39  ;;  %v3967_v40 = vmul.f32 0.1, %v11738_v16  ;;  %4473 = vst.msk [vmem:[%s13162_s5 + $0x118] sm:$0xff] %vm1842_vm2, %v4217_v22  ;;  %v15307_v22 = vld [vmem:[#allocation134_spill] sm:$0xff] }
 0x5cf   :  { %v4219_v49 = vmax.f32 %v11686_v1, %v3963_v0  ;;  %v15292_v62 = vsub.f32 %v15291_v23, %v8847_v14  ;;  %v11803_v35 = vadd.f32 %v10322_v54, %v3456_v6  ;;  %v3968_v42 = vmul.f32 0.1, %v11751_v63  ;;  %4474 = vst.msk [vmem:[%s13162_s5 + $0x120] sm:$0xff] %vm1842_vm2, %v4218_v12  ;;  %v4974_v6 = vld [vmem:[%s13160_s4] ss:$0 sm:$0xff]  ;;  %v15309_v12 = vld [vmem:[#allocation136_spill] sm:$0xff] }
 0x5d0   :  { %v3459_v26 = vmul.f32 %v15222_v3, %v15290_v21  ;;  %v4220_v5 = vmax.f32 %v11699_v46, %v3964_v60  ;;  %v15294_v61 = vsub.f32 %v15293_v55, %v8847_v14  ;;  %v11816_v56 = vadd.f32 %v10322_v54, %v3457_v8  ;;  %v15297_v46 = vld [vmem:[#allocation128_spill] sm:$0xff] }
 0x5d1   :  { %v3460_v59 = vmul.f32 %v15222_v3, %v15292_v62  ;;  %v3969_v13 = vmul.f32 0.1, %v11764_v10  ;;  %v4221_v34 = vmax.f32 %v11712_v27, %v3965_v11  ;;  %v15296_v1 = vsub.f32 %v15295_v53, %v8847_v14  ;;  %4475 = vst.msk [vmem:[%s13162_s5 + $0x128] sm:$0xff] %vm1842_vm2, %v4219_v49  ;;  %v15311_v49 = vld [vmem:[#allocation137_spill] sm:$0xff] }
 0x5d2   :  { %v3461_v9 = vmul.f32 %v15222_v3, %v15294_v61  ;;  %v11829_v45 = vadd.f32 %v10322_v54, %v3458_v44  ;;  %v3970_v7 = vmul.f32 0.1, %v11777_v18  ;;  %v4222_v15 = vmax.f32 %v11725_v37, %v3966_v17  ;;  %4476 = vst.msk [vmem:[%s13162_s5 + $0x130] sm:$0xff] %vm1842_vm2, %v4220_v5  ;;  %v15313_v5 = vld [vmem:[#allocation138_spill] sm:$0xff] }
 0x5d3   :  { %v3462_v20 = vmul.f32 %v15222_v3, %v15296_v1  ;;  %v15298_v25 = vsub.f32 %v15297_v46, %v8847_v14  ;;  %v3719_v38 = vadd.f32 %v10322_v54, %v3459_v26  ;;  %v3971_v19 = vmul.f32 0.1, %v11790_v24  ;;  %4477 = vst.msk [vmem:[%s13162_s5 + $0x138] sm:$0xff] %vm1842_vm2, %v4221_v34  ;;  %v15315_v34 = vld [vmem:[#allocation139_spill] sm:$0xff] }
 0x5d4   :  { %v4223_v27 = vmax.f32 %v11738_v16, %v3967_v40  ;;  %v15300_v4 = vsub.f32 %v15299_v31, %v8847_v14  ;;  %v3720_v32 = vadd.f32 %v10322_v54, %v3460_v59  ;;  %v3972_v37 = vmul.f32 0.1, %v11803_v35  ;;  %4478 = vst.msk [vmem:[%s13162_s5 + $0x140] sm:$0xff] %vm1842_vm2, %v4222_v15 }
 0x5d5   :  { %v3463_v50 = vmul.f32 %v15222_v3, %v15298_v25  ;;  %v4224_v47 = vmax.f32 %v11751_v63, %v3968_v42  ;;  %v15302_v51 = vsub.f32 %v15301_v52, %v8847_v14  ;;  %v3721_v39 = vadd.f32 %v10322_v54, %v3461_v9 }
 0x5d6   :  { %v3464_v57 = vmul.f32 %v15222_v3, %v15300_v4  ;;  %v3973_v16 = vmul.f32 0.1, %v11816_v56  ;;  %v4225_v0 = vmax.f32 %v11764_v10, %v3969_v13  ;;  %v15304_v48 = vsub.f32 %v15303_v58, %v8847_v14  ;;  %4479 = vst.msk [vmem:[%s13162_s5 + $0x148] sm:$0xff] %vm1842_vm2, %v4223_v27 }
 0x5d7   :  { %v3465_v29 = vmul.f32 %v15222_v3, %v15302_v51  ;;  %v3722_v63 = vadd.f32 %v4974_v6, %v3462_v20  ;;  %v3974_v54 = vmul.f32 0.1, %v11829_v45  ;;  %v4226_v60 = vmax.f32 %v11777_v18, %v3970_v7  ;;  %4480 = vst.msk [vmem:[%s13162_s5 + $0x150] sm:$0xff] %vm1842_vm2, %v4224_v47 }
 0x5d8   :  { %v3466_v28 = vmul.f32 %v15222_v3, %v15304_v48  ;;  %v15306_v43 = vsub.f32 %v15305_v33, %v8847_v14  ;;  %v3723_v8 = vadd.f32 %v4974_v6, %v3463_v50  ;;  %v3975_v10 = vmul.f32 0.1, %v3719_v38  ;;  %4481 = vst.msk [vmem:[%s13162_s5 + $0x158] sm:$0xff] %vm1842_vm2, %v4225_v0  ;;  %v15317_v0 = vld [vmem:[#allocation217_spill] sm:$0xff] }
 0x5d9   :  { %v4227_v11 = vmax.f32 %v11790_v24, %v3971_v19  ;;  %v15308_v30 = vsub.f32 %v15307_v22, %v8847_v14  ;;  %v3724_v44 = vadd.f32 %v4974_v6, %v3464_v57  ;;  %v3976_v18 = vmul.f32 0.1, %v3720_v32  ;;  %4482 = vst.msk [vmem:[%s13162_s5 + $0x160] sm:$0xff] %vm1842_vm2, %v4226_v60 }
 0x5da   :  { %v3467_v2 = vmul.f32 %v15222_v3, %v15306_v43  ;;  %v4228_v17 = vmax.f32 %v11803_v35, %v3972_v37  ;;  %v15310_v41 = vsub.f32 %v15309_v12, %v8847_v14  ;;  %v3725_v26 = vadd.f32 %v4974_v6, %v3465_v29  ;;  %v15320_v43 = vld [vmem:[#allocation54_spill] sm:$0xff] }
 0x5db   :  { %v3468_v36 = vmul.f32 %v15222_v3, %v15308_v30  ;;  %v3977_v24 = vmul.f32 0.1, %v3721_v39  ;;  %v4229_v40 = vmax.f32 %v11816_v56, %v3973_v16  ;;  %v15312_v23 = vsub.f32 %v15311_v49, %v8847_v14  ;;  %4483 = vst.msk [vmem:[%s13162_s5 + $0x168] sm:$0xff] %vm1842_vm2, %v4227_v11  ;;  %v15322_v30 = vld [vmem:[#allocation63_spill] sm:$0xff] }
 0x5dc   :  { %v3469_v21 = vmul.f32 %v15222_v3, %v15310_v41  ;;  %v3726_v59 = vadd.f32 %v4974_v6, %v3466_v28  ;;  %v3978_v35 = vmul.f32 0.1, %v3722_v63  ;;  %v4230_v42 = vmax.f32 %v11829_v45, %v3974_v54  ;;  %4484 = vst.msk [vmem:[%s13162_s5 + $0x170] sm:$0xff] %vm1842_vm2, %v4228_v17  ;;  %v15318_v28 = vld [vmem:[#allocation218_spill] sm:$0xff]  ;;  %v15319_v54 = vld [vmem:[#allocation51_spill] sm:$0xff] }
 0x5dd   :  { %v3470_v62 = vmul.f32 %v15222_v3, %v15312_v23  ;;  %v15314_v55 = vsub.f32 %v15313_v5, %v8847_v14  ;;  %v3727_v9 = vadd.f32 %v4974_v6, %v3467_v2  ;;  %v3979_v56 = vmul.f32 0.1, %v3723_v8  ;;  %4485 = vst.msk [vmem:[%s13162_s5 + $0x178] sm:$0xff] %vm1842_vm2, %v4229_v40  ;;  %v15324_v41 = vld [vmem:[#allocation75_spill] sm:$0xff]  ;;  %v15326_v23 = vld [vmem:[#allocation85_spill] sm:$0xff] }
 0x5de   :  { %v4231_v13 = vmax.f32 %v3719_v38, %v3975_v10  ;;  %v15316_v53 = vsub.f32 %v15315_v34, %v8847_v14  ;;  %v3728_v20 = vadd.f32 %v4974_v6, %v3468_v36  ;;  %v3980_v45 = vmul.f32 0.1, %v3724_v44  ;;  %4486 = vst.msk [vmem:[%s13162_s5 + $0x180] sm:$0xff] %vm1842_vm2, %v4230_v42  ;;  %v15321_v10 = vld [vmem:[#allocation57_spill] sm:$0xff] }
 0x5df   :  { %v3471_v61 = vmul.f32 %v15222_v3, %v15314_v55  ;;  %v4232_v7 = vmax.f32 %v3720_v32, %v3976_v18  ;;  %v3729_v15 = vadd.f32 %v4974_v6, %v3469_v21  ;;  %v3981_v46 = vmul.f32 0.1, %v3725_v26  ;;  %v15323_v18 = vld [vmem:[#allocation70_spill] sm:$0xff]  ;;  %v15328_v55 = vld [vmem:[#allocation95_spill] sm:$0xff] }
 0x5e0   :  { %v3472_v1 = vmul.f32 %v15222_v3, %v15316_v53  ;;  %v4233_v25 = vmax.f32 %v3721_v39, %v3977_v24  ;;  %v3730_v50 = vadd.f32 %v4974_v6, %v3470_v62  ;;  %v3982_v14 = vmul.f32 0.1, %v3726_v59  ;;  %4487 = vst.msk [vmem:[%s13162_s5 + $0x188] sm:$0xff] %vm1842_vm2, %v4231_v13  ;;  %v15325_v24 = vld [vmem:[#allocation80_spill] sm:$0xff]  ;;  %v15330_v53 = vld [vmem:[#allocation105_spill] sm:$0xff] }
 0x5e1   :  { %v4234_v38 = vmax.f32 %v3722_v63, %v3978_v35  ;;  %v3731_v3 = vadd.f32 %v4974_v6, %v3471_v61  ;;  %v3983_v19 = vmul.f32 0.1, %v3727_v9  ;;  %v4235_v27 = vmax.f32 %v3723_v8, %v3979_v56  ;;  %4488 = vst.msk [vmem:[%s13162_s5 + $0x190] sm:$0xff] %vm1842_vm2, %v4232_v7  ;;  %v15327_v35 = vld [vmem:[#allocation90_spill] sm:$0xff]  ;;  %v15329_v56 = vld [vmem:[#allocation100_spill] sm:$0xff] }
 0x5e2   :  { %v3732_v31 = vadd.f32 %v4974_v6, %v3472_v1  ;;  %v3984_v4 = vmul.f32 0.1, %v3728_v20  ;;  %v4236_v57 = vmax.f32 %v3724_v44, %v3980_v45  ;;  %v3985_v32 = vmul.f32 0.1, %v3729_v15  ;;  %4489 = vst.msk [vmem:[%s13162_s5 + $0x198] sm:$0xff] %vm1842_vm2, %v4233_v25  ;;  %v15331_v45 = vld [vmem:[#allocation110_spill] sm:$0xff] }
 0x5e3   :  { %v4237_v37 = vmax.f32 %v3725_v26, %v3981_v46  ;;  %v3986_v47 = vmul.f32 0.1, %v3730_v50  ;;  %v4238_v52 = vmax.f32 %v3726_v59, %v3982_v14  ;;  %4490 = vst.msk [vmem:[%s13162_s5 + $0x1a0] sm:$0xff] %vm1842_vm2, %v4234_v38  ;;  %v3987_v51 = vmul.f32 0.1, %v3731_v3  ;;  %v15332_v46 = vld [vmem:[#allocation115_spill] sm:$0xff] }
 0x5e4   :  { %v4239_v29 = vmax.f32 %v3727_v9, %v3983_v19  ;;  %4491 = vst.msk [vmem:[%s13162_s5 + $0x1a8] sm:$0xff] %vm1842_vm2, %v4235_v27  ;;  %v3988_v39 = vmul.f32 0.1, %v3732_v31  ;;  %v4240_v16 = vmax.f32 %v3728_v20, %v3984_v4  ;;  %v3989_v58 = vmul.f32 0.1, %v15317_v0  ;;  %v15333_v14 = vld [vmem:[#allocation120_spill] sm:$0xff] }
 0x5e5   :  { %4492 = vst.msk [vmem:[%s13162_s5 + $0x1b0] sm:$0xff] %vm1842_vm2, %v4236_v57  ;;  %v4241_v48 = vmax.f32 %v3729_v15, %v3985_v32  ;;  %v3990_v6 = vmul.f32 0.1, %v15318_v28  ;;  %v4242_v63 = vmax.f32 %v3730_v50, %v3986_v47  ;;  %v3991_v60 = vmul.f32 0.1, %v15319_v54  ;;  %v15334_v19 = vld [vmem:[#allocation125_spill] sm:$0xff] }
 0x5e6   :  { %4493 = vst.msk [vmem:[%s13162_s5 + $0x1b8] sm:$0xff] %vm1842_vm2, %v4237_v37  ;;  %v4243_v33 = vmax.f32 %v3731_v3, %v3987_v51  ;;  %v3992_v2 = vmul.f32 0.1, %v15320_v43  ;;  %v4244_v8 = vmax.f32 %v3732_v31, %v3988_v39  ;;  %v3993_v11 = vmul.f32 0.1, %v15321_v10  ;;  %v15335_v4 = vld [vmem:[#allocation130_spill] sm:$0xff] }
 0x5e7   :  { %4494 = vst.msk [vmem:[%s13162_s5 + $0x1c0] sm:$0xff] %vm1842_vm2, %v4238_v52  ;;  %v4245_v22 = vmax.f32 %v15317_v0, %v3989_v58  ;;  %v3994_v36 = vmul.f32 0.1, %v15322_v30  ;;  %v4246_v44 = vmax.f32 %v15318_v28, %v3990_v6  ;;  %v3995_v17 = vmul.f32 0.1, %v15323_v18  ;;  %v15336_v37 = vld [vmem:[#allocation145_spill] sm:$0xff] }
 0x5e8   :  { %4495 = vst.msk [vmem:[%s13162_s5 + $0x1c8] sm:$0xff] %vm1842_vm2, %v4239_v29  ;;  %v4247_v12 = vmax.f32 %v15319_v54, %v3991_v60  ;;  %v3996_v21 = vmul.f32 0.1, %v15324_v41  ;;  %v4248_v26 = vmax.f32 %v15320_v43, %v3992_v2  ;;  %v3997_v40 = vmul.f32 0.1, %v15325_v24  ;;  %v15337_v51 = vld [vmem:[#allocation148_spill] sm:$0xff] }
 0x5e9   :  { %4496 = vst.msk [vmem:[%s13162_s5 + $0x1d0] sm:$0xff] %vm1842_vm2, %v4240_v16  ;;  %v4249_v49 = vmax.f32 %v15321_v10, %v3993_v11  ;;  %v3998_v62 = vmul.f32 0.1, %v15326_v23  ;;  %v4250_v59 = vmax.f32 %v15322_v30, %v3994_v36  ;;  %v3999_v42 = vmul.f32 0.1, %v15327_v35  ;;  %v15338_v16 = vld [vmem:[#allocation149_spill] sm:$0xff] }
 0x5ea   :  { %4497 = vst.msk [vmem:[%s13162_s5 + $0x1d8] sm:$0xff] %vm1842_vm2, %v4241_v48  ;;  %v4251_v5 = vmax.f32 %v15323_v18, %v3995_v17  ;;  %v4000_v61 = vmul.f32 0.1, %v15328_v55  ;;  %v4252_v9 = vmax.f32 %v15324_v41, %v3996_v21  ;;  %v4001_v13 = vmul.f32 0.1, %v15329_v56  ;;  %v15339_v48 = vld [vmem:[#allocation150_spill] sm:$0xff] }
 0x5eb   :  { %4498 = vst.msk [vmem:[%s13162_s5 + $0x1e0] sm:$0xff] %vm1842_vm2, %v4242_v63  ;;  %v4253_v34 = vmax.f32 %v15325_v24, %v3997_v40  ;;  %v4002_v1 = vmul.f32 0.1, %v15330_v53  ;;  %v4254_v20 = vmax.f32 %v15326_v23, %v3998_v62  ;;  %v4003_v7 = vmul.f32 0.1, %v15331_v45  ;;  %v15340_v63 = vld [vmem:[#allocation152_spill] sm:$0xff] }
 0x5ec   :  { %4499 = vst.msk [vmem:[%s13162_s5 + $0x1e8] sm:$0xff] %vm1842_vm2, %v4243_v33  ;;  %v4255_v15 = vmax.f32 %v15327_v35, %v3999_v42  ;;  %v4004_v25 = vmul.f32 0.1, %v15332_v46  ;;  %v4256_v50 = vmax.f32 %v15328_v55, %v4000_v61  ;;  %v4005_v38 = vmul.f32 0.1, %v15333_v14  ;;  %v15341_v33 = vld [vmem:[#allocation222_spill] sm:$0xff] }
 0x5ed   :  { %4500 = vst.msk [vmem:[%s13162_s5 + $0x1f0] sm:$0xff] %vm1842_vm2, %v4244_v8  ;;  %v4257_v3 = vmax.f32 %v15329_v56, %v4001_v13  ;;  %v4006_v27 = vmul.f32 0.1, %v15334_v19  ;;  %v4258_v31 = vmax.f32 %v15330_v53, %v4002_v1  ;;  %v4007_v57 = vmul.f32 0.1, %v15335_v4  ;;  %v15342_v8 = vld [vmem:[#allocation181_spill] sm:$0xff] }
 0x5ee   :  { %4501 = vst.msk [vmem:[%s13162_s5 + $0x1f8] sm:$0xff] %vm1842_vm2, %v4245_v22  ;;  %v4259_v32 = vmax.f32 %v15331_v45, %v4003_v7  ;;  %v4008_v47 = vmul.f32 0.1, %v15336_v37  ;;  %v4260_v52 = vmax.f32 %v15332_v46, %v4004_v25  ;;  %v4009_v29 = vmul.f32 0.1, %v15337_v51  ;;  %v15343_v22 = vld [vmem:[#allocation224_spill] sm:$0xff] }
 0x5ef   :  { %4502 = vst.msk [vmem:[%s13162_s5 + $0x200] sm:$0xff] %vm1842_vm2, %v4246_v44  ;;  %v4261_v39 = vmax.f32 %v15333_v14, %v4005_v38  ;;  %v4010_v0 = vmul.f32 0.1, %v15338_v16  ;;  %v4262_v58 = vmax.f32 %v15334_v19, %v4006_v27  ;;  %v4011_v28 = vmul.f32 0.1, %v15339_v48  ;;  %v15344_v44 = vld [vmem:[#allocation225_spill] sm:$0xff] }
 0x5f0   :  { %4503 = vst.msk [vmem:[%s13162_s5 + $0x208] sm:$0xff] %vm1842_vm2, %v4247_v12  ;;  %v4263_v6 = vmax.f32 %v15335_v4, %v4007_v57  ;;  %v4012_v54 = vmul.f32 0.1, %v15340_v63  ;;  %v4264_v60 = vmax.f32 %v15336_v37, %v4008_v47  ;;  %v4013_v43 = vmul.f32 0.1, %v15341_v33  ;;  %v15345_v12 = vld [vmem:[#allocation226_spill] sm:$0xff] }
 0x5f1   :  { %4504 = vst.msk [vmem:[%s13162_s5 + $0x210] sm:$0xff] %vm1842_vm2, %v4248_v26  ;;  %v4265_v2 = vmax.f32 %v15337_v51, %v4009_v29  ;;  %v4014_v10 = vmul.f32 0.1, %v15342_v8  ;;  %v4266_v11 = vmax.f32 %v15338_v16, %v4010_v0  ;;  %v4015_v30 = vmul.f32 0.1, %v15343_v22  ;;  %v15346_v26 = vld [vmem:[#allocation227_spill] sm:$0xff] }
 0x5f2   :  { %4505 = vst.msk [vmem:[%s13162_s5 + $0x218] sm:$0xff] %vm1842_vm2, %v4249_v49  ;;  %v4267_v36 = vmax.f32 %v15339_v48, %v4011_v28  ;;  %v4016_v18 = vmul.f32 0.1, %v15344_v44  ;;  %v4268_v17 = vmax.f32 %v15340_v63, %v4012_v54  ;;  %v4017_v41 = vmul.f32 0.1, %v15345_v12  ;;  %v15347_v49 = vld [vmem:[#allocation228_spill] sm:$0xff] }
 0x5f3   :  { %4506 = vst.msk [vmem:[%s13162_s5 + $0x220] sm:$0xff] %vm1842_vm2, %v4250_v59  ;;  %v4269_v21 = vmax.f32 %v15341_v33, %v4013_v43  ;;  %v4018_v24 = vmul.f32 0.1, %v15346_v26  ;;  %v4270_v40 = vmax.f32 %v15342_v8, %v4014_v10  ;;  %v4019_v23 = vmul.f32 0.1, %v15347_v49  ;;  %v15348_v59 = vld [vmem:[#allocation229_spill] sm:$0xff] }
 0x5f4   :  { %4507 = vst.msk [vmem:[%s13162_s5 + $0x228] sm:$0xff] %vm1842_vm2, %v4251_v5  ;;  %v4271_v62 = vmax.f32 %v15343_v22, %v4015_v30  ;;  %v4020_v35 = vmul.f32 0.1, %v15348_v59  ;;  %v4272_v42 = vmax.f32 %v15344_v44, %v4016_v18  ;;  %v15349_v5 = vld [vmem:[#allocation230_spill] sm:$0xff]  ;;  %v4273_v61 = vmax.f32 %v15345_v12, %v4017_v41 }
 0x5f5   :  { %4508 = vst.msk [vmem:[%s13162_s5 + $0x230] sm:$0xff] %vm1842_vm2, %v4252_v9  ;;  %v4021_v55 = vmul.f32 0.1, %v15349_v5  ;;  %v15350_v9 = vld [vmem:[#allocation231_spill] sm:$0xff]  ;;  %v4274_v13 = vmax.f32 %v15346_v26, %v4018_v24  ;;  %v4275_v1 = vmax.f32 %v15347_v49, %v4019_v23 }
 0x5f6   :  { %4509 = vst.msk [vmem:[%s13162_s5 + $0x238] sm:$0xff] %vm1842_vm2, %v4253_v34  ;;  %v4022_v56 = vmul.f32 0.1, %v15350_v9  ;;  %v15351_v34 = vld [vmem:[#allocation232_spill] sm:$0xff]  ;;  %v4276_v7 = vmax.f32 %v15348_v59, %v4020_v35 }
 0x5f7   :  { %4510 = vst.msk [vmem:[%s13162_s5 + $0x240] sm:$0xff] %vm1842_vm2, %v4254_v20  ;;  %v4023_v53 = vmul.f32 0.1, %v15351_v34  ;;  %v15352_v20 = vld [vmem:[#allocation233_spill] sm:$0xff]  ;;  %v4277_v25 = vmax.f32 %v15349_v5, %v4021_v55 }
 0x5f8   :  { %4511 = vst.msk [vmem:[%s13162_s5 + $0x248] sm:$0xff] %vm1842_vm2, %v4255_v15  ;;  %v4024_v45 = vmul.f32 0.1, %v15352_v20  ;;  %v15353_v15 = vld [vmem:[#allocation141_spill] sm:$0xff]  ;;  %v4278_v38 = vmax.f32 %v15350_v9, %v4022_v56 }
 0x5f9   :  { %4512 = vst.msk [vmem:[%s13162_s5 + $0x250] sm:$0xff] %vm1842_vm2, %v4256_v50  ;;  %v4025_v46 = vmul.f32 0.1, %v15353_v15  ;;  %v15354_v50 = vld [vmem:[#allocation2_spill] sm:$0xff]  ;;  %v4279_v27 = vmax.f32 %v15351_v34, %v4023_v53 }
 0x5fa   :  { %4513 = vst.msk [vmem:[%s13162_s5 + $0x258] sm:$0xff] %vm1842_vm2, %v4257_v3  ;;  %v4026_v14 = vmul.f32 0.1, %v15354_v50  ;;  %v15355_v3 = vld [vmem:[#allocation3_spill] sm:$0xff]  ;;  %v4280_v57 = vmax.f32 %v15352_v20, %v4024_v45 }
 0x5fb   :  { %4514 = vst.msk [vmem:[%s13162_s5 + $0x260] sm:$0xff] %vm1842_vm2, %v4258_v31  ;;  %v4027_v19 = vmul.f32 0.1, %v15355_v3  ;;  %v15356_v31 = vld [vmem:[#allocation4_spill] sm:$0xff]  ;;  %v4281_v47 = vmax.f32 %v15353_v15, %v4025_v46 }
 0x5fc   :  { %4515 = vst.msk [vmem:[%s13162_s5 + $0x268] sm:$0xff] %vm1842_vm2, %v4259_v32  ;;  %v4028_v4 = vmul.f32 0.1, %v15356_v31  ;;  %v15357_v32 = vld [vmem:[#allocation5_spill] sm:$0xff]  ;;  %v4282_v29 = vmax.f32 %v15354_v50, %v4026_v14 }
 0x5fd   :  { %4516 = vst.msk [vmem:[%s13162_s5 + $0x270] sm:$0xff] %vm1842_vm2, %v4260_v52  ;;  %v4029_v37 = vmul.f32 0.1, %v15357_v32  ;;  %v15358_v52 = vld [vmem:[#allocation6_spill] sm:$0xff]  ;;  %v4283_v0 = vmax.f32 %v15355_v3, %v4027_v19 }
 0x5fe   :  { %4517 = vst.msk [vmem:[%s13162_s5 + $0x278] sm:$0xff] %vm1842_vm2, %v4261_v39  ;;  %v4030_v51 = vmul.f32 0.1, %v15358_v52  ;;  %v15359_v39 = vld [vmem:[#allocation19_spill] sm:$0xff]  ;;  %v4284_v28 = vmax.f32 %v15356_v31, %v4028_v4 }
 0x5ff   :  { %4518 = vst.msk [vmem:[%s13162_s5 + $0x280] sm:$0xff] %vm1842_vm2, %v4262_v58  ;;  %v4031_v16 = vmul.f32 0.1, %v15359_v39  ;;  %v15360_v58 = vld [vmem:[#allocation31_spill] sm:$0xff]  ;;  %v4285_v54 = vmax.f32 %v15357_v32, %v4029_v37 }
 0x600   :  { %4519 = vst.msk [vmem:[%s13162_s5 + $0x288] sm:$0xff] %vm1842_vm2, %v4263_v6  ;;  %v4032_v48 = vmul.f32 0.1, %v15360_v58  ;;  %v15361_v6 = vld [vmem:[#allocation38_spill] sm:$0xff]  ;;  %v4286_v43 = vmax.f32 %v15358_v52, %v4030_v51 }
 0x601   :  { %4520 = vst.msk [vmem:[%s13162_s5 + $0x290] sm:$0xff] %vm1842_vm2, %v4264_v60  ;;  %v4033_v63 = vmul.f32 0.1, %v15361_v6  ;;  %v15362_v60 = vld [vmem:[#allocation42_spill] sm:$0xff]  ;;  %v4287_v10 = vmax.f32 %v15359_v39, %v4031_v16 }
 0x602   :  { %4521 = vst.msk [vmem:[%s13162_s5 + $0x298] sm:$0xff] %vm1842_vm2, %v4265_v2  ;;  %v4034_v33 = vmul.f32 0.1, %v15362_v60  ;;  %v15363_v2 = vld [vmem:[#allocation46_spill] sm:$0xff]  ;;  %v4288_v30 = vmax.f32 %v15360_v58, %v4032_v48 }
 0x603   :  { %4522 = vst.msk [vmem:[%s13162_s5 + $0x2a0] sm:$0xff] %vm1842_vm2, %v4266_v11  ;;  %v4035_v8 = vmul.f32 0.1, %v15363_v2  ;;  %v15364_v11 = vld [vmem:[#allocation48_spill] sm:$0xff]  ;;  %v4289_v18 = vmax.f32 %v15361_v6, %v4033_v63 }
 0x604   :  { %4523 = vst.msk [vmem:[%s13162_s5 + $0x2a8] sm:$0xff] %vm1842_vm2, %v4267_v36  ;;  %v4036_v22 = vmul.f32 0.1, %v15364_v11  ;;  %v15365_v36 = vld [vmem:[#allocation56_spill] sm:$0xff]  ;;  %v4290_v41 = vmax.f32 %v15362_v60, %v4034_v33 }
 0x605   :  { %4524 = vst.msk [vmem:[%s13162_s5 + $0x2b0] sm:$0xff] %vm1842_vm2, %v4268_v17  ;;  %v4037_v44 = vmul.f32 0.1, %v15365_v36  ;;  %v15366_v17 = vld [vmem:[#allocation182_spill] sm:$0xff]  ;;  %v4291_v24 = vmax.f32 %v15363_v2, %v4035_v8 }
 0x606   :  { %4525 = vst.msk [vmem:[%s13162_s5 + $0x2b8] sm:$0xff] %vm1842_vm2, %v4269_v21  ;;  %v4038_v12 = vmul.f32 0.1, %v15366_v17  ;;  %v15367_v21 = vld [vmem:[#allocation183_spill] sm:$0xff]  ;;  %v4292_v23 = vmax.f32 %v15364_v11, %v4036_v22 }
 0x607   :  { %4526 = vst.msk [vmem:[%s13162_s5 + $0x2c0] sm:$0xff] %vm1842_vm2, %v4270_v40  ;;  %v4039_v26 = vmul.f32 0.1, %v15367_v21  ;;  %v15368_v40 = vld [vmem:[#allocation186_spill] sm:$0xff]  ;;  %v4293_v35 = vmax.f32 %v15365_v36, %v4037_v44 }
 0x608   :  { %4527 = vst.msk [vmem:[%s13162_s5 + $0x2c8] sm:$0xff] %vm1842_vm2, %v4271_v62  ;;  %v4040_v49 = vmul.f32 0.1, %v15368_v40  ;;  %v15369_v62 = vld [vmem:[#allocation187_spill] sm:$0xff]  ;;  %v4294_v55 = vmax.f32 %v15366_v17, %v4038_v12 }
 0x609   :  { %4528 = vst.msk [vmem:[%s13162_s5 + $0x2d0] sm:$0xff] %vm1842_vm2, %v4272_v42  ;;  %v4041_v59 = vmul.f32 0.1, %v15369_v62  ;;  %v15370_v42 = vld [vmem:[#allocation194_spill] sm:$0xff]  ;;  %v4295_v56 = vmax.f32 %v15367_v21, %v4039_v26 }
 0x60a   :  { %4529 = vst.msk [vmem:[%s13162_s5 + $0x2d8] sm:$0xff] %vm1842_vm2, %v4273_v61  ;;  %v4042_v5 = vmul.f32 0.1, %v15370_v42  ;;  %v15371_v61 = vld [vmem:[#allocation196_spill] sm:$0xff]  ;;  %v4296_v53 = vmax.f32 %v15368_v40, %v4040_v49 }
 0x60b   :  { %4530 = vst.msk [vmem:[%s13162_s5 + $0x2e0] sm:$0xff] %vm1842_vm2, %v4274_v13  ;;  %v4043_v9 = vmul.f32 0.1, %v15371_v61  ;;  %v15372_v13 = vld [vmem:[#allocation135_spill] sm:$0xff]  ;;  %v4297_v45 = vmax.f32 %v15369_v62, %v4041_v59 }
 0x60c   :  { %4531 = vst.msk [vmem:[%s13162_s5 + $0x2e8] sm:$0xff] %vm1842_vm2, %v4275_v1  ;;  %v4044_v34 = vmul.f32 0.1, %v15372_v13  ;;  %v15373_v1 = vld [vmem:[#allocation140_spill] sm:$0xff]  ;;  %v4298_v46 = vmax.f32 %v15370_v42, %v4042_v5 }
 0x60d   :  { %4532 = vst.msk [vmem:[%s13162_s5 + $0x2f0] sm:$0xff] %vm1842_vm2, %v4276_v7  ;;  %v4045_v20 = vmul.f32 0.1, %v15373_v1  ;;  %v15374_v7 = vld [vmem:[#allocation143_spill] sm:$0xff]  ;;  %v4299_v14 = vmax.f32 %v15371_v61, %v4043_v9 }
 0x60e   :  { %4533 = vst.msk [vmem:[%s13162_s5 + $0x2f8] sm:$0xff] %vm1842_vm2, %v4277_v25  ;;  %v4046_v15 = vmul.f32 0.1, %v15374_v7  ;;  %v15375_v25 = vld [vmem:[#allocation144_spill] sm:$0xff]  ;;  %v4300_v19 = vmax.f32 %v15372_v13, %v4044_v34 }
 0x60f   :  { %4534 = vst.msk [vmem:[%s13162_s5 + $0x300] sm:$0xff] %vm1842_vm2, %v4278_v38  ;;  %v4047_v50 = vmul.f32 0.1, %v15375_v25  ;;  %v15376_v38 = vld [vmem:[#allocation146_spill] sm:$0xff]  ;;  %v4301_v4 = vmax.f32 %v15373_v1, %v4045_v20 }
 0x610   :  { %4535 = vst.msk [vmem:[%s13162_s5 + $0x308] sm:$0xff] %vm1842_vm2, %v4279_v27  ;;  %v4048_v3 = vmul.f32 0.1, %v15376_v38  ;;  %v15377_v27 = vld [vmem:[#allocation147_spill] sm:$0xff]  ;;  %v4302_v37 = vmax.f32 %v15374_v7, %v4046_v15 }
 0x611   :  { %4536 = vst.msk [vmem:[%s13162_s5 + $0x310] sm:$0xff] %vm1842_vm2, %v4280_v57  ;;  %v4049_v31 = vmul.f32 0.1, %v15377_v27  ;;  %v15378_v57 = vld [vmem:[#allocation219_spill] sm:$0xff]  ;;  %v4303_v51 = vmax.f32 %v15375_v25, %v4047_v50 }
 0x612   :  { %4537 = vst.msk [vmem:[%s13162_s5 + $0x318] sm:$0xff] %vm1842_vm2, %v4281_v47  ;;  %v4050_v32 = vmul.f32 0.1, %v15378_v57  ;;  %v15379_v47 = vld [vmem:[#allocation220_spill] sm:$0xff]  ;;  %v4304_v16 = vmax.f32 %v15376_v38, %v4048_v3 }
 0x613   :  { %4538 = vst.msk [vmem:[%s13162_s5 + $0x320] sm:$0xff] %vm1842_vm2, %v4282_v29  ;;  %v4051_v52 = vmul.f32 0.1, %v15379_v47  ;;  %v15380_v29 = vld [vmem:[#allocation221_spill] sm:$0xff]  ;;  %v4305_v48 = vmax.f32 %v15377_v27, %v4049_v31 }
 0x614   :  { %4539 = vst.msk [vmem:[%s13162_s5 + $0x328] sm:$0xff] %vm1842_vm2, %v4283_v0  ;;  %v4052_v39 = vmul.f32 0.1, %v15380_v29  ;;  %v15381_v0 = vld [vmem:[#allocation180_spill] sm:$0xff]  ;;  %v4306_v63 = vmax.f32 %v15378_v57, %v4050_v32 }
 0x615   :  { %4540 = vst.msk [vmem:[%s13162_s5 + $0x330] sm:$0xff] %vm1842_vm2, %v4284_v28  ;;  %v4053_v58 = vmul.f32 0.1, %v15381_v0  ;;  %v15382_v28 = vld [vmem:[#allocation223_spill] sm:$0xff]  ;;  %v4307_v33 = vmax.f32 %v15379_v47, %v4051_v52 }
 0x616   :  { %4541 = vst.msk [vmem:[%s13162_s5 + $0x338] sm:$0xff] %vm1842_vm2, %v4285_v54  ;;  %v4054_v6 = vmul.f32 0.1, %v15382_v28  ;;  %v15383_v54 = vld [vmem:[#allocation234_spill] sm:$0xff]  ;;  %v4308_v8 = vmax.f32 %v15380_v29, %v4052_v39 }
 0x617   :  { %4542 = vst.msk [vmem:[%s13162_s5 + $0x340] sm:$0xff] %vm1842_vm2, %v4286_v43  ;;  %v4055_v60 = vmul.f32 0.1, %v15383_v54  ;;  %v15384_v43 = vld [vmem:[#allocation235_spill] sm:$0xff]  ;;  %v4309_v22 = vmax.f32 %v15381_v0, %v4053_v58 }
 0x618   :  { %4543 = vst.msk [vmem:[%s13162_s5 + $0x348] sm:$0xff] %vm1842_vm2, %v4287_v10  ;;  %v4056_v2 = vmul.f32 0.1, %v15384_v43  ;;  %v15385_v10 = vld [vmem:[#allocation236_spill] sm:$0xff]  ;;  %v4310_v44 = vmax.f32 %v15382_v28, %v4054_v6 }
 0x619   :  { %4544 = vst.msk [vmem:[%s13162_s5 + $0x350] sm:$0xff] %vm1842_vm2, %v4288_v30  ;;  %v4057_v11 = vmul.f32 0.1, %v15385_v10  ;;  %v15386_v30 = vld [vmem:[#allocation237_spill] sm:$0xff]  ;;  %v4311_v12 = vmax.f32 %v15383_v54, %v4055_v60 }
 0x61a   :  { %4545 = vst.msk [vmem:[%s13162_s5 + $0x358] sm:$0xff] %vm1842_vm2, %v4289_v18  ;;  %v4058_v36 = vmul.f32 0.1, %v15386_v30  ;;  %v15387_v18 = vld [vmem:[#allocation238_spill] sm:$0xff]  ;;  %v4312_v26 = vmax.f32 %v15384_v43, %v4056_v2 }
 0x61b   :  { %4546 = vst.msk [vmem:[%s13162_s5 + $0x360] sm:$0xff] %vm1842_vm2, %v4290_v41  ;;  %v4059_v17 = vmul.f32 0.1, %v15387_v18  ;;  %v15388_v41 = vld [vmem:[#allocation239_spill] sm:$0xff]  ;;  %v4313_v49 = vmax.f32 %v15385_v10, %v4057_v11 }
 0x61c   :  { %4547 = vst.msk [vmem:[%s13162_s5 + $0x368] sm:$0xff] %vm1842_vm2, %v4291_v24  ;;  %v4060_v21 = vmul.f32 0.1, %v15388_v41  ;;  %v15389_v24 = vld [vmem:[#allocation240_spill] sm:$0xff]  ;;  %v4314_v59 = vmax.f32 %v15386_v30, %v4058_v36 }
 0x61d   :  { %4548 = vst.msk [vmem:[%s13162_s5 + $0x370] sm:$0xff] %vm1842_vm2, %v4292_v23  ;;  %v4061_v40 = vmul.f32 0.1, %v15389_v24  ;;  %v15390_v23 = vld [vmem:[#allocation7_spill] sm:$0xff]  ;;  %v4315_v5 = vmax.f32 %v15387_v18, %v4059_v17 }
 0x61e   :  { %4549 = vst.msk [vmem:[%s13162_s5 + $0x378] sm:$0xff] %vm1842_vm2, %v4293_v35  ;;  %v4062_v62 = vmul.f32 0.1, %v15390_v23  ;;  %v15391_v35 = vld [vmem:[#allocation8_spill] sm:$0xff]  ;;  %v4316_v9 = vmax.f32 %v15388_v41, %v4060_v21 }
 0x61f   :  { %4550 = vst.msk [vmem:[%s13162_s5 + $0x380] sm:$0xff] %vm1842_vm2, %v4294_v55  ;;  %v4063_v42 = vmul.f32 0.1, %v15391_v35  ;;  %v15392_v55 = vld [vmem:[#allocation9_spill] sm:$0xff]  ;;  %v4317_v34 = vmax.f32 %v15389_v24, %v4061_v40 }
 0x620   :  { %4551 = vst.msk [vmem:[%s13162_s5 + $0x388] sm:$0xff] %vm1842_vm2, %v4295_v56  ;;  %v4064_v61 = vmul.f32 0.1, %v15392_v55  ;;  %v15393_v56 = vld [vmem:[#allocation10_spill] sm:$0xff]  ;;  %v4318_v20 = vmax.f32 %v15390_v23, %v4062_v62 }
 0x621   :  { %4552 = vst.msk [vmem:[%s13162_s5 + $0x390] sm:$0xff] %vm1842_vm2, %v4296_v53  ;;  %v4065_v13 = vmul.f32 0.1, %v15393_v56  ;;  %v15394_v53 = vld [vmem:[#allocation11_spill] sm:$0xff]  ;;  %v4319_v15 = vmax.f32 %v15391_v35, %v4063_v42 }
 0x622   :  { %4553 = vst.msk [vmem:[%s13162_s5 + $0x398] sm:$0xff] %vm1842_vm2, %v4297_v45  ;;  %v4066_v1 = vmul.f32 0.1, %v15394_v53  ;;  %v15395_v45 = vld [vmem:[#allocation12_spill] sm:$0xff]  ;;  %v4320_v50 = vmax.f32 %v15392_v55, %v4064_v61 }
 0x623   :  { %4554 = vst.msk [vmem:[%s13162_s5 + $0x3a0] sm:$0xff] %vm1842_vm2, %v4298_v46  ;;  %v4067_v7 = vmul.f32 0.1, %v15395_v45  ;;  %v15396_v46 = vld [vmem:[#allocation13_spill] sm:$0xff]  ;;  %v4321_v3 = vmax.f32 %v15393_v56, %v4065_v13 }
 0x624   :  { %4555 = vst.msk [vmem:[%s13162_s5 + $0x3a8] sm:$0xff] %vm1842_vm2, %v4299_v14  ;;  %v4068_v25 = vmul.f32 0.1, %v15396_v46  ;;  %v15397_v14 = vld [vmem:[#allocation14_spill] sm:$0xff]  ;;  %v4322_v31 = vmax.f32 %v15394_v53, %v4066_v1 }
 0x625   :  { %4556 = vst.msk [vmem:[%s13162_s5 + $0x3b0] sm:$0xff] %vm1842_vm2, %v4300_v19  ;;  %v4069_v38 = vmul.f32 0.1, %v15397_v14  ;;  %v15398_v19 = vld [vmem:[#allocation15_spill] sm:$0xff]  ;;  %v4323_v32 = vmax.f32 %v15395_v45, %v4067_v7 }
 0x626   :  { %4557 = vst.msk [vmem:[%s13162_s5 + $0x3b8] sm:$0xff] %vm1842_vm2, %v4301_v4  ;;  %v4070_v27 = vmul.f32 0.1, %v15398_v19  ;;  %v15399_v4 = vld [vmem:[#allocation16_spill] sm:$0xff]  ;;  %v4324_v52 = vmax.f32 %v15396_v46, %v4068_v25 }
 0x627   :  { %4558 = vst.msk [vmem:[%s13162_s5 + $0x3c0] sm:$0xff] %vm1842_vm2, %v4302_v37  ;;  %v4071_v57 = vmul.f32 0.1, %v15399_v4  ;;  %v15400_v37 = vld [vmem:[#allocation17_spill] sm:$0xff]  ;;  %v4325_v39 = vmax.f32 %v15397_v14, %v4069_v38 }
 0x628   :  { %4559 = vst.msk [vmem:[%s13162_s5 + $0x3c8] sm:$0xff] %vm1842_vm2, %v4303_v51  ;;  %v4072_v47 = vmul.f32 0.1, %v15400_v37  ;;  %v15401_v51 = vld [vmem:[#allocation21_spill] sm:$0xff]  ;;  %v4326_v58 = vmax.f32 %v15398_v19, %v4070_v27 }
 0x629   :  { %4560 = vst.msk [vmem:[%s13162_s5 + $0x3d0] sm:$0xff] %vm1842_vm2, %v4304_v16  ;;  %v4073_v29 = vmul.f32 0.1, %v15401_v51  ;;  %v15402_v16 = vld [vmem:[#allocation23_spill] sm:$0xff]  ;;  %v4327_v6 = vmax.f32 %v15399_v4, %v4071_v57 }
 0x62a   :  { %4561 = vst.msk [vmem:[%s13162_s5 + $0x3d8] sm:$0xff] %vm1842_vm2, %v4305_v48  ;;  %v4074_v0 = vmul.f32 0.1, %v15402_v16  ;;  %v15403_v48 = vld [vmem:[#allocation25_spill] sm:$0xff]  ;;  %v4328_v60 = vmax.f32 %v15400_v37, %v4072_v47 }
 0x62b   :  { %4562 = vst.msk [vmem:[%s13162_s5 + $0x3e0] sm:$0xff] %vm1842_vm2, %v4306_v63  ;;  %v4075_v28 = vmul.f32 0.1, %v15403_v48  ;;  %v15404_v63 = vld [vmem:[#allocation27_spill] sm:$0xff]  ;;  %v4329_v2 = vmax.f32 %v15401_v51, %v4073_v29 }
 0x62c   :  { %4563 = vst.msk [vmem:[%s13162_s5 + $0x3e8] sm:$0xff] %vm1842_vm2, %v4307_v33  ;;  %v4076_v54 = vmul.f32 0.1, %v15404_v63  ;;  %v15405_v33 = vld [vmem:[#allocation29_spill] sm:$0xff]  ;;  %v4330_v11 = vmax.f32 %v15402_v16, %v4074_v0 }
 0x62d   :  { %4564 = vst.msk [vmem:[%s13162_s5 + $0x3f0] sm:$0xff] %vm1842_vm2, %v4308_v8  ;;  %v4077_v43 = vmul.f32 0.1, %v15405_v33  ;;  %v15406_v8 = vld [vmem:[#allocation33_spill] sm:$0xff]  ;;  %v4331_v36 = vmax.f32 %v15403_v48, %v4075_v28 }
 0x62e   :  { %4565 = vst.msk [vmem:[%s13162_s5 + $0x3f8] sm:$0xff] %vm1842_vm2, %v4309_v22  ;;  %v4078_v10 = vmul.f32 0.1, %v15406_v8  ;;  %v15407_v22 = vld [vmem:[#allocation35_spill] sm:$0xff]  ;;  %v4332_v17 = vmax.f32 %v15404_v63, %v4076_v54 }
 0x62f   :  { %4566 = vst.msk [vmem:[%s13162_s5 + $0x400] sm:$0xff] %vm1842_vm2, %v4310_v44  ;;  %v4079_v30 = vmul.f32 0.1, %v15407_v22  ;;  %v15408_v44 = vld [vmem:[#allocation37_spill] sm:$0xff]  ;;  %v4333_v21 = vmax.f32 %v15405_v33, %v4077_v43 }
 0x630   :  { %4567 = vst.msk [vmem:[%s13162_s5 + $0x408] sm:$0xff] %vm1842_vm2, %v4311_v12  ;;  %v4080_v18 = vmul.f32 0.1, %v15408_v44  ;;  %v15409_v12 = vld [vmem:[#allocation39_spill] sm:$0xff]  ;;  %v4334_v40 = vmax.f32 %v15406_v8, %v4078_v10 }
 0x631   :  { %4568 = vst.msk [vmem:[%s13162_s5 + $0x410] sm:$0xff] %vm1842_vm2, %v4312_v26  ;;  %v4081_v41 = vmul.f32 0.1, %v15409_v12  ;;  %v15410_v26 = vld [vmem:[#allocation41_spill] sm:$0xff]  ;;  %v4335_v62 = vmax.f32 %v15407_v22, %v4079_v30 }
 0x632   :  { %4569 = vst.msk [vmem:[%s13162_s5 + $0x418] sm:$0xff] %vm1842_vm2, %v4313_v49  ;;  %v4082_v24 = vmul.f32 0.1, %v15410_v26  ;;  %v15411_v49 = vld [vmem:[#allocation43_spill] sm:$0xff]  ;;  %v4336_v42 = vmax.f32 %v15408_v44, %v4080_v18 }
 0x633   :  { %4570 = vst.msk [vmem:[%s13162_s5 + $0x420] sm:$0xff] %vm1842_vm2, %v4314_v59  ;;  %v4083_v23 = vmul.f32 0.1, %v15411_v49  ;;  %v15412_v59 = vld [vmem:[#allocation45_spill] sm:$0xff]  ;;  %v4337_v61 = vmax.f32 %v15409_v12, %v4081_v41 }
 0x634   :  { %4571 = vst.msk [vmem:[%s13162_s5 + $0x428] sm:$0xff] %vm1842_vm2, %v4315_v5  ;;  %v4084_v35 = vmul.f32 0.1, %v15412_v59  ;;  %v15413_v5 = vld [vmem:[#allocation47_spill] sm:$0xff]  ;;  %v4338_v13 = vmax.f32 %v15410_v26, %v4082_v24 }
 0x635   :  { %4572 = vst.msk [vmem:[%s13162_s5 + $0x430] sm:$0xff] %vm1842_vm2, %v4316_v9  ;;  %v4085_v55 = vmul.f32 0.1, %v15413_v5  ;;  %v15414_v9 = vld [vmem:[#allocation49_spill] sm:$0xff]  ;;  %v4339_v1 = vmax.f32 %v15411_v49, %v4083_v23 }
 0x636   :  { %4573 = vst.msk [vmem:[%s13162_s5 + $0x438] sm:$0xff] %vm1842_vm2, %v4317_v34  ;;  %v4086_v56 = vmul.f32 0.1, %v15414_v9  ;;  %v15415_v34 = vld [vmem:[#allocation52_spill] sm:$0xff]  ;;  %v4340_v7 = vmax.f32 %v15412_v59, %v4084_v35 }
 0x637   :  { %4574 = vst.msk [vmem:[%s13162_s5 + $0x440] sm:$0xff] %vm1842_vm2, %v4318_v20  ;;  %v4087_v53 = vmul.f32 0.1, %v15415_v34  ;;  %v15416_v20 = vld [vmem:[#allocation55_spill] sm:$0xff]  ;;  %v4341_v25 = vmax.f32 %v15413_v5, %v4085_v55 }
 0x638   :  { %4575 = vst.msk [vmem:[%s13162_s5 + $0x448] sm:$0xff] %vm1842_vm2, %v4319_v15  ;;  %v4088_v45 = vmul.f32 0.1, %v15416_v20  ;;  %v15417_v15 = vld [vmem:[#allocation60_spill] sm:$0xff]  ;;  %v4342_v38 = vmax.f32 %v15414_v9, %v4086_v56 }
 0x639   :  { %4576 = vst.msk [vmem:[%s13162_s5 + $0x450] sm:$0xff] %vm1842_vm2, %v4320_v50  ;;  %v4089_v46 = vmul.f32 0.1, %v15417_v15  ;;  %v15418_v50 = vld [vmem:[#allocation67_spill] sm:$0xff]  ;;  %v4343_v27 = vmax.f32 %v15415_v34, %v4087_v53 }
 0x63a   :  { %4577 = vst.msk [vmem:[%s13162_s5 + $0x458] sm:$0xff] %vm1842_vm2, %v4321_v3  ;;  %v4090_v14 = vmul.f32 0.1, %v15418_v50  ;;  %v15419_v3 = vld [vmem:[#allocation153_spill] sm:$0xff]  ;;  %v4344_v57 = vmax.f32 %v15416_v20, %v4088_v45 }
 0x63b   :  { %4578 = vst.msk [vmem:[%s13162_s5 + $0x460] sm:$0xff] %vm1842_vm2, %v4322_v31  ;;  %v4091_v19 = vmul.f32 0.1, %v15419_v3  ;;  %v15420_v31 = vld [vmem:[#allocation154_spill] sm:$0xff]  ;;  %v4345_v47 = vmax.f32 %v15417_v15, %v4089_v46 }
 0x63c   :  { %4579 = vst.msk [vmem:[%s13162_s5 + $0x468] sm:$0xff] %vm1842_vm2, %v4323_v32  ;;  %v4092_v4 = vmul.f32 0.1, %v15420_v31  ;;  %v15421_v32 = vld [vmem:[#allocation155_spill] sm:$0xff]  ;;  %v4346_v29 = vmax.f32 %v15418_v50, %v4090_v14 }
 0x63d   :  { %4580 = vst.msk [vmem:[%s13162_s5 + $0x470] sm:$0xff] %vm1842_vm2, %v4324_v52  ;;  %v4093_v37 = vmul.f32 0.1, %v15421_v32  ;;  %v15422_v52 = vld [vmem:[#allocation156_spill] sm:$0xff]  ;;  %v4347_v0 = vmax.f32 %v15419_v3, %v4091_v19 }
 0x63e   :  { %4581 = vst.msk [vmem:[%s13162_s5 + $0x478] sm:$0xff] %vm1842_vm2, %v4325_v39  ;;  %v4094_v51 = vmul.f32 0.1, %v15422_v52  ;;  %v15423_v39 = vld [vmem:[#allocation157_spill] sm:$0xff]  ;;  %v4348_v28 = vmax.f32 %v15420_v31, %v4092_v4 }
 0x63f   :  { %4582 = vst.msk [vmem:[%s13162_s5 + $0x480] sm:$0xff] %vm1842_vm2, %v4326_v58  ;;  %v4095_v16 = vmul.f32 0.1, %v15423_v39  ;;  %v15424_v58 = vld [vmem:[#allocation158_spill] sm:$0xff]  ;;  %v4349_v54 = vmax.f32 %v15421_v32, %v4093_v37 }
 0x640   :  { %4583 = vst.msk [vmem:[%s13162_s5 + $0x488] sm:$0xff] %vm1842_vm2, %v4327_v6  ;;  %v4096_v48 = vmul.f32 0.1, %v15424_v58  ;;  %v15425_v6 = vld [vmem:[#allocation159_spill] sm:$0xff]  ;;  %v4350_v43 = vmax.f32 %v15422_v52, %v4094_v51 }
 0x641   :  { %4584 = vst.msk [vmem:[%s13162_s5 + $0x490] sm:$0xff] %vm1842_vm2, %v4328_v60  ;;  %v4097_v63 = vmul.f32 0.1, %v15425_v6  ;;  %v15426_v60 = vld [vmem:[#allocation160_spill] sm:$0xff]  ;;  %v4351_v10 = vmax.f32 %v15423_v39, %v4095_v16 }
 0x642   :  { %4585 = vst.msk [vmem:[%s13162_s5 + $0x498] sm:$0xff] %vm1842_vm2, %v4329_v2  ;;  %v4098_v33 = vmul.f32 0.1, %v15426_v60  ;;  %v15427_v2 = vld [vmem:[#allocation161_spill] sm:$0xff]  ;;  %v4352_v30 = vmax.f32 %v15424_v58, %v4096_v48 }
 0x643   :  { %4586 = vst.msk [vmem:[%s13162_s5 + $0x4a0] sm:$0xff] %vm1842_vm2, %v4330_v11  ;;  %v4099_v8 = vmul.f32 0.1, %v15427_v2  ;;  %v15428_v11 = vld [vmem:[#allocation162_spill] sm:$0xff]  ;;  %v4353_v18 = vmax.f32 %v15425_v6, %v4097_v63 }
 0x644   :  { %4587 = vst.msk [vmem:[%s13162_s5 + $0x4a8] sm:$0xff] %vm1842_vm2, %v4331_v36  ;;  %v4100_v22 = vmul.f32 0.1, %v15428_v11  ;;  %v15429_v36 = vld [vmem:[#allocation163_spill] sm:$0xff]  ;;  %v4354_v41 = vmax.f32 %v15426_v60, %v4098_v33 }
 0x645   :  { %4588 = vst.msk [vmem:[%s13162_s5 + $0x4b0] sm:$0xff] %vm1842_vm2, %v4332_v17  ;;  %v4101_v44 = vmul.f32 0.1, %v15429_v36  ;;  %v15430_v17 = vld [vmem:[#allocation164_spill] sm:$0xff]  ;;  %v4355_v24 = vmax.f32 %v15427_v2, %v4099_v8 }
 0x646   :  { %4589 = vst.msk [vmem:[%s13162_s5 + $0x4b8] sm:$0xff] %vm1842_vm2, %v4333_v21  ;;  %v4102_v12 = vmul.f32 0.1, %v15430_v17  ;;  %v15431_v21 = vld [vmem:[#allocation165_spill] sm:$0xff]  ;;  %v4356_v23 = vmax.f32 %v15428_v11, %v4100_v22 }
 0x647   :  { %4590 = vst.msk [vmem:[%s13162_s5 + $0x4c0] sm:$0xff] %vm1842_vm2, %v4334_v40  ;;  %v4103_v26 = vmul.f32 0.1, %v15431_v21  ;;  %v15432_v40 = vld [vmem:[#allocation166_spill] sm:$0xff]  ;;  %v4357_v35 = vmax.f32 %v15429_v36, %v4101_v44 }
 0x648   :  { %4591 = vst.msk [vmem:[%s13162_s5 + $0x4c8] sm:$0xff] %vm1842_vm2, %v4335_v62  ;;  %v4104_v49 = vmul.f32 0.1, %v15432_v40  ;;  %v15433_v62 = vld [vmem:[#allocation167_spill] sm:$0xff]  ;;  %v4358_v55 = vmax.f32 %v15430_v17, %v4102_v12 }
 0x649   :  { %4592 = vst.msk [vmem:[%s13162_s5 + $0x4d0] sm:$0xff] %vm1842_vm2, %v4336_v42  ;;  %v4105_v59 = vmul.f32 0.1, %v15433_v62  ;;  %v15434_v42 = vld [vmem:[#allocation168_spill] sm:$0xff]  ;;  %v4359_v56 = vmax.f32 %v15431_v21, %v4103_v26 }
 0x64a   :  { %4593 = vst.msk [vmem:[%s13162_s5 + $0x4d8] sm:$0xff] %vm1842_vm2, %v4337_v61  ;;  %v4106_v5 = vmul.f32 0.1, %v15434_v42  ;;  %v15435_v61 = vld [vmem:[#allocation169_spill] sm:$0xff]  ;;  %v4360_v53 = vmax.f32 %v15432_v40, %v4104_v49 }
 0x64b   :  { %4594 = vst.msk [vmem:[%s13162_s5 + $0x4e0] sm:$0xff] %vm1842_vm2, %v4338_v13  ;;  %v4107_v9 = vmul.f32 0.1, %v15435_v61  ;;  %v15436_v13 = vld [vmem:[#allocation170_spill] sm:$0xff]  ;;  %v4361_v45 = vmax.f32 %v15433_v62, %v4105_v59 }
 0x64c   :  { %4595 = vst.msk [vmem:[%s13162_s5 + $0x4e8] sm:$0xff] %vm1842_vm2, %v4339_v1  ;;  %v4108_v34 = vmul.f32 0.1, %v15436_v13  ;;  %v15437_v1 = vld [vmem:[#allocation171_spill] sm:$0xff]  ;;  %v4362_v46 = vmax.f32 %v15434_v42, %v4106_v5 }
 0x64d   :  { %4596 = vst.msk [vmem:[%s13162_s5 + $0x4f0] sm:$0xff] %vm1842_vm2, %v4340_v7  ;;  %v4109_v20 = vmul.f32 0.1, %v15437_v1  ;;  %v15438_v7 = vld [vmem:[#allocation172_spill] sm:$0xff]  ;;  %v4363_v14 = vmax.f32 %v15435_v61, %v4107_v9 }
 0x64e   :  { %4597 = vst.msk [vmem:[%s13162_s5 + $0x4f8] sm:$0xff] %vm1842_vm2, %v4341_v25  ;;  %v4110_v15 = vmul.f32 0.1, %v15438_v7  ;;  %v15439_v25 = vld [vmem:[#allocation173_spill] sm:$0xff]  ;;  %v4364_v19 = vmax.f32 %v15436_v13, %v4108_v34 }
 0x64f   :  { %4598 = vst.msk [vmem:[%s13162_s5 + $0x500] sm:$0xff] %vm1842_vm2, %v4342_v38  ;;  %v4111_v50 = vmul.f32 0.1, %v15439_v25  ;;  %v15440_v38 = vld [vmem:[#allocation174_spill] sm:$0xff]  ;;  %v4365_v4 = vmax.f32 %v15437_v1, %v4109_v20 }
 0x650   :  { %4599 = vst.msk [vmem:[%s13162_s5 + $0x508] sm:$0xff] %vm1842_vm2, %v4343_v27  ;;  %v4112_v3 = vmul.f32 0.1, %v15440_v38  ;;  %v15441_v27 = vld [vmem:[#allocation175_spill] sm:$0xff]  ;;  %v4366_v37 = vmax.f32 %v15438_v7, %v4110_v15 }
 0x651   :  { %4600 = vst.msk [vmem:[%s13162_s5 + $0x510] sm:$0xff] %vm1842_vm2, %v4344_v57  ;;  %v4113_v31 = vmul.f32 0.1, %v15441_v27  ;;  %v15442_v57 = vld [vmem:[#allocation176_spill] sm:$0xff]  ;;  %v4367_v51 = vmax.f32 %v15439_v25, %v4111_v50 }
 0x652   :  { %4601 = vst.msk [vmem:[%s13162_s5 + $0x518] sm:$0xff] %vm1842_vm2, %v4345_v47  ;;  %v4114_v32 = vmul.f32 0.1, %v15442_v57  ;;  %v15443_v47 = vld [vmem:[#allocation177_spill] sm:$0xff]  ;;  %v4368_v16 = vmax.f32 %v15440_v38, %v4112_v3 }
 0x653   :  { %4602 = vst.msk [vmem:[%s13162_s5 + $0x520] sm:$0xff] %vm1842_vm2, %v4346_v29  ;;  %v4115_v52 = vmul.f32 0.1, %v15443_v47  ;;  %v15444_v29 = vld [vmem:[#allocation178_spill] sm:$0xff]  ;;  %v4369_v48 = vmax.f32 %v15441_v27, %v4113_v31 }
 0x654   :  { %4603 = vst.msk [vmem:[%s13162_s5 + $0x528] sm:$0xff] %vm1842_vm2, %v4347_v0  ;;  %v4116_v39 = vmul.f32 0.1, %v15444_v29  ;;  %v15445_v0 = vld [vmem:[#allocation179_spill] sm:$0xff]  ;;  %v4370_v63 = vmax.f32 %v15442_v57, %v4114_v32 }
 0x655   :  { %4604 = vst.msk [vmem:[%s13162_s5 + $0x530] sm:$0xff] %vm1842_vm2, %v4348_v28  ;;  %v4117_v58 = vmul.f32 0.1, %v15445_v0  ;;  %v15446_v28 = vld [vmem:[#allocation18_spill] sm:$0xff]  ;;  %v4371_v33 = vmax.f32 %v15443_v47, %v4115_v52 }
 0x656   :  { %4605 = vst.msk [vmem:[%s13162_s5 + $0x538] sm:$0xff] %vm1842_vm2, %v4349_v54  ;;  %v4118_v6 = vmul.f32 0.1, %v15446_v28  ;;  %v15447_v54 = vld [vmem:[#allocation20_spill] sm:$0xff]  ;;  %v4372_v8 = vmax.f32 %v15444_v29, %v4116_v39 }
 0x657   :  { %4606 = vst.msk [vmem:[%s13162_s5 + $0x540] sm:$0xff] %vm1842_vm2, %v4350_v43  ;;  %v4119_v60 = vmul.f32 0.1, %v15447_v54  ;;  %v15448_v43 = vld [vmem:[#allocation22_spill] sm:$0xff]  ;;  %v4373_v22 = vmax.f32 %v15445_v0, %v4117_v58 }
 0x658   :  { %4607 = vst.msk [vmem:[%s13162_s5 + $0x548] sm:$0xff] %vm1842_vm2, %v4351_v10  ;;  %v4120_v2 = vmul.f32 0.1, %v15448_v43  ;;  %v15449_v10 = vld [vmem:[#allocation24_spill] sm:$0xff]  ;;  %v4374_v44 = vmax.f32 %v15446_v28, %v4118_v6 }
 0x659   :  { %4608 = vst.msk [vmem:[%s13162_s5 + $0x550] sm:$0xff] %vm1842_vm2, %v4352_v30  ;;  %v4121_v11 = vmul.f32 0.1, %v15449_v10  ;;  %v15450_v30 = vld [vmem:[#allocation26_spill] sm:$0xff]  ;;  %v4375_v12 = vmax.f32 %v15447_v54, %v4119_v60 }
 0x65a   :  { %4609 = vst.msk [vmem:[%s13162_s5 + $0x558] sm:$0xff] %vm1842_vm2, %v4353_v18  ;;  %v4122_v36 = vmul.f32 0.1, %v15450_v30  ;;  %v15451_v18 = vld [vmem:[#allocation28_spill] sm:$0xff]  ;;  %v4376_v26 = vmax.f32 %v15448_v43, %v4120_v2 }
 0x65b   :  { %4610 = vst.msk [vmem:[%s13162_s5 + $0x560] sm:$0xff] %vm1842_vm2, %v4354_v41  ;;  %v4123_v17 = vmul.f32 0.1, %v15451_v18  ;;  %v15452_v41 = vld [vmem:[#allocation30_spill] sm:$0xff]  ;;  %v4377_v49 = vmax.f32 %v15449_v10, %v4121_v11 }
 0x65c   :  { %4611 = vst.msk [vmem:[%s13162_s5 + $0x568] sm:$0xff] %vm1842_vm2, %v4355_v24  ;;  %v4124_v21 = vmul.f32 0.1, %v15452_v41  ;;  %v15453_v24 = vld [vmem:[#allocation32_spill] sm:$0xff]  ;;  %v4378_v59 = vmax.f32 %v15450_v30, %v4122_v36 }
 0x65d   :  { %4612 = vst.msk [vmem:[%s13162_s5 + $0x570] sm:$0xff] %vm1842_vm2, %v4356_v23  ;;  %v4125_v40 = vmul.f32 0.1, %v15453_v24  ;;  %v15454_v23 = vld [vmem:[#allocation34_spill] sm:$0xff]  ;;  %v4379_v5 = vmax.f32 %v15451_v18, %v4123_v17 }
 0x65e   :  { %4613 = vst.msk [vmem:[%s13162_s5 + $0x578] sm:$0xff] %vm1842_vm2, %v4357_v35  ;;  %v4126_v62 = vmul.f32 0.1, %v15454_v23  ;;  %v15455_v35 = vld [vmem:[#allocation36_spill] sm:$0xff]  ;;  %v4380_v9 = vmax.f32 %v15452_v41, %v4124_v21 }
 0x65f   :  { %4614 = vst.msk [vmem:[%s13162_s5 + $0x580] sm:$0xff] %vm1842_vm2, %v4358_v55  ;;  %v4127_v42 = vmul.f32 0.1, %v15455_v35  ;;  %v15456_v55 = vld [vmem:[#allocation40_spill] sm:$0xff]  ;;  %v4381_v34 = vmax.f32 %v15453_v24, %v4125_v40 }
 0x660   :  { %4615 = vst.msk [vmem:[%s13162_s5 + $0x588] sm:$0xff] %vm1842_vm2, %v4359_v56  ;;  %v4128_v61 = vmul.f32 0.1, %v15456_v55  ;;  %v15457_v56 = vld [vmem:[#allocation44_spill] sm:$0xff]  ;;  %v4382_v20 = vmax.f32 %v15454_v23, %v4126_v62 }
 0x661   :  { %4616 = vst.msk [vmem:[%s13162_s5 + $0x590] sm:$0xff] %vm1842_vm2, %v4360_v53  ;;  %v4129_v13 = vmul.f32 0.1, %v15457_v56  ;;  %v15458_v53 = vld [vmem:[#allocation50_spill] sm:$0xff]  ;;  %v4383_v15 = vmax.f32 %v15455_v35, %v4127_v42 }
 0x662   :  { %4617 = vst.msk [vmem:[%s13162_s5 + $0x598] sm:$0xff] %vm1842_vm2, %v4361_v45  ;;  %v4130_v1 = vmul.f32 0.1, %v15458_v53  ;;  %v15459_v45 = vld [vmem:[#allocation53_spill] sm:$0xff]  ;;  %v4384_v50 = vmax.f32 %v15456_v55, %v4128_v61 }
 0x663   :  { %4618 = vst.msk [vmem:[%s13162_s5 + $0x5a0] sm:$0xff] %vm1842_vm2, %v4362_v46  ;;  %v4131_v7 = vmul.f32 0.1, %v15459_v45  ;;  %v15460_v46 = vld [vmem:[#allocation62_spill] sm:$0xff]  ;;  %v4385_v3 = vmax.f32 %v15457_v56, %v4129_v13 }
 0x664   :  { %4619 = vst.msk [vmem:[%s13162_s5 + $0x5a8] sm:$0xff] %vm1842_vm2, %v4363_v14  ;;  %v4132_v25 = vmul.f32 0.1, %v15460_v46  ;;  %v15461_v14 = vld [vmem:[#allocation69_spill] sm:$0xff]  ;;  %v4386_v31 = vmax.f32 %v15458_v53, %v4130_v1 }
 0x665   :  { %4620 = vst.msk [vmem:[%s13162_s5 + $0x5b0] sm:$0xff] %vm1842_vm2, %v4364_v19  ;;  %v4133_v38 = vmul.f32 0.1, %v15461_v14  ;;  %v15462_v19 = vld [vmem:[#allocation184_spill] sm:$0xff]  ;;  %v4387_v32 = vmax.f32 %v15459_v45, %v4131_v7 }
 0x666   :  { %4621 = vst.msk [vmem:[%s13162_s5 + $0x5b8] sm:$0xff] %vm1842_vm2, %v4365_v4  ;;  %v4134_v27 = vmul.f32 0.1, %v15462_v19  ;;  %v15463_v4 = vld [vmem:[#allocation185_spill] sm:$0xff]  ;;  %v4388_v52 = vmax.f32 %v15460_v46, %v4132_v25 }
 0x667   :  { %4622 = vst.msk [vmem:[%s13162_s5 + $0x5c0] sm:$0xff] %vm1842_vm2, %v4366_v37  ;;  %v4135_v57 = vmul.f32 0.1, %v15463_v4  ;;  %v15464_v37 = vld [vmem:[#allocation188_spill] sm:$0xff]  ;;  %v4389_v39 = vmax.f32 %v15461_v14, %v4133_v38 }
 0x668   :  { %4623 = vst.msk [vmem:[%s13162_s5 + $0x5c8] sm:$0xff] %vm1842_vm2, %v4367_v51  ;;  %v4136_v47 = vmul.f32 0.1, %v15464_v37  ;;  %v15465_v51 = vld [vmem:[#allocation189_spill] sm:$0xff]  ;;  %v4390_v58 = vmax.f32 %v15462_v19, %v4134_v27 }
 0x669   :  { %4624 = vst.msk [vmem:[%s13162_s5 + $0x5d0] sm:$0xff] %vm1842_vm2, %v4368_v16  ;;  %v4137_v29 = vmul.f32 0.1, %v15465_v51  ;;  %v15466_v16 = vld [vmem:[#allocation190_spill] sm:$0xff]  ;;  %v4391_v6 = vmax.f32 %v15463_v4, %v4135_v57 }
 0x66a   :  { %4625 = vst.msk [vmem:[%s13162_s5 + $0x5d8] sm:$0xff] %vm1842_vm2, %v4369_v48  ;;  %v4138_v0 = vmul.f32 0.1, %v15466_v16  ;;  %v15467_v48 = vld [vmem:[#allocation191_spill] sm:$0xff]  ;;  %v4392_v60 = vmax.f32 %v15464_v37, %v4136_v47 }
 0x66b   :  { %4626 = vst.msk [vmem:[%s13162_s5 + $0x5e0] sm:$0xff] %vm1842_vm2, %v4370_v63  ;;  %v4139_v28 = vmul.f32 0.1, %v15467_v48  ;;  %v15468_v63 = vld [vmem:[#allocation192_spill] sm:$0xff]  ;;  %v4393_v2 = vmax.f32 %v15465_v51, %v4137_v29 }
 0x66c   :  { %4627 = vst.msk [vmem:[%s13162_s5 + $0x5e8] sm:$0xff] %vm1842_vm2, %v4371_v33  ;;  %v4140_v54 = vmul.f32 0.1, %v15468_v63  ;;  %v15469_v33 = vld [vmem:[#allocation193_spill] sm:$0xff]  ;;  %v4394_v11 = vmax.f32 %v15466_v16, %v4138_v0 }
 0x66d   :  { %4628 = vst.msk [vmem:[%s13162_s5 + $0x5f0] sm:$0xff] %vm1842_vm2, %v4372_v8  ;;  %v4141_v43 = vmul.f32 0.1, %v15469_v33  ;;  %v15470_v8 = vld [vmem:[#allocation195_spill] sm:$0xff]  ;;  %v4395_v36 = vmax.f32 %v15467_v48, %v4139_v28 }
 0x66e   :  { %4629 = vst.msk [vmem:[%s13162_s5 + $0x5f8] sm:$0xff] %vm1842_vm2, %v4373_v22  ;;  %v4142_v10 = vmul.f32 0.1, %v15470_v8  ;;  %v15471_v22 = vld [vmem:[#allocation197_spill] sm:$0xff]  ;;  %v4396_v17 = vmax.f32 %v15468_v63, %v4140_v54 }
 0x66f   :  { %4630 = vst.msk [vmem:[%s13162_s5 + $0x600] sm:$0xff] %vm1842_vm2, %v4374_v44  ;;  %v4143_v30 = vmul.f32 0.1, %v15471_v22  ;;  %v15472_v44 = vld [vmem:[#allocation198_spill] sm:$0xff]  ;;  %v4397_v21 = vmax.f32 %v15469_v33, %v4141_v43 }
 0x670   :  { %4631 = vst.msk [vmem:[%s13162_s5 + $0x608] sm:$0xff] %vm1842_vm2, %v4375_v12  ;;  %v4144_v18 = vmul.f32 0.1, %v15472_v44  ;;  %v15473_v12 = vld [vmem:[#allocation151_spill] sm:$0xff]  ;;  %v4398_v40 = vmax.f32 %v15470_v8, %v4142_v10 }
 0x671   :  { %4632 = vst.msk [vmem:[%s13162_s5 + $0x610] sm:$0xff] %vm1842_vm2, %v4376_v26  ;;  %v4145_v41 = vmul.f32 0.1, %v15473_v12  ;;  %v15474_v26 = vld [vmem:[#allocation199_spill] sm:$0xff]  ;;  %v4399_v62 = vmax.f32 %v15471_v22, %v4143_v30 }
 0x672   :  { %4633 = vst.msk [vmem:[%s13162_s5 + $0x618] sm:$0xff] %vm1842_vm2, %v4377_v49  ;;  %v4146_v24 = vmul.f32 0.1, %v15474_v26  ;;  %v15475_v49 = vld [vmem:[#allocation200_spill] sm:$0xff]  ;;  %v4400_v42 = vmax.f32 %v15472_v44, %v4144_v18 }
 0x673   :  { %4634 = vst.msk [vmem:[%s13162_s5 + $0x620] sm:$0xff] %vm1842_vm2, %v4378_v59  ;;  %v4147_v23 = vmul.f32 0.1, %v15475_v49  ;;  %v15476_v59 = vld [vmem:[#allocation201_spill] sm:$0xff]  ;;  %v4401_v61 = vmax.f32 %v15473_v12, %v4145_v41 }
 0x674   :  { %4635 = vst.msk [vmem:[%s13162_s5 + $0x628] sm:$0xff] %vm1842_vm2, %v4379_v5  ;;  %v4148_v35 = vmul.f32 0.1, %v15476_v59  ;;  %v15477_v5 = vld [vmem:[#allocation202_spill] sm:$0xff]  ;;  %v4402_v13 = vmax.f32 %v15474_v26, %v4146_v24 }
 0x675   :  { %4636 = vst.msk [vmem:[%s13162_s5 + $0x630] sm:$0xff] %vm1842_vm2, %v4380_v9  ;;  %v4149_v55 = vmul.f32 0.1, %v15477_v5  ;;  %v15478_v9 = vld [vmem:[#allocation203_spill] sm:$0xff]  ;;  %v4403_v1 = vmax.f32 %v15475_v49, %v4147_v23 }
 0x676   :  { %4637 = vst.msk [vmem:[%s13162_s5 + $0x638] sm:$0xff] %vm1842_vm2, %v4381_v34  ;;  %v4150_v56 = vmul.f32 0.1, %v15478_v9  ;;  %v15479_v34 = vld [vmem:[#allocation204_spill] sm:$0xff]  ;;  %v4404_v7 = vmax.f32 %v15476_v59, %v4148_v35 }
 0x677   :  { %4638 = vst.msk [vmem:[%s13162_s5 + $0x640] sm:$0xff] %vm1842_vm2, %v4382_v20  ;;  %v4151_v53 = vmul.f32 0.1, %v15479_v34  ;;  %v15480_v20 = vld [vmem:[#allocation241_spill] sm:$0xff]  ;;  %v4405_v25 = vmax.f32 %v15477_v5, %v4149_v55 }
 0x678   :  { %4639 = vst.msk [vmem:[%s13162_s5 + $0x648] sm:$0xff] %vm1842_vm2, %v4383_v15  ;;  %v4152_v45 = vmul.f32 0.1, %v15480_v20  ;;  %v15481_v15 = vld [vmem:[#allocation242_spill] sm:$0xff]  ;;  %v4406_v38 = vmax.f32 %v15478_v9, %v4150_v56 }
 0x679   :  { %4640 = vst.msk [vmem:[%s13162_s5 + $0x650] sm:$0xff] %vm1842_vm2, %v4384_v50  ;;  %v4153_v46 = vmul.f32 0.1, %v15481_v15  ;;  %v15482_v50 = vld [vmem:[#allocation243_spill] sm:$0xff]  ;;  %v4407_v27 = vmax.f32 %v15479_v34, %v4151_v53 }
 0x67a   :  { %4641 = vst.msk [vmem:[%s13162_s5 + $0x658] sm:$0xff] %vm1842_vm2, %v4385_v3  ;;  %v4154_v14 = vmul.f32 0.1, %v15482_v50  ;;  %v15483_v3 = vld [vmem:[#allocation205_spill] sm:$0xff]  ;;  %v4408_v57 = vmax.f32 %v15480_v20, %v4152_v45 }
 0x67b   :  { %4642 = vst.msk [vmem:[%s13162_s5 + $0x660] sm:$0xff] %vm1842_vm2, %v4386_v31  ;;  %v4155_v19 = vmul.f32 0.1, %v15483_v3  ;;  %v15484_v31 = vld [vmem:[#allocation244_spill] sm:$0xff]  ;;  %v4409_v47 = vmax.f32 %v15481_v15, %v4153_v46 }
 0x67c   :  { %4643 = vst.msk [vmem:[%s13162_s5 + $0x668] sm:$0xff] %vm1842_vm2, %v4387_v32  ;;  %v4156_v4 = vmul.f32 0.1, %v15484_v31  ;;  %v15485_v32 = vld [vmem:[#allocation245_spill] sm:$0xff]  ;;  %v4410_v29 = vmax.f32 %v15482_v50, %v4154_v14 }
 0x67d   :  { %4644 = vst.msk [vmem:[%s13162_s5 + $0x670] sm:$0xff] %vm1842_vm2, %v4388_v52  ;;  %v4157_v37 = vmul.f32 0.1, %v15485_v32  ;;  %v15486_v52 = vld [vmem:[#allocation246_spill] sm:$0xff]  ;;  %v4411_v0 = vmax.f32 %v15483_v3, %v4155_v19 }
 0x67e   :  { %4645 = vst.msk [vmem:[%s13162_s5 + $0x678] sm:$0xff] %vm1842_vm2, %v4389_v39  ;;  %v4158_v51 = vmul.f32 0.1, %v15486_v52  ;;  %v15487_v39 = vld [vmem:[#allocation247_spill] sm:$0xff]  ;;  %v4412_v28 = vmax.f32 %v15484_v31, %v4156_v4 }
 0x67f   :  { %4646 = vst.msk [vmem:[%s13162_s5 + $0x680] sm:$0xff] %vm1842_vm2, %v4390_v58  ;;  %v4159_v16 = vmul.f32 0.1, %v15487_v39  ;;  %v15488_v58 = vld [vmem:[#allocation206_spill] sm:$0xff]  ;;  %v4413_v54 = vmax.f32 %v15485_v32, %v4157_v37 }
 0x680   :  { %4647 = vst.msk [vmem:[%s13162_s5 + $0x688] sm:$0xff] %vm1842_vm2, %v4391_v6  ;;  %v4160_v48 = vmul.f32 0.1, %v15488_v58  ;;  %v15489_v6 = vld [vmem:[#allocation207_spill] sm:$0xff]  ;;  %v4414_v43 = vmax.f32 %v15486_v52, %v4158_v51 }
 0x681   :  { %4648 = vst.msk [vmem:[%s13162_s5 + $0x690] sm:$0xff] %vm1842_vm2, %v4392_v60  ;;  %v4161_v63 = vmul.f32 0.1, %v15489_v6  ;;  %v15490_v60 = vld [vmem:[#allocation208_spill] sm:$0xff]  ;;  %v4415_v10 = vmax.f32 %v15487_v39, %v4159_v16 }
 0x682   :  { %4649 = vst.msk [vmem:[%s13162_s5 + $0x698] sm:$0xff] %vm1842_vm2, %v4393_v2  ;;  %v4162_v33 = vmul.f32 0.1, %v15490_v60  ;;  %v15491_v2 = vld [vmem:[#allocation209_spill] sm:$0xff]  ;;  %v4416_v30 = vmax.f32 %v15488_v58, %v4160_v48 }
 0x683   :  { %4650 = vst.msk [vmem:[%s13162_s5 + $0x6a0] sm:$0xff] %vm1842_vm2, %v4394_v11  ;;  %v4163_v8 = vmul.f32 0.1, %v15491_v2  ;;  %v15492_v11 = vld [vmem:[#allocation210_spill] sm:$0xff]  ;;  %v4417_v18 = vmax.f32 %v15489_v6, %v4161_v63 }
 0x684   :  { %4651 = vst.msk [vmem:[%s13162_s5 + $0x6a8] sm:$0xff] %vm1842_vm2, %v4395_v36  ;;  %v4164_v22 = vmul.f32 0.1, %v15492_v11  ;;  %v15493_v36 = vld [vmem:[#allocation211_spill] sm:$0xff]  ;;  %v4418_v41 = vmax.f32 %v15490_v60, %v4162_v33 }
 0x685   :  { %4652 = vst.msk [vmem:[%s13162_s5 + $0x6b0] sm:$0xff] %vm1842_vm2, %v4396_v17  ;;  %v4165_v44 = vmul.f32 0.1, %v15493_v36  ;;  %v15494_v17 = vld [vmem:[#allocation212_spill] sm:$0xff]  ;;  %v4419_v24 = vmax.f32 %v15491_v2, %v4163_v8 }
 0x686   :  { %4653 = vst.msk [vmem:[%s13162_s5 + $0x6b8] sm:$0xff] %vm1842_vm2, %v4397_v21  ;;  %v4166_v12 = vmul.f32 0.1, %v15494_v17  ;;  %v15495_v21 = vld [vmem:[#allocation213_spill] sm:$0xff]  ;;  %v4420_v23 = vmax.f32 %v15492_v11, %v4164_v22 }
 0x687   :  { %4654 = vst.msk [vmem:[%s13162_s5 + $0x6c0] sm:$0xff] %vm1842_vm2, %v4398_v40  ;;  %v4167_v26 = vmul.f32 0.1, %v15495_v21  ;;  %v15496_v40 = vld [vmem:[#allocation214_spill] sm:$0xff]  ;;  %v4421_v35 = vmax.f32 %v15493_v36, %v4165_v44 }
 0x688   :  { %4655 = vst.msk [vmem:[%s13162_s5 + $0x6c8] sm:$0xff] %vm1842_vm2, %v4399_v62  ;;  %v4168_v49 = vmul.f32 0.1, %v15496_v40  ;;  %v15497_v62 = vld [vmem:[#allocation215_spill] sm:$0xff]  ;;  %v4422_v55 = vmax.f32 %v15494_v17, %v4166_v12 }
 0x689   :  { %4656 = vst.msk [vmem:[%s13162_s5 + $0x6d0] sm:$0xff] %vm1842_vm2, %v4400_v42  ;;  %v4169_v59 = vmul.f32 0.1, %v15497_v62  ;;  %v15498_v42 = vld [vmem:[#allocation216_spill] sm:$0xff]  ;;  %v4423_v56 = vmax.f32 %v15495_v21, %v4167_v26 }
 0x68a   :  { %4657 = vst.msk [vmem:[%s13162_s5 + $0x6d8] sm:$0xff] %vm1842_vm2, %v4401_v61  ;;  %v4170_v5 = vmul.f32 0.1, %v15498_v42  ;;  %v15499_v61 = vld [vmem:[#allocation248_spill] sm:$0xff]  ;;  %v4424_v53 = vmax.f32 %v15496_v40, %v4168_v49 }
 0x68b   :  { %4658 = vst.msk [vmem:[%s13162_s5 + $0x6e0] sm:$0xff] %vm1842_vm2, %v4402_v13  ;;  %v4171_v9 = vmul.f32 0.1, %v15499_v61  ;;  %v15500_v13 = vld [vmem:[#allocation249_spill] sm:$0xff]  ;;  %v4425_v45 = vmax.f32 %v15497_v62, %v4169_v59 }
 0x68c   :  { %4659 = vst.msk [vmem:[%s13162_s5 + $0x6e8] sm:$0xff] %vm1842_vm2, %v4403_v1  ;;  %v4172_v34 = vmul.f32 0.1, %v15500_v13  ;;  %v15501_v1 = vld [vmem:[#allocation250_spill] sm:$0xff]  ;;  %v4426_v46 = vmax.f32 %v15498_v42, %v4170_v5 }
 0x68d   :  { %4660 = vst.msk [vmem:[%s13162_s5 + $0x6f0] sm:$0xff] %vm1842_vm2, %v4404_v7  ;;  %v4173_v20 = vmul.f32 0.1, %v15501_v1  ;;  %v15502_v7 = vld [vmem:[#allocation251_spill] sm:$0xff]  ;;  %v4427_v14 = vmax.f32 %v15499_v61, %v4171_v9 }
 0x68e   :  { %4661 = vst.msk [vmem:[%s13162_s5 + $0x6f8] sm:$0xff] %vm1842_vm2, %v4405_v25  ;;  %v4174_v15 = vmul.f32 0.1, %v15502_v7  ;;  %v15503_v25 = vld [vmem:[#allocation252_spill] sm:$0xff]  ;;  %v4428_v19 = vmax.f32 %v15500_v13, %v4172_v34 }
 0x68f   :  { %4662 = vst.msk [vmem:[%s13162_s5 + $0x700] sm:$0xff] %vm1842_vm2, %v4406_v38  ;;  %v4175_v50 = vmul.f32 0.1, %v15503_v25  ;;  %v15504_v38 = vld [vmem:[#allocation253_spill] sm:$0xff]  ;;  %v4429_v4 = vmax.f32 %v15501_v1, %v4173_v20 }
 0x690   :  { %4663 = vst.msk [vmem:[%s13162_s5 + $0x708] sm:$0xff] %vm1842_vm2, %v4407_v27  ;;  %v4176_v3 = vmul.f32 0.1, %v15504_v38  ;;  %v15505_v27 = vld [vmem:[#allocation254_spill] sm:$0xff]  ;;  %v4430_v37 = vmax.f32 %v15502_v7, %v4174_v15 }
 0x691   :  { %4664 = vst.msk [vmem:[%s13162_s5 + $0x710] sm:$0xff] %vm1842_vm2, %v4408_v57  ;;  %v4177_v31 = vmul.f32 0.1, %v15505_v27  ;;  %v15506_v57 = vld [vmem:[#allocation255_spill] sm:$0xff]  ;;  %v4431_v51 = vmax.f32 %v15503_v25, %v4175_v50 }
 0x692   :  { %4665 = vst.msk [vmem:[%s13162_s5 + $0x718] sm:$0xff] %vm1842_vm2, %v4409_v47  ;;  %v4178_v32 = vmul.f32 0.1, %v15506_v57  ;;  %v15507_v47 = vld [vmem:[#allocation256_spill] sm:$0xff]  ;;  %v4432_v16 = vmax.f32 %v15504_v38, %v4176_v3 }
 0x693   :  { %4666 = vst.msk [vmem:[%s13162_s5 + $0x720] sm:$0xff] %vm1842_vm2, %v4410_v29  ;;  %v4179_v52 = vmul.f32 0.1, %v15507_v47  ;;  %v15508_v29 = vld [vmem:[#allocation257_spill] sm:$0xff]  ;;  %v4433_v48 = vmax.f32 %v15505_v27, %v4177_v31 }
 0x694   :  { %4667 = vst.msk [vmem:[%s13162_s5 + $0x728] sm:$0xff] %vm1842_vm2, %v4411_v0  ;;  %v4180_v39 = vmul.f32 0.1, %v15508_v29  ;;  %v15509_v0 = vld [vmem:[#allocation258_spill] sm:$0xff] }
 0x695   :  { %4668 = vst.msk [vmem:[%s13162_s5 + $0x730] sm:$0xff] %vm1842_vm2, %v4412_v28  ;;  %v4181_v58 = vmul.f32 0.1, %v15509_v0  ;;  %v4434_v28 = vmax.f32 %v15506_v57, %v4178_v32  ;;  %v4435_v6 = vmax.f32 %v15507_v47, %v4179_v52 }
 0x696   :  { %4669 = vst.msk [vmem:[%s13162_s5 + $0x738] sm:$0xff] %vm1842_vm2, %v4413_v54  ;;  %v4436_v63 = vmax.f32 %v15508_v29, %v4180_v39 }
 0x697   :  { %4670 = vst.msk [vmem:[%s13162_s5 + $0x740] sm:$0xff] %vm1842_vm2, %v4414_v43  ;;  %v4437_v54 = vmax.f32 %v15509_v0, %v4181_v58 }
 0x698   :  { %4671 = vst.msk [vmem:[%s13162_s5 + $0x748] sm:$0xff] %vm1842_vm2, %v4415_v10 }
 0x699   :  { %4672 = vst.msk [vmem:[%s13162_s5 + $0x750] sm:$0xff] %vm1842_vm2, %v4416_v30 }
 0x69a   :  { %4673 = vst.msk [vmem:[%s13162_s5 + $0x758] sm:$0xff] %vm1842_vm2, %v4417_v18 }
 0x69b   :  { %4674 = vst.msk [vmem:[%s13162_s5 + $0x760] sm:$0xff] %vm1842_vm2, %v4418_v41 }
 0x69c   :  { %4675 = vst.msk [vmem:[%s13162_s5 + $0x768] sm:$0xff] %vm1842_vm2, %v4419_v24 }
 0x69d   :  { %4676 = vst.msk [vmem:[%s13162_s5 + $0x770] sm:$0xff] %vm1842_vm2, %v4420_v23 }
 0x69e   :  { %4677 = vst.msk [vmem:[%s13162_s5 + $0x778] sm:$0xff] %vm1842_vm2, %v4421_v35 }
 0x69f   :  { %4678 = vst.msk [vmem:[%s13162_s5 + $0x780] sm:$0xff] %vm1842_vm2, %v4422_v55 }
 0x6a0   :  { %4679 = vst.msk [vmem:[%s13162_s5 + $0x788] sm:$0xff] %vm1842_vm2, %v4423_v56 }
 0x6a1   :  { %4680 = vst.msk [vmem:[%s13162_s5 + $0x790] sm:$0xff] %vm1842_vm2, %v4424_v53 }
 0x6a2   :  { %4681 = vst.msk [vmem:[%s13162_s5 + $0x798] sm:$0xff] %vm1842_vm2, %v4425_v45 }
 0x6a3   :  { %4682 = vst.msk [vmem:[%s13162_s5 + $0x7a0] sm:$0xff] %vm1842_vm2, %v4426_v46 }
 0x6a4   :  { %4683 = vst.msk [vmem:[%s13162_s5 + $0x7a8] sm:$0xff] %vm1842_vm2, %v4427_v14 }
 0x6a5   :  { %4684 = vst.msk [vmem:[%s13162_s5 + $0x7b0] sm:$0xff] %vm1842_vm2, %v4428_v19 }
 0x6a6   :  { %4685 = vst.msk [vmem:[%s13162_s5 + $0x7b8] sm:$0xff] %vm1842_vm2, %v4429_v4 }
 0x6a7   :  { %4686 = vst.msk [vmem:[%s13162_s5 + $0x7c0] sm:$0xff] %vm1842_vm2, %v4430_v37 }
 0x6a8   :  { %4687 = vst.msk [vmem:[%s13162_s5 + $0x7c8] sm:$0xff] %vm1842_vm2, %v4431_v51 }
 0x6a9   :  { %4688 = vst.msk [vmem:[%s13162_s5 + $0x7d0] sm:$0xff] %vm1842_vm2, %v4432_v16 }
 0x6aa   :  { %4689 = vst.msk [vmem:[%s13162_s5 + $0x7d8] sm:$0xff] %vm1842_vm2, %v4433_v48 }
 0x6ab   :  { %4690 = vst.msk [vmem:[%s13162_s5 + $0x7e0] sm:$0xff] %vm1842_vm2, %v4434_v28 }
 0x6ac   :  { %4691 = vst.msk [vmem:[%s13162_s5 + $0x7e8] sm:$0xff] %vm1842_vm2, %v4435_v6 }
 0x6ad   :  { %4692 = vst.msk [vmem:[%s13162_s5 + $0x7f0] sm:$0xff] %vm1842_vm2, %v4436_v63 }
 0x6ae   :  { %4693 = vst.msk [vmem:[%s13162_s5 + $0x7f8] sm:$0xff] %vm1842_vm2, %v4437_v54 }

// kernel: latent_state_encoder_flow_forward.6
= control target key start
LH: loop header
LB: loop body
LE: loop exit
PB: predicated region body
PF: predicated region fallthrough
CT: control target
= control target key end

     0   :  { %vm97_vm0 = vcmask 588800   ;;  %vm499_vm1 = vcmask 130048   ;;  %s3134_s1 = inlined_call_operand.vmem [shape: f32[72,16], index: 1, kind: input, shape index: {}]   ;;  %s3135_s2 = inlined_call_operand.vmem [shape: f32[1,16], index: 2, kind: input, shape index: {}]   ;;  %s3136_s0 = inlined_call_operand.vmem [shape: f32[512,72], index: 0, kind: input, shape index: {}]   ;;  %s3137_s4 = inlined_call_operand.vmem [shape: f32[1,16], index: 4, kind: input, shape index: {}]   ;;  %s3138_s3 = inlined_call_operand.vmem [shape: f32[1,16], index: 3, kind: input, shape index: {}]   ;;  %s3139_s5 = inlined_call_operand.vmem [shape: f32[512,16], index: 5, kind: output, shape index: {}]  }
   0x1   :  { %v92_v0 = vld [vmem:[%s3134_s1 + $0x40] sm:$0xff]  ;;  %v91_v1 = vld [vmem:[%s3134_s1 + $0x38] sm:$0xff]  ;;  %v90_v2 = vld [vmem:[%s3134_s1 + $0x30] sm:$0xff] }
   0x2   :  { %297 = vmatpush.msra.mxu0 %v92_v0  ;;  %1307 = vmatpush.msra.mxu1 %v92_v0  ;;  %v89_v3 = vld [vmem:[%s3134_s1 + $0x28] sm:$0xff]  ;;  %v88_v4 = vld [vmem:[%s3134_s1 + $0x20] sm:$0xff]  ;;  %v87_v5 = vld [vmem:[%s3134_s1 + $0x18] sm:$0xff] }
   0x3   :  { %1308 = vmatpush.msra.mxu2 %v92_v0  ;;  %1309 = vmatpush.msra.mxu3 %v92_v0  ;;  %v86_v6 = vld [vmem:[%s3134_s1 + $0x10] sm:$0xff]  ;;  %v85_v7 = vld [vmem:[%s3134_s1 + $0x8] sm:$0xff]  ;;  %v84_v8 = vld [vmem:[%s3134_s1] sm:$0xff] }
   0x4   :  { %298 = vmatpush.msra.mxu0 %v91_v1  ;;  %1310 = vmatpush.msra.mxu1 %v91_v1  ;;  %v20_v9 = vld [vmem:[%s3136_s0] sm:$0xff]  ;;  %v21_v11 = vld [vmem:[%s3136_s0 + $0x8] sm:$0xff]  ;;  %v22_v13 = vld [vmem:[%s3136_s0 + $0x10] sm:$0xff] }
   0x5   :  { %1311 = vmatpush.msra.mxu2 %v91_v1  ;;  %1312 = vmatpush.msra.mxu3 %v91_v1  ;;  %v36_v10 = vld [vmem:[%s3136_s0 + $0x80] sm:$0xff]  ;;  %v37_v12 = vld [vmem:[%s3136_s0 + $0x88] sm:$0xff]  ;;  %v38_v14 = vld [vmem:[%s3136_s0 + $0x90] sm:$0xff] }
   0x6   :  { %299 = vmatpush.msra.mxu0 %v90_v2  ;;  %1313 = vmatpush.msra.mxu1 %v90_v2  ;;  %v23_v15 = vld [vmem:[%s3136_s0 + $0x18] sm:$0xff]  ;;  %v52_v17 = vld [vmem:[%s3136_s0 + $0x100] sm:$0xff]  ;;  %v53_v20 = vld [vmem:[%s3136_s0 + $0x108] sm:$0xff] }
   0x7   :  { %1314 = vmatpush.msra.mxu2 %v90_v2  ;;  %1315 = vmatpush.msra.mxu3 %v90_v2  ;;  %v39_v16 = vld [vmem:[%s3136_s0 + $0x98] sm:$0xff]  ;;  %v24_v18 = vld [vmem:[%s3136_s0 + $0x20] sm:$0xff]  ;;  %v25_v21 = vld [vmem:[%s3136_s0 + $0x28] sm:$0xff] }
   0x8   :  { %300 = vmatpush.msra.mxu0 %v89_v3  ;;  %1316 = vmatpush.msra.mxu1 %v89_v3  ;;  %v40_v19 = vld [vmem:[%s3136_s0 + $0xa0] sm:$0xff]  ;;  %v41_v22 = vld [vmem:[%s3136_s0 + $0xa8] sm:$0xff]  ;;  %v54_v23 = vld [vmem:[%s3136_s0 + $0x110] sm:$0xff] }
   0x9   :  { %1317 = vmatpush.msra.mxu2 %v89_v3  ;;  %1318 = vmatpush.msra.mxu3 %v89_v3  ;;  %v26_v24 = vld [vmem:[%s3136_s0 + $0x30] sm:$0xff]  ;;  %v55_v26 = vld [vmem:[%s3136_s0 + $0x118] sm:$0xff]  ;;  %v56_v29 = vld [vmem:[%s3136_s0 + $0x120] sm:$0xff] }
   0xa   :  { %301 = vmatpush.msra.mxu0 %v88_v4  ;;  %1319 = vmatpush.msra.mxu1 %v88_v4  ;;  %v42_v25 = vld [vmem:[%s3136_s0 + $0xb0] sm:$0xff]  ;;  %v27_v27 = vld [vmem:[%s3136_s0 + $0x38] sm:$0xff]  ;;  %v68_v30 = vld [vmem:[%s3136_s0 + $0x180] sm:$0xff] }
   0xb   :  { %1320 = vmatpush.msra.mxu2 %v88_v4  ;;  %1321 = vmatpush.msra.mxu3 %v88_v4  ;;  %v43_v28 = vld [vmem:[%s3136_s0 + $0xb8] sm:$0xff]  ;;  %v28_v31 = vld [vmem:[%s3136_s0 + $0x40] sm:$0xff]  ;;  %v57_v33 = vld [vmem:[%s3136_s0 + $0x128] sm:$0xff] }
   0xc   :  { %302 = vmatpush.msra.mxu0 %v87_v5  ;;  %1322 = vmatpush.msra.mxu1 %v87_v5  ;;  %v44_v32 = vld [vmem:[%s3136_s0 + $0xc0] sm:$0xff]  ;;  %v69_v34 = vld [vmem:[%s3136_s0 + $0x188] sm:$0xff]  ;;  %v58_v37 = vld [vmem:[%s3136_s0 + $0x130] sm:$0xff] }
   0xd   :  { %1323 = vmatpush.msra.mxu2 %v87_v5  ;;  %1324 = vmatpush.msra.mxu3 %v87_v5  ;;  %v29_v35 = vld [vmem:[%s3136_s0 + $0x48] sm:$0xff]  ;;  %v70_v38 = vld [vmem:[%s3136_s0 + $0x190] sm:$0xff]  ;;  %v59_v41 = vld [vmem:[%s3136_s0 + $0x138] sm:$0xff] }
   0xe   :  { %303 = vmatpush.msra.mxu0 %v86_v6  ;;  %1325 = vmatpush.msra.mxu1 %v86_v6  ;;  %v45_v36 = vld [vmem:[%s3136_s0 + $0xc8] sm:$0xff]  ;;  %v30_v39 = vld [vmem:[%s3136_s0 + $0x50] sm:$0xff]  ;;  %v71_v42 = vld [vmem:[%s3136_s0 + $0x198] sm:$0xff] }
   0xf   :  { %1326 = vmatpush.msra.mxu2 %v86_v6  ;;  %1327 = vmatpush.msra.mxu3 %v86_v6  ;;  %v46_v40 = vld [vmem:[%s3136_s0 + $0xd0] sm:$0xff]  ;;  %v31_v43 = vld [vmem:[%s3136_s0 + $0x58] sm:$0xff]  ;;  %v60_v45 = vld [vmem:[%s3136_s0 + $0x140] sm:$0xff] }
  0x10   :  { %304 = vmatpush.msra.mxu0 %v85_v7  ;;  %1328 = vmatpush.msra.mxu1 %v85_v7  ;;  %v47_v44 = vld [vmem:[%s3136_s0 + $0xd8] sm:$0xff]  ;;  %v72_v46 = vld [vmem:[%s3136_s0 + $0x1a0] sm:$0xff]  ;;  %v61_v49 = vld [vmem:[%s3136_s0 + $0x148] sm:$0xff] }
  0x11   :  { %1329 = vmatpush.msra.mxu2 %v85_v7  ;;  %1330 = vmatpush.msra.mxu3 %v85_v7  ;;  %v32_v47 = vld [vmem:[%s3136_s0 + $0x60] sm:$0xff]  ;;  %v73_v50 = vld [vmem:[%s3136_s0 + $0x1a8] sm:$0xff]  ;;  %v62_v53 = vld [vmem:[%s3136_s0 + $0x150] sm:$0xff] }
  0x12   :  { %305 = vmatpush.msra.mxu0 %v84_v8  ;;  %1331 = vmatpush.msra.mxu1 %v84_v8  ;;  %v48_v48 = vld [vmem:[%s3136_s0 + $0xe0] sm:$0xff]  ;;  %v33_v51 = vld [vmem:[%s3136_s0 + $0x68] sm:$0xff]  ;;  %v74_v54 = vld [vmem:[%s3136_s0 + $0x1b0] sm:$0xff] }
  0x13   :  { %1243 = vmatmul.msk.f32.vlgmr.msra.gmra.mxu0 %vm97_vm0, %v20_v9  ;;  %1259 = vmatmul.msk.f32.vlgmr.msra.gmra.mxu1 %vm97_vm0, %v36_v10  ;;  %v49_v52 = vld [vmem:[%s3136_s0 + $0xe8] sm:$0xff]  ;;  %v34_v55 = vld [vmem:[%s3136_s0 + $0x70] sm:$0xff]  ;;  %v63_v57 = vld [vmem:[%s3136_s0 + $0x158] sm:$0xff] }
  0x14   :  { %1332 = vmatpush.msra.mxu2 %v84_v8  ;;  %1333 = vmatpush.msra.mxu3 %v84_v8  ;;  %v50_v56 = vld [vmem:[%s3136_s0 + $0xf0] sm:$0xff]  ;;  %v75_v58 = vld [vmem:[%s3136_s0 + $0x1b8] sm:$0xff]  ;;  %v64_v61 = vld [vmem:[%s3136_s0 + $0x160] sm:$0xff] }
  0x15   :  { %1275 = vmatmul.msk.f32.vlgmr.msra.gmra.mxu2 %vm97_vm0, %v52_v17  ;;  %1291 = vmatmul.msk.f32.vlgmr.msra.gmra.mxu3 %vm97_vm0, %v68_v30  ;;  %v35_v59 = vld [vmem:[%s3136_s0 + $0x78] sm:$0xff]  ;;  %v76_v62 = vld [vmem:[%s3136_s0 + $0x1c0] sm:$0xff]  ;;  %v65_v1 = vld [vmem:[%s3136_s0 + $0x168] sm:$0xff] }
  0x16   :  { %v51_v60 = vld [vmem:[%s3136_s0 + $0xf8] sm:$0xff]  ;;  %v77_v2 = vld [vmem:[%s3136_s0 + $0x1c8] sm:$0xff]  ;;  %v66_v5 = vld [vmem:[%s3136_s0 + $0x170] sm:$0xff] }
  0x17   :  { %v78_v6 = vld [vmem:[%s3136_s0 + $0x1d0] sm:$0xff]  ;;  %v67_v9 = vld [vmem:[%s3136_s0 + $0x178] sm:$0xff]  ;;  %v81_v17 = vld [vmem:[%s3136_s0 + $0x1e8] sm:$0xff] }
  0x18   :  { %v79_v10 = vld [vmem:[%s3136_s0 + $0x1d8] sm:$0xff] }
  0x1b   :  { %1244 = vmatmul.msk.f32.gmra.mxu0 %vm97_vm0, %v21_v11  ;;  %1260 = vmatmul.msk.f32.gmra.mxu1 %vm97_vm0, %v37_v12 }
  0x1d   :  { %1276 = vmatmul.msk.f32.gmra.mxu2 %vm97_vm0, %v53_v20  ;;  %1292 = vmatmul.msk.f32.gmra.mxu3 %vm97_vm0, %v69_v34 }
  0x23   :  { %1245 = vmatmul.msk.f32.gmra.mxu0 %vm97_vm0, %v22_v13  ;;  %1261 = vmatmul.msk.f32.gmra.mxu1 %vm97_vm0, %v38_v14  ;;  %v80_v13 = vld [vmem:[%s3136_s0 + $0x1e0] sm:$0xff] }
  0x25   :  { %1277 = vmatmul.msk.f32.gmra.mxu2 %vm97_vm0, %v54_v23  ;;  %1293 = vmatmul.msk.f32.gmra.mxu3 %vm97_vm0, %v70_v38  ;;  %v1690_v38 = vld [vmem:[%s3135_s2] ss:$0 sm:$0xff] }
  0x2b   :  { %1246 = vmatmul.msk.f32.gmra.mxu0 %vm97_vm0, %v23_v15  ;;  %1262 = vmatmul.msk.f32.gmra.mxu1 %vm97_vm0, %v39_v16 }
  0x2d   :  { %1278 = vmatmul.msk.f32.gmra.mxu2 %vm97_vm0, %v55_v26  ;;  %1294 = vmatmul.msk.f32.gmra.mxu3 %vm97_vm0, %v71_v42 }
  0x33   :  { %1247 = vmatmul.msk.f32.gmra.mxu0 %vm97_vm0, %v24_v18  ;;  %1263 = vmatmul.msk.f32.gmra.mxu1 %vm97_vm0, %v40_v19 }
  0x35   :  { %1279 = vmatmul.msk.f32.gmra.mxu2 %vm97_vm0, %v56_v29  ;;  %1295 = vmatmul.msk.f32.gmra.mxu3 %vm97_vm0, %v72_v46 }
  0x3b   :  { %1248 = vmatmul.msk.f32.gmra.mxu0 %vm97_vm0, %v25_v21  ;;  %1264 = vmatmul.msk.f32.gmra.mxu1 %vm97_vm0, %v41_v22  ;;  %v82_v21 = vld [vmem:[%s3136_s0 + $0x1f0] sm:$0xff] }
  0x3d   :  { %1280 = vmatmul.msk.f32.gmra.mxu2 %vm97_vm0, %v57_v33  ;;  %1296 = vmatmul.msk.f32.gmra.mxu3 %vm97_vm0, %v73_v50 }
  0x43   :  { %1249 = vmatmul.msk.f32.gmra.mxu0 %vm97_vm0, %v26_v24  ;;  %1265 = vmatmul.msk.f32.gmra.mxu1 %vm97_vm0, %v42_v25  ;;  %v83_v24 = vld [vmem:[%s3136_s0 + $0x1f8] sm:$0xff] }
  0x45   :  { %1281 = vmatmul.msk.f32.gmra.mxu2 %vm97_vm0, %v58_v37  ;;  %1297 = vmatmul.msk.f32.gmra.mxu3 %vm97_vm0, %v74_v54 }
  0x4b   :  { %1250 = vmatmul.msk.f32.gmra.mxu0 %vm97_vm0, %v27_v27  ;;  %1266 = vmatmul.msk.f32.gmra.mxu1 %vm97_vm0, %v43_v28 }
  0x4d   :  { %1282 = vmatmul.msk.f32.gmra.mxu2 %vm97_vm0, %v59_v41  ;;  %1298 = vmatmul.msk.f32.gmra.mxu3 %vm97_vm0, %v75_v58 }
  0x53   :  { %1251 = vmatmul.msk.f32.gmra.mxu0 %vm97_vm0, %v28_v31  ;;  %1267 = vmatmul.msk.f32.gmra.mxu1 %vm97_vm0, %v44_v32 }
  0x55   :  { %1283 = vmatmul.msk.f32.gmra.mxu2 %vm97_vm0, %v60_v45  ;;  %1299 = vmatmul.msk.f32.gmra.mxu3 %vm97_vm0, %v76_v62 }
  0x5b   :  { %1252 = vmatmul.msk.f32.gmra.mxu0 %vm97_vm0, %v29_v35  ;;  %1268 = vmatmul.msk.f32.gmra.mxu1 %vm97_vm0, %v45_v36 }
  0x5d   :  { %1284 = vmatmul.msk.f32.gmra.mxu2 %vm97_vm0, %v61_v49  ;;  %1300 = vmatmul.msk.f32.gmra.mxu3 %vm97_vm0, %v77_v2 }
  0x63   :  { %1253 = vmatmul.msk.f32.gmra.mxu0 %vm97_vm0, %v30_v39  ;;  %1269 = vmatmul.msk.f32.gmra.mxu1 %vm97_vm0, %v46_v40 }
  0x65   :  { %1285 = vmatmul.msk.f32.gmra.mxu2 %vm97_vm0, %v62_v53  ;;  %1301 = vmatmul.msk.f32.gmra.mxu3 %vm97_vm0, %v78_v6 }
  0x6b   :  { %1254 = vmatmul.msk.f32.gmra.mxu0 %vm97_vm0, %v31_v43  ;;  %1270 = vmatmul.msk.f32.gmra.mxu1 %vm97_vm0, %v47_v44 }
  0x6d   :  { %1286 = vmatmul.msk.f32.gmra.mxu2 %vm97_vm0, %v63_v57  ;;  %1302 = vmatmul.msk.f32.gmra.mxu3 %vm97_vm0, %v79_v10 }
  0x73   :  { %1255 = vmatmul.msk.f32.gmra.mxu0 %vm97_vm0, %v32_v47  ;;  %1271 = vmatmul.msk.f32.gmra.mxu1 %vm97_vm0, %v48_v48 }
  0x75   :  { %1287 = vmatmul.msk.f32.gmra.mxu2 %vm97_vm0, %v64_v61  ;;  %1303 = vmatmul.msk.f32.gmra.mxu3 %vm97_vm0, %v80_v13 }
  0x7b   :  { %1256 = vmatmul.msk.f32.gmra.mxu0 %vm97_vm0, %v33_v51  ;;  %1272 = vmatmul.msk.f32.gmra.mxu1 %vm97_vm0, %v49_v52 }
  0x7d   :  { %1288 = vmatmul.msk.f32.gmra.mxu2 %vm97_vm0, %v65_v1  ;;  %1304 = vmatmul.msk.f32.gmra.mxu3 %vm97_vm0, %v81_v17 }
  0x83   :  { %1257 = vmatmul.msk.f32.gmra.mxu0 %vm97_vm0, %v34_v55  ;;  %1273 = vmatmul.msk.f32.gmra.mxu1 %vm97_vm0, %v50_v56 }
  0x85   :  { %1289 = vmatmul.msk.f32.gmra.mxu2 %vm97_vm0, %v66_v5  ;;  %1305 = vmatmul.msk.f32.gmra.mxu3 %vm97_vm0, %v82_v21 }
  0x8b   :  { %1258 = vmatmul.msk.f32.gmra.mxu0 %vm97_vm0, %v35_v59  ;;  %1274 = vmatmul.msk.f32.gmra.mxu1 %vm97_vm0, %v51_v60 }
  0x8d   :  { %1290 = vmatmul.msk.f32.gmra.mxu2 %vm97_vm0, %v67_v9  ;;  %1306 = vmatmul.msk.f32.gmra.mxu3 %vm97_vm0, %v83_v24 }
  0x90   :  { %v307_v63 = vpop.f32.mrf.mxu0  ;;  %v1611_v0 = vpop.f32.mrf.mxu1 }
  0x91   :  { %v1700_v42 = vadd.f32 %v1690_v38, %v307_v63 }
  0x93   :  { %v633_v48 = vmul.f32 %v1700_v42, %v1700_v42  ;;  %v500_v52 = vsel %vm499_vm1, %v1700_v42, 0.0 }
  0x95   :  { %v697_v58 = vsel %vm499_vm1, %v633_v48, 0.0 }
  0x98   :  { %v310_v3 = vpop.f32.mrf.mxu0  ;;  %v1621_v4 = vpop.f32.mrf.mxu1 }
  0x99   :  { %v1647_v15 = vpop.f32.mrf.mxu2  ;;  %v1675_v30 = vpop.f32.mrf.mxu3  ;;  %v1697_v41 = vadd.f32 %v1690_v38, %v310_v3 }
  0x9b   :  { %v634_v46 = vmul.f32 %v1697_v41, %v1697_v41  ;;  %v501_v49 = vsel %vm499_vm1, %v1697_v41, 0.0 }
  0x9c   :  { %v502_v59 = vadd.f32 %v501_v49, %v500_v52 }
  0x9d   :  { %v698_v54 = vsel %vm499_vm1, %v634_v46, 0.0 }
  0x9e   :  { %v699_v3 = vadd.f32 %v698_v54, %v697_v58 }
  0xa0   :  { %v313_v7 = vpop.f32.mrf.mxu0  ;;  %v1631_v8 = vpop.f32.mrf.mxu1 }
  0xa1   :  { %v1655_v19 = vpop.f32.mrf.mxu2  ;;  %v1679_v33 = vpop.f32.mrf.mxu3  ;;  %v1703_v44 = vadd.f32 %v1690_v38, %v313_v7 }
  0xa3   :  { %v635_v50 = vmul.f32 %v1703_v44, %v1703_v44  ;;  %v503_v55 = vsel %vm499_vm1, %v1703_v44, 0.0 }
  0xa4   :  { %v504_v5 = vadd.f32 %v503_v55, %v502_v59 }
  0xa5   :  { %v700_v62 = vsel %vm499_vm1, %v635_v50, 0.0 }
  0xa6   :  { %v701_v13 = vadd.f32 %v700_v62, %v699_v3 }
  0xa8   :  { %v316_v11 = vpop.f32.mrf.mxu0  ;;  %v1641_v12 = vpop.f32.mrf.mxu1 }
  0xa9   :  { %v1663_v23 = vpop.f32.mrf.mxu2  ;;  %v1685_v37 = vpop.f32.mrf.mxu3  ;;  %v1710_v47 = vadd.f32 %v1690_v38, %v316_v11 }
  0xab   :  { %v636_v56 = vmul.f32 %v1710_v47, %v1710_v47  ;;  %v505_v63 = vsel %vm499_vm1, %v1710_v47, 0.0 }
  0xad   :  { %v702_v7 = vsel %vm499_vm1, %v636_v56, 0.0 }
  0xae   :  { %v703_v24 = vadd.f32 %v702_v7, %v701_v13 }
  0xb0   :  { %v319_v14 = vpop.f32.mrf.mxu0  ;;  %v1649_v16 = vpop.f32.mrf.mxu1 }
  0xb1   :  { %v1671_v27 = vpop.f32.mrf.mxu2  ;;  %v1705_v45 = vpop.f32.mrf.mxu3  ;;  %v1719_v51 = vadd.f32 %v1690_v38, %v319_v14  ;;  %v506_v14 = vadd.f32 %v505_v63, %v504_v5 }
  0xb3   :  { %v637_v1 = vmul.f32 %v1719_v51, %v1719_v51  ;;  %v507_v9 = vsel %vm499_vm1, %v1719_v51, 0.0 }
  0xb4   :  { %v508_v46 = vadd.f32 %v507_v9, %v506_v14 }
  0xb5   :  { %v704_v17 = vsel %vm499_vm1, %v637_v1, 0.0 }
  0xb6   :  { %v705_v52 = vadd.f32 %v704_v17, %v703_v24 }
  0xb8   :  { %v322_v18 = vpop.f32.mrf.mxu0  ;;  %v1657_v20 = vpop.f32.mrf.mxu1 }
  0xb9   :  { %v1677_v31 = vpop.f32.mrf.mxu2  ;;  %v1731_v57 = vadd.f32 %v1690_v38, %v322_v18  ;;  %v1744_v6 = vpop.f32.mrf.mxu3 }
  0xbb   :  { %v638_v10 = vmul.f32 %v1731_v57, %v1731_v57  ;;  %v509_v18 = vsel %vm499_vm1, %v1731_v57, 0.0 }
  0xbc   :  { %v510_v54 = vadd.f32 %v509_v18, %v508_v46 }
  0xbd   :  { %v706_v48 = vsel %vm499_vm1, %v638_v10, 0.0 }
  0xbe   :  { %v707_v63 = vadd.f32 %v706_v48, %v705_v52 }
  0xc0   :  { %v325_v22 = vpop.f32.mrf.mxu0  ;;  %v1669_v25 = vpop.f32.mrf.mxu1 }
  0xc1   :  { %v1683_v35 = vpop.f32.mrf.mxu2  ;;  %v1742_v2 = vadd.f32 %v1690_v38, %v325_v22  ;;  %v1790_v14 = vpop.f32.mrf.mxu3 }
  0xc3   :  { %v639_v21 = vmul.f32 %v1742_v2, %v1742_v2 }
  0xc8   :  { %v328_v26 = vpop.f32.mrf.mxu0  ;;  %v1673_v29 = vpop.f32.mrf.mxu1 }
  0xc9   :  { %v1694_v40 = vpop.f32.mrf.mxu2  ;;  %v1752_v11 = vadd.f32 %v1690_v38, %v328_v26  ;;  %v511_v26 = vsel %vm499_vm1, %v1742_v2, 0.0 }
  0xca   :  { %v512_v1 = vadd.f32 %v511_v26, %v510_v54 }
  0xcb   :  { %v640_v49 = vmul.f32 %v1752_v11, %v1752_v11  ;;  %v513_v58 = vsel %vm499_vm1, %v1752_v11, 0.0 }
  0xcc   :  { %v514_v13 = vadd.f32 %v513_v58, %v512_v1 }
  0xcd   :  { %v710_v3 = vsel %vm499_vm1, %v640_v49, 0.0 }
  0xd0   :  { %v331_v28 = vpop.f32.mrf.mxu0  ;;  %v1681_v34 = vpop.f32.mrf.mxu1 }
  0xd1   :  { %v1734_v61 = vpop.f32.mrf.mxu2  ;;  %v1760_v22 = vadd.f32 %v1690_v38, %v331_v28  ;;  %v708_v28 = vsel %vm499_vm1, %v639_v21, 0.0 }
  0xd2   :  { %v709_v10 = vadd.f32 %v708_v28, %v707_v63 }
  0xd3   :  { %v641_v59 = vmul.f32 %v1760_v22, %v1760_v22  ;;  %v515_v5 = vsel %vm499_vm1, %v1760_v22, 0.0 }
  0xd4   :  { %v711_v24 = vadd.f32 %v710_v3, %v709_v10  ;;  %v516_v46 = vadd.f32 %v515_v5, %v514_v13 }
  0xd8   :  { %v334_v32 = vpop.f32.mrf.mxu0  ;;  %v1692_v39 = vpop.f32.mrf.mxu1 }
  0xd9   :  { %v1768_v50 = vadd.f32 %v1690_v38, %v334_v32  ;;  %v1780_v32 = vpop.f32.mrf.mxu2 }
  0xdb   :  { %v642_v7 = vmul.f32 %v1768_v50, %v1768_v50  ;;  %v517_v17 = vsel %vm499_vm1, %v1768_v50, 0.0 }
  0xdc   :  { %v518_v54 = vadd.f32 %v517_v17, %v516_v46 }
  0xe0   :  { %v337_v36 = vpop.f32.mrf.mxu0  ;;  %v1723_v53 = vpop.f32.mrf.mxu1 }
  0xe1   :  { %v1778_v62 = vadd.f32 %v1690_v38, %v337_v36  ;;  %v712_v36 = vsel %vm499_vm1, %v641_v59, 0.0  ;;  %v1823_v17 = vpop.f32.mrf.mxu2 }
  0xe2   :  { %v713_v52 = vadd.f32 %v712_v36, %v711_v24 }
  0xe3   :  { %v643_v18 = vmul.f32 %v1778_v62, %v1778_v62  ;;  %v519_v48 = vsel %vm499_vm1, %v1778_v62, 0.0 }
  0xe4   :  { %v520_v3 = vadd.f32 %v519_v48, %v518_v54 }
  0xe5   :  { %v716_v58 = vsel %vm499_vm1, %v643_v18, 0.0 }
  0xe8   :  { %v340_v43 = vpop.f32.mrf.mxu0  ;;  %v1770_v56 = vpop.f32.mrf.mxu1 }
  0xe9   :  { %v1788_v9 = vadd.f32 %v1690_v38, %v340_v43  ;;  %v714_v43 = vsel %vm499_vm1, %v642_v7, 0.0 }
  0xea   :  { %v715_v1 = vadd.f32 %v714_v43, %v713_v52  ;;  %v1834_v52 = vadd.f32 %v1690_v38, %v1611_v0 }
  0xeb   :  { %v644_v26 = vmul.f32 %v1788_v9, %v1788_v9 }
  0xec   :  { %v717_v13 = vadd.f32 %v716_v58, %v715_v1  ;;  %3198 = vst [vmem:[#allocation2_spill] sm:$0xff] %v1834_v52  ;;  %v1841_v1 = vadd.f32 %v1690_v38, %v1621_v4 }
  0xf0   :  { %v343_v60 = vpop.f32.mrf.mxu0  ;;  %v1816_v5 = vpop.f32.mrf.mxu1 }
  0xf1   :  { %v1798_v21 = vadd.f32 %v1690_v38, %v343_v60  ;;  %v521_v60 = vsel %vm499_vm1, %v1788_v9, 0.0 }
  0xf2   :  { %v522_v36 = vadd.f32 %v521_v60, %v520_v3 }
  0xf3   :  { %v645_v59 = vmul.f32 %v1798_v21, %v1798_v21  ;;  %v523_v7 = vsel %vm499_vm1, %v1798_v21, 0.0 }
  0xf4   :  { %v524_v48 = vadd.f32 %v523_v7, %v522_v36 }
  0xf5   :  { %v720_v18 = vsel %vm499_vm1, %v645_v59, 0.0 }
  0xf8   :  { %v346_v55 = vpop.f32.mrf.mxu0 }
  0xf9   :  { %v1806_v49 = vadd.f32 %v1690_v38, %v346_v55  ;;  %v718_v55 = vsel %vm499_vm1, %v644_v26, 0.0  ;;  %v1830_v26 = vpop.f32.mrf.mxu3 }
  0xfa   :  { %v719_v43 = vadd.f32 %v718_v55, %v717_v13  ;;  %v1851_v13 = vadd.f32 %v1690_v38, %v1631_v8  ;;  %v1865_v8 = vadd.f32 %v1690_v38, %v1641_v12 }
  0xfb   :  { %v646_v10 = vmul.f32 %v1806_v49, %v1806_v49  ;;  %v525_v24 = vsel %vm499_vm1, %v1806_v49, 0.0 }
  0xfc   :  { %v721_v58 = vadd.f32 %v720_v18, %v719_v43  ;;  %v526_v60 = vadd.f32 %v525_v24, %v524_v48  ;;  %3199 = vst [vmem:[#allocation3_spill] sm:$0xff] %v1851_v13  ;;  %v531_v43 = vsel %vm499_vm1, %v1834_v52, 0.0  ;;  %v650_v48 = vmul.f32 %v1841_v1, %v1841_v1 }
  0xfd   :  { %v722_v54 = vsel %vm499_vm1, %v646_v10, 0.0  ;;  %v649_v10 = vmul.f32 %v1834_v52, %v1834_v52 }
  0xfe   :  { %v723_v7 = vadd.f32 %v722_v54, %v721_v58 }
 0x100   :  { %v349_v28 = vpop.f32.mrf.mxu0 }
 0x101   :  { %v1814_v63 = vadd.f32 %v1690_v38, %v349_v28  ;;  %v1879_v52 = vpop.f32.mrf.mxu3 }
 0x103   :  { %v647_v46 = vmul.f32 %v1814_v63, %v1814_v63  ;;  %v527_v28 = vsel %vm499_vm1, %v1814_v63, 0.0 }
 0x104   :  { %v528_v0 = vadd.f32 %v527_v28, %v526_v60  ;;  %v1868_v60 = vpop.f32.mrf.mxu2 }
 0x105   :  { %v724_v3 = vsel %vm499_vm1, %v647_v46, 0.0  ;;  %v1857_v46 = vpop.f32.mrf.mxu1 }
 0x106   :  { %v725_v18 = vadd.f32 %v724_v3, %v723_v7  ;;  %v533_v3 = vsel %vm499_vm1, %v1841_v1, 0.0  ;;  %v651_v7 = vmul.f32 %v1851_v13, %v1851_v13 }
 0x108   :  { %v352_v59 = vpop.f32.mrf.mxu0 }
 0x109   :  { %v1845_v55 = vadd.f32 %v1690_v38, %v352_v59  ;;  %v728_v59 = vsel %vm499_vm1, %v649_v10, 0.0  ;;  %v652_v10 = vmul.f32 %v1865_v8, %v1865_v8 }
 0x10b   :  { %v529_v36 = vsel %vm499_vm1, %v1845_v55, 0.0  ;;  %v648_v4 = vmul.f32 %v1845_v55, %v1845_v55 }
 0x10c   :  { %v530_v24 = vadd.f32 %v529_v36, %v528_v0  ;;  %v1877_v0 = vadd.f32 %v1690_v38, %v1649_v16  ;;  %v732_v16 = vsel %vm499_vm1, %v651_v7, 0.0 }
 0x10d   :  { %v726_v54 = vsel %vm499_vm1, %v648_v4, 0.0  ;;  %v730_v4 = vsel %vm499_vm1, %v650_v48, 0.0 }
 0x10e   :  { %v532_v28 = vadd.f32 %v531_v43, %v530_v24  ;;  %v727_v58 = vadd.f32 %v726_v54, %v725_v18  ;;  %3200 = vst [vmem:[#allocation4_spill] sm:$0xff] %v1877_v0  ;;  %v535_v18 = vsel %vm499_vm1, %v1851_v13, 0.0  ;;  %v1888_v24 = vadd.f32 %v1690_v38, %v1657_v20 }
 0x10f   :  { %v653_v48 = vmul.f32 %v1877_v0, %v1877_v0  ;;  %v734_v13 = vsel %vm499_vm1, %v652_v10, 0.0  ;;  %v539_v20 = vsel %vm499_vm1, %v1877_v0, 0.0  ;;  %v1917_v0 = vpop.f32.mrf.mxu2 }
 0x110   :  { %v534_v12 = vadd.f32 %v533_v3, %v532_v28  ;;  %v729_v36 = vadd.f32 %v728_v59, %v727_v58  ;;  %v537_v28 = vsel %vm499_vm1, %v1865_v8, 0.0  ;;  %v1897_v58 = vadd.f32 %v1690_v38, %v1669_v25 }
 0x111   :  { %v654_v7 = vmul.f32 %v1888_v24, %v1888_v24  ;;  %v736_v25 = vsel %vm499_vm1, %v653_v48, 0.0 }
 0x112   :  { %v536_v43 = vadd.f32 %v535_v18, %v534_v12  ;;  %v731_v54 = vadd.f32 %v730_v4, %v729_v36  ;;  %3201 = vst [vmem:[#allocation5_spill] sm:$0xff] %v1897_v58  ;;  %v1906_v12 = vadd.f32 %v1690_v38, %v1673_v29  ;;  %v397_v18 = vpop.f32.mrf.mxu1  ;;  %v655_v10 = vmul.f32 %v1897_v58, %v1897_v58 }
 0x113   :  { %v738_v29 = vsel %vm499_vm1, %v654_v7, 0.0 }
 0x114   :  { %v538_v59 = vadd.f32 %v537_v28, %v536_v43  ;;  %v733_v3 = vadd.f32 %v732_v16, %v731_v54  ;;  %3202 = vst [vmem:[#allocation6_spill] sm:$0xff] %v1906_v12  ;;  %v541_v43 = vsel %vm499_vm1, %v1888_v24, 0.0  ;;  %v1915_v54 = vadd.f32 %v1690_v38, %v1681_v34 }
 0x115   :  { %v656_v48 = vmul.f32 %v1906_v12, %v1906_v12  ;;  %v1930_v34 = vadd.f32 %v1690_v38, %v1723_v53  ;;  %v740_v7 = vsel %vm499_vm1, %v655_v10, 0.0 }
 0x116   :  { %v540_v36 = vadd.f32 %v539_v20, %v538_v59  ;;  %v735_v4 = vadd.f32 %v734_v13, %v733_v3  ;;  %3203 = vst [vmem:[#allocation7_spill] sm:$0xff] %v1915_v54  ;;  %v543_v13 = vsel %vm499_vm1, %v1897_v58, 0.0  ;;  %v1926_v59 = vadd.f32 %v1690_v38, %v1692_v39 }
 0x117   :  { %3204 = vst [vmem:[#allocation8_spill] sm:$0xff] %v1930_v34  ;;  %v742_v39 = vsel %vm499_vm1, %v656_v48, 0.0  ;;  %v547_v53 = vsel %vm499_vm1, %v1915_v54, 0.0  ;;  %v659_v10 = vmul.f32 %v1930_v34, %v1930_v34 }
 0x118   :  { %v737_v16 = vadd.f32 %v736_v25, %v735_v4  ;;  %v542_v28 = vadd.f32 %v541_v43, %v540_v36  ;;  %v1932_v36 = vpop.f32.mrf.mxu3  ;;  %v545_v4 = vsel %vm499_vm1, %v1906_v12, 0.0  ;;  %v657_v25 = vmul.f32 %v1915_v54, %v1915_v54 }
 0x119   :  { %v549_v48 = vsel %vm499_vm1, %v1926_v59, 0.0  ;;  %v551_v12 = vsel %vm499_vm1, %v1930_v34, 0.0 }
 0x11a   :  { %v544_v3 = vadd.f32 %v543_v13, %v542_v28  ;;  %v739_v20 = vadd.f32 %v738_v29, %v737_v16  ;;  %v658_v16 = vmul.f32 %v1926_v59, %v1926_v59  ;;  %v1946_v28 = vadd.f32 %v1690_v38, %v1770_v56  ;;  %v400_v54 = vpop.f32.mrf.mxu1 }
 0x11c   :  { %v546_v43 = vadd.f32 %v545_v4, %v544_v3  ;;  %v741_v58 = vadd.f32 %v740_v7, %v739_v20  ;;  %v744_v3 = vsel %vm499_vm1, %v657_v25, 0.0  ;;  %v1955_v20 = vadd.f32 %v1690_v38, %v1816_v5 }
 0x11d   :  { %v746_v56 = vsel %vm499_vm1, %v658_v16, 0.0  ;;  %v1964_v25 = vadd.f32 %v1690_v38, %v1857_v46 }
 0x11e   :  { %v548_v29 = vadd.f32 %v547_v53, %v546_v43  ;;  %v743_v13 = vadd.f32 %v742_v39, %v741_v58  ;;  %3205 = vst [vmem:[#allocation9_spill] sm:$0xff] %v1955_v20  ;;  %v660_v58 = vmul.f32 %v1946_v28, %v1946_v28  ;;  %v748_v43 = vsel %vm499_vm1, %v659_v10, 0.0  ;;  %v1967_v53 = vpop.f32.mrf.mxu2 }
 0x11f   :  { %v661_v16 = vmul.f32 %v1955_v20, %v1955_v20  ;;  %v555_v10 = vsel %vm499_vm1, %v1955_v20, 0.0  ;;  %v1999_v20 = vadd.f32 %v1690_v38, %v1655_v19 }
 0x120   :  { %v550_v7 = vadd.f32 %v549_v48, %v548_v29  ;;  %v745_v4 = vadd.f32 %v744_v3, %v743_v13  ;;  %v553_v29 = vsel %vm499_vm1, %v1946_v28, 0.0  ;;  %v1974_v13 = vadd.f32 %v1690_v38, %v397_v18  ;;  %v1979_v34 = vpop.f32.mrf.mxu3 }
 0x121   :  { %v1977_v3 = vadd.f32 %v1690_v38, %v400_v54  ;;  %v752_v54 = vsel %vm499_vm1, %v661_v16, 0.0  ;;  %3207 = vst [vmem:[#allocation11_spill] sm:$0xff] %v1999_v20 }
 0x122   :  { %v552_v39 = vadd.f32 %v551_v12, %v550_v7  ;;  %v747_v5 = vadd.f32 %v746_v56, %v745_v4  ;;  %v750_v12 = vsel %vm499_vm1, %v660_v58, 0.0  ;;  %v662_v7 = vmul.f32 %v1964_v25, %v1964_v25 }
 0x123   :  { %3206 = vst [vmem:[#allocation10_spill] sm:$0xff] %v1977_v3  ;;  %v1988_v4 = vadd.f32 %v1690_v38, %v1647_v15  ;;  %v663_v58 = vmul.f32 %v1974_v13, %v1974_v13  ;;  %v559_v16 = vsel %vm499_vm1, %v1974_v13, 0.0 }
 0x124   :  { %v554_v46 = vadd.f32 %v553_v29, %v552_v39  ;;  %v749_v48 = vadd.f32 %v748_v43, %v747_v5  ;;  %v557_v43 = vsel %vm499_vm1, %v1964_v25, 0.0  ;;  %v664_v39 = vmul.f32 %v1977_v3, %v1977_v3 }
 0x125   :  { %v754_v15 = vsel %vm499_vm1, %v662_v7, 0.0  ;;  %v756_v19 = vsel %vm499_vm1, %v663_v58, 0.0 }
 0x126   :  { %v751_v18 = vadd.f32 %v750_v12, %v749_v48  ;;  %v556_v56 = vadd.f32 %v555_v10, %v554_v46  ;;  %v561_v46 = vsel %vm499_vm1, %v1977_v3, 0.0  ;;  %v665_v10 = vmul.f32 %v1988_v4, %v1988_v4 }
 0x127   :  { %v563_v3 = vsel %vm499_vm1, %v1988_v4, 0.0 }
 0x128   :  { %v753_v5 = vadd.f32 %v752_v54, %v751_v18  ;;  %v558_v29 = vadd.f32 %v557_v43, %v556_v56  ;;  %v2010_v18 = vadd.f32 %v1690_v38, %v1663_v23  ;;  %v758_v56 = vsel %vm499_vm1, %v664_v39, 0.0  ;;  %v2014_v43 = vpop.f32.mrf.mxu2 }
 0x129   :  { %v760_v58 = vsel %vm499_vm1, %v665_v10, 0.0  ;;  %v565_v39 = vsel %vm499_vm1, %v1999_v20, 0.0 }
 0x12a   :  { %v755_v48 = vadd.f32 %v754_v15, %v753_v5  ;;  %v560_v12 = vadd.f32 %v559_v16, %v558_v29  ;;  %v666_v5 = vmul.f32 %v1999_v20, %v1999_v20  ;;  %v2022_v29 = vadd.f32 %v1690_v38, %v1671_v27  ;;  %v2024_v16 = vpop.f32.mrf.mxu3 }
 0x12c   :  { %v757_v7 = vadd.f32 %v756_v19, %v755_v48  ;;  %v562_v54 = vadd.f32 %v561_v46, %v560_v12  ;;  %v667_v46 = vmul.f32 %v2010_v18, %v2010_v18  ;;  %v2033_v48 = vadd.f32 %v1690_v38, %v1677_v31 }
 0x12d   :  { %v762_v27 = vsel %vm499_vm1, %v666_v5, 0.0  ;;  %v668_v10 = vmul.f32 %v2022_v29, %v2022_v29  ;;  %v569_v31 = vsel %vm499_vm1, %v2022_v29, 0.0 }
 0x12e   :  { %v564_v23 = vadd.f32 %v563_v3, %v562_v54  ;;  %v759_v15 = vadd.f32 %v758_v56, %v757_v7  ;;  %3208 = vst [vmem:[#allocation12_spill] sm:$0xff] %v2033_v48  ;;  %v567_v3 = vsel %vm499_vm1, %v2010_v18, 0.0  ;;  %v2042_v56 = vadd.f32 %v1690_v38, %v1683_v35 }
 0x12f   :  { %v764_v20 = vsel %vm499_vm1, %v667_v46, 0.0  ;;  %v669_v5 = vmul.f32 %v2033_v48, %v2033_v48  ;;  %v571_v35 = vsel %vm499_vm1, %v2033_v48, 0.0 }
 0x130   :  { %v566_v12 = vadd.f32 %v565_v39, %v564_v23  ;;  %v761_v19 = vadd.f32 %v760_v58, %v759_v15  ;;  %v2051_v23 = vadd.f32 %v1690_v38, %v1694_v40  ;;  %v766_v39 = vsel %vm499_vm1, %v668_v10, 0.0 }
 0x131   :  { %v670_v46 = vmul.f32 %v2042_v56, %v2042_v56  ;;  %v768_v40 = vsel %vm499_vm1, %v669_v5, 0.0 }
 0x132   :  { %v568_v7 = vadd.f32 %v567_v3, %v566_v12  ;;  %v763_v54 = vadd.f32 %v762_v27, %v761_v19  ;;  %3209 = vst [vmem:[#allocation13_spill] sm:$0xff] %v2051_v23  ;;  %v2060_v12 = vadd.f32 %v1690_v38, %v1734_v61  ;;  %v445_v3 = vpop.f32.mrf.mxu2  ;;  %v671_v10 = vmul.f32 %v2051_v23, %v2051_v23  ;;  %v2071_v48 = vpop.f32.mrf.mxu3 }
 0x133   :  { %v770_v61 = vsel %vm499_vm1, %v670_v46, 0.0 }
 0x134   :  { %v570_v15 = vadd.f32 %v569_v31, %v568_v7  ;;  %v765_v58 = vadd.f32 %v764_v20, %v763_v54  ;;  %v573_v20 = vsel %vm499_vm1, %v2042_v56, 0.0  ;;  %v2069_v7 = vadd.f32 %v1690_v38, %v1780_v32 }
 0x135   :  { %v672_v5 = vmul.f32 %v2060_v12, %v2060_v12  ;;  %v2084_v32 = vadd.f32 %v1690_v38, %v1868_v60  ;;  %v577_v46 = vsel %vm499_vm1, %v2060_v12, 0.0 }
 0x136   :  { %v572_v19 = vadd.f32 %v571_v35, %v570_v15  ;;  %v767_v27 = vadd.f32 %v766_v39, %v765_v58  ;;  %3210 = vst [vmem:[#allocation14_spill] sm:$0xff] %v2069_v7  ;;  %v575_v15 = vsel %vm499_vm1, %v2051_v23, 0.0  ;;  %v2080_v58 = vadd.f32 %v1690_v38, %v1823_v17 }
 0x137   :  { %v774_v23 = vsel %vm499_vm1, %v672_v5, 0.0  ;;  %v579_v17 = vsel %vm499_vm1, %v2069_v7, 0.0 }
 0x138   :  { %v769_v54 = vadd.f32 %v768_v40, %v767_v27  ;;  %v574_v31 = vadd.f32 %v573_v20, %v572_v19  ;;  %v772_v19 = vsel %vm499_vm1, %v671_v10, 0.0  ;;  %v673_v27 = vmul.f32 %v2069_v7, %v2069_v7 }
 0x139   :  { %v674_v60 = vmul.f32 %v2080_v58, %v2080_v58  ;;  %v675_v10 = vmul.f32 %v2084_v32, %v2084_v32  ;;  %v581_v5 = vsel %vm499_vm1, %v2080_v58, 0.0  ;;  %v583_v7 = vsel %vm499_vm1, %v2084_v32, 0.0 }
 0x13a   :  { %v576_v39 = vadd.f32 %v575_v15, %v574_v31  ;;  %v771_v35 = vadd.f32 %v770_v61, %v769_v54  ;;  %v2098_v54 = vadd.f32 %v1690_v38, %v1917_v0  ;;  %v776_v15 = vsel %vm499_vm1, %v673_v27, 0.0 }
 0x13b   :  { %v778_v0 = vsel %vm499_vm1, %v674_v60, 0.0  ;;  %v2116_v27 = vadd.f32 %v1690_v38, %v2014_v43 }
 0x13c   :  { %v578_v40 = vadd.f32 %v577_v46, %v576_v39  ;;  %v773_v20 = vadd.f32 %v772_v19, %v771_v35  ;;  %3211 = vst [vmem:[#allocation15_spill] sm:$0xff] %v2098_v54  ;;  %v2107_v39 = vadd.f32 %v1690_v38, %v1967_v53  ;;  %v448_v46 = vpop.f32.mrf.mxu2 }
 0x13d   :  { %3212 = vst [vmem:[#allocation16_spill] sm:$0xff] %v2116_v27 }
 0x13e   :  { %v580_v31 = vadd.f32 %v579_v17, %v578_v40  ;;  %v775_v61 = vadd.f32 %v774_v23, %v773_v20  ;;  %v676_v23 = vmul.f32 %v2098_v54, %v2098_v54  ;;  %v780_v40 = vsel %vm499_vm1, %v675_v10, 0.0  ;;  %v2119_v17 = vpop.f32.mrf.mxu3 }
 0x13f   :  { %v677_v60 = vmul.f32 %v2107_v39, %v2107_v39 }
 0x140   :  { %v582_v35 = vadd.f32 %v581_v5, %v580_v31  ;;  %v777_v19 = vadd.f32 %v776_v15, %v775_v61  ;;  %v585_v31 = vsel %vm499_vm1, %v2098_v54, 0.0  ;;  %v2126_v61 = vadd.f32 %v1690_v38, %v445_v3 }
 0x141   :  { %v2129_v15 = vadd.f32 %v1690_v38, %v448_v46  ;;  %v782_v10 = vsel %vm499_vm1, %v676_v23, 0.0  ;;  %v784_v54 = vsel %vm499_vm1, %v677_v60, 0.0  ;;  %v589_v46 = vsel %vm499_vm1, %v2116_v27, 0.0 }
 0x142   :  { %v584_v20 = vadd.f32 %v583_v7, %v582_v35  ;;  %v779_v53 = vadd.f32 %v778_v0, %v777_v19  ;;  %3213 = vst [vmem:[#allocation17_spill] sm:$0xff] %v2126_v61  ;;  %v587_v7 = vsel %vm499_vm1, %v2107_v39, 0.0  ;;  %v678_v35 = vmul.f32 %v2116_v27, %v2116_v27 }
 0x143   :  { %3214 = vst [vmem:[#allocation18_spill] sm:$0xff] %v2129_v15  ;;  %v2138_v19 = vadd.f32 %v1690_v38, %v1675_v30  ;;  %v679_v23 = vmul.f32 %v2126_v61, %v2126_v61  ;;  %v591_v60 = vsel %vm499_vm1, %v2126_v61, 0.0 }
 0x144   :  { %v586_v43 = vadd.f32 %v585_v31, %v584_v20  ;;  %v781_v5 = vadd.f32 %v780_v40, %v779_v53  ;;  %v680_v40 = vmul.f32 %v2129_v15, %v2129_v15  ;;  %v2149_v31 = vadd.f32 %v1690_v38, %v1679_v33 }
 0x145   :  { %3215 = vst [vmem:[#allocation19_spill] sm:$0xff] %v2138_v19  ;;  %v786_v30 = vsel %vm499_vm1, %v678_v35, 0.0  ;;  %v788_v33 = vsel %vm499_vm1, %v679_v23, 0.0 }
 0x146   :  { %v783_v0 = vadd.f32 %v782_v10, %v781_v5  ;;  %v588_v3 = vadd.f32 %v587_v7, %v586_v43  ;;  %3216 = vst [vmem:[#allocation20_spill] sm:$0xff] %v2149_v31  ;;  %v593_v43 = vsel %vm499_vm1, %v2129_v15, 0.0  ;;  %v681_v7 = vmul.f32 %v2138_v19, %v2138_v19 }
 0x147   :  { %v595_v15 = vsel %vm499_vm1, %v2138_v19, 0.0 }
 0x148   :  { %v785_v20 = vadd.f32 %v784_v54, %v783_v0  ;;  %v590_v53 = vadd.f32 %v589_v46, %v588_v3  ;;  %v2160_v54 = vadd.f32 %v1690_v38, %v1685_v37  ;;  %v790_v0 = vsel %vm499_vm1, %v680_v40, 0.0  ;;  %v2164_v46 = vpop.f32.mrf.mxu3 }
 0x149   :  { %v792_v23 = vsel %vm499_vm1, %v681_v7, 0.0  ;;  %v597_v40 = vsel %vm499_vm1, %v2149_v31, 0.0  ;;  %v2190_v7 = vadd.f32 %v1690_v38, %v1790_v14 }
 0x14a   :  { %v787_v5 = vadd.f32 %v786_v30, %v785_v20  ;;  %v592_v10 = vadd.f32 %v591_v60, %v590_v53  ;;  %3217 = vst [vmem:[#allocation21_spill] sm:$0xff] %v2160_v54  ;;  %v682_v20 = vmul.f32 %v2149_v31, %v2149_v31  ;;  %v2172_v53 = vadd.f32 %v1690_v38, %v1705_v45 }
 0x14b   :  { %v683_v60 = vmul.f32 %v2160_v54, %v2160_v54  ;;  %v599_v45 = vsel %vm499_vm1, %v2160_v54, 0.0  ;;  %3220 = vst [vmem:[#allocation24_spill] sm:$0xff] %v2190_v7 }
 0x14c   :  { %v789_v35 = vadd.f32 %v788_v33, %v787_v5  ;;  %v594_v3 = vadd.f32 %v593_v43, %v592_v10  ;;  %3218 = vst [vmem:[#allocation22_spill] sm:$0xff] %v2172_v53  ;;  %v2181_v43 = vadd.f32 %v1690_v38, %v1744_v6  ;;  %v794_v33 = vsel %vm499_vm1, %v682_v20, 0.0 }
 0x14d   :  { %v601_v6 = vsel %vm499_vm1, %v2172_v53, 0.0 }
 0x14e   :  { %v596_v37 = vadd.f32 %v595_v15, %v594_v3  ;;  %v791_v30 = vadd.f32 %v790_v0, %v789_v35  ;;  %3219 = vst [vmem:[#allocation23_spill] sm:$0xff] %v2181_v43  ;;  %v684_v15 = vmul.f32 %v2172_v53, %v2172_v53  ;;  %v796_v3 = vsel %vm499_vm1, %v683_v60, 0.0 }
 0x14f   :  { %v685_v20 = vmul.f32 %v2181_v43, %v2181_v43  ;;  %v603_v14 = vsel %vm499_vm1, %v2181_v43, 0.0  ;;  %v686_v60 = vmul.f32 %v2190_v7, %v2190_v7 }
 0x150   :  { %v598_v5 = vadd.f32 %v597_v40, %v596_v37  ;;  %v793_v10 = vadd.f32 %v792_v23, %v791_v30  ;;  %v2199_v37 = vadd.f32 %v1690_v38, %v1830_v26  ;;  %v798_v40 = vsel %vm499_vm1, %v684_v15, 0.0 }
 0x151   :  { %v800_v26 = vsel %vm499_vm1, %v685_v20, 0.0 }
 0x152   :  { %v600_v0 = vadd.f32 %v599_v45, %v598_v5  ;;  %v795_v35 = vadd.f32 %v794_v33, %v793_v10  ;;  %3221 = vst [vmem:[#allocation25_spill] sm:$0xff] %v2199_v37  ;;  %v2208_v5 = vadd.f32 %v1690_v38, %v1879_v52  ;;  %v493_v45 = vpop.f32.mrf.mxu3  ;;  %v687_v15 = vmul.f32 %v2199_v37, %v2199_v37 }
 0x153   :  { %v802_v52 = vsel %vm499_vm1, %v686_v60, 0.0 }
 0x154   :  { %v602_v30 = vadd.f32 %v601_v6, %v600_v0  ;;  %v797_v23 = vadd.f32 %v796_v3, %v795_v35  ;;  %3222 = vst [vmem:[#allocation26_spill] sm:$0xff] %v2208_v5  ;;  %v605_v0 = vsel %vm499_vm1, %v2190_v7, 0.0  ;;  %v2217_v35 = vadd.f32 %v1690_v38, %v1932_v36 }
 0x155   :  { %v688_v20 = vmul.f32 %v2208_v5, %v2208_v5  ;;  %v609_v60 = vsel %vm499_vm1, %v2208_v5, 0.0 }
 0x156   :  { %v604_v10 = vadd.f32 %v603_v14, %v602_v30  ;;  %v799_v33 = vadd.f32 %v798_v40, %v797_v23  ;;  %3223 = vst [vmem:[#allocation27_spill] sm:$0xff] %v2217_v35  ;;  %v607_v30 = vsel %vm499_vm1, %v2199_v37, 0.0  ;;  %v2226_v23 = vadd.f32 %v1690_v38, %v1979_v34 }
 0x157   :  { %v2230_v40 = vadd.f32 %v1690_v38, %v2024_v16  ;;  %v806_v37 = vsel %vm499_vm1, %v688_v20, 0.0  ;;  %v611_v34 = vsel %vm499_vm1, %v2217_v35, 0.0 }
 0x158   :  { %v801_v3 = vadd.f32 %v800_v26, %v799_v33  ;;  %v606_v6 = vadd.f32 %v605_v0, %v604_v10  ;;  %3224 = vst [vmem:[#allocation28_spill] sm:$0xff] %v2226_v23  ;;  %v804_v10 = vsel %vm499_vm1, %v687_v15, 0.0  ;;  %v689_v33 = vmul.f32 %v2217_v35, %v2217_v35 }
 0x159   :  { %3225 = vst [vmem:[#allocation29_spill] sm:$0xff] %v2230_v40  ;;  %v690_v16 = vmul.f32 %v2226_v23, %v2226_v23  ;;  %v691_v15 = vmul.f32 %v2230_v40, %v2230_v40  ;;  %v613_v20 = vsel %vm499_vm1, %v2226_v23, 0.0  ;;  %v615_v35 = vsel %vm499_vm1, %v2230_v40, 0.0 }
 0x15a   :  { %v608_v36 = vadd.f32 %v607_v30, %v606_v6  ;;  %v803_v14 = vadd.f32 %v802_v52, %v801_v3  ;;  %v2244_v3 = vadd.f32 %v1690_v38, %v2071_v48  ;;  %v808_v30 = vsel %vm499_vm1, %v689_v33, 0.0 }
 0x15b   :  { %v810_v48 = vsel %vm499_vm1, %v690_v16, 0.0  ;;  %v2262_v33 = vadd.f32 %v1690_v38, %v2164_v46 }
 0x15c   :  { %v610_v26 = vadd.f32 %v609_v60, %v608_v36  ;;  %v805_v0 = vadd.f32 %v804_v10, %v803_v14  ;;  %3226 = vst [vmem:[#allocation30_spill] sm:$0xff] %v2244_v3  ;;  %v2253_v36 = vadd.f32 %v1690_v38, %v2119_v17  ;;  %v496_v60 = vpop.f32.mrf.mxu3 }
 0x15d   :  { %3228 = vst [vmem:[#allocation32_spill] sm:$0xff] %v2262_v33 }
 0x15e   :  { %v612_v6 = vadd.f32 %v611_v34, %v610_v26  ;;  %v807_v52 = vadd.f32 %v806_v37, %v805_v0  ;;  %3227 = vst [vmem:[#allocation31_spill] sm:$0xff] %v2253_v36  ;;  %v692_v37 = vmul.f32 %v2244_v3, %v2244_v3  ;;  %v812_v26 = vsel %vm499_vm1, %v691_v15, 0.0 }
 0x15f   :  { %v617_v34 = vsel %vm499_vm1, %v2244_v3, 0.0  ;;  %v693_v16 = vmul.f32 %v2253_v36, %v2253_v36  ;;  %v619_v15 = vsel %vm499_vm1, %v2253_v36, 0.0 }
 0x160   :  { %v614_v14 = vadd.f32 %v613_v20, %v612_v6  ;;  %v809_v10 = vadd.f32 %v808_v30, %v807_v52  ;;  %v2270_v6 = vadd.f32 %v1690_v38, %v493_v45  ;;  %v497_v52 = vadd.f32 %v1690_v38, %v496_v60 }
 0x161   :  { %v814_v46 = vsel %vm499_vm1, %v692_v37, 0.0  ;;  %v621_v45 = vsel %vm499_vm1, %v2262_v33, 0.0 }
 0x162   :  { %v616_v0 = vadd.f32 %v615_v35, %v614_v14  ;;  %v811_v17 = vadd.f32 %v810_v48, %v809_v10  ;;  %3229 = vst [vmem:[#allocation33_spill] sm:$0xff] %v2270_v6  ;;  %v694_v35 = vmul.f32 %v2262_v33, %v2262_v33  ;;  %v816_v48 = vsel %vm499_vm1, %v693_v16, 0.0 }
 0x163   :  { %v695_v38 = vmul.f32 %v2270_v6, %v2270_v6  ;;  %v696_v60 = vmul.f32 %v497_v52, %v497_v52 }
 0x164   :  { %v618_v30 = vadd.f32 %v617_v34, %v616_v0  ;;  %v813_v20 = vadd.f32 %v812_v26, %v811_v17  ;;  %v818_v37 = vsel %vm499_vm1, %v694_v35, 0.0  ;;  %v623_v17 = vsel %vm499_vm1, %v2270_v6, 0.0 }
 0x165   :  { %v625_v34 = vsel %vm499_vm1, %v497_v52, 0.0  ;;  %v820_v16 = vsel %vm499_vm1, %v695_v38, 0.0 }
 0x166   :  { %v815_v14 = vadd.f32 %v814_v46, %v813_v20  ;;  %v620_v10 = vadd.f32 %v619_v15, %v618_v30  ;;  %v822_v46 = vsel %vm499_vm1, %v696_v60, 0.0 }
 0x168   :  { %v817_v26 = vadd.f32 %v816_v48, %v815_v14  ;;  %v622_v0 = vadd.f32 %v621_v45, %v620_v10 }
 0x16a   :  { %v819_v20 = vadd.f32 %v818_v37, %v817_v26  ;;  %v624_v30 = vadd.f32 %v623_v17, %v622_v0 }
 0x16c   :  { %v821_v15 = vadd.f32 %v820_v16, %v819_v20  ;;  %v626_v33 = vadd.f32 %v625_v34, %v624_v30 }
 0x16e   :  { %v627_v36 = vrot.slane %v626_v33, 4  ;;  %v823_v3 = vadd.f32 %v822_v46, %v821_v15 }
 0x170   :  { %v628_v40 = vadd.f32 %v627_v36, %v626_v33  ;;  %v824_v14 = vrot.slane %v823_v3, 4 }
 0x172   :  { %v629_v10 = vrot.slane %v628_v40, 2  ;;  %v825_v48 = vadd.f32 %v824_v14, %v823_v3 }
 0x174   :  { %v630_v35 = vadd.f32 %v629_v10, %v628_v40  ;;  %v826_v45 = vrot.slane %v825_v48, 2 }
 0x176   :  { %v631_v23 = vrot.slane %v630_v35, 1  ;;  %v827_v6 = vadd.f32 %v826_v45, %v825_v48 }
 0x178   :  { %v632_v5 = vadd.f32 %v631_v23, %v630_v35  ;;  %v828_v7 = vrot.slane %v827_v6, 1  ;;  %v2311_v35 = vld [vmem:[%s3137_s4] ss:$0 sm:$0xff] }
 0x17a   :  { %v829_v26 = vadd.f32 %v828_v7, %v827_v6  ;;  %v2289_v0 = vmul.f32 0.001953125, %v632_v5  ;;  %v835_v7 = vld [vmem:[%s3138_s3] sm:$0x1] }
 0x17c   :  { %v831_v38 = vmul.f32 0.001953125, %v829_v26  ;;  %v832_v60 = vmul.f32 %v2289_v0, %v2289_v0  ;;  %v911_v16 = vsub.f32 %v497_v52, %v2289_v0  ;;  %v848_v15 = vsub.f32 %v1700_v42, %v2289_v0 }
 0x17d   :  { %v849_v14 = vsub.f32 %v1697_v41, %v2289_v0  ;;  %v850_v10 = vsub.f32 %v1703_v44, %v2289_v0  ;;  %v851_v48 = vsub.f32 %v1710_v47, %v2289_v0  ;;  %v852_v52 = vsub.f32 %v1719_v51, %v2289_v0  ;;  %v3244_v47 = vld [vmem:[#allocation15_spill] sm:$0xff] }
 0x17e   :  { %v833_v37 = vsub.f32 %v831_v38, %v832_v60  ;;  %v853_v42 = vsub.f32 %v1731_v57, %v2289_v0  ;;  %v854_v41 = vsub.f32 %v1742_v2, %v2289_v0  ;;  %v3240_v60 = vld [vmem:[#allocation11_spill] sm:$0xff]  ;;  %v3242_v2 = vld [vmem:[#allocation13_spill] sm:$0xff]  ;;  %v3243_v57 = vld [vmem:[#allocation14_spill] sm:$0xff]  ;;  %v3261_v54 = vsub.f32 %v1798_v21, %v2289_v0 }
 0x17f   :  { %v3262_v31 = vsub.f32 %v1806_v49, %v2289_v0 }
 0x180   :  { %v834_v17 = vmax.f32 %v833_v37, 0.0  ;;  %v3230_v37 = vld [vmem:[#allocation2_spill] sm:$0xff] }
 0x182   :  { %v836_v34 = vadd.f32 1e-05, %v834_v17  ;;  %v3239_v17 = vld [vmem:[#allocation10_spill] sm:$0xff] }
 0x184   :  { %1336 = vrsqrt.f32 %v836_v34  ;;  %vm843_vm3 = vweird.f32 %v836_v34 }
 0x18a   :  { %v1337_v36 = vpop.eup %1336 }
 0x18b   :  { %v838_v33 = vmul.f32 %v1337_v36, %v836_v34  ;;  %vm844_vm2 = vweird.f32 %v1337_v36 }
 0x18c   :  { %vm845_vm4 = vmor %vm843_vm3, %vm844_vm2 }
 0x18d   :  { %v839_v3 = vmul.f32 %v1337_v36, %v838_v33  ;;  %v3236_v33 = vld [vmem:[#allocation7_spill] sm:$0xff] }
 0x18f   :  { %v840_v40 = vmul.f32 0.5, %v839_v3 }
 0x191   :  { %v841_v20 = vsub.f32 1.5, %v840_v40  ;;  %v3237_v40 = vld [vmem:[#allocation8_spill] sm:$0xff] }
 0x193   :  { %v842_v30 = vmul.f32 %v1337_v36, %v841_v20  ;;  %v3233_v20 = vld [vmem:[#allocation4_spill] sm:$0xff] }
 0x195   :  { %v846_v5 = vsel %vm845_vm4, %v1337_v36, %v842_v30  ;;  %v3231_v36 = vld [vmem:[#allocation3_spill] sm:$0xff] }
 0x196   :  { %v847_v23 = vmul.f32 %v846_v5, %v835_v7  ;;  %v3234_v5 = vld [vmem:[#allocation5_spill] sm:$0xff] }
 0x197   :  { %v3238_v7 = vld [vmem:[#allocation9_spill] sm:$0xff] }
 0x198   :  { %v2296_v6 = vperm.slane %v847_v23, 0  ;;  %v3241_v23 = vld [vmem:[#allocation12_spill] sm:$0xff] }
 0x19a   :  { %v978_v46 = vmul.f32 %v2296_v6, %v911_v16  ;;  %v3235_v16 = vld [vmem:[#allocation6_spill] sm:$0xff]  ;;  %v915_v38 = vmul.f32 %v2296_v6, %v848_v15  ;;  %v916_v44 = vmul.f32 %v2296_v6, %v849_v14  ;;  %v918_v26 = vmul.f32 %v2296_v6, %v851_v48 }
 0x19b   :  { %v919_v15 = vmul.f32 %v2296_v6, %v852_v52  ;;  %v920_v14 = vmul.f32 %v2296_v6, %v853_v42  ;;  %v921_v52 = vmul.f32 %v2296_v6, %v854_v41  ;;  %v3252_v42 = vsub.f32 %v1752_v11, %v2289_v0 }
 0x19c   :  { %v2344_v3 = vadd.f32 %v2311_v35, %v978_v46  ;;  %v984_v48 = vadd.f32 %v2311_v35, %v916_v44  ;;  %v986_v46 = vadd.f32 %v2311_v35, %v918_v26  ;;  %v3254_v41 = vsub.f32 %v1760_v22, %v2289_v0 }
 0x19d   :  { %v922_v44 = vmul.f32 %v2296_v6, %v3252_v42  ;;  %v987_v19 = vadd.f32 %v2311_v35, %v919_v15  ;;  %v3256_v11 = vsub.f32 %v1768_v50, %v2289_v0  ;;  %v988_v26 = vadd.f32 %v2311_v35, %v920_v14 }
 0x19e   :  { %3232 = vst [vmem:[#allocation2_spill] sm:$0xff] %v2344_v3  ;;  %v917_v3 = vmul.f32 %v2296_v6, %v850_v10  ;;  %v983_v10 = vadd.f32 %v2311_v35, %v915_v38  ;;  %v1048_v53 = vmul.f32 0.1, %v984_v48  ;;  %v3258_v22 = vsub.f32 %v1778_v62, %v2289_v0 }
 0x19f   :  { %v924_v42 = vmul.f32 %v2296_v6, %v3256_v11  ;;  %v3260_v50 = vsub.f32 %v1788_v9, %v2289_v0  ;;  %v990_v11 = vadd.f32 %v2311_v35, %v922_v44  ;;  %v1050_v30 = vmul.f32 0.1, %v986_v46 }
 0x1a0   :  { %v985_v38 = vadd.f32 %v2311_v35, %v917_v3  ;;  %v923_v3 = vmul.f32 %v2296_v6, %v3254_v41  ;;  %v1047_v43 = vmul.f32 0.1, %v983_v10  ;;  %v925_v15 = vmul.f32 %v2296_v6, %v3258_v22 }
 0x1a1   :  { %v989_v41 = vadd.f32 %v2311_v35, %v921_v52  ;;  %v926_v14 = vmul.f32 %v2296_v6, %v3260_v50  ;;  %v927_v62 = vmul.f32 %v2296_v6, %v3261_v54  ;;  %v1051_v52 = vmul.f32 0.1, %v987_v19 }
 0x1a2   :  { %v1049_v34 = vmul.f32 0.1, %v985_v38  ;;  %v991_v22 = vadd.f32 %v2311_v35, %v923_v3  ;;  %v1111_v45 = vmax.f32 %v983_v10, %v1047_v43  ;;  %v928_v51 = vmul.f32 %v2296_v6, %v3262_v31 }
 0x1a3   :  { %v992_v9 = vadd.f32 %v2311_v35, %v924_v42  ;;  %v1052_v50 = vmul.f32 0.1, %v988_v26  ;;  %v1112_v61 = vmax.f32 %v984_v48, %v1048_v53  ;;  %v3263_v44 = vsub.f32 %v1814_v63, %v2289_v0 }
 0x1a4   :  { %v993_v54 = vadd.f32 %v2311_v35, %v925_v15  ;;  %v1053_v27 = vmul.f32 0.1, %v989_v41  ;;  %v1113_v3 = vmax.f32 %v985_v38, %v1049_v34  ;;  %v3264_v43 = vsub.f32 %v1845_v55, %v2289_v0  ;;  %1175 = vst.msk [vmem:[%s3139_s5] sm:$0xff] %vm499_vm1, %v1111_v45 }
 0x1a5   :  { %v929_v21 = vmul.f32 %v2296_v6, %v3263_v44  ;;  %v2489_v31 = vadd.f32 %v2311_v35, %v926_v14  ;;  %v1054_v10 = vmul.f32 0.1, %v990_v11  ;;  %v1114_v42 = vmax.f32 %v986_v46, %v1050_v30  ;;  %1176 = vst.msk [vmem:[%s3139_s5 + $0x8] sm:$0xff] %vm499_vm1, %v1112_v61 }
 0x1a6   :  { %v930_v49 = vmul.f32 %v2296_v6, %v3264_v43  ;;  %v3265_v53 = vsub.f32 %v3230_v37, %v2289_v0  ;;  %v2496_v48 = vadd.f32 %v2311_v35, %v927_v62  ;;  %v1055_v15 = vmul.f32 0.1, %v991_v22  ;;  %1177 = vst.msk [vmem:[%s3139_s5 + $0x10] sm:$0xff] %vm499_vm1, %v1113_v3 }
 0x1a7   :  { %v1115_v34 = vmax.f32 %v987_v19, %v1051_v52  ;;  %v3266_v55 = vsub.f32 %v1841_v1, %v2289_v0  ;;  %v2507_v46 = vadd.f32 %v2311_v35, %v928_v51  ;;  %v1056_v37 = vmul.f32 0.1, %v992_v9  ;;  %1178 = vst.msk [vmem:[%s3139_s5 + $0x18] sm:$0xff] %vm499_vm1, %v1114_v42 }
 0x1a8   :  { %v931_v63 = vmul.f32 %v2296_v6, %v3265_v53  ;;  %v1116_v38 = vmax.f32 %v988_v26, %v1052_v50  ;;  %v3267_v19 = vsub.f32 %v3231_v36, %v2289_v0  ;;  %v2518_v14 = vadd.f32 %v2311_v35, %v929_v21 }
 0x1a9   :  { %v932_v30 = vmul.f32 %v2296_v6, %v3266_v55  ;;  %v1057_v1 = vmul.f32 0.1, %v993_v54  ;;  %v1117_v62 = vmax.f32 %v989_v41, %v1053_v27  ;;  %v3268_v51 = vsub.f32 %v1865_v8, %v2289_v0  ;;  %1179 = vst.msk [vmem:[%s3139_s5 + $0x20] sm:$0xff] %vm499_vm1, %v1115_v34 }
 0x1aa   :  { %v933_v45 = vmul.f32 %v2296_v6, %v3267_v19  ;;  %v2529_v26 = vadd.f32 %v2311_v35, %v930_v49  ;;  %v1058_v36 = vmul.f32 0.1, %v2489_v31  ;;  %v1118_v52 = vmax.f32 %v990_v11, %v1054_v10  ;;  %1180 = vst.msk [vmem:[%s3139_s5 + $0x28] sm:$0xff] %vm499_vm1, %v1116_v38 }
 0x1ab   :  { %v934_v61 = vmul.f32 %v2296_v6, %v3268_v51  ;;  %v3269_v27 = vsub.f32 %v3233_v20, %v2289_v0  ;;  %v2541_v8 = vadd.f32 %v2311_v35, %v931_v63  ;;  %v1059_v50 = vmul.f32 0.1, %v2496_v48  ;;  %1181 = vst.msk [vmem:[%s3139_s5 + $0x30] sm:$0xff] %vm499_vm1, %v1117_v62 }
 0x1ac   :  { %v1119_v44 = vmax.f32 %v991_v22, %v1055_v15  ;;  %v3270_v11 = vsub.f32 %v1888_v24, %v2289_v0  ;;  %v2553_v20 = vadd.f32 %v2311_v35, %v932_v30  ;;  %v1060_v3 = vmul.f32 0.1, %v2507_v46  ;;  %1182 = vst.msk [vmem:[%s3139_s5 + $0x38] sm:$0xff] %vm499_vm1, %v1118_v52 }
 0x1ad   :  { %v935_v41 = vmul.f32 %v2296_v6, %v3269_v27  ;;  %v1120_v43 = vmax.f32 %v992_v9, %v1056_v37  ;;  %v3271_v22 = vsub.f32 %v3234_v5, %v2289_v0  ;;  %v2565_v24 = vadd.f32 %v2311_v35, %v933_v45 }
 0x1ae   :  { %v936_v21 = vmul.f32 %v2296_v6, %v3270_v11  ;;  %v1061_v10 = vmul.f32 0.1, %v2518_v14  ;;  %v1121_v42 = vmax.f32 %v993_v54, %v1057_v1  ;;  %v3272_v9 = vsub.f32 %v3235_v16, %v2289_v0  ;;  %1183 = vst.msk [vmem:[%s3139_s5 + $0x40] sm:$0xff] %vm499_vm1, %v1119_v44 }
 0x1af   :  { %v937_v49 = vmul.f32 %v2296_v6, %v3271_v22  ;;  %v2577_v5 = vadd.f32 %v2311_v35, %v934_v61  ;;  %v1062_v63 = vmul.f32 0.1, %v2529_v26  ;;  %v1122_v15 = vmax.f32 %v2489_v31, %v1058_v36  ;;  %1184 = vst.msk [vmem:[%s3139_s5 + $0x48] sm:$0xff] %vm499_vm1, %v1120_v43 }
 0x1b0   :  { %v938_v53 = vmul.f32 %v2296_v6, %v3272_v9  ;;  %v3273_v54 = vsub.f32 %v3236_v33, %v2289_v0  ;;  %v2590_v16 = vadd.f32 %v2311_v35, %v935_v41  ;;  %v1063_v55 = vmul.f32 0.1, %v2541_v8  ;;  %1185 = vst.msk [vmem:[%s3139_s5 + $0x50] sm:$0xff] %vm499_vm1, %v1121_v42 }
 0x1b1   :  { %v1123_v30 = vmax.f32 %v2496_v48, %v1059_v50  ;;  %v3274_v31 = vsub.f32 %v1926_v59, %v2289_v0  ;;  %v2603_v33 = vadd.f32 %v2311_v35, %v936_v21  ;;  %v1064_v38 = vmul.f32 0.1, %v2553_v20  ;;  %1186 = vst.msk [vmem:[%s3139_s5 + $0x58] sm:$0xff] %vm499_vm1, %v1122_v15 }
 0x1b2   :  { %v939_v34 = vmul.f32 %v2296_v6, %v3273_v54  ;;  %v1124_v19 = vmax.f32 %v2507_v46, %v1060_v3  ;;  %v3275_v48 = vsub.f32 %v3237_v40, %v2289_v0  ;;  %v2616_v59 = vadd.f32 %v2311_v35, %v937_v49 }
 0x1b3   :  { %v940_v37 = vmul.f32 %v2296_v6, %v3274_v31  ;;  %v1065_v1 = vmul.f32 0.1, %v2565_v24  ;;  %v1125_v62 = vmax.f32 %v2518_v14, %v1061_v10  ;;  %v3276_v46 = vsub.f32 %v1946_v28, %v2289_v0  ;;  %1187 = vst.msk [vmem:[%s3139_s5 + $0x60] sm:$0xff] %vm499_vm1, %v1123_v30 }
 0x1b4   :  { %v941_v45 = vmul.f32 %v2296_v6, %v3275_v48  ;;  %v2629_v40 = vadd.f32 %v2311_v35, %v938_v53  ;;  %v1066_v61 = vmul.f32 0.1, %v2577_v5  ;;  %v1126_v36 = vmax.f32 %v2529_v26, %v1062_v63  ;;  %1188 = vst.msk [vmem:[%s3139_s5 + $0x68] sm:$0xff] %vm499_vm1, %v1124_v19 }
 0x1b5   :  { %v942_v51 = vmul.f32 %v2296_v6, %v3276_v46  ;;  %v3277_v14 = vsub.f32 %v3238_v7, %v2289_v0  ;;  %v2642_v28 = vadd.f32 %v2311_v35, %v939_v34  ;;  %v1067_v27 = vmul.f32 0.1, %v2590_v16  ;;  %1189 = vst.msk [vmem:[%s3139_s5 + $0x70] sm:$0xff] %vm499_vm1, %v1125_v62 }
 0x1b6   :  { %v1127_v41 = vmax.f32 %v2541_v8, %v1063_v55  ;;  %v3278_v26 = vsub.f32 %v1964_v25, %v2289_v0  ;;  %v2655_v7 = vadd.f32 %v2311_v35, %v940_v37  ;;  %v1068_v44 = vmul.f32 0.1, %v2603_v33  ;;  %1190 = vst.msk [vmem:[%s3139_s5 + $0x78] sm:$0xff] %vm499_vm1, %v1126_v36 }
 0x1b7   :  { %v943_v52 = vmul.f32 %v2296_v6, %v3277_v14  ;;  %v1128_v11 = vmax.f32 %v2553_v20, %v1064_v38  ;;  %v3279_v8 = vsub.f32 %v1974_v13, %v2289_v0  ;;  %v2668_v25 = vadd.f32 %v2311_v35, %v941_v45 }
 0x1b8   :  { %v944_v50 = vmul.f32 %v2296_v6, %v3278_v26  ;;  %v1069_v3 = vmul.f32 0.1, %v2616_v59  ;;  %v1129_v43 = vmax.f32 %v2565_v24, %v1065_v1  ;;  %v3280_v20 = vsub.f32 %v3239_v17, %v2289_v0  ;;  %1191 = vst.msk [vmem:[%s3139_s5 + $0x80] sm:$0xff] %vm499_vm1, %v1127_v41 }
 0x1b9   :  { %v945_v21 = vmul.f32 %v2296_v6, %v3279_v8  ;;  %v2681_v13 = vadd.f32 %v2311_v35, %v942_v51  ;;  %v1070_v49 = vmul.f32 0.1, %v2629_v40  ;;  %v1130_v10 = vmax.f32 %v2577_v5, %v1066_v61  ;;  %1192 = vst.msk [vmem:[%s3139_s5 + $0x88] sm:$0xff] %vm499_vm1, %v1128_v11 }
 0x1ba   :  { %v946_v22 = vmul.f32 %v2296_v6, %v3280_v20  ;;  %v3281_v24 = vsub.f32 %v1988_v4, %v2289_v0  ;;  %v2694_v17 = vadd.f32 %v2311_v35, %v943_v52  ;;  %v1071_v9 = vmul.f32 0.1, %v2642_v28  ;;  %1193 = vst.msk [vmem:[%s3139_s5 + $0x90] sm:$0xff] %vm499_vm1, %v1129_v43 }
 0x1bb   :  { %v1131_v53 = vmax.f32 %v2590_v16, %v1067_v27  ;;  %v3282_v5 = vsub.f32 %v3240_v60, %v2289_v0  ;;  %v2707_v4 = vadd.f32 %v2311_v35, %v944_v50  ;;  %v1072_v15 = vmul.f32 0.1, %v2655_v7  ;;  %1194 = vst.msk [vmem:[%s3139_s5 + $0x98] sm:$0xff] %vm499_vm1, %v1130_v10 }
 0x1bc   :  { %v947_v42 = vmul.f32 %v2296_v6, %v3281_v24  ;;  %v1132_v54 = vmax.f32 %v2603_v33, %v1068_v44  ;;  %v3283_v34 = vsub.f32 %v2010_v18, %v2289_v0  ;;  %v2720_v60 = vadd.f32 %v2311_v35, %v945_v21 }
 0x1bd   :  { %v948_v63 = vmul.f32 %v2296_v6, %v3282_v5  ;;  %v1073_v55 = vmul.f32 0.1, %v2668_v25  ;;  %v1133_v30 = vmax.f32 %v2616_v59, %v1069_v3  ;;  %v3284_v31 = vsub.f32 %v2022_v29, %v2289_v0  ;;  %1195 = vst.msk [vmem:[%s3139_s5 + $0xa0] sm:$0xff] %vm499_vm1, %v1131_v53  ;;  %v3294_v5 = vld [vmem:[#allocation16_spill] sm:$0xff] }
 0x1be   :  { %v949_v16 = vmul.f32 %v2296_v6, %v3283_v34  ;;  %v2733_v18 = vadd.f32 %v2311_v35, %v946_v22  ;;  %v1074_v33 = vmul.f32 0.1, %v2681_v13  ;;  %v1134_v38 = vmax.f32 %v2629_v40, %v1070_v49  ;;  %1196 = vst.msk [vmem:[%s3139_s5 + $0xa8] sm:$0xff] %vm499_vm1, %v1132_v54  ;;  %v3296_v34 = vld [vmem:[#allocation17_spill] sm:$0xff] }
 0x1bf   :  { %v950_v37 = vmul.f32 %v2296_v6, %v3284_v31  ;;  %v3285_v19 = vsub.f32 %v3241_v23, %v2289_v0  ;;  %v2746_v29 = vadd.f32 %v2311_v35, %v947_v42  ;;  %v1075_v45 = vmul.f32 0.1, %v2694_v17  ;;  %1197 = vst.msk [vmem:[%s3139_s5 + $0xb0] sm:$0xff] %vm499_vm1, %v1133_v30 }
 0x1c0   :  { %v1135_v59 = vmax.f32 %v2642_v28, %v1071_v9  ;;  %v3286_v1 = vsub.f32 %v2042_v56, %v2289_v0  ;;  %v2759_v23 = vadd.f32 %v2311_v35, %v948_v63  ;;  %v1076_v46 = vmul.f32 0.1, %v2707_v4  ;;  %1198 = vst.msk [vmem:[%s3139_s5 + $0xb8] sm:$0xff] %vm499_vm1, %v1134_v38 }
 0x1c1   :  { %v951_v48 = vmul.f32 %v2296_v6, %v3285_v19  ;;  %v1136_v51 = vmax.f32 %v2655_v7, %v1072_v15  ;;  %v3287_v40 = vsub.f32 %v3242_v2, %v2289_v0  ;;  %v2772_v56 = vadd.f32 %v2311_v35, %v949_v16 }
 0x1c2   :  { %v952_v62 = vmul.f32 %v2296_v6, %v3286_v1  ;;  %v1077_v36 = vmul.f32 0.1, %v2720_v60  ;;  %v1137_v14 = vmax.f32 %v2668_v25, %v1073_v55  ;;  %v3288_v52 = vsub.f32 %v2060_v12, %v2289_v0  ;;  %1199 = vst.msk [vmem:[%s3139_s5 + $0xc0] sm:$0xff] %vm499_vm1, %v1135_v59 }
 0x1c3   :  { %v953_v61 = vmul.f32 %v2296_v6, %v3287_v40  ;;  %v2785_v2 = vadd.f32 %v2311_v35, %v950_v37  ;;  %v1078_v27 = vmul.f32 0.1, %v2733_v18  ;;  %v1138_v41 = vmax.f32 %v2681_v13, %v1074_v33  ;;  %1200 = vst.msk [vmem:[%s3139_s5 + $0xc8] sm:$0xff] %vm499_vm1, %v1136_v51  ;;  %v3298_v37 = vld [vmem:[#allocation18_spill] sm:$0xff] }
 0x1c4   :  { %v954_v28 = vmul.f32 %v2296_v6, %v3288_v52  ;;  %v3289_v26 = vsub.f32 %v3243_v57, %v2289_v0  ;;  %v2798_v12 = vadd.f32 %v2311_v35, %v951_v48  ;;  %v1079_v7 = vmul.f32 0.1, %v2746_v29  ;;  %1201 = vst.msk [vmem:[%s3139_s5 + $0xd0] sm:$0xff] %vm499_vm1, %v1137_v14  ;;  %v3304_v14 = vld [vmem:[#allocation21_spill] sm:$0xff] }
 0x1c5   :  { %v1139_v44 = vmax.f32 %v2694_v17, %v1075_v45  ;;  %v3290_v11 = vsub.f32 %v2080_v58, %v2289_v0  ;;  %v2811_v57 = vadd.f32 %v2311_v35, %v952_v62  ;;  %v1080_v21 = vmul.f32 0.1, %v2759_v23  ;;  %1202 = vst.msk [vmem:[%s3139_s5 + $0xd8] sm:$0xff] %vm499_vm1, %v1138_v41 }
 0x1c6   :  { %v955_v50 = vmul.f32 %v2296_v6, %v3289_v26  ;;  %v1140_v25 = vmax.f32 %v2707_v4, %v1076_v46  ;;  %v3291_v3 = vsub.f32 %v2084_v32, %v2289_v0  ;;  %v2824_v58 = vadd.f32 %v2311_v35, %v953_v61  ;;  %v3302_v46 = vld [vmem:[#allocation20_spill] sm:$0xff]  ;;  %v3306_v26 = vld [vmem:[#allocation22_spill] sm:$0xff] }
 0x1c7   :  { %v956_v8 = vmul.f32 %v2296_v6, %v3290_v11  ;;  %v1081_v20 = vmul.f32 0.1, %v2772_v56  ;;  %v1141_v22 = vmax.f32 %v2720_v60, %v1077_v36  ;;  %v3292_v13 = vsub.f32 %v3244_v47, %v2289_v0  ;;  %1203 = vst.msk [vmem:[%s3139_s5 + $0xe0] sm:$0xff] %vm499_vm1, %v1139_v44 }
 0x1c8   :  { %v957_v43 = vmul.f32 %v2296_v6, %v3291_v3  ;;  %v2837_v32 = vadd.f32 %v2311_v35, %v954_v28  ;;  %v1082_v10 = vmul.f32 0.1, %v2785_v2  ;;  %v1142_v24 = vmax.f32 %v2733_v18, %v1078_v27  ;;  %1204 = vst.msk [vmem:[%s3139_s5 + $0xe8] sm:$0xff] %vm499_vm1, %v1140_v25 }
 0x1c9   :  { %v958_v49 = vmul.f32 %v2296_v6, %v3292_v13  ;;  %v3293_v42 = vsub.f32 %v2107_v39, %v2289_v0  ;;  %v2850_v47 = vadd.f32 %v2311_v35, %v955_v50  ;;  %v1083_v9 = vmul.f32 0.1, %v2798_v12  ;;  %1205 = vst.msk [vmem:[%s3139_s5 + $0xf0] sm:$0xff] %vm499_vm1, %v1141_v22 }
 0x1ca   :  { %v1143_v53 = vmax.f32 %v2746_v29, %v1079_v7  ;;  %v3295_v63 = vsub.f32 %v3294_v5, %v2289_v0  ;;  %v2863_v39 = vadd.f32 %v2311_v35, %v956_v8  ;;  %v1084_v15 = vmul.f32 0.1, %v2811_v57  ;;  %1206 = vst.msk [vmem:[%s3139_s5 + $0xf8] sm:$0xff] %vm499_vm1, %v1142_v24  ;;  %v3300_v29 = vld [vmem:[#allocation19_spill] sm:$0xff] }
 0x1cb   :  { %v959_v17 = vmul.f32 %v2296_v6, %v3293_v42  ;;  %v1144_v54 = vmax.f32 %v2759_v23, %v1080_v21  ;;  %v3297_v16 = vsub.f32 %v3296_v34, %v2289_v0  ;;  %v2876_v55 = vadd.f32 %v2311_v35, %v957_v43  ;;  %v3308_v8 = vld [vmem:[#allocation23_spill] sm:$0xff] }
 0x1cc   :  { %v960_v4 = vmul.f32 %v2296_v6, %v3295_v63  ;;  %v1085_v30 = vmul.f32 0.1, %v2824_v58  ;;  %v1145_v31 = vmax.f32 %v2772_v56, %v1081_v20  ;;  %v3299_v18 = vsub.f32 %v3298_v37, %v2289_v0  ;;  %1207 = vst.msk [vmem:[%s3139_s5 + $0x100] sm:$0xff] %vm499_vm1, %v1143_v53  ;;  %v3314_v53 = vld [vmem:[#allocation26_spill] sm:$0xff] }
 0x1cd   :  { %v961_v60 = vmul.f32 %v2296_v6, %v3297_v16  ;;  %v2889_v38 = vadd.f32 %v2311_v35, %v958_v49  ;;  %v1086_v19 = vmul.f32 0.1, %v2837_v32  ;;  %v1146_v48 = vmax.f32 %v2785_v2, %v1082_v10  ;;  %1208 = vst.msk [vmem:[%s3139_s5 + $0x108] sm:$0xff] %vm499_vm1, %v1144_v54  ;;  %v3312_v10 = vld [vmem:[#allocation25_spill] sm:$0xff]  ;;  %v3316_v54 = vld [vmem:[#allocation27_spill] sm:$0xff] }
 0x1ce   :  { %v962_v33 = vmul.f32 %v2296_v6, %v3299_v18  ;;  %v3301_v45 = vsub.f32 %v3300_v29, %v2289_v0  ;;  %v2902_v1 = vadd.f32 %v2311_v35, %v959_v17  ;;  %v1087_v62 = vmul.f32 0.1, %v2850_v47  ;;  %1209 = vst.msk [vmem:[%s3139_s5 + $0x110] sm:$0xff] %vm499_vm1, %v1145_v31  ;;  %v3318_v31 = vld [vmem:[#allocation28_spill] sm:$0xff] }
 0x1cf   :  { %v1147_v23 = vmax.f32 %v2798_v12, %v1083_v9  ;;  %v3303_v51 = vsub.f32 %v3302_v46, %v2289_v0  ;;  %v2915_v61 = vadd.f32 %v2311_v35, %v960_v4  ;;  %v1088_v56 = vmul.f32 0.1, %v2863_v39  ;;  %1210 = vst.msk [vmem:[%s3139_s5 + $0x118] sm:$0xff] %vm499_vm1, %v1146_v48  ;;  %v3320_v48 = vld [vmem:[#allocation29_spill] sm:$0xff] }
 0x1d0   :  { %v963_v59 = vmul.f32 %v2296_v6, %v3301_v45  ;;  %v1148_v36 = vmax.f32 %v2811_v57, %v1084_v15  ;;  %v3305_v52 = vsub.f32 %v3304_v14, %v2289_v0  ;;  %v2928_v2 = vadd.f32 %v2311_v35, %v961_v60 }
 0x1d1   :  { %v964_v40 = vmul.f32 %v2296_v6, %v3303_v51  ;;  %v1089_v27 = vmul.f32 0.1, %v2876_v55  ;;  %v1149_v41 = vmax.f32 %v2824_v58, %v1085_v30  ;;  %v3307_v50 = vsub.f32 %v3306_v26, %v2289_v0  ;;  %1211 = vst.msk [vmem:[%s3139_s5 + $0x120] sm:$0xff] %vm499_vm1, %v1147_v23  ;;  %v3310_v58 = vld [vmem:[#allocation24_spill] sm:$0xff]  ;;  %v3322_v23 = vld [vmem:[#allocation30_spill] sm:$0xff] }
 0x1d2   :  { %v965_v28 = vmul.f32 %v2296_v6, %v3305_v52  ;;  %v2941_v7 = vadd.f32 %v2311_v35, %v962_v33  ;;  %v1090_v44 = vmul.f32 0.1, %v2889_v38  ;;  %v1150_v11 = vmax.f32 %v2837_v32, %v1086_v19  ;;  %1212 = vst.msk [vmem:[%s3139_s5 + $0x128] sm:$0xff] %vm499_vm1, %v1148_v36  ;;  %v3324_v36 = vld [vmem:[#allocation31_spill] sm:$0xff] }
 0x1d3   :  { %v966_v12 = vmul.f32 %v2296_v6, %v3307_v50  ;;  %v3309_v57 = vsub.f32 %v3308_v8, %v2289_v0  ;;  %v1031_v25 = vadd.f32 %v2311_v35, %v963_v59  ;;  %v1091_v3 = vmul.f32 0.1, %v2902_v1  ;;  %1213 = vst.msk [vmem:[%s3139_s5 + $0x130] sm:$0xff] %vm499_vm1, %v1149_v41  ;;  %v3326_v41 = vld [vmem:[#allocation32_spill] sm:$0xff] }
 0x1d4   :  { %v1151_v43 = vmax.f32 %v2850_v47, %v1087_v62  ;;  %v3311_v20 = vsub.f32 %v3310_v58, %v2289_v0  ;;  %v1032_v13 = vadd.f32 %v2311_v35, %v964_v40  ;;  %v1092_v49 = vmul.f32 0.1, %v2915_v61  ;;  %1214 = vst.msk [vmem:[%s3139_s5 + $0x138] sm:$0xff] %vm499_vm1, %v1150_v11  ;;  %v3328_v11 = vld [vmem:[#allocation33_spill] sm:$0xff] }
 0x1d5   :  { %v967_v21 = vmul.f32 %v2296_v6, %v3309_v57  ;;  %v1152_v32 = vmax.f32 %v2863_v39, %v1088_v56  ;;  %v3313_v24 = vsub.f32 %v3312_v10, %v2289_v0  ;;  %v1033_v17 = vadd.f32 %v2311_v35, %v965_v28 }
 0x1d6   :  { %v968_v22 = vmul.f32 %v2296_v6, %v3311_v20  ;;  %v1093_v47 = vmul.f32 0.1, %v2928_v2  ;;  %v1153_v9 = vmax.f32 %v2876_v55, %v1089_v27  ;;  %v3315_v5 = vsub.f32 %v3314_v53, %v2289_v0  ;;  %1215 = vst.msk [vmem:[%s3139_s5 + $0x140] sm:$0xff] %vm499_vm1, %v1151_v43 }
 0x1d7   :  { %v969_v42 = vmul.f32 %v2296_v6, %v3313_v24  ;;  %v1034_v4 = vadd.f32 %v2311_v35, %v966_v12  ;;  %v1094_v39 = vmul.f32 0.1, %v2941_v7  ;;  %v1154_v15 = vmax.f32 %v2889_v38, %v1090_v44  ;;  %1216 = vst.msk [vmem:[%s3139_s5 + $0x148] sm:$0xff] %vm499_vm1, %v1152_v32 }
 0x1d8   :  { %v970_v63 = vmul.f32 %v2296_v6, %v3315_v5  ;;  %v3317_v34 = vsub.f32 %v3316_v54, %v2289_v0  ;;  %v1035_v60 = vadd.f32 %v2311_v35, %v967_v21  ;;  %v1095_v55 = vmul.f32 0.1, %v1031_v25  ;;  %1217 = vst.msk [vmem:[%s3139_s5 + $0x150] sm:$0xff] %vm499_vm1, %v1153_v9 }
 0x1d9   :  { %v1155_v30 = vmax.f32 %v2902_v1, %v1091_v3  ;;  %v3319_v37 = vsub.f32 %v3318_v31, %v2289_v0  ;;  %v1036_v33 = vadd.f32 %v2311_v35, %v968_v22  ;;  %v1096_v38 = vmul.f32 0.1, %v1032_v13  ;;  %1218 = vst.msk [vmem:[%s3139_s5 + $0x158] sm:$0xff] %vm499_vm1, %v1154_v15 }
 0x1da   :  { %v971_v16 = vmul.f32 %v2296_v6, %v3317_v34  ;;  %v1156_v19 = vmax.f32 %v2915_v61, %v1092_v49  ;;  %v3321_v29 = vsub.f32 %v3320_v48, %v2289_v0  ;;  %v1037_v59 = vadd.f32 %v2311_v35, %v969_v42 }
 0x1db   :  { %v972_v18 = vmul.f32 %v2296_v6, %v3319_v37  ;;  %v1097_v1 = vmul.f32 0.1, %v1033_v17  ;;  %v1157_v62 = vmax.f32 %v2928_v2, %v1093_v47  ;;  %v3323_v46 = vsub.f32 %v3322_v23, %v2289_v0  ;;  %1219 = vst.msk [vmem:[%s3139_s5 + $0x160] sm:$0xff] %vm499_vm1, %v1155_v30 }
 0x1dc   :  { %v973_v45 = vmul.f32 %v2296_v6, %v3321_v29  ;;  %v1038_v40 = vadd.f32 %v2311_v35, %v970_v63  ;;  %v1098_v61 = vmul.f32 0.1, %v1034_v4  ;;  %v1158_v56 = vmax.f32 %v2941_v7, %v1094_v39  ;;  %1220 = vst.msk [vmem:[%s3139_s5 + $0x168] sm:$0xff] %vm499_vm1, %v1156_v19  ;;  %v3330_v39 = vld [vmem:[#allocation2_spill] sm:$0xff] }
 0x1dd   :  { %v974_v51 = vmul.f32 %v2296_v6, %v3323_v46  ;;  %v3325_v14 = vsub.f32 %v3324_v36, %v2289_v0  ;;  %v1039_v28 = vadd.f32 %v2311_v35, %v971_v16  ;;  %v1099_v2 = vmul.f32 0.1, %v1035_v60  ;;  %1221 = vst.msk [vmem:[%s3139_s5 + $0x170] sm:$0xff] %vm499_vm1, %v1157_v62 }
 0x1de   :  { %v1159_v27 = vmax.f32 %v1031_v25, %v1095_v55  ;;  %v3327_v26 = vsub.f32 %v3326_v41, %v2289_v0  ;;  %v1040_v12 = vadd.f32 %v2311_v35, %v972_v18  ;;  %v1100_v7 = vmul.f32 0.1, %v1036_v33  ;;  %1222 = vst.msk [vmem:[%s3139_s5 + $0x178] sm:$0xff] %vm499_vm1, %v1158_v56 }
 0x1df   :  { %v975_v52 = vmul.f32 %v2296_v6, %v3325_v14  ;;  %v1160_v44 = vmax.f32 %v1032_v13, %v1096_v38  ;;  %v3329_v8 = vsub.f32 %v3328_v11, %v2289_v0  ;;  %v1041_v21 = vadd.f32 %v2311_v35, %v973_v45 }
 0x1e0   :  { %v976_v50 = vmul.f32 %v2296_v6, %v3327_v26  ;;  %v1101_v25 = vmul.f32 0.1, %v1037_v59  ;;  %v1161_v3 = vmax.f32 %v1033_v17, %v1097_v1  ;;  %v1042_v43 = vadd.f32 %v2311_v35, %v974_v51  ;;  %1223 = vst.msk [vmem:[%s3139_s5 + $0x180] sm:$0xff] %vm499_vm1, %v1159_v27 }
 0x1e1   :  { %v977_v57 = vmul.f32 %v2296_v6, %v3329_v8  ;;  %v1102_v58 = vmul.f32 0.1, %v1038_v40  ;;  %v1162_v20 = vmax.f32 %v1034_v4, %v1098_v61  ;;  %v1043_v0 = vadd.f32 %v2311_v35, %v975_v52  ;;  %1224 = vst.msk [vmem:[%s3139_s5 + $0x188] sm:$0xff] %vm499_vm1, %v1160_v44 }
 0x1e2   :  { %v1103_v6 = vmul.f32 0.1, %v1039_v28  ;;  %v1163_v22 = vmax.f32 %v1035_v60, %v1099_v2  ;;  %v1044_v13 = vadd.f32 %v2311_v35, %v976_v50  ;;  %v1104_v49 = vmul.f32 0.1, %v1040_v12  ;;  %1225 = vst.msk [vmem:[%s3139_s5 + $0x190] sm:$0xff] %vm499_vm1, %v1161_v3 }
 0x1e3   :  { %v1164_v32 = vmax.f32 %v1036_v33, %v1100_v7  ;;  %v1045_v10 = vadd.f32 %v2311_v35, %v977_v57  ;;  %v1105_v24 = vmul.f32 0.1, %v1041_v21  ;;  %v1165_v42 = vmax.f32 %v1037_v59, %v1101_v25  ;;  %1226 = vst.msk [vmem:[%s3139_s5 + $0x198] sm:$0xff] %vm499_vm1, %v1162_v20 }
 0x1e4   :  { %v1106_v17 = vmul.f32 0.1, %v1042_v43  ;;  %v1166_v47 = vmax.f32 %v1038_v40, %v1102_v58  ;;  %v1107_v9 = vmul.f32 0.1, %v1043_v0  ;;  %v1167_v53 = vmax.f32 %v1039_v28, %v1103_v6  ;;  %1227 = vst.msk [vmem:[%s3139_s5 + $0x1a0] sm:$0xff] %vm499_vm1, %v1163_v22 }
 0x1e5   :  { %v1108_v35 = vmul.f32 0.1, %v1044_v13  ;;  %v1168_v5 = vmax.f32 %v1040_v12, %v1104_v49  ;;  %1228 = vst.msk [vmem:[%s3139_s5 + $0x1a8] sm:$0xff] %vm499_vm1, %v1164_v32  ;;  %v1109_v63 = vmul.f32 0.1, %v1045_v10  ;;  %v1169_v4 = vmax.f32 %v1041_v21, %v1105_v24 }
 0x1e6   :  { %1229 = vst.msk [vmem:[%s3139_s5 + $0x1b0] sm:$0xff] %vm499_vm1, %v1165_v42  ;;  %v1110_v15 = vmul.f32 0.1, %v3330_v39  ;;  %v1170_v54 = vmax.f32 %v1042_v43, %v1106_v17  ;;  %v1171_v34 = vmax.f32 %v1043_v0, %v1107_v9 }
 0x1e7   :  { %1230 = vst.msk [vmem:[%s3139_s5 + $0x1b8] sm:$0xff] %vm499_vm1, %v1166_v47  ;;  %v1172_v16 = vmax.f32 %v1044_v13, %v1108_v35  ;;  %v1173_v60 = vmax.f32 %v1045_v10, %v1109_v63 }
 0x1e8   :  { %1231 = vst.msk [vmem:[%s3139_s5 + $0x1c0] sm:$0xff] %vm499_vm1, %v1167_v53  ;;  %v1174_v55 = vmax.f32 %v3330_v39, %v1110_v15 }
 0x1e9   :  { %1232 = vst.msk [vmem:[%s3139_s5 + $0x1c8] sm:$0xff] %vm499_vm1, %v1168_v5 }
 0x1ea   :  { %1233 = vst.msk [vmem:[%s3139_s5 + $0x1d0] sm:$0xff] %vm499_vm1, %v1169_v4 }
 0x1eb   :  { %1234 = vst.msk [vmem:[%s3139_s5 + $0x1d8] sm:$0xff] %vm499_vm1, %v1170_v54 }
 0x1ec   :  { %1235 = vst.msk [vmem:[%s3139_s5 + $0x1e0] sm:$0xff] %vm499_vm1, %v1171_v34 }
 0x1ed   :  { %1236 = vst.msk [vmem:[%s3139_s5 + $0x1e8] sm:$0xff] %vm499_vm1, %v1172_v16 }
 0x1ee   :  { %1237 = vst.msk [vmem:[%s3139_s5 + $0x1f0] sm:$0xff] %vm499_vm1, %v1173_v60 }
 0x1ef   :  { %1238 = vst.msk [vmem:[%s3139_s5 + $0x1f8] sm:$0xff] %vm499_vm1, %v1174_v55 }

// kernel: latent_state_encoder_flow_forward.7
= control target key start
LH: loop header
LB: loop body
LE: loop exit
PB: predicated region body
PF: predicated region fallthrough
CT: control target
= control target key end

     0   :  { %vm74_vm0 = vcmask 130048   ;;  %vm253_vm1 = vcmask 261120   ;;  %s981_s1 = inlined_call_operand.vmem [shape: f32[144,32], index: 1, kind: input, shape index: {}]   ;;  %s982_s0 = inlined_call_operand.vmem [shape: f32[128,144], index: 0, kind: input, shape index: {}]   ;;  %s983_s2 = inlined_call_operand.vmem [shape: f32[1,32], index: 2, kind: input, shape index: {}]   ;;  %s984_s4 = inlined_call_operand.vmem [shape: f32[1,32], index: 4, kind: input, shape index: {}]   ;;  %s985_s3 = inlined_call_operand.vmem [shape: f32[1,32], index: 3, kind: input, shape index: {}]   ;;  %s986_s5 = inlined_call_operand.vmem [shape: f32[128,32], index: 5, kind: output, shape index: {}]  }
   0x1   :  { %v67_v0 = vld [vmem:[%s981_s1 + $0x78] sm:$0xff]  ;;  %v559_v1 = vld [vmem:[%s981_s1 + $0x88] sm:$0xff]  ;;  %v66_v2 = vld [vmem:[%s981_s1 + $0x70] sm:$0xff] }
   0x2   :  { %123 = vmatpush.msra.mxu0 %v67_v0  ;;  %485 = vmatpush.msra.mxu2 %v67_v0  ;;  %v567_v3 = vld [vmem:[%s981_s1 + $0x80] sm:$0xff]  ;;  %v21_v4 = vld [vmem:[%s982_s0 + $0x8] sm:$0xff]  ;;  %v63_v7 = vld [vmem:[%s981_s1 + $0x58] sm:$0xff] }
   0x3   :  { %486 = vmatpush.msra.mxu3 %v67_v0  ;;  %202 = vmatpush.msra.mxu1 %v559_v1  ;;  %v65_v5 = vld [vmem:[%s981_s1 + $0x68] sm:$0xff]  ;;  %v64_v6 = vld [vmem:[%s981_s1 + $0x60] sm:$0xff]  ;;  %v62_v8 = vld [vmem:[%s981_s1 + $0x50] sm:$0xff] }
   0x4   :  { %124 = vmatpush.msra.mxu0 %v66_v2  ;;  %487 = vmatpush.msra.mxu2 %v66_v2  ;;  %v23_v9 = vld [vmem:[%s982_s0 + $0x18] sm:$0xff]  ;;  %v61_v10 = vld [vmem:[%s981_s1 + $0x48] sm:$0xff]  ;;  %v60_v11 = vld [vmem:[%s981_s1 + $0x40] sm:$0xff] }
   0x5   :  { %488 = vmatpush.msra.mxu3 %v66_v2  ;;  %203 = vmatpush.msra.mxu1 %v567_v3  ;;  %v59_v12 = vld [vmem:[%s981_s1 + $0x38] sm:$0xff]  ;;  %v58_v13 = vld [vmem:[%s981_s1 + $0x30] sm:$0xff]  ;;  %v25_v14 = vld [vmem:[%s982_s0 + $0x28] sm:$0xff] }
   0x6   :  { %469 = vmatmul.msk.f32.vlgmr.msra.gmra.mxu1 %vm74_vm0, %v21_v4  ;;  %125 = vmatpush.msra.mxu0 %v65_v5  ;;  %v57_v15 = vld [vmem:[%s981_s1 + $0x28] sm:$0xff]  ;;  %v56_v16 = vld [vmem:[%s981_s1 + $0x20] sm:$0xff]  ;;  %v55_v17 = vld [vmem:[%s981_s1 + $0x18] sm:$0xff] }
   0x7   :  { %489 = vmatpush.msra.mxu2 %v65_v5  ;;  %490 = vmatpush.msra.mxu3 %v65_v5  ;;  %v54_v18 = vld [vmem:[%s981_s1 + $0x10] sm:$0xff]  ;;  %v27_v19 = vld [vmem:[%s982_s0 + $0x38] sm:$0xff]  ;;  %v53_v20 = vld [vmem:[%s981_s1 + $0x8] sm:$0xff] }
   0x8   :  { %126 = vmatpush.msra.mxu0 %v64_v6  ;;  %v52_v21 = vld [vmem:[%s981_s1] sm:$0xff]  ;;  %v34_v23 = vld [vmem:[%s982_s0 + $0x70] sm:$0xff]  ;;  %v29_v25 = vld [vmem:[%s982_s0 + $0x48] sm:$0xff] }
   0x9   :  { %491 = vmatpush.msra.mxu2 %v64_v6  ;;  %492 = vmatpush.msra.mxu3 %v64_v6  ;;  %v20_v22 = vld [vmem:[%s982_s0] sm:$0xff]  ;;  %v50_v24 = vld [vmem:[%s982_s0 + $0xf0] sm:$0xff]  ;;  %v41_v28 = vld [vmem:[%s982_s0 + $0xa8] sm:$0xff] }
   0xa   :  { %127 = vmatpush.msra.mxu0 %v63_v7  ;;  %v22_v26 = vld [vmem:[%s982_s0 + $0x10] sm:$0xff]  ;;  %v36_v27 = vld [vmem:[%s982_s0 + $0x80] sm:$0xff]  ;;  %v31_v29 = vld [vmem:[%s982_s0 + $0x58] sm:$0xff] }
   0xb   :  { %493 = vmatpush.msra.mxu2 %v63_v7  ;;  %494 = vmatpush.msra.mxu3 %v63_v7  ;;  %v24_v30 = vld [vmem:[%s982_s0 + $0x20] sm:$0xff]  ;;  %v38_v31 = vld [vmem:[%s982_s0 + $0x90] sm:$0xff]  ;;  %v43_v32 = vld [vmem:[%s982_s0 + $0xb8] sm:$0xff] }
   0xc   :  { %128 = vmatpush.msra.mxu0 %v62_v8  ;;  %v33_v33 = vld [vmem:[%s982_s0 + $0x68] sm:$0xff]  ;;  %v26_v34 = vld [vmem:[%s982_s0 + $0x30] sm:$0xff]  ;;  %v40_v35 = vld [vmem:[%s982_s0 + $0xa0] sm:$0xff] }
   0xd   :  { %495 = vmatpush.msra.mxu2 %v62_v8  ;;  %496 = vmatpush.msra.mxu3 %v62_v8  ;;  %v45_v36 = vld [vmem:[%s982_s0 + $0xc8] sm:$0xff]  ;;  %v35_v37 = vld [vmem:[%s982_s0 + $0x78] sm:$0xff]  ;;  %v28_v38 = vld [vmem:[%s982_s0 + $0x40] sm:$0xff] }
   0xe   :  { %470 = vmatmul.msk.f32.gmra.mxu1 %vm74_vm0, %v23_v9  ;;  %129 = vmatpush.msra.mxu0 %v61_v10  ;;  %v42_v39 = vld [vmem:[%s982_s0 + $0xb0] sm:$0xff]  ;;  %v47_v40 = vld [vmem:[%s982_s0 + $0xd8] sm:$0xff]  ;;  %v37_v41 = vld [vmem:[%s982_s0 + $0x88] sm:$0xff] }
   0xf   :  { %497 = vmatpush.msra.mxu2 %v61_v10  ;;  %498 = vmatpush.msra.mxu3 %v61_v10  ;;  %v30_v42 = vld [vmem:[%s982_s0 + $0x50] sm:$0xff]  ;;  %v44_v43 = vld [vmem:[%s982_s0 + $0xc0] sm:$0xff]  ;;  %v49_v44 = vld [vmem:[%s982_s0 + $0xe8] sm:$0xff] }
  0x10   :  { %130 = vmatpush.msra.mxu0 %v60_v11  ;;  %v39_v45 = vld [vmem:[%s982_s0 + $0x98] sm:$0xff]  ;;  %v32_v46 = vld [vmem:[%s982_s0 + $0x60] sm:$0xff]  ;;  %v46_v47 = vld [vmem:[%s982_s0 + $0xd0] sm:$0xff] }
  0x11   :  { %499 = vmatpush.msra.mxu2 %v60_v11  ;;  %500 = vmatpush.msra.mxu3 %v60_v11  ;;  %v51_v48 = vld [vmem:[%s982_s0 + $0xf8] sm:$0xff]  ;;  %v48_v49 = vld [vmem:[%s982_s0 + $0xe0] sm:$0xff] }
  0x12   :  { %131 = vmatpush.msra.mxu0 %v59_v12 }
  0x13   :  { %501 = vmatpush.msra.mxu2 %v59_v12  ;;  %502 = vmatpush.msra.mxu3 %v59_v12 }
  0x14   :  { %132 = vmatpush.msra.mxu0 %v58_v13 }
  0x15   :  { %503 = vmatpush.msra.mxu2 %v58_v13  ;;  %504 = vmatpush.msra.mxu3 %v58_v13 }
  0x16   :  { %471 = vmatmul.msk.f32.gmra.mxu1 %vm74_vm0, %v25_v14  ;;  %133 = vmatpush.msra.mxu0 %v57_v15 }
  0x17   :  { %505 = vmatpush.msra.mxu2 %v57_v15  ;;  %506 = vmatpush.msra.mxu3 %v57_v15 }
  0x18   :  { %134 = vmatpush.msra.mxu0 %v56_v16 }
  0x19   :  { %507 = vmatpush.msra.mxu2 %v56_v16  ;;  %508 = vmatpush.msra.mxu3 %v56_v16 }
  0x1a   :  { %135 = vmatpush.msra.mxu0 %v55_v17 }
  0x1b   :  { %509 = vmatpush.msra.mxu2 %v55_v17  ;;  %510 = vmatpush.msra.mxu3 %v55_v17 }
  0x1c   :  { %136 = vmatpush.msra.mxu0 %v54_v18 }
  0x1d   :  { %511 = vmatpush.msra.mxu2 %v54_v18  ;;  %512 = vmatpush.msra.mxu3 %v54_v18 }
  0x1e   :  { %472 = vmatmul.msk.f32.gmra.mxu1 %vm74_vm0, %v27_v19  ;;  %137 = vmatpush.msra.mxu0 %v53_v20 }
  0x1f   :  { %513 = vmatpush.msra.mxu2 %v53_v20  ;;  %514 = vmatpush.msra.mxu3 %v53_v20 }
  0x20   :  { %138 = vmatpush.msra.mxu0 %v52_v21 }
  0x21   :  { %515 = vmatpush.msra.mxu2 %v52_v21  ;;  %516 = vmatpush.msra.mxu3 %v52_v21 }
  0x22   :  { %139 = vmatmul.f32.vlgmr.msra.gmra.mxu0 %v20_v22  ;;  %160 = vmatmul.f32.vlgmr.msra.gmra.mxu2 %v34_v23 }
  0x23   :  { %184 = vmatmul.f32.vlgmr.msra.gmra.mxu3 %v50_v24 }
  0x24   :  { %517 = vmatpush.msrb.mxu3 %v559_v1 }
  0x26   :  { %473 = vmatmul.msk.f32.gmra.mxu1 %vm74_vm0, %v29_v25  ;;  %518 = vmatpush.msrb.mxu3 %v567_v3  ;;  %v736_v3 = vld [vmem:[%s983_s2] ss:$0 sm:$0xff] }
  0x2a   :  { %142 = vmatmul.f32.gmra.mxu0 %v22_v26  ;;  %163 = vmatmul.f32.gmra.mxu2 %v36_v27 }
  0x2b   :  { %479 = vmatmul.msk.f32.vlgmr.msrb.gmra.mxu3 %vm74_vm0, %v41_v28 }
  0x2e   :  { %474 = vmatmul.msk.f32.gmra.mxu1 %vm74_vm0, %v31_v29 }
  0x32   :  { %145 = vmatmul.f32.gmra.mxu0 %v24_v30  ;;  %166 = vmatmul.f32.gmra.mxu2 %v38_v31 }
  0x33   :  { %480 = vmatmul.msk.f32.gmra.mxu3 %vm74_vm0, %v43_v32 }
  0x36   :  { %475 = vmatmul.msk.f32.gmra.mxu1 %vm74_vm0, %v33_v33 }
  0x3a   :  { %148 = vmatmul.f32.gmra.mxu0 %v26_v34  ;;  %169 = vmatmul.f32.gmra.mxu2 %v40_v35 }
  0x3b   :  { %481 = vmatmul.msk.f32.gmra.mxu3 %vm74_vm0, %v45_v36 }
  0x3e   :  { %476 = vmatmul.msk.f32.gmra.mxu1 %vm74_vm0, %v35_v37 }
  0x42   :  { %151 = vmatmul.f32.gmra.mxu0 %v28_v38  ;;  %172 = vmatmul.f32.gmra.mxu2 %v42_v39 }
  0x43   :  { %482 = vmatmul.msk.f32.gmra.mxu3 %vm74_vm0, %v47_v40 }
  0x46   :  { %477 = vmatmul.msk.f32.gmra.mxu1 %vm74_vm0, %v37_v41 }
  0x4a   :  { %154 = vmatmul.f32.gmra.mxu0 %v30_v42  ;;  %175 = vmatmul.f32.gmra.mxu2 %v44_v43 }
  0x4b   :  { %483 = vmatmul.msk.f32.gmra.mxu3 %vm74_vm0, %v49_v44 }
  0x4e   :  { %478 = vmatmul.msk.f32.gmra.mxu1 %vm74_vm0, %v39_v45 }
  0x52   :  { %157 = vmatmul.f32.gmra.mxu0 %v32_v46  ;;  %178 = vmatmul.f32.gmra.mxu2 %v46_v47 }
  0x53   :  { %484 = vmatmul.msk.f32.gmra.mxu3 %vm74_vm0, %v51_v48 }
  0x5a   :  { %181 = vmatmul.f32.gmra.mxu2 %v48_v49 }
  0x83   :  { %v205_v50 = vpop.f32.mrf.mxu1 }
  0x8b   :  { %v208_v51 = vpop.f32.mrf.mxu1 }
  0x93   :  { %v211_v52 = vpop.f32.mrf.mxu1 }
  0x9b   :  { %v214_v53 = vpop.f32.mrf.mxu1 }
  0x9f   :  { %v140_v54 = vpop.f32.mrf.mxu0 }
  0xa0   :  { %v141_v7 = vadd.f32 %v736_v3, %v140_v54 }
  0xa2   :  { %v746_v13 = vadd.f32 %v205_v50, %v141_v7 }
  0xa3   :  { %v217_v55 = vpop.f32.mrf.mxu1 }
  0xa4   :  { %v291_v19 = vmul.f32 %v746_v13, %v746_v13  ;;  %v254_v26 = vsel %vm253_vm1, %v746_v13, 0.0 }
  0xa5   :  { %v161_v56 = vpop.f32.mrf.mxu2 }
  0xa6   :  { %v727_v57 = vpop.f32.mrf.mxu3  ;;  %v307_v33 = vsel %vm253_vm1, %v291_v19, 0.0  ;;  %v162_v40 = vadd.f32 %v736_v3, %v161_v56 }
  0xa7   :  { %v143_v58 = vpop.f32.mrf.mxu0 }
  0xa8   :  { %v144_v6 = vadd.f32 %v736_v3, %v143_v58 }
  0xaa   :  { %v743_v11 = vadd.f32 %v208_v51, %v144_v6 }
  0xab   :  { %v220_v59 = vpop.f32.mrf.mxu1 }
  0xac   :  { %v292_v17 = vmul.f32 %v743_v11, %v743_v11  ;;  %v255_v22 = vsel %vm253_vm1, %v743_v11, 0.0 }
  0xad   :  { %v164_v60 = vpop.f32.mrf.mxu2  ;;  %v256_v32 = vadd.f32 %v255_v22, %v254_v26 }
  0xae   :  { %v729_v61 = vpop.f32.mrf.mxu3  ;;  %v308_v28 = vsel %vm253_vm1, %v292_v17, 0.0  ;;  %v165_v44 = vadd.f32 %v736_v3, %v164_v60 }
  0xaf   :  { %v146_v62 = vpop.f32.mrf.mxu0  ;;  %v309_v37 = vadd.f32 %v308_v28, %v307_v33 }
  0xb0   :  { %v147_v10 = vadd.f32 %v736_v3, %v146_v62 }
  0xb2   :  { %v748_v14 = vadd.f32 %v211_v52, %v147_v10 }
  0xb3   :  { %v223_v63 = vpop.f32.mrf.mxu1 }
  0xb4   :  { %v293_v23 = vmul.f32 %v748_v14, %v748_v14  ;;  %v257_v29 = vsel %vm253_vm1, %v748_v14, 0.0 }
  0xb5   :  { %v167_v0 = vpop.f32.mrf.mxu2  ;;  %v258_v38 = vadd.f32 %v257_v29, %v256_v32 }
  0xb6   :  { %v731_v1 = vpop.f32.mrf.mxu3  ;;  %v310_v34 = vsel %vm253_vm1, %v293_v23, 0.0  ;;  %v168_v52 = vadd.f32 %v736_v3, %v167_v0 }
  0xb7   :  { %v149_v2 = vpop.f32.mrf.mxu0  ;;  %v311_v45 = vadd.f32 %v310_v34, %v309_v37 }
  0xb8   :  { %v150_v12 = vadd.f32 %v736_v3, %v149_v2 }
  0xba   :  { %v753_v18 = vadd.f32 %v214_v53, %v150_v12 }
  0xbb   :  { %v226_v4 = vpop.f32.mrf.mxu1 }
  0xbc   :  { %v294_v30 = vmul.f32 %v753_v18, %v753_v18  ;;  %v259_v35 = vsel %vm253_vm1, %v753_v18, 0.0  ;;  %v788_v48 = vadd.f32 %v226_v4, %v162_v40 }
  0xbd   :  { %v170_v5 = vpop.f32.mrf.mxu2  ;;  %v260_v46 = vadd.f32 %v259_v35, %v258_v38 }
  0xbe   :  { %v740_v8 = vpop.f32.mrf.mxu3  ;;  %v312_v41 = vsel %vm253_vm1, %v294_v30, 0.0  ;;  %v171_v56 = vadd.f32 %v736_v3, %v170_v5  ;;  %v298_v7 = vmul.f32 %v788_v48, %v788_v48 }
  0xbf   :  { %v152_v9 = vpop.f32.mrf.mxu0  ;;  %v313_v53 = vadd.f32 %v312_v41, %v311_v45  ;;  %v186_v41 = vadd.f32 %v736_v3, %v727_v57 }
  0xc0   :  { %v153_v15 = vadd.f32 %v736_v3, %v152_v9 }
  0xc2   :  { %v761_v24 = vadd.f32 %v217_v55, %v153_v15 }
  0xc3   :  { %v229_v20 = vpop.f32.mrf.mxu1 }
  0xc4   :  { %v295_v36 = vmul.f32 %v761_v24, %v761_v24  ;;  %v261_v42 = vsel %vm253_vm1, %v761_v24, 0.0  ;;  %v796_v58 = vadd.f32 %v229_v20, %v165_v44 }
  0xc5   :  { %v173_v16 = vpop.f32.mrf.mxu2  ;;  %v262_v54 = vadd.f32 %v261_v42, %v260_v46 }
  0xc6   :  { %v766_v27 = vpop.f32.mrf.mxu3  ;;  %v314_v49 = vsel %vm253_vm1, %v295_v36, 0.0  ;;  %v174_v2 = vadd.f32 %v736_v3, %v173_v16  ;;  %v813_v16 = vadd.f32 %v729_v61, %v171_v56  ;;  %v299_v17 = vmul.f32 %v796_v58, %v796_v58 }
  0xc7   :  { %v155_v21 = vpop.f32.mrf.mxu0  ;;  %v315_v62 = vadd.f32 %v314_v49, %v313_v53  ;;  %v269_v26 = vsel %vm253_vm1, %v796_v58, 0.0 }
  0xc8   :  { %v156_v25 = vadd.f32 %v736_v3, %v155_v21  ;;  %v820_v21 = vadd.f32 %v731_v1, %v174_v2  ;;  %v301_v32 = vmul.f32 %v813_v16, %v813_v16  ;;  %v322_v1 = vsel %vm253_vm1, %v299_v17, 0.0 }
  0xc9   :  { %v273_v38 = vsel %vm253_vm1, %v813_v16, 0.0 }
  0xca   :  { %v773_v31 = vadd.f32 %v220_v59, %v156_v25  ;;  %v320_v25 = vsel %vm253_vm1, %v298_v7, 0.0  ;;  %v302_v35 = vmul.f32 %v820_v21, %v820_v21  ;;  %v326_v45 = vsel %vm253_vm1, %v301_v32, 0.0 }
  0xcb   :  { %v232_v55 = vpop.f32.mrf.mxu1  ;;  %v275_v46 = vsel %vm253_vm1, %v820_v21, 0.0 }
  0xcc   :  { %v296_v43 = vmul.f32 %v773_v31, %v773_v31  ;;  %v263_v50 = vsel %vm253_vm1, %v773_v31, 0.0  ;;  %v804_v0 = vadd.f32 %v232_v55, %v168_v52 }
  0xcd   :  { %v176_v39 = vpop.f32.mrf.mxu2  ;;  %v264_v4 = vadd.f32 %v263_v50, %v262_v54 }
  0xce   :  { %v316_v59 = vsel %vm253_vm1, %v296_v43, 0.0  ;;  %v247_v6 = vpop.f32.mrf.mxu3  ;;  %v177_v19 = vadd.f32 %v736_v3, %v176_v39  ;;  %v300_v61 = vmul.f32 %v804_v0, %v804_v0  ;;  %v271_v33 = vsel %vm253_vm1, %v804_v0, 0.0 }
  0xcf   :  { %v158_v47 = vpop.f32.mrf.mxu0  ;;  %v317_v10 = vadd.f32 %v316_v59, %v315_v62 }
  0xd0   :  { %v159_v51 = vadd.f32 %v736_v3, %v158_v47  ;;  %v834_v34 = vadd.f32 %v740_v8, %v177_v19  ;;  %v324_v39 = vsel %vm253_vm1, %v300_v61, 0.0 }
  0xd2   :  { %v799_v60 = vadd.f32 %v223_v63, %v159_v51  ;;  %v267_v63 = vsel %vm253_vm1, %v788_v48, 0.0  ;;  %v303_v47 = vmul.f32 %v834_v34, %v834_v34  ;;  %v277_v57 = vsel %vm253_vm1, %v834_v34, 0.0 }
  0xd4   :  { %v265_v9 = vsel %vm253_vm1, %v799_v60, 0.0  ;;  %v297_v5 = vmul.f32 %v799_v60, %v799_v60  ;;  %v330_v59 = vsel %vm253_vm1, %v303_v47, 0.0  ;;  %v349_v47 = vld [vmem:[%s985_s3] sm:$0x1] }
  0xd5   :  { %v266_v12 = vadd.f32 %v265_v9, %v264_v4  ;;  %v179_v15 = vpop.f32.mrf.mxu2 }
  0xd6   :  { %v318_v20 = vsel %vm253_vm1, %v297_v5, 0.0  ;;  %v180_v28 = vadd.f32 %v736_v3, %v179_v15  ;;  %v250_v8 = vpop.f32.mrf.mxu3 }
  0xd7   :  { %v268_v22 = vadd.f32 %v267_v63, %v266_v12  ;;  %v319_v23 = vadd.f32 %v318_v20, %v317_v10  ;;  %v857_v53 = vadd.f32 %v250_v8, %v186_v41 }
  0xd8   :  { %v842_v40 = vadd.f32 %v766_v27, %v180_v28  ;;  %v328_v27 = vsel %vm253_vm1, %v302_v35, 0.0 }
  0xd9   :  { %v270_v29 = vadd.f32 %v269_v26, %v268_v22  ;;  %v321_v30 = vadd.f32 %v320_v25, %v319_v23  ;;  %v306_v9 = vmul.f32 %v857_v53, %v857_v53  ;;  %v283_v10 = vsel %vm253_vm1, %v857_v53, 0.0 }
  0xda   :  { %v304_v52 = vmul.f32 %v842_v40, %v842_v40 }
  0xdb   :  { %v272_v36 = vadd.f32 %v271_v33, %v270_v29  ;;  %v323_v37 = vadd.f32 %v322_v1, %v321_v30  ;;  %v336_v19 = vsel %vm253_vm1, %v306_v9, 0.0 }
  0xdc   :  { %v332_v7 = vsel %vm253_vm1, %v304_v52, 0.0 }
  0xdd   :  { %v325_v42 = vadd.f32 %v324_v39, %v323_v37  ;;  %v274_v43 = vadd.f32 %v273_v38, %v272_v36  ;;  %v182_v44 = vpop.f32.mrf.mxu2 }
  0xde   :  { %v183_v49 = vadd.f32 %v736_v3, %v182_v44  ;;  %v279_v3 = vsel %vm253_vm1, %v842_v40, 0.0 }
  0xdf   :  { %v276_v50 = vadd.f32 %v275_v46, %v274_v43  ;;  %v327_v51 = vadd.f32 %v326_v45, %v325_v42 }
  0xe0   :  { %v859_v54 = vadd.f32 %v247_v6, %v183_v49 }
  0xe1   :  { %v278_v55 = vadd.f32 %v277_v57, %v276_v50  ;;  %v329_v56 = vadd.f32 %v328_v27, %v327_v51 }
  0xe2   :  { %v305_v62 = vmul.f32 %v859_v54, %v859_v54  ;;  %v281_v6 = vsel %vm253_vm1, %v859_v54, 0.0 }
  0xe3   :  { %v280_v2 = vadd.f32 %v279_v3, %v278_v55  ;;  %v331_v4 = vadd.f32 %v330_v59, %v329_v56 }
  0xe4   :  { %v334_v12 = vsel %vm253_vm1, %v305_v62, 0.0 }
  0xe5   :  { %v333_v5 = vadd.f32 %v332_v7, %v331_v4  ;;  %v282_v63 = vadd.f32 %v281_v6, %v280_v2 }
  0xe7   :  { %v284_v15 = vadd.f32 %v283_v10, %v282_v63  ;;  %v335_v17 = vadd.f32 %v334_v12, %v333_v5 }
  0xe9   :  { %v285_v20 = vrot.slane %v284_v15, 4  ;;  %v337_v22 = vadd.f32 %v336_v19, %v335_v17 }
  0xeb   :  { %v286_v23 = vadd.f32 %v285_v20, %v284_v15  ;;  %v338_v25 = vrot.slane %v337_v22, 4 }
  0xed   :  { %v287_v26 = vrot.slane %v286_v23, 2  ;;  %v339_v61 = vadd.f32 %v338_v25, %v337_v22 }
  0xef   :  { %v288_v28 = vadd.f32 %v287_v26, %v286_v23  ;;  %v340_v29 = vrot.slane %v339_v61, 2 }
  0xf1   :  { %v289_v30 = vrot.slane %v288_v28, 1  ;;  %v341_v32 = vadd.f32 %v340_v29, %v339_v61 }
  0xf3   :  { %v290_v1 = vadd.f32 %v289_v30, %v288_v28  ;;  %v342_v33 = vrot.slane %v341_v32, 1 }
  0xf5   :  { %v343_v35 = vadd.f32 %v342_v33, %v341_v32  ;;  %v875_v36 = vmul.f32 0.0078125, %v290_v1 }
  0xf7   :  { %v345_v37 = vmul.f32 0.0078125, %v343_v35  ;;  %v346_v38 = vmul.f32 %v875_v36, %v875_v36  ;;  %v362_v51 = vsub.f32 %v746_v13, %v875_v36  ;;  %v363_v57 = vsub.f32 %v743_v11, %v875_v36  ;;  %v520_v11 = vld [vmem:[%s984_s4] ss:$0 sm:$0xff] }
  0xf8   :  { %v364_v52 = vsub.f32 %v748_v14, %v875_v36  ;;  %v365_v56 = vsub.f32 %v753_v18, %v875_v36  ;;  %v366_v59 = vsub.f32 %v761_v24, %v875_v36  ;;  %v367_v3 = vsub.f32 %v773_v31, %v875_v36 }
  0xf9   :  { %v347_v39 = vsub.f32 %v345_v37, %v346_v38  ;;  %v368_v13 = vsub.f32 %v799_v60, %v875_v36  ;;  %v369_v18 = vsub.f32 %v788_v48, %v875_v36  ;;  %v370_v24 = vsub.f32 %v796_v58, %v875_v36 }
  0xfa   :  { %v371_v31 = vsub.f32 %v804_v0, %v875_v36  ;;  %v372_v6 = vsub.f32 %v813_v16, %v875_v36  ;;  %v373_v5 = vsub.f32 %v820_v21, %v875_v36  ;;  %v374_v48 = vsub.f32 %v834_v34, %v875_v36 }
  0xfb   :  { %v348_v41 = vmax.f32 %v347_v39, 0.0  ;;  %v375_v0 = vsub.f32 %v842_v40, %v875_v36  ;;  %v376_v16 = vsub.f32 %v859_v54, %v875_v36  ;;  %v377_v21 = vsub.f32 %v857_v53, %v875_v36 }
  0xfd   :  { %v350_v42 = vadd.f32 1e-05, %v348_v41 }
  0xff   :  { %521 = vrsqrt.f32 %v350_v42  ;;  %vm357_vm3 = vweird.f32 %v350_v42 }
 0x105   :  { %v522_v43 = vpop.eup %521 }
 0x106   :  { %v352_v8 = vmul.f32 %v522_v43, %v350_v42  ;;  %vm358_vm2 = vweird.f32 %v522_v43 }
 0x107   :  { %vm359_vm4 = vmor %vm357_vm3, %vm358_vm2 }
 0x108   :  { %v353_v44 = vmul.f32 %v522_v43, %v352_v8 }
 0x10a   :  { %v354_v45 = vmul.f32 0.5, %v353_v44 }
 0x10c   :  { %v355_v46 = vsub.f32 1.5, %v354_v45 }
 0x10e   :  { %v356_v49 = vmul.f32 %v522_v43, %v355_v46 }
 0x110   :  { %v360_v27 = vsel %vm359_vm4, %v522_v43, %v356_v49 }
 0x111   :  { %v361_v50 = vmul.f32 %v360_v27, %v349_v47 }
 0x113   :  { %v379_v55 = vperm.slane %v361_v50, 0 }
 0x115   :  { %v381_v62 = vmul.f32 %v379_v55, %v362_v51  ;;  %v382_v2 = vmul.f32 %v379_v55, %v363_v57  ;;  %v383_v4 = vmul.f32 %v379_v55, %v364_v52  ;;  %v384_v14 = vmul.f32 %v379_v55, %v365_v56 }
 0x116   :  { %v385_v7 = vmul.f32 %v379_v55, %v366_v59  ;;  %v386_v9 = vmul.f32 %v379_v55, %v367_v3  ;;  %v387_v63 = vmul.f32 %v379_v55, %v368_v13  ;;  %v388_v60 = vmul.f32 %v379_v55, %v369_v18 }
 0x117   :  { %v401_v10 = vadd.f32 %v520_v11, %v381_v62  ;;  %v402_v12 = vadd.f32 %v520_v11, %v382_v2  ;;  %v403_v15 = vadd.f32 %v520_v11, %v383_v4  ;;  %v389_v17 = vmul.f32 %v379_v55, %v370_v24 }
 0x118   :  { %v404_v58 = vadd.f32 %v520_v11, %v384_v14  ;;  %v405_v19 = vadd.f32 %v520_v11, %v385_v7  ;;  %v390_v20 = vmul.f32 %v379_v55, %v371_v31  ;;  %v406_v22 = vadd.f32 %v520_v11, %v386_v9 }
 0x119   :  { %v391_v23 = vmul.f32 %v379_v55, %v372_v6  ;;  %v392_v25 = vmul.f32 %v379_v55, %v373_v5  ;;  %v407_v26 = vadd.f32 %v520_v11, %v387_v63  ;;  %v408_v61 = vadd.f32 %v520_v11, %v388_v60 }
 0x11a   :  { %v417_v28 = vmul.f32 0.1, %v401_v10  ;;  %v418_v34 = vmul.f32 0.1, %v402_v12  ;;  %v419_v29 = vmul.f32 0.1, %v403_v15  ;;  %v393_v30 = vmul.f32 %v379_v55, %v374_v48 }
 0x11b   :  { %v409_v32 = vadd.f32 %v520_v11, %v389_v17  ;;  %v420_v1 = vmul.f32 0.1, %v404_v58  ;;  %v421_v33 = vmul.f32 0.1, %v405_v19  ;;  %v394_v40 = vmul.f32 %v379_v55, %v375_v0 }
 0x11c   :  { %v410_v35 = vadd.f32 %v520_v11, %v390_v20  ;;  %v422_v37 = vmul.f32 0.1, %v406_v22  ;;  %v433_v54 = vmax.f32 %v401_v10, %v417_v28  ;;  %v395_v38 = vmul.f32 %v379_v55, %v376_v16 }
 0x11d   :  { %v411_v39 = vadd.f32 %v520_v11, %v391_v23  ;;  %v423_v41 = vmul.f32 0.1, %v407_v26  ;;  %v434_v42 = vmax.f32 %v402_v12, %v418_v34  ;;  %v396_v53 = vmul.f32 %v379_v55, %v377_v21 }
 0x11e   :  { %v412_v36 = vadd.f32 %v520_v11, %v392_v25  ;;  %v424_v43 = vmul.f32 0.1, %v408_v61  ;;  %v435_v8 = vmax.f32 %v403_v15, %v419_v29  ;;  %v413_v44 = vadd.f32 %v520_v11, %v393_v30  ;;  %449 = vst.msk [vmem:[%s986_s5] sm:$0xff] %vm253_vm1, %v433_v54 }
 0x11f   :  { %v425_v45 = vmul.f32 0.1, %v409_v32  ;;  %v436_v46 = vmax.f32 %v404_v58, %v420_v1  ;;  %v437_v47 = vmax.f32 %v405_v19, %v421_v33  ;;  %v414_v49 = vadd.f32 %v520_v11, %v394_v40  ;;  %450 = vst.msk [vmem:[%s986_s5 + $0x8] sm:$0xff] %vm253_vm1, %v434_v42 }
 0x120   :  { %v426_v27 = vmul.f32 0.1, %v410_v35  ;;  %v438_v50 = vmax.f32 %v406_v22, %v422_v37  ;;  %v415_v51 = vadd.f32 %v520_v11, %v395_v38  ;;  %v427_v57 = vmul.f32 0.1, %v411_v39  ;;  %451 = vst.msk [vmem:[%s986_s5 + $0x10] sm:$0xff] %vm253_vm1, %v435_v8 }
 0x121   :  { %v439_v52 = vmax.f32 %v407_v26, %v423_v41  ;;  %v416_v55 = vadd.f32 %v520_v11, %v396_v53  ;;  %v428_v56 = vmul.f32 0.1, %v412_v36  ;;  %v440_v59 = vmax.f32 %v408_v61, %v424_v43  ;;  %452 = vst.msk [vmem:[%s986_s5 + $0x18] sm:$0xff] %vm253_vm1, %v436_v46 }
 0x122   :  { %v429_v3 = vmul.f32 0.1, %v413_v44  ;;  %v441_v62 = vmax.f32 %v409_v32, %v425_v45  ;;  %453 = vst.msk [vmem:[%s986_s5 + $0x20] sm:$0xff] %vm253_vm1, %v437_v47  ;;  %v430_v2 = vmul.f32 0.1, %v414_v49  ;;  %v442_v4 = vmax.f32 %v410_v35, %v426_v27 }
 0x123   :  { %454 = vst.msk [vmem:[%s986_s5 + $0x28] sm:$0xff] %vm253_vm1, %v438_v50  ;;  %v431_v11 = vmul.f32 0.1, %v415_v51  ;;  %v443_v13 = vmax.f32 %v411_v39, %v427_v57  ;;  %v432_v14 = vmul.f32 0.1, %v416_v55  ;;  %v444_v7 = vmax.f32 %v412_v36, %v428_v56 }
 0x124   :  { %455 = vst.msk [vmem:[%s986_s5 + $0x30] sm:$0xff] %vm253_vm1, %v439_v52  ;;  %v445_v18 = vmax.f32 %v413_v44, %v429_v3  ;;  %v446_v24 = vmax.f32 %v414_v49, %v430_v2 }
 0x125   :  { %456 = vst.msk [vmem:[%s986_s5 + $0x38] sm:$0xff] %vm253_vm1, %v440_v59  ;;  %v447_v9 = vmax.f32 %v415_v51, %v431_v11  ;;  %v448_v31 = vmax.f32 %v416_v55, %v432_v14 }
 0x126   :  { %457 = vst.msk [vmem:[%s986_s5 + $0x40] sm:$0xff] %vm253_vm1, %v441_v62 }
 0x127   :  { %458 = vst.msk [vmem:[%s986_s5 + $0x48] sm:$0xff] %vm253_vm1, %v442_v4 }
 0x128   :  { %459 = vst.msk [vmem:[%s986_s5 + $0x50] sm:$0xff] %vm253_vm1, %v443_v13 }
 0x129   :  { %460 = vst.msk [vmem:[%s986_s5 + $0x58] sm:$0xff] %vm253_vm1, %v444_v7 }
 0x12a   :  { %461 = vst.msk [vmem:[%s986_s5 + $0x60] sm:$0xff] %vm253_vm1, %v445_v18 }
 0x12b   :  { %462 = vst.msk [vmem:[%s986_s5 + $0x68] sm:$0xff] %vm253_vm1, %v446_v24 }
 0x12c   :  { %463 = vst.msk [vmem:[%s986_s5 + $0x70] sm:$0xff] %vm253_vm1, %v447_v9 }
 0x12d   :  { %464 = vst.msk [vmem:[%s986_s5 + $0x78] sm:$0xff] %vm253_vm1, %v448_v31 }

// kernel: latent_state_encoder_flow_forward.8
= control target key start
LH: loop header
LB: loop body
LE: loop exit
PB: predicated region body
PF: predicated region fallthrough
CT: control target
= control target key end

     0   :  { %vm66_vm0 = vcmask 261120   ;;  %vm170_vm1 = vcmask 64512   ;;  %s395_s1 = inlined_call_operand.vmem [shape: f32[288,8], index: 1, kind: input, shape index: {}]   ;;  %s396_s0 = inlined_call_operand.vmem [shape: f32[32,288], index: 0, kind: input, shape index: {}]   ;;  %s397_s2 = inlined_call_operand.vmem [shape: f32[1,8], index: 2, kind: input, shape index: {}]   ;;  %s398_s3 = inlined_call_operand.vmem [shape: f32[32,8], index: 3, kind: output, shape index: {}]  }
   0x1   :  { %v41_v0 = vld [vmem:[%s395_s1 + $0x78] sm:$0xff]  ;;  %v40_v2 = vld [vmem:[%s395_s1 + $0x70] sm:$0xff]  ;;  %v39_v4 = vld [vmem:[%s395_s1 + $0x68] sm:$0xff] }
   0x2   :  { %v57_v1 = vld [vmem:[%s395_s1 + $0xf8] sm:$0xff]  ;;  %79 = vmatpush.msra.mxu0 %v41_v0  ;;  %183 = vmatpush.msra.mxu3 %v41_v0  ;;  %v56_v3 = vld [vmem:[%s395_s1 + $0xf0] sm:$0xff]  ;;  %v55_v5 = vld [vmem:[%s395_s1 + $0xe8] sm:$0xff] }
   0x3   :  { %108 = vmatpush.msra.mxu1 %v57_v1  ;;  %v38_v6 = vld [vmem:[%s395_s1 + $0x60] sm:$0xff]  ;;  %v37_v8 = vld [vmem:[%s395_s1 + $0x58] sm:$0xff]  ;;  %v36_v11 = vld [vmem:[%s395_s1 + $0x50] sm:$0xff] }
   0x4   :  { %80 = vmatpush.msra.mxu0 %v40_v2  ;;  %184 = vmatpush.msra.mxu3 %v40_v2  ;;  %v54_v7 = vld [vmem:[%s395_s1 + $0xe0] sm:$0xff]  ;;  %v53_v9 = vld [vmem:[%s395_s1 + $0xd8] sm:$0xff]  ;;  %v60_v12 = vld [vmem:[%s395_s1 + $0x110] sm:$0xff] }
   0x5   :  { %109 = vmatpush.msra.mxu1 %v56_v3  ;;  %v61_v10 = vld [vmem:[%s395_s1 + $0x118] sm:$0xff]  ;;  %v52_v13 = vld [vmem:[%s395_s1 + $0xd0] sm:$0xff]  ;;  %v59_v14 = vld [vmem:[%s395_s1 + $0x108] sm:$0xff] }
   0x6   :  { %81 = vmatpush.msra.mxu0 %v39_v4  ;;  %185 = vmatpush.msra.mxu3 %v39_v4  ;;  %v35_v15 = vld [vmem:[%s395_s1 + $0x48] sm:$0xff]  ;;  %v58_v17 = vld [vmem:[%s395_s1 + $0x100] sm:$0xff]  ;;  %v16_v20 = vld [vmem:[%s396_s0 + $0x10] sm:$0xff] }
   0x7   :  { %110 = vmatpush.msra.mxu1 %v55_v5  ;;  %149 = vmatpush.msra.mxu2 %v61_v10  ;;  %v51_v16 = vld [vmem:[%s395_s1 + $0xc8] sm:$0xff]  ;;  %v34_v18 = vld [vmem:[%s395_s1 + $0x40] sm:$0xff]  ;;  %v33_v21 = vld [vmem:[%s395_s1 + $0x38] sm:$0xff] }
   0x8   :  { %82 = vmatpush.msra.mxu0 %v38_v6  ;;  %186 = vmatpush.msra.mxu3 %v38_v6  ;;  %v50_v19 = vld [vmem:[%s395_s1 + $0xc0] sm:$0xff]  ;;  %v49_v22 = vld [vmem:[%s395_s1 + $0xb8] sm:$0xff]  ;;  %v32_v23 = vld [vmem:[%s395_s1 + $0x30] sm:$0xff] }
   0x9   :  { %111 = vmatpush.msra.mxu1 %v54_v7  ;;  %150 = vmatpush.msra.mxu2 %v60_v12  ;;  %v48_v24 = vld [vmem:[%s395_s1 + $0xb0] sm:$0xff]  ;;  %v31_v25 = vld [vmem:[%s395_s1 + $0x28] sm:$0xff]  ;;  %v30_v27 = vld [vmem:[%s395_s1 + $0x20] sm:$0xff] }
   0xa   :  { %83 = vmatpush.msra.mxu0 %v37_v8  ;;  %187 = vmatpush.msra.mxu3 %v37_v8  ;;  %v47_v26 = vld [vmem:[%s395_s1 + $0xa8] sm:$0xff]  ;;  %v46_v28 = vld [vmem:[%s395_s1 + $0xa0] sm:$0xff]  ;;  %v29_v30 = vld [vmem:[%s395_s1 + $0x18] sm:$0xff] }
   0xb   :  { %112 = vmatpush.msra.mxu1 %v53_v9  ;;  %151 = vmatpush.msra.mxu2 %v59_v14  ;;  %v19_v29 = vld [vmem:[%s396_s0 + $0x28] sm:$0xff]  ;;  %v45_v31 = vld [vmem:[%s395_s1 + $0x98] sm:$0xff]  ;;  %v28_v32 = vld [vmem:[%s395_s1 + $0x10] sm:$0xff] }
   0xc   :  { %84 = vmatpush.msra.mxu0 %v36_v11  ;;  %188 = vmatpush.msra.mxu3 %v36_v11  ;;  %v44_v33 = vld [vmem:[%s395_s1 + $0x90] sm:$0xff]  ;;  %v27_v34 = vld [vmem:[%s395_s1 + $0x8] sm:$0xff]  ;;  %v26_v36 = vld [vmem:[%s395_s1] sm:$0xff] }
   0xd   :  { %113 = vmatpush.msra.mxu1 %v52_v13  ;;  %152 = vmatpush.msra.mxu2 %v58_v17  ;;  %v43_v35 = vld [vmem:[%s395_s1 + $0x88] sm:$0xff]  ;;  %v42_v37 = vld [vmem:[%s395_s1 + $0x80] sm:$0xff]  ;;  %v17_v39 = vld [vmem:[%s396_s0 + $0x18] sm:$0xff] }
   0xe   :  { %85 = vmatpush.msra.mxu0 %v35_v15  ;;  %189 = vmatpush.msra.mxu3 %v35_v15  ;;  %v14_v38 = vld [vmem:[%s396_s0] sm:$0xff]  ;;  %v15_v40 = vld [vmem:[%s396_s0 + $0x8] sm:$0xff]  ;;  %v20_v42 = vld [vmem:[%s396_s0 + $0x30] sm:$0xff] }
   0xf   :  { %114 = vmatpush.msra.mxu1 %v51_v16  ;;  %179 = vmatmul.msk.f32.vlgmr.msra.gmra.mxu2 %vm66_vm0, %v16_v20  ;;  %v22_v41 = vld [vmem:[%s396_s0 + $0x40] sm:$0xff]  ;;  %v25_v44 = vld [vmem:[%s396_s0 + $0x58] sm:$0xff]  ;;  %v23_v45 = vld [vmem:[%s396_s0 + $0x48] sm:$0xff] }
  0x10   :  { %86 = vmatpush.msra.mxu0 %v34_v18  ;;  %190 = vmatpush.msra.mxu3 %v34_v18  ;;  %v18_v43 = vld [vmem:[%s396_s0 + $0x20] sm:$0xff]  ;;  %v21_v46 = vld [vmem:[%s396_s0 + $0x38] sm:$0xff]  ;;  %v24_v47 = vld [vmem:[%s396_s0 + $0x50] sm:$0xff] }
  0x11   :  { %115 = vmatpush.msra.mxu1 %v50_v19  ;;  %v199_v49 = vld [vmem:[%s397_s2] ss:$0 sm:$0xff] }
  0x12   :  { %87 = vmatpush.msra.mxu0 %v33_v21  ;;  %191 = vmatpush.msra.mxu3 %v33_v21 }
  0x13   :  { %116 = vmatpush.msra.mxu1 %v49_v22 }
  0x14   :  { %88 = vmatpush.msra.mxu0 %v32_v23  ;;  %192 = vmatpush.msra.mxu3 %v32_v23 }
  0x15   :  { %117 = vmatpush.msra.mxu1 %v48_v24 }
  0x16   :  { %89 = vmatpush.msra.mxu0 %v31_v25  ;;  %193 = vmatpush.msra.mxu3 %v31_v25 }
  0x17   :  { %118 = vmatpush.msra.mxu1 %v47_v26  ;;  %180 = vmatmul.msk.f32.gmra.mxu2 %vm66_vm0, %v19_v29 }
  0x18   :  { %90 = vmatpush.msra.mxu0 %v30_v27  ;;  %194 = vmatpush.msra.mxu3 %v30_v27 }
  0x19   :  { %119 = vmatpush.msra.mxu1 %v46_v28 }
  0x1a   :  { %91 = vmatpush.msra.mxu0 %v29_v30  ;;  %195 = vmatpush.msra.mxu3 %v29_v30 }
  0x1b   :  { %120 = vmatpush.msra.mxu1 %v45_v31 }
  0x1c   :  { %92 = vmatpush.msra.mxu0 %v28_v32  ;;  %196 = vmatpush.msra.mxu3 %v28_v32 }
  0x1d   :  { %121 = vmatpush.msra.mxu1 %v44_v33 }
  0x1e   :  { %93 = vmatpush.msra.mxu0 %v27_v34  ;;  %197 = vmatpush.msra.mxu3 %v27_v34 }
  0x1f   :  { %122 = vmatpush.msra.mxu1 %v43_v35  ;;  %181 = vmatmul.msk.f32.gmra.mxu2 %vm66_vm0, %v22_v41 }
  0x20   :  { %94 = vmatpush.msra.mxu0 %v26_v36  ;;  %198 = vmatpush.msra.mxu3 %v26_v36 }
  0x21   :  { %123 = vmatpush.msra.mxu1 %v42_v37  ;;  %95 = vmatmul.f32.vlgmr.msra.gmra.mxu0 %v14_v38 }
  0x22   :  { %98 = vmatmul.f32.vlgmr.msra.gmra.mxu3 %v17_v39  ;;  %124 = vmatmul.f32.vlgmr.msra.gmra.mxu1 %v15_v40 }
  0x27   :  { %182 = vmatmul.msk.f32.gmra.mxu2 %vm66_vm0, %v25_v44 }
  0x2a   :  { %101 = vmatmul.f32.gmra.mxu3 %v20_v42  ;;  %127 = vmatmul.f32.gmra.mxu1 %v18_v43 }
  0x32   :  { %104 = vmatmul.f32.gmra.mxu3 %v23_v45  ;;  %130 = vmatmul.f32.gmra.mxu1 %v21_v46 }
  0x3a   :  { %133 = vmatmul.f32.gmra.mxu1 %v24_v47 }
  0x92   :  { %v154_v48 = vpop.f32.mrf.mxu2 }
  0x9a   :  { %v157_v55 = vpop.f32.mrf.mxu2 }
  0x9e   :  { %v96_v50 = vpop.f32.mrf.mxu0 }
  0x9f   :  { %v97_v51 = vadd.f32 %v199_v49, %v96_v50  ;;  %v125_v52 = vpop.f32.mrf.mxu1 }
  0xa1   :  { %v126_v53 = vadd.f32 %v125_v52, %v97_v51 }
  0xa2   :  { %v160_v63 = vpop.f32.mrf.mxu2 }
  0xa3   :  { %v155_v54 = vadd.f32 %v154_v48, %v126_v53 }
  0xa5   :  { %200 = vtanh.f32 %v155_v54  ;;  %v99_v56 = vpop.f32.mrf.mxu3 }
  0xa6   :  { %v100_v57 = vadd.f32 %v199_v49, %v99_v56 }
  0xa7   :  { %v128_v58 = vpop.f32.mrf.mxu1 }
  0xa8   :  { %v129_v59 = vadd.f32 %v128_v58, %v100_v57 }
  0xaa   :  { %v158_v60 = vadd.f32 %v157_v55, %v129_v59  ;;  %v163_v8 = vpop.f32.mrf.mxu2 }
  0xab   :  { %v201_v61 = vpop.eup %200 }
  0xac   :  { %171 = vst.msk [vmem:[%s398_s3] sm:$0xff] %vm170_vm1, %v201_v61  ;;  %202 = vtanh.f32 %v158_v60 }
  0xad   :  { %v102_v62 = vpop.f32.mrf.mxu3 }
  0xae   :  { %v103_v0 = vadd.f32 %v199_v49, %v102_v62 }
  0xaf   :  { %v131_v1 = vpop.f32.mrf.mxu1 }
  0xb0   :  { %v132_v2 = vadd.f32 %v131_v1, %v103_v0 }
  0xb2   :  { %v203_v3 = vpop.eup %202  ;;  %v161_v4 = vadd.f32 %v160_v63, %v132_v2 }
  0xb3   :  { %172 = vst.msk [vmem:[%s398_s3 + $0x8] sm:$0xff] %vm170_vm1, %v203_v3 }
  0xb4   :  { %204 = vtanh.f32 %v161_v4 }
  0xb5   :  { %v105_v5 = vpop.f32.mrf.mxu3 }
  0xb6   :  { %v106_v6 = vadd.f32 %v199_v49, %v105_v5 }
  0xb7   :  { %v134_v7 = vpop.f32.mrf.mxu1 }
  0xb8   :  { %v135_v9 = vadd.f32 %v134_v7, %v106_v6 }
  0xba   :  { %v205_v10 = vpop.eup %204  ;;  %v164_v11 = vadd.f32 %v163_v8, %v135_v9 }
  0xbb   :  { %173 = vst.msk [vmem:[%s398_s3 + $0x10] sm:$0xff] %vm170_vm1, %v205_v10 }
  0xbc   :  { %206 = vtanh.f32 %v164_v11 }
  0xc2   :  { %v207_v12 = vpop.eup %206 }
  0xc3   :  { %174 = vst.msk [vmem:[%s398_s3 + $0x18] sm:$0xff] %vm170_vm1, %v207_v12 }

// kernel: latent_state_encoder_flow_forward.9
= control target key start
LH: loop header
LB: loop body
LE: loop exit
PB: predicated region body
PF: predicated region fallthrough
CT: control target
= control target key end

     0   :  { %18 = vsyncpa [#allocation3], 0  ;;  %s589_s0 = inlined_call_operand.vmem [shape: f32[2,128], index: 0, kind: input, shape index: {}]   ;;  %s590_s1 = inlined_call_operand.vmem [shape: f32[2,16], index: 1, kind: input, shape index: {}]   ;;  %s591_s2 = inlined_call_operand.vmem [shape: f32[128,64], index: 2, kind: input, shape index: {}]   ;;  %s592_s3 = inlined_call_operand.vmem [shape: f32[1,64], index: 3, kind: input, shape index: {}]   ;;  %s593_s4 = inlined_call_operand.vmem [shape: f32[64,16], index: 4, kind: input, shape index: {}]   ;;  %s594_s5 = inlined_call_operand.vmem [shape: f32[1,16], index: 5, kind: input, shape index: {}]   ;;  %s595_s6 = inlined_call_operand.vmem [shape: f32[128,64], index: 6, kind: input, shape index: {}]   ;;  %s596_s7 = inlined_call_operand.vmem [shape: f32[1,64], index: 7, kind: input, shape index: {}]   ;;  %s597_s8 = inlined_call_operand.vmem [shape: f32[64,16], index: 8, kind: input, shape index: {}]   ;;  %s598_s9 = inlined_call_operand.vmem [shape: f32[1,16], index: 9, kind: input, shape index: {}]   ;;  %s599_s10 = inlined_call_operand.hbm [shape: f32[2,16], index: 10, kind: output, shape index: {0}]   ;;  %s600_s11 = inlined_call_operand.hbm [shape: f32[2,16], index: 11, kind: output, shape index: {1}]   ;;  %s601_s12 = inlined_call_operand.hbm [shape: f32[2,16], index: 12, kind: output, shape index: {2}]  }
   0x1   :  { %v134_v0 = vld [vmem:[%s595_s6 + $0x78] sm:$0xff]  ;;  %v133_v1 = vld [vmem:[%s595_s6 + $0x70] sm:$0xff]  ;;  %v132_v2 = vld [vmem:[%s595_s6 + $0x68] sm:$0xff] }
   0x2   :  { %139 = vmatpush.msra.mxu2 %v134_v0  ;;  %v131_v3 = vld [vmem:[%s595_s6 + $0x60] sm:$0xff]  ;;  %v56_v4 = vld [vmem:[%s591_s2 + $0x78] sm:$0xff]  ;;  %v55_v6 = vld [vmem:[%s591_s2 + $0x70] sm:$0xff] }
   0x3   :  { %v130_v5 = vld [vmem:[%s595_s6 + $0x58] sm:$0xff]  ;;  %61 = vmatpush.msra.mxu0 %v56_v4  ;;  %v54_v7 = vld [vmem:[%s591_s2 + $0x68] sm:$0xff]  ;;  %v129_v8 = vld [vmem:[%s595_s6 + $0x50] sm:$0xff] }
   0x4   :  { %140 = vmatpush.msra.mxu2 %v133_v1  ;;  %v53_v9 = vld [vmem:[%s591_s2 + $0x60] sm:$0xff]  ;;  %v128_v10 = vld [vmem:[%s595_s6 + $0x48] sm:$0xff]  ;;  %v52_v12 = vld [vmem:[%s591_s2 + $0x58] sm:$0xff] }
   0x5   :  { %62 = vmatpush.msra.mxu0 %v55_v6  ;;  %v127_v11 = vld [vmem:[%s595_s6 + $0x40] sm:$0xff]  ;;  %v168_v13 = vld [vmem:[%s597_s8 + $0x38] sm:$0xff]  ;;  %v167_v14 = vld [vmem:[%s597_s8 + $0x30] sm:$0xff] }
   0x6   :  { %141 = vmatpush.msra.mxu2 %v132_v2  ;;  %v51_v15 = vld [vmem:[%s591_s2 + $0x50] sm:$0xff]  ;;  %184 = vmatpush.msra.mxu3 %v168_v13  ;;  %v166_v16 = vld [vmem:[%s597_s8 + $0x28] sm:$0xff]  ;;  %v126_v17 = vld [vmem:[%s595_s6 + $0x38] sm:$0xff] }
   0x7   :  { %63 = vmatpush.msra.mxu0 %v54_v7 }
   0x8   :  { %142 = vmatpush.msra.mxu2 %v131_v3  ;;  %185 = vmatpush.msra.mxu3 %v167_v14 }
   0x9   :  { %64 = vmatpush.msra.mxu0 %v53_v9 }
   0xa   :  { %143 = vmatpush.msra.mxu2 %v130_v5 }
   0xb   :  { %65 = vmatpush.msra.mxu0 %v52_v12 }
   0xc   :  { %144 = vmatpush.msra.mxu2 %v129_v8 }
   0xe   :  { %145 = vmatpush.msra.mxu2 %v128_v10 }
   0xf   :  { %19 = vsyncpa [#allocation5], 0  ;;  %v50_v18 = vld [vmem:[%s591_s2 + $0x48] sm:$0xff]  ;;  %v165_v19 = vld [vmem:[%s597_s8 + $0x20] sm:$0xff]  ;;  %66 = vmatpush.msra.mxu0 %v51_v15  ;;  %186 = vmatpush.msra.mxu3 %v166_v16  ;;  %vm95_vm0 = vcmask 523264   ;;  %s218_s29 = sshll.u32 %s599_s10, 4  ;;  %s219_s29 = int_to_ptr.hbm [resolvable:$true] %s218_s29 }
  0x10   :  { %146 = vmatpush.msra.mxu2 %v127_v11  ;;  %v125_v20 = vld [vmem:[%s595_s6 + $0x30] sm:$0xff]  ;;  %v49_v21 = vld [vmem:[%s591_s2 + $0x40] sm:$0xff]  ;;  %v124_v22 = vld [vmem:[%s595_s6 + $0x28] sm:$0xff]  ;;  %vm207_vm1 = vcmask 123904   ;;  %s229_s16 = sshll.u32 %s600_s11, 4  ;;  %s240_s11 = sshll.u32 %s601_s12, 4  ;;  %s230_s16 = int_to_ptr.hbm [resolvable:$true] %s229_s16  ;;  %s241_s11 = int_to_ptr.hbm [resolvable:$true] %s240_s11 }
  0x11   :  { %67 = vmatpush.msra.mxu0 %v50_v18  ;;  %187 = vmatpush.msra.mxu3 %v165_v19  ;;  %v48_v23 = vld [vmem:[%s591_s2 + $0x38] sm:$0xff]  ;;  %v123_v24 = vld [vmem:[%s595_s6 + $0x20] sm:$0xff]  ;;  %v47_v25 = vld [vmem:[%s591_s2 + $0x30] sm:$0xff] }
  0x12   :  { %147 = vmatpush.msra.mxu2 %v126_v17  ;;  %v122_v26 = vld [vmem:[%s595_s6 + $0x18] sm:$0xff]  ;;  %v46_v27 = vld [vmem:[%s591_s2 + $0x28] sm:$0xff]  ;;  %v121_v28 = vld [vmem:[%s595_s6 + $0x10] sm:$0xff] }
  0x13   :  { %68 = vmatpush.msra.mxu0 %v49_v21  ;;  %v45_v29 = vld [vmem:[%s591_s2 + $0x20] sm:$0xff]  ;;  %v120_v30 = vld [vmem:[%s595_s6 + $0x8] sm:$0xff]  ;;  %v44_v31 = vld [vmem:[%s591_s2 + $0x18] sm:$0xff] }
  0x14   :  { %148 = vmatpush.msra.mxu2 %v125_v20  ;;  %v119_v32 = vld [vmem:[%s595_s6] sm:$0xff]  ;;  %v43_v34 = vld [vmem:[%s591_s2 + $0x10] sm:$0xff]  ;;  %v42_v35 = vld [vmem:[%s591_s2 + $0x8] sm:$0xff] }
  0x15   :  { %69 = vmatpush.msra.mxu0 %v48_v23  ;;  %v40_v33 = vld [vmem:[%s589_s0] sm:$0x3]  ;;  %v164_v37 = vld [vmem:[%s597_s8 + $0x18] sm:$0xff]  ;;  %v163_v38 = vld [vmem:[%s597_s8 + $0x10] sm:$0xff] }
  0x16   :  { %149 = vmatpush.msra.mxu2 %v124_v22  ;;  %v41_v36 = vld [vmem:[%s591_s2] sm:$0xff]  ;;  %188 = vmatpush.msra.mxu3 %v164_v37  ;;  %v162_v39 = vld [vmem:[%s597_s8 + $0x8] sm:$0xff]  ;;  %v90_v41 = vld [vmem:[%s593_s4 + $0x38] sm:$0xff] }
  0x17   :  { %70 = vmatpush.msra.mxu0 %v47_v25  ;;  %v161_v40 = vld [vmem:[%s597_s8] sm:$0xff]  ;;  %v89_v42 = vld [vmem:[%s593_s4 + $0x30] sm:$0xff]  ;;  %107 = vmatpush.msra.mxu1 %v90_v41  ;;  %v88_v43 = vld [vmem:[%s593_s4 + $0x28] sm:$0xff]  ;;  %s349_s8 = smov [#allocation6]  }
  0x18   :  { %150 = vmatpush.msra.mxu2 %v123_v24  ;;  %189 = vmatpush.msra.mxu3 %v163_v38  ;;  %v87_v44 = vld [vmem:[%s593_s4 + $0x20] sm:$0xff]  ;;  %v86_v45 = vld [vmem:[%s593_s4 + $0x18] sm:$0xff]  ;;  %v85_v46 = vld [vmem:[%s593_s4 + $0x10] sm:$0xff]  ;;  %s238_s18 = sshll.u32 %s349_s8, 4  ;;  %s239_s18 = int_to_ptr.vmem [resolvable:$true] %s238_s18 }
  0x19   :  { %71 = vmatpush.msra.mxu0 %v46_v27  ;;  %108 = vmatpush.msra.mxu1 %v89_v42  ;;  %v84_v47 = vld [vmem:[%s593_s4 + $0x8] sm:$0xff]  ;;  %v83_v48 = vld [vmem:[%s593_s4] sm:$0xff] }
  0x1a   :  { %151 = vmatpush.msra.mxu2 %v122_v26  ;;  %190 = vmatpush.msra.mxu3 %v162_v39  ;;  %v264_v49 = vld [vmem:[%s592_s3] ss:$0 sm:$0xff]  ;;  %s347_s3 = smov [#allocation2]  }
  0x1b   :  { %72 = vmatpush.msra.mxu0 %v45_v29  ;;  %109 = vmatpush.msra.mxu1 %v88_v43  ;;  %v263_v50 = vld [vmem:[%s596_s7] ss:$0 sm:$0xff]  ;;  %s216_s2 = sshll.u32 %s347_s3, 4  ;;  %s217_s2 = int_to_ptr.vmem [resolvable:$true] %s216_s2 }
  0x1c   :  { %152 = vmatpush.msra.mxu2 %v121_v28  ;;  %191 = vmatpush.msra.mxu3 %v161_v40  ;;  %v266_v59 = vld [vmem:[%s594_s5] ss:$0 sm:$0xff]  ;;  %s348_s5 = smov [#allocation4]  }
  0x1d   :  { %73 = vmatpush.msra.mxu0 %v44_v31  ;;  %110 = vmatpush.msra.mxu1 %v87_v44  ;;  %v265_v63 = vld [vmem:[%s598_s9] ss:$0 sm:$0xff]  ;;  %s227_s14 = sshll.u32 %s348_s5, 4  ;;  %s228_s14 = int_to_ptr.vmem [resolvable:$true] %s227_s14 }
  0x1e   :  { %153 = vmatpush.msra.mxu2 %v120_v30  ;;  %v204_v8 = vld [vmem:[%s590_s1] sm:$0x3] }
  0x1f   :  { %74 = vmatpush.msra.mxu0 %v43_v34  ;;  %111 = vmatpush.msra.mxu1 %v86_v45 }
  0x20   :  { %154 = vmatpush.msra.mxu2 %v119_v32 }
  0x21   :  { %155 = vmatmul.f32.vlgmr.msra.gmra.mxu2 %v40_v33  ;;  %75 = vmatpush.msra.mxu0 %v42_v35 }
  0x22   :  { %112 = vmatpush.msra.mxu1 %v85_v46 }
  0x23   :  { %76 = vmatpush.msra.mxu0 %v41_v36 }
  0x24   :  { %77 = vmatmul.f32.vlgmr.msra.gmra.mxu0 %v40_v33  ;;  %113 = vmatpush.msra.mxu1 %v84_v47 }
  0x26   :  { %114 = vmatpush.msra.mxu1 %v83_v48 }
  0xa1   :  { %v78_v51 = vpop.f32.mrf.mxu0 }
  0xa2   :  { %v79_v53 = vadd.f32 %v264_v49, %v78_v51 }
  0xa4   :  { %v156_v52 = vpop.f32.mrf.mxu2  ;;  %v81_v55 = vmul.f32 0.1, %v79_v53 }
  0xa5   :  { %v157_v54 = vadd.f32 %v263_v50, %v156_v52 }
  0xa6   :  { %v82_v57 = vmax.f32 %v79_v53, %v81_v55 }
  0xa7   :  { %v159_v56 = vmul.f32 0.1, %v157_v54 }
  0xa8   :  { %258 = vmatmul.msk.f32.vlgmr.msra.gmra.mxu1 %vm95_vm0, %v82_v57 }
  0xa9   :  { %v160_v58 = vmax.f32 %v157_v54, %v159_v56 }
  0xab   :  { %259 = vmatmul.msk.f32.vlgmr.msra.gmra.mxu3 %vm95_vm0, %v160_v58 }
 0x125   :  { %v116_v60 = vpop.f32.mrf.mxu1 }
 0x126   :  { %v117_v61 = vadd.f32 %v266_v59, %v116_v60 }
 0x128   :  { %v196_v62 = vmax.f32 %v117_v61, -100.0 }
 0x12a   :  { %v197_v0 = vmin.f32 %v196_v62, 85.0 }
 0x12c   :  { %208 = vst.msk [vmem:[#allocation2] sm:$0x3] %vm207_vm1, %v197_v0 }
 0x12d   :  { %221 = dma.vmem_to_hbm [thread:$0]  %s217_s2, 32, %s219_s29, [#allocation3]  }
 0x12e   :  { %v193_v1 = vpop.f32.mrf.mxu3 }
 0x12f   :  { %v194_v2 = vadd.f32 %v265_v63, %v193_v1 }
 0x131   :  { %v198_v3 = vmax.f32 %v194_v2, -100.0 }
 0x133   :  { %v199_v4 = vmin.f32 %v198_v3, 85.0 }
 0x135   :  { %267 = vtanh.f32 %v199_v4 }
 0x13b   :  { %v268_v5 = vpop.eup %267 }
 0x13c   :  { %v201_v6 = vmul.f32 0.5, %v268_v5  ;;  %209 = vst.msk [vmem:[#allocation4] sm:$0x3] %vm207_vm1, %v268_v5 }
 0x13d   :  { %232 = dma.vmem_to_hbm [thread:$0]  %s228_s14, 32, %s230_s16, [#allocation5]  }
 0x13e   :  { %v202_v7 = vmul.f32 1.442695, %v201_v6 }
 0x140   :  { %269 = vpow2.f32 %v202_v7 }
 0x146   :  { %v270_v9 = vpop.eup %269 }
 0x147   :  { %v205_v10 = vmul.f32 %v270_v9, %v204_v8 }
 0x149   :  { %v206_v11 = vadd.f32 %v205_v10, %v197_v0 }
 0x14b   :  { %210 = vst.msk [vmem:[#allocation6] sm:$0x3] %vm207_vm1, %v206_v11 }
 0x14c   :  { %243 = dma.vmem_to_hbm [thread:$0]  %s239_s18, 32, %s241_s11, [#allocation5]  }
 0x14d   :  { %343 = dma.done.wait [#allocation3], 32  }
 0x14e   :  { %344 = vsyncadd [#allocation3], 4294967264 }
 0x14f   :  { %345 = dma.done.wait [#allocation5], 64  }
 0x150   :  { %346 = vsyncadd [#allocation5], 4294967232 }
 0x151   :  { %256 = vsyncpa [#allocation3], 1 }
 0x152   :  { %257 = vsyncpa [#allocation5], 1 }

</bundles_post_ra>
